<compile_context>
chip_gen: v7x
topology: tpu7x:2x2x1
jax: 0.10.0
libtpu: 0.0.40
codegen_flags: <defaults>
</compile_context>

<pallas_src>
import functools

import jax
import jax.numpy as jnp
from jax import lax
from jax.experimental import pallas as pl
from jax.experimental.pallas import tpu as pltpu


def _round_up(x, m):
    return (x + m - 1) // m * m


def _vmem_cap_bytes():
    """Per-generation scoped-VMEM cap (v7x: 64 MiB/core, v5e/v6e: 128 MiB)."""
    try:
        kind = jax.devices()[0].device_kind.lower()
    except Exception:
        return 64 * 2 ** 20
    if "v7" in kind:
        return 56 * 2 ** 20
    return 100 * 2 ** 20


def _double_conv_kernel(xin_ref, w1_ref, b1_ref, w2_ref, b2_ref, w3_ref, b3_ref,
                        out_ref, y2pad_ref, *, H, W, K, P, TH, pre_im2col):
    """One (batch, row-strip) tile per grid step.  Channels-last, Cout padded
    to a multiple of 128 so every intermediate / store is lane-dense.

    xin_ref   : pre_im2col -> (TH+2P, W, Kc)        bf16  conv1 patch strip
                else       -> (TH+4P, W+2P, Cin)    bf16  raw halo'd strip
    w1_ref    : (Kc, Cp)          bf16  conv1 weights (im2col-flattened rows)
    w2_ref    : (Cp, Cp)          bf16  conv2 (1x1)
    w3_ref    : (K, K*Cp, Cp)     bf16  conv3, grouped by dy
    b*_ref    : (1, Cp)           f32
    out_ref   : (TH, W, Cp)       bf16  one output row-strip
    y2pad_ref : (TH+2P, Wsc, Cp)  bf16  VMEM scratch (W-padded conv3 input)
    """
    Cp = out_ref.shape[-1]
    HE = TH + 2 * P                      # rows of y1/y2 needed (strip + conv3 halo)
    hi = pl.program_id(1)

    # ---- conv1 (KxK) as a single MXU matmul over im2col patches -------------
    if pre_im2col:
        Kc = xin_ref.shape[-1]
        p1 = xin_ref[...].reshape(HE * W, Kc)
    else:
        Cin = xin_ref.shape[-1]
        p1 = jnp.concatenate(
            [xin_ref[dy:dy + HE, dx:dx + W, :]
             for dy in range(K) for dx in range(K)],
            axis=-1).reshape(HE * W, K * K * Cin)
    acc1 = jnp.dot(p1, w1_ref[...], preferred_element_type=jnp.float32)
    y1 = jnp.maximum(acc1 + b1_ref[...], 0.0)        # drop1: identity (eval)

    # ---- conv2 (1x1) + ReLU, residual add ------------------------------------
    y2 = jnp.maximum(
        jnp.dot(y1.astype(jnp.bfloat16), w2_ref[...],
                preferred_element_type=jnp.float32) + b2_ref[...],
        0.0)                                         # drop2: identity (eval)
    y2 = y2 + y1                                     # x += identity_full

    # combined residual (identity_full + identity_1) on interior rows only
    ysum = (y1 + y2)[P * W:(P + TH) * W, :]          # (TH*W, Cp)

    # ---- stage y2 for conv3 (zero out-of-image halo rows = conv3 H-padding) --
    g = hi * TH - P + lax.broadcasted_iota(jnp.int32, (HE, W, Cp), 0)
    valid = jnp.logical_and(g >= 0, g < H)
    y2m = jnp.where(valid, y2.reshape(HE, W, Cp), 0.0).astype(jnp.bfloat16)

    if P > 0:
        # Zero only the tiny column borders, every step (scratch persists
        # across grid steps / cores, so a one-time init is not megacore-safe).
        y2pad_ref[:, :P, :] = jnp.zeros((HE, P, Cp), jnp.bfloat16)
        y2pad_ref[:, P + W:P + W + P, :] = jnp.zeros((HE, P, Cp), jnp.bfloat16)
    y2pad_ref[:, P:P + W, :] = y2m

    # ---- conv3 (KxK): one matmul per dy group (contraction K*Cp) -------------
    # Avoids materializing the full (TH*W, K*K*Cp) im2col tensor while keeping
    # the MXU contraction deep.
    # TODO(synk): on v5e the dx taps could come from pltpu.roll of a single
    #             aligned per-dy load instead of K offset reads of the scratch.
    acc3 = None
    for dy in range(K):
        p_dy = jnp.concatenate(
            [y2pad_ref[dy:dy + TH, dx:dx + W, :] for dx in range(K)],
            axis=-1).reshape(TH * W, K * Cp)
        part = jnp.dot(p_dy, w3_ref[dy], preferred_element_type=jnp.float32)
        acc3 = part if acc3 is None else acc3 + part

    y3 = jnp.maximum(acc3 + b3_ref[...], 0.0)        # drop3: identity (eval)
    y3 = y3 + ysum                                   # += identity_full; += identity_1
    out_ref[...] = y3.reshape(TH, W, Cp).astype(out_ref.dtype)


def double_conv_pallas(x_nchw, params, kernel_size, *, strip_height=None,
                       force_in_kernel_im2col=False):
    """Pallas forward. x_nchw: (N, Cin, H, W) f32 -> (N, Cout, H, W) f32."""
    w1, b1, w2, b2, w3, b3 = params
    N, Cin, H, W = x_nchw.shape
    Cout = w1.shape[-1]
    K = kernel_size
    P = K // 2
    f32, bf16 = jnp.float32, jnp.bfloat16

    Cp = _round_up(Cout, 128)               # lane-dense channel count
    dC = Cp - Cout
    Wsc = _round_up(W + 2 * P, 16)          # scratch width (bf16 sublane tile)

    # conv1 strategy: pre-im2col in the wrapper when the patch depth is small
    # (tiny Cin -> HBM duplication is cheap, kernel matmul is lane-dense).
    # TODO(synk): for large Cin the raw path should strip-DMA via pl.ANY
    #             instead of pre-im2col'ing K*K patches in HBM.
    pre_im2col = (not force_in_kernel_im2col) and (K * K * Cin <= 256)
    Kc_raw = K * K * Cin
    Kc = _round_up(Kc_raw, 128) if pre_im2col else Kc_raw

    # ---- pack / pad parameters once (channels -> Cp, conv1 im2col-flattened) -
    w1f = jnp.pad(w1, ((0, 0), (0, 0), (0, 0), (0, dC))).reshape(Kc_raw, Cp)
    w1f = jnp.pad(w1f, ((0, Kc - Kc_raw), (0, 0))).astype(bf16)
    w2f = jnp.pad(w2, ((0, dC), (0, dC))).astype(bf16)
    w3f = jnp.pad(w3, ((0, 0), (0, 0), (0, dC), (0, dC))
                  ).reshape(K, K * Cp, Cp).astype(bf16)
    b1p = jnp.pad(b1, ((0, 0), (0, dC))).astype(f32)
    b2p = jnp.pad(b2, ((0, 0), (0, dC))).astype(f32)
    b3p = jnp.pad(b3, ((0, 0), (0, dC))).astype(f32)
    weight_bytes = ((w1f.size + w2f.size + w3f.size) * 2
                    + (b1p.size + b2p.size + b3p.size) * 4)

    # ---- per-step VMEM footprint model & strip-height choice -----------------
    def step_bytes(th):
        he = th + 2 * P
        in_blk = (he * W * Kc * 2 if pre_im2col
                  else (th + 4 * P) * (W + 2 * P) * Cin * 2)
        out_blk = th * W * Cp * 2                 # bf16 output strip
        scratch = he * Wsc * Cp * 2
        live = (2 * he * W * Cp * 4               # y1, y2 (f32)
                + he * W * Cp * 2                 # y2m (bf16)
                + 2 * th * W * Cp * 4             # ysum, acc3 (f32)
                + th * W * K * Cp * 2)            # one conv3 dy-group (bf16)
        if not pre_im2col:
            live += he * W * Kc_raw * 2           # in-kernel conv1 im2col
        return 2 * in_blk + 2 * out_blk + scratch + live

    vmem_cap = _vmem_cap_bytes()
    if strip_height is not None:
        TH = max(1, min(strip_height, H))
    else:
        budget = max(8 * 2 ** 20, vmem_cap - 2 * weight_bytes - (6 << 20))
        TH = H                                    # largest strip that fits VMEM
        while TH > 1 and step_bytes(TH) > budget:
            TH -= 1
        # keep >= 2 grid steps so both v7x TensorCores get work
        if N * pl.cdiv(H, TH) < 2 and H > 1:
            TH = pl.cdiv(H, 2)

    nH = pl.cdiv(H, TH)
    Hp = nH * TH                                  # ragged last strip -> masked
    HE = TH + 2 * P

    # ---- build the strip-blocked (halo-duplicated) input in HBM --------------
    x = jnp.transpose(x_nchw, (0, 2, 3, 1))       # NHWC, f32
    if pre_im2col:
        xz = jnp.pad(x, ((0, 0), (2 * P, 2 * P + Hp - H), (P, P), (0, 0)))
        patches = jnp.concatenate(                # (N, Hp+2P, W, K*K*Cin)
            [xz[:, dy:dy + Hp + 2 * P, dx:dx + W, :]
             for dy in range(K) for dx in range(K)], axis=-1)
        src = jnp.pad(patches, ((0, 0), (0, 0), (0, 0), (0, Kc - Kc_raw))
                      ).astype(bf16)
        HE_in, W_in, C_in_eff = HE, W, Kc
    else:
        src = jnp.pad(x, ((0, 0), (2 * P, 2 * P + Hp - H), (P, P), (0, 0))
                      ).astype(bf16)
        HE_in, W_in, C_in_eff = TH + 4 * P, W + 2 * P, Cin
    row_idx = jnp.arange(nH)[:, None] * TH + jnp.arange(HE_in)[None, :]
    xin = src[:, row_idx]                         # (N, nH, HE_in, W_in, C_in_eff)

    kernel = functools.partial(_double_conv_kernel, H=H, W=W, K=K, P=P, TH=TH,
                               pre_im2col=pre_im2col)

    flops = 2 * N * nH * (HE * W * Cp * (Kc + Cp) + TH * W * K * K * Cp * Cp)
    bytes_accessed = xin.size * 2 + weight_bytes + N * Hp * W * Cp * 2
    vmem_limit = int(min(vmem_cap,
                         max(32 * 2 ** 20,
                             int(1.25 * (step_bytes(TH) + 2 * weight_bytes))
                             + (4 << 20))))

    def call(single_buffer_weights):
        # constant-index weight/bias blocks: single buffering saves VMEM
        wmode = ({"pipeline_mode": pl.Buffered(1)} if single_buffer_weights
                 else {})
        in_specs = [
            pl.BlockSpec((None, None, HE_in, W_in, C_in_eff),
                         lambda n, h: (n, h, 0, 0, 0)),
            pl.BlockSpec((Kc, Cp), lambda n, h: (0, 0), **wmode),
            pl.BlockSpec((1, Cp), lambda n, h: (0, 0), **wmode),
            pl.BlockSpec((Cp, Cp), lambda n, h: (0, 0), **wmode),
            pl.BlockSpec((1, Cp), lambda n, h: (0, 0), **wmode),
            pl.BlockSpec((K, K * Cp, Cp), lambda n, h: (0, 0, 0), **wmode),
            pl.BlockSpec((1, Cp), lambda n, h: (0, 0), **wmode),
        ]
        return pl.pallas_call(
            kernel,
            out_shape=jax.ShapeDtypeStruct((N, Hp, W, Cp), bf16),
            grid_spec=pltpu.PrefetchScalarGridSpec(
                num_scalar_prefetch=0,
                grid=(N, nH),
                in_specs=in_specs,
                out_specs=pl.BlockSpec((None, TH, W, Cp),
                                       lambda n, h: (n, h, 0, 0)),
                scratch_shapes=[pltpu.VMEM((HE, Wsc, Cp), bf16)]),
            compiler_params=pltpu.CompilerParams(
                dimension_semantics=("parallel", "parallel"),
                vmem_limit_bytes=vmem_limit),
            cost_estimate=pl.CostEstimate(flops=flops, transcendentals=0,
                                          bytes_accessed=bytes_accessed),
        )(xin, w1f, b1p, w2f, b2p, w3f, b3p)

    try:
        out_nhwc = call(True)
    except Exception:
        # graceful fallback if this build rejects pipeline_mode=pl.Buffered(1)
        out_nhwc = call(False)

    # NOTE: a fused consumer should take the lane-dense bf16 NHWC output
    # directly; the slice/cast/transpose below only restores the PyTorch
    # NCHW-f32 interface of the reference module.
    out = out_nhwc[:, :H, :, :Cout].astype(f32)
    return jnp.transpose(out, (0, 3, 1, 2))


def double_conv_ref(x_nchw, params, kernel_size):
    """Pure-JAX reference (lax.conv, f32) for correctness checking."""
    w1, b1, w2, b2, w3, b3 = params
    P = kernel_size // 2
    x = jnp.transpose(x_nchw, (0, 2, 3, 1)).astype(jnp.float32)

    def conv(z, w, pad):
        dn = jax.lax.conv_dimension_numbers(z.shape, w.shape,
                                            ('NHWC', 'HWIO', 'NHWC'))
        return jax.lax.conv_general_dilated(z, w, (1, 1),
                                            [(pad, pad), (pad, pad)],
                                            dimension_numbers=dn)

    y1 = jax.nn.relu(conv(x, w1, P) + b1)
    y2 = jax.nn.relu(conv(y1, w2[None, None], 0) + b2) + y1
    y3 = jax.nn.relu(conv(y2, w3, P) + b3) + y1 + y2
    return jnp.transpose(y3, (0, 3, 1, 2))


def init_params(key, in_channels, out_channels, kernel_size):
    """Deterministic PyTorch-like (kaiming-uniform-ish) init."""
    K = kernel_size
    ks = jax.random.split(key, 6)

    def u(k, shape, fan_in):
        bound = 1.0 / jnp.sqrt(fan_in)
        return jax.random.uniform(k, shape, jnp.float32, -bound, bound)

    fan1 = in_channels * K * K
    fan2 = out_channels
    fan3 = out_channels * K * K
    w1 = u(ks[0], (K, K, in_channels, out_channels), fan1)    # HWIO
    b1 = u(ks[1], (1, out_channels), fan1)
    w2 = u(ks[2], (out_channels, out_channels), fan2)         # 1x1 conv as matmul
    b2 = u(ks[3], (1, out_channels), fan2)
    w3 = u(ks[4], (K, K, out_channels, out_channels), fan3)   # HWIO
    b3 = u(ks[5], (1, out_channels), fan3)
    return (w1, b1, w2, b2, w3, b3)


if __name__ == "__main__":
    key = jax.random.PRNGKey(0)
    kx, kx2, kp = jax.random.split(key, 3)

    N, Cin, Cout, H, W, K = 2, 4, 8, 16, 16, 3
    x = jax.random.normal(kx, (N, Cin, H, W), jnp.float32)    # PyTorch NCHW input
    params = init_params(kp, Cin, Cout, K)

    out = jax.block_until_ready(double_conv_pallas(x, params, K))
    ref = double_conv_ref(x, params, K)
    assert out.shape == (N, Cout, H, W)
    # bf16 matmul operands / bf16 output with f32 accumulation -> relaxed tol
    assert jnp.allclose(out, ref, rtol=5e-2, atol=5e-2), "mismatch vs JAX reference"

    # second config: ragged H (13 % 4 != 0) + the raw-input (in-kernel im2col)
    # path -- exercises multi-strip blocking and halo masking end-to-end.
    x2 = jax.random.normal(kx2, (1, Cin, 13, 16), jnp.float32)
    out2 = jax.block_until_ready(
        double_conv_pallas(x2, params, K, strip_height=4,
                           force_in_kernel_im2col=True))
    ref2 = double_conv_ref(x2, params, K)
    assert out2.shape == (1, Cout, 13, 16)
    assert jnp.allclose(out2, ref2, rtol=5e-2, atol=5e-2), "mismatch (ragged strips)"

    print("KERNEL_OK")
</pallas_src>

<mosaic_0001>
module attributes {stable_mosaic.version = 11 : i64} {
  func.func @_double_conv_kernel(%arg0: i32, %arg1: i32, %arg2: memref<1x1x18x16x128xbf16, #tpu.memory_space<vmem>>, %arg3: memref<128x128xbf16, #tpu.memory_space<vmem>>, %arg4: memref<1x128xf32, #tpu.memory_space<vmem>>, %arg5: memref<128x128xbf16, #tpu.memory_space<vmem>>, %arg6: memref<1x128xf32, #tpu.memory_space<vmem>>, %arg7: memref<3x384x128xbf16, #tpu.memory_space<vmem>>, %arg8: memref<1x128xf32, #tpu.memory_space<vmem>>, %arg9: memref<1x16x16x128xbf16, #tpu.memory_space<vmem>>, %arg10: memref<18x32x128xbf16, #tpu.memory_space<vmem>>) attributes {dimension_semantics = [#tpu.dimension_semantics<parallel>, #tpu.dimension_semantics<parallel>], iteration_bounds = array<i64: 2, 1>, scalar_prefetch = 0 : i64, scratch_operands = 1 : i64, tpu.core_type = #tpu.core_type<tc>, window_params = [{transform_indices = @transform_0, window_bounds = array<i64: 1, 1, 18, 16, 128>}, {pipeline_mode = #tpu.pipeline_mode<synchronous>, transform_indices = @transform_1, window_bounds = array<i64: 128, 128>}, {pipeline_mode = #tpu.pipeline_mode<synchronous>, transform_indices = @transform_2, window_bounds = array<i64: 1, 128>}, {pipeline_mode = #tpu.pipeline_mode<synchronous>, transform_indices = @transform_3, window_bounds = array<i64: 128, 128>}, {pipeline_mode = #tpu.pipeline_mode<synchronous>, transform_indices = @transform_4, window_bounds = array<i64: 1, 128>}, {pipeline_mode = #tpu.pipeline_mode<synchronous>, transform_indices = @transform_5, window_bounds = array<i64: 3, 384, 128>}, {pipeline_mode = #tpu.pipeline_mode<synchronous>, transform_indices = @transform_6, window_bounds = array<i64: 1, 128>}, {transform_indices = @transform_7, window_bounds = array<i64: 1, 16, 16, 128>}]} {
    %c0 = arith.constant 0 : index
    %c0_0 = arith.constant 0 : index
    %c0_1 = arith.constant 0 : index
    %c0_2 = arith.constant 0 : index
    %c0_3 = arith.constant 0 : index
    %0 = vector.load %arg2[%c0, %c0_0, %c0_1, %c0_2, %c0_3] : memref<1x1x18x16x128xbf16, #tpu.memory_space<vmem>>, vector<1x1x18x16x128xbf16>
    %1 = vector.shape_cast %0 : vector<1x1x18x16x128xbf16> to vector<18x16x128xbf16>
    %2 = vector.shape_cast %1 : vector<18x16x128xbf16> to vector<288x128xbf16>
    %c0_4 = arith.constant 0 : index
    %c0_5 = arith.constant 0 : index
    %3 = vector.load %arg3[%c0_4, %c0_5] : memref<128x128xbf16, #tpu.memory_space<vmem>>, vector<128x128xbf16>
    %cst = arith.constant dense<0.000000e+00> : vector<288x128xf32>
    %4 = tpu.matmul %2, %3, %cst {dimension_numbers = #tpu.dot_dimension_numbers<[1], [0], [0], [1], [0, 0, 1, 1], [], []>} : vector<288x128xbf16>, vector<128x128xbf16>, vector<288x128xf32> -> vector<288x128xf32>
    %c0_6 = arith.constant 0 : index
    %c0_7 = arith.constant 0 : index
    %5 = vector.load %arg4[%c0_6, %c0_7] : memref<1x128xf32, #tpu.memory_space<vmem>>, vector<1x128xf32>
    %6 = vector.broadcast %5 : vector<1x128xf32> to vector<288x128xf32>
    %7 = arith.addf %4, %6 : vector<288x128xf32>
    %cst_8 = arith.constant 0.000000e+00 : f32
    %8 = vector.broadcast %cst_8 : f32 to vector<288x128xf32>
    %9 = arith.maximumf %7, %8 : vector<288x128xf32>
    %10 = arith.truncf %9 : vector<288x128xf32> to vector<288x128xbf16>
    %c0_9 = arith.constant 0 : index
    %c0_10 = arith.constant 0 : index
    %11 = vector.load %arg5[%c0_9, %c0_10] : memref<128x128xbf16, #tpu.memory_space<vmem>>, vector<128x128xbf16>
    %cst_11 = arith.constant dense<0.000000e+00> : vector<288x128xf32>
    %12 = tpu.matmul %10, %11, %cst_11 {dimension_numbers = #tpu.dot_dimension_numbers<[1], [0], [0], [1], [0, 0, 1, 1], [], []>} : vector<288x128xbf16>, vector<128x128xbf16>, vector<288x128xf32> -> vector<288x128xf32>
    %c0_12 = arith.constant 0 : index
    %c0_13 = arith.constant 0 : index
    %13 = vector.load %arg6[%c0_12, %c0_13] : memref<1x128xf32, #tpu.memory_space<vmem>>, vector<1x128xf32>
    %14 = vector.broadcast %13 : vector<1x128xf32> to vector<288x128xf32>
    %15 = arith.addf %12, %14 : vector<288x128xf32>
    %cst_14 = arith.constant 0.000000e+00 : f32
    %16 = vector.broadcast %cst_14 : f32 to vector<288x128xf32>
    %17 = arith.maximumf %15, %16 : vector<288x128xf32>
    %18 = arith.addf %17, %9 : vector<288x128xf32>
    %19 = arith.addf %9, %18 : vector<288x128xf32>
    %20 = vector.extract_strided_slice %19 {offsets = [16, 0], sizes = [256, 128], strides = [1, 1]} : vector<288x128xf32> to vector<256x128xf32>
    %c16_i32 = arith.constant 16 : i32
    %21 = arith.muli %arg1, %c16_i32 : i32
    %c1_i32 = arith.constant 1 : i32
    %22 = arith.subi %21, %c1_i32 : i32
    %23 = tpu.iota {dimensions = array<i32: 0>} : vector<18x16x128xi32>
    %24 = vector.broadcast %22 : i32 to vector<18x16x128xi32>
    %25 = arith.addi %24, %23 : vector<18x16x128xi32>
    %c0_i32 = arith.constant 0 : i32
    %26 = vector.broadcast %c0_i32 : i32 to vector<18x16x128xi32>
    %27 = arith.cmpi sge, %25, %26 : vector<18x16x128xi32>
    %c16_i32_15 = arith.constant 16 : i32
    %28 = vector.broadcast %c16_i32_15 : i32 to vector<18x16x128xi32>
    %29 = arith.cmpi slt, %25, %28 : vector<18x16x128xi32>
    %30 = arith.andi %27, %29 : vector<18x16x128xi1>
    %31 = vector.shape_cast %18 : vector<288x128xf32> to vector<18x16x128xf32>
    %cst_16 = arith.constant 0.000000e+00 : f32
    %32 = vector.broadcast %cst_16 : f32 to vector<18x16x128xf32>
    %33 = arith.select %30, %31, %32 : vector<18x16x128xi1>, vector<18x16x128xf32>
    %34 = arith.truncf %33 : vector<18x16x128xf32> to vector<18x16x128xbf16>
    %cst_17 = arith.constant 0.000000e+00 : bf16
    %35 = vector.broadcast %cst_17 : bf16 to vector<18x1x128xbf16>
    %c0_18 = arith.constant 0 : index
    %c0_19 = arith.constant 0 : index
    %c0_20 = arith.constant 0 : index
    %36 = vector.load %arg10[%c0_18, %c0_19, %c0_20] : memref<18x32x128xbf16, #tpu.memory_space<vmem>>, vector<18x1x128xbf16>
    tpu.vector_store %arg10[%c0_18, %c0_19, %c0_20], %35 {strides = array<i32>} : memref<18x32x128xbf16, #tpu.memory_space<vmem>>, vector<18x1x128xbf16>,
    %cst_21 = arith.constant 0.000000e+00 : bf16
    %37 = vector.broadcast %cst_21 : bf16 to vector<18x1x128xbf16>
    %c0_22 = arith.constant 0 : index
    %c17 = arith.constant 17 : index
    %c0_23 = arith.constant 0 : index
    %38 = vector.load %arg10[%c0_22, %c17, %c0_23] : memref<18x32x128xbf16, #tpu.memory_space<vmem>>, vector<18x1x128xbf16>
    tpu.vector_store %arg10[%c0_22, %c17, %c0_23], %37 {strides = array<i32>} : memref<18x32x128xbf16, #tpu.memory_space<vmem>>, vector<18x1x128xbf16>,
    %c0_24 = arith.constant 0 : index
    %c1 = arith.constant 1 : index
    %c0_25 = arith.constant 0 : index
    %39 = vector.load %arg10[%c0_24, %c1, %c0_25] : memref<18x32x128xbf16, #tpu.memory_space<vmem>>, vector<18x16x128xbf16>
    tpu.vector_store %arg10[%c0_24, %c1, %c0_25], %34 {strides = array<i32>} : memref<18x32x128xbf16, #tpu.memory_space<vmem>>, vector<18x16x128xbf16>,
    %c0_26 = arith.constant 0 : index
    %c0_27 = arith.constant 0 : index
    %c0_28 = arith.constant 0 : index
    %40 = vector.load %arg10[%c0_26, %c0_27, %c0_28] : memref<18x32x128xbf16, #tpu.memory_space<vmem>>, vector<16x16x128xbf16>
    %c0_29 = arith.constant 0 : index
    %c1_30 = arith.constant 1 : index
    %c0_31 = arith.constant 0 : index
    %41 = vector.load %arg10[%c0_29, %c1_30, %c0_31] : memref<18x32x128xbf16, #tpu.memory_space<vmem>>, vector<16x16x128xbf16>
    %c0_32 = arith.constant 0 : index
    %c2 = arith.constant 2 : index
    %c0_33 = arith.constant 0 : index
    %42 = vector.load %arg10[%c0_32, %c2, %c0_33] : memref<18x32x128xbf16, #tpu.memory_space<vmem>>, vector<16x16x128xbf16>
    %43 = tpu.concatenate %40, %41, %42 in 2 : vector<16x16x128xbf16>, vector<16x16x128xbf16>, vector<16x16x128xbf16> -> vector<16x16x384xbf16>
    %44 = vector.shape_cast %43 : vector<16x16x384xbf16> to vector<256x384xbf16>
    %c0_34 = arith.constant 0 : index
    %c0_35 = arith.constant 0 : index
    %c0_36 = arith.constant 0 : index
    %45 = vector.load %arg7[%c0_34, %c0_35, %c0_36] : memref<3x384x128xbf16, #tpu.memory_space<vmem>>, vector<1x384x128xbf16>
    %46 = vector.shape_cast %45 : vector<1x384x128xbf16> to vector<384x128xbf16>
    %cst_37 = arith.constant dense<0.000000e+00> : vector<256x128xf32>
    %47 = tpu.matmul %44, %46, %cst_37 {dimension_numbers = #tpu.dot_dimension_numbers<[1], [0], [0], [1], [0, 0, 1, 1], [], []>} : vector<256x384xbf16>, vector<384x128xbf16>, vector<256x128xf32> -> vector<256x128xf32>
    %c1_38 = arith.constant 1 : index
    %c0_39 = arith.constant 0 : index
    %c0_40 = arith.constant 0 : index
    %48 = vector.load %arg10[%c1_38, %c0_39, %c0_40] : memref<18x32x128xbf16, #tpu.memory_space<vmem>>, vector<16x16x128xbf16>
    %c1_41 = arith.constant 1 : index
    %c1_42 = arith.constant 1 : index
    %c0_43 = arith.constant 0 : index
    %49 = vector.load %arg10[%c1_41, %c1_42, %c0_43] : memref<18x32x128xbf16, #tpu.memory_space<vmem>>, vector<16x16x128xbf16>
    %c1_44 = arith.constant 1 : index
    %c2_45 = arith.constant 2 : index
    %c0_46 = arith.constant 0 : index
    %50 = vector.load %arg10[%c1_44, %c2_45, %c0_46] : memref<18x32x128xbf16, #tpu.memory_space<vmem>>, vector<16x16x128xbf16>
    %51 = tpu.concatenate %48, %49, %50 in 2 : vector<16x16x128xbf16>, vector<16x16x128xbf16>, vector<16x16x128xbf16> -> vector<16x16x384xbf16>
    %52 = vector.shape_cast %51 : vector<16x16x384xbf16> to vector<256x384xbf16>
    %c1_47 = arith.constant 1 : index
    %c0_48 = arith.constant 0 : index
    %c0_49 = arith.constant 0 : index
    %53 = vector.load %arg7[%c1_47, %c0_48, %c0_49] : memref<3x384x128xbf16, #tpu.memory_space<vmem>>, vector<1x384x128xbf16>
    %54 = vector.shape_cast %53 : vector<1x384x128xbf16> to vector<384x128xbf16>
    %cst_50 = arith.constant dense<0.000000e+00> : vector<256x128xf32>
    %55 = tpu.matmul %52, %54, %cst_50 {dimension_numbers = #tpu.dot_dimension_numbers<[1], [0], [0], [1], [0, 0, 1, 1], [], []>} : vector<256x384xbf16>, vector<384x128xbf16>, vector<256x128xf32> -> vector<256x128xf32>
    %56 = arith.addf %47, %55 : vector<256x128xf32>
    %c2_51 = arith.constant 2 : index
    %c0_52 = arith.constant 0 : index
    %c0_53 = arith.constant 0 : index
    %57 = vector.load %arg10[%c2_51, %c0_52, %c0_53] : memref<18x32x128xbf16, #tpu.memory_space<vmem>>, vector<16x16x128xbf16>
    %c2_54 = arith.constant 2 : index
    %c1_55 = arith.constant 1 : index
    %c0_56 = arith.constant 0 : index
    %58 = vector.load %arg10[%c2_54, %c1_55, %c0_56] : memref<18x32x128xbf16, #tpu.memory_space<vmem>>, vector<16x16x128xbf16>
    %c2_57 = arith.constant 2 : index
    %c2_58 = arith.constant 2 : index
    %c0_59 = arith.constant 0 : index
    %59 = vector.load %arg10[%c2_57, %c2_58, %c0_59] : memref<18x32x128xbf16, #tpu.memory_space<vmem>>, vector<16x16x128xbf16>
    %60 = tpu.concatenate %57, %58, %59 in 2 : vector<16x16x128xbf16>, vector<16x16x128xbf16>, vector<16x16x128xbf16> -> vector<16x16x384xbf16>
    %61 = vector.shape_cast %60 : vector<16x16x384xbf16> to vector<256x384xbf16>
    %c2_60 = arith.constant 2 : index
    %c0_61 = arith.constant 0 : index
    %c0_62 = arith.constant 0 : index
    %62 = vector.load %arg7[%c2_60, %c0_61, %c0_62] : memref<3x384x128xbf16, #tpu.memory_space<vmem>>, vector<1x384x128xbf16>
    %63 = vector.shape_cast %62 : vector<1x384x128xbf16> to vector<384x128xbf16>
    %cst_63 = arith.constant dense<0.000000e+00> : vector<256x128xf32>
    %64 = tpu.matmul %61, %63, %cst_63 {dimension_numbers = #tpu.dot_dimension_numbers<[1], [0], [0], [1], [0, 0, 1, 1], [], []>} : vector<256x384xbf16>, vector<384x128xbf16>, vector<256x128xf32> -> vector<256x128xf32>
    %65 = arith.addf %56, %64 : vector<256x128xf32>
    %c0_64 = arith.constant 0 : index
    %c0_65 = arith.constant 0 : index
    %66 = vector.load %arg8[%c0_64, %c0_65] : memref<1x128xf32, #tpu.memory_space<vmem>>, vector<1x128xf32>
    %67 = vector.broadcast %66 : vector<1x128xf32> to vector<256x128xf32>
    %68 = arith.addf %65, %67 : vector<256x128xf32>
    %cst_66 = arith.constant 0.000000e+00 : f32
    %69 = vector.broadcast %cst_66 : f32 to vector<256x128xf32>
    %70 = arith.maximumf %68, %69 : vector<256x128xf32>
    %71 = arith.addf %70, %20 : vector<256x128xf32>
    %72 = vector.shape_cast %71 : vector<256x128xf32> to vector<16x16x128xf32>
    %73 = arith.truncf %72 : vector<16x16x128xf32> to vector<16x16x128xbf16>
    %c0_67 = arith.constant 0 : index
    %c0_68 = arith.constant 0 : index
    %c0_69 = arith.constant 0 : index
    %c0_70 = arith.constant 0 : index
    %74 = vector.load %arg9[%c0_67, %c0_68, %c0_69, %c0_70] : memref<1x16x16x128xbf16, #tpu.memory_space<vmem>>, vector<1x16x16x128xbf16>
    %75 = vector.shape_cast %74 : vector<1x16x16x128xbf16> to vector<16x16x128xbf16>
    %76 = vector.shape_cast %73 : vector<16x16x128xbf16> to vector<1x16x16x128xbf16>
    tpu.vector_store %arg9[%c0_67, %c0_68, %c0_69, %c0_70], %76 {strides = array<i32>} : memref<1x16x16x128xbf16, #tpu.memory_space<vmem>>, vector<1x16x16x128xbf16>,
    return
  }
  func.func @transform_0(%arg0: i32, %arg1: i32) -> (i32, i32, i32, i32, i32) {
    %c0_i32 = arith.constant 0 : i32
    %c0_i32_0 = arith.constant 0 : i32
    %c0_i32_1 = arith.constant 0 : i32
    %c0_i32_2 = arith.constant 0 : i32
    return %arg0, %arg1, %c0_i32, %c0_i32_0, %c0_i32_1 : i32, i32, i32, i32, i32
  }
  func.func @transform_1(%arg0: i32, %arg1: i32) -> (i32, i32) {
    %c0_i32 = arith.constant 0 : i32
    %c0_i32_0 = arith.constant 0 : i32
    %c0_i32_1 = arith.constant 0 : i32
    return %c0_i32, %c0_i32_0 : i32, i32
  }
  func.func @transform_2(%arg0: i32, %arg1: i32) -> (i32, i32) {
    %c0_i32 = arith.constant 0 : i32
    %c0_i32_0 = arith.constant 0 : i32
    %c0_i32_1 = arith.constant 0 : i32
    return %c0_i32, %c0_i32_0 : i32, i32
  }
  func.func @transform_3(%arg0: i32, %arg1: i32) -> (i32, i32) {
    %c0_i32 = arith.constant 0 : i32
    %c0_i32_0 = arith.constant 0 : i32
    %c0_i32_1 = arith.constant 0 : i32
    return %c0_i32, %c0_i32_0 : i32, i32
  }
  func.func @transform_4(%arg0: i32, %arg1: i32) -> (i32, i32) {
    %c0_i32 = arith.constant 0 : i32
    %c0_i32_0 = arith.constant 0 : i32
    %c0_i32_1 = arith.constant 0 : i32
    return %c0_i32, %c0_i32_0 : i32, i32
  }
  func.func @transform_5(%arg0: i32, %arg1: i32) -> (i32, i32, i32) {
    %c0_i32 = arith.constant 0 : i32
    %c0_i32_0 = arith.constant 0 : i32
    %c0_i32_1 = arith.constant 0 : i32
    %c0_i32_2 = arith.constant 0 : i32
    return %c0_i32, %c0_i32_0, %c0_i32_1 : i32, i32, i32
  }
  func.func @transform_6(%arg0: i32, %arg1: i32) -> (i32, i32) {
    %c0_i32 = arith.constant 0 : i32
    %c0_i32_0 = arith.constant 0 : i32
    %c0_i32_1 = arith.constant 0 : i32
    return %c0_i32, %c0_i32_0 : i32, i32
  }
  func.func @transform_7(%arg0: i32, %arg1: i32) -> (i32, i32, i32, i32) {
    %c0_i32 = arith.constant 0 : i32
    %c0_i32_0 = arith.constant 0 : i32
    %c0_i32_1 = arith.constant 0 : i32
    return %arg0, %arg1, %c0_i32, %c0_i32_0 : i32, i32, i32, i32
  }
}

module attributes {stable_mosaic.version = 11 : i64} {
  func.func @_double_conv_kernel(%arg0: i32, %arg1: i32, %arg2: memref<1x1x18x16x128xbf16, #tpu.memory_space<vmem>>, %arg3: memref<128x128xbf16, #tpu.memory_space<vmem>>, %arg4: memref<1x128xf32, #tpu.memory_space<vmem>>, %arg5: memref<128x128xbf16, #tpu.memory_space<vmem>>, %arg6: memref<1x128xf32, #tpu.memory_space<vmem>>, %arg7: memref<3x384x128xbf16, #tpu.memory_space<vmem>>, %arg8: memref<1x128xf32, #tpu.memory_space<vmem>>, %arg9: memref<1x16x16x128xbf16, #tpu.memory_space<vmem>>, %arg10: memref<18x32x128xbf16, #tpu.memory_space<vmem>>) attributes {dimension_semantics = [#tpu.dimension_semantics<parallel>, #tpu.dimension_semantics<parallel>], iteration_bounds = array<i64: 2, 1>, scalar_prefetch = 0 : i64, scratch_operands = 1 : i64, tpu.core_type = #tpu.core_type<tc>, window_params = [{transform_indices = @transform_0, window_bounds = array<i64: 1, 1, 18, 16, 128>}, {pipeline_mode = #tpu.pipeline_mode<synchronous>, transform_indices = @transform_1, window_bounds = array<i64: 128, 128>}, {pipeline_mode = #tpu.pipeline_mode<synchronous>, transform_indices = @transform_2, window_bounds = array<i64: 1, 128>}, {pipeline_mode = #tpu.pipeline_mode<synchronous>, transform_indices = @transform_3, window_bounds = array<i64: 128, 128>}, {pipeline_mode = #tpu.pipeline_mode<synchronous>, transform_indices = @transform_4, window_bounds = array<i64: 1, 128>}, {pipeline_mode = #tpu.pipeline_mode<synchronous>, transform_indices = @transform_5, window_bounds = array<i64: 3, 384, 128>}, {pipeline_mode = #tpu.pipeline_mode<synchronous>, transform_indices = @transform_6, window_bounds = array<i64: 1, 128>}, {transform_indices = @transform_7, window_bounds = array<i64: 1, 16, 16, 128>}]} {
    %c0 = arith.constant 0 : index
    %c0_0 = arith.constant 0 : index
    %c0_1 = arith.constant 0 : index
    %c0_2 = arith.constant 0 : index
    %c0_3 = arith.constant 0 : index
    %0 = vector.load %arg2[%c0, %c0_0, %c0_1, %c0_2, %c0_3] : memref<1x1x18x16x128xbf16, #tpu.memory_space<vmem>>, vector<1x1x18x16x128xbf16>
    %1 = vector.shape_cast %0 : vector<1x1x18x16x128xbf16> to vector<18x16x128xbf16>
    %2 = vector.shape_cast %1 : vector<18x16x128xbf16> to vector<288x128xbf16>
    %c0_4 = arith.constant 0 : index
    %c0_5 = arith.constant 0 : index
    %3 = vector.load %arg3[%c0_4, %c0_5] : memref<128x128xbf16, #tpu.memory_space<vmem>>, vector<128x128xbf16>
    %cst = arith.constant dense<0.000000e+00> : vector<288x128xf32>
    %4 = tpu.matmul %2, %3, %cst {dimension_numbers = #tpu.dot_dimension_numbers<[1], [0], [0], [1], [0, 0, 1, 1], [], []>} : vector<288x128xbf16>, vector<128x128xbf16>, vector<288x128xf32> -> vector<288x128xf32>
    %c0_6 = arith.constant 0 : index
    %c0_7 = arith.constant 0 : index
    %5 = vector.load %arg4[%c0_6, %c0_7] : memref<1x128xf32, #tpu.memory_space<vmem>>, vector<1x128xf32>
    %6 = vector.broadcast %5 : vector<1x128xf32> to vector<288x128xf32>
    %7 = arith.addf %4, %6 : vector<288x128xf32>
    %cst_8 = arith.constant 0.000000e+00 : f32
    %8 = vector.broadcast %cst_8 : f32 to vector<288x128xf32>
    %9 = arith.maximumf %7, %8 : vector<288x128xf32>
    %10 = arith.truncf %9 : vector<288x128xf32> to vector<288x128xbf16>
    %c0_9 = arith.constant 0 : index
    %c0_10 = arith.constant 0 : index
    %11 = vector.load %arg5[%c0_9, %c0_10] : memref<128x128xbf16, #tpu.memory_space<vmem>>, vector<128x128xbf16>
    %cst_11 = arith.constant dense<0.000000e+00> : vector<288x128xf32>
    %12 = tpu.matmul %10, %11, %cst_11 {dimension_numbers = #tpu.dot_dimension_numbers<[1], [0], [0], [1], [0, 0, 1, 1], [], []>} : vector<288x128xbf16>, vector<128x128xbf16>, vector<288x128xf32> -> vector<288x128xf32>
    %c0_12 = arith.constant 0 : index
    %c0_13 = arith.constant 0 : index
    %13 = vector.load %arg6[%c0_12, %c0_13] : memref<1x128xf32, #tpu.memory_space<vmem>>, vector<1x128xf32>
    %14 = vector.broadcast %13 : vector<1x128xf32> to vector<288x128xf32>
    %15 = arith.addf %12, %14 : vector<288x128xf32>
    %cst_14 = arith.constant 0.000000e+00 : f32
    %16 = vector.broadcast %cst_14 : f32 to vector<288x128xf32>
    %17 = arith.maximumf %15, %16 : vector<288x128xf32>
    %18 = arith.addf %17, %9 : vector<288x128xf32>
    %19 = arith.addf %9, %18 : vector<288x128xf32>
    %20 = vector.extract_strided_slice %19 {offsets = [16, 0], sizes = [256, 128], strides = [1, 1]} : vector<288x128xf32> to vector<256x128xf32>
    %c16_i32 = arith.constant 16 : i32
    %21 = arith.muli %arg1, %c16_i32 : i32
    %c1_i32 = arith.constant 1 : i32
    %22 = arith.subi %21, %c1_i32 : i32
    %23 = tpu.iota {dimensions = array<i32: 0>} : vector<18x16x128xi32>
    %24 = vector.broadcast %22 : i32 to vector<18x16x128xi32>
    %25 = arith.addi %24, %23 : vector<18x16x128xi32>
    %c0_i32 = arith.constant 0 : i32
    %26 = vector.broadcast %c0_i32 : i32 to vector<18x16x128xi32>
    %27 = arith.cmpi sge, %25, %26 : vector<18x16x128xi32>
    %c16_i32_15 = arith.constant 16 : i32
    %28 = vector.broadcast %c16_i32_15 : i32 to vector<18x16x128xi32>
    %29 = arith.cmpi slt, %25, %28 : vector<18x16x128xi32>
    %30 = arith.andi %27, %29 : vector<18x16x128xi1>
    %31 = vector.shape_cast %18 : vector<288x128xf32> to vector<18x16x128xf32>
    %cst_16 = arith.constant 0.000000e+00 : f32
    %32 = vector.broadcast %cst_16 : f32 to vector<18x16x128xf32>
    %33 = arith.select %30, %31, %32 : vector<18x16x128xi1>, vector<18x16x128xf32>
    %34 = arith.truncf %33 : vector<18x16x128xf32> to vector<18x16x128xbf16>
    %cst_17 = arith.constant 0.000000e+00 : bf16
    %35 = vector.broadcast %cst_17 : bf16 to vector<18x1x128xbf16>
    %c0_18 = arith.constant 0 : index
    %c0_19 = arith.constant 0 : index
    %c0_20 = arith.constant 0 : index
    %36 = vector.load %arg10[%c0_18, %c0_19, %c0_20] : memref<18x32x128xbf16, #tpu.memory_space<vmem>>, vector<18x1x128xbf16>
    tpu.vector_store %arg10[%c0_18, %c0_19, %c0_20], %35 {strides = array<i32>} : memref<18x32x128xbf16, #tpu.memory_space<vmem>>, vector<18x1x128xbf16>,
    %cst_21 = arith.constant 0.000000e+00 : bf16
    %37 = vector.broadcast %cst_21 : bf16 to vector<18x1x128xbf16>
    %c0_22 = arith.constant 0 : index
    %c17 = arith.constant 17 : index
    %c0_23 = arith.constant 0 : index
    %38 = vector.load %arg10[%c0_22, %c17, %c0_23] : memref<18x32x128xbf16, #tpu.memory_space<vmem>>, vector<18x1x128xbf16>
    tpu.vector_store %arg10[%c0_22, %c17, %c0_23], %37 {strides = array<i32>} : memref<18x32x128xbf16, #tpu.memory_space<vmem>>, vector<18x1x128xbf16>,
    %c0_24 = arith.constant 0 : index
    %c1 = arith.constant 1 : index
    %c0_25 = arith.constant 0 : index
    %39 = vector.load %arg10[%c0_24, %c1, %c0_25] : memref<18x32x128xbf16, #tpu.memory_space<vmem>>, vector<18x16x128xbf16>
    tpu.vector_store %arg10[%c0_24, %c1, %c0_25], %34 {strides = array<i32>} : memref<18x32x128xbf16, #tpu.memory_space<vmem>>, vector<18x16x128xbf16>,
    %c0_26 = arith.constant 0 : index
    %c0_27 = arith.constant 0 : index
    %c0_28 = arith.constant 0 : index
    %40 = vector.load %arg10[%c0_26, %c0_27, %c0_28] : memref<18x32x128xbf16, #tpu.memory_space<vmem>>, vector<16x16x128xbf16>
    %c0_29 = arith.constant 0 : index
    %c1_30 = arith.constant 1 : index
    %c0_31 = arith.constant 0 : index
    %41 = vector.load %arg10[%c0_29, %c1_30, %c0_31] : memref<18x32x128xbf16, #tpu.memory_space<vmem>>, vector<16x16x128xbf16>
    %c0_32 = arith.constant 0 : index
    %c2 = arith.constant 2 : index
    %c0_33 = arith.constant 0 : index
    %42 = vector.load %arg10[%c0_32, %c2, %c0_33] : memref<18x32x128xbf16, #tpu.memory_space<vmem>>, vector<16x16x128xbf16>
    %43 = tpu.concatenate %40, %41, %42 in 2 : vector<16x16x128xbf16>, vector<16x16x128xbf16>, vector<16x16x128xbf16> -> vector<16x16x384xbf16>
    %44 = vector.shape_cast %43 : vector<16x16x384xbf16> to vector<256x384xbf16>
    %c0_34 = arith.constant 0 : index
    %c0_35 = arith.constant 0 : index
    %c0_36 = arith.constant 0 : index
    %45 = vector.load %arg7[%c0_34, %c0_35, %c0_36] : memref<3x384x128xbf16, #tpu.memory_space<vmem>>, vector<1x384x128xbf16>
    %46 = vector.shape_cast %45 : vector<1x384x128xbf16> to vector<384x128xbf16>
    %cst_37 = arith.constant dense<0.000000e+00> : vector<256x128xf32>
    %47 = tpu.matmul %44, %46, %cst_37 {dimension_numbers = #tpu.dot_dimension_numbers<[1], [0], [0], [1], [0, 0, 1, 1], [], []>} : vector<256x384xbf16>, vector<384x128xbf16>, vector<256x128xf32> -> vector<256x128xf32>
    %c1_38 = arith.constant 1 : index
    %c0_39 = arith.constant 0 : index
    %c0_40 = arith.constant 0 : index
    %48 = vector.load %arg10[%c1_38, %c0_39, %c0_40] : memref<18x32x128xbf16, #tpu.memory_space<vmem>>, vector<16x16x128xbf16>
    %c1_41 = arith.constant 1 : index
    %c1_42 = arith.constant 1 : index
    %c0_43 = arith.constant 0 : index
    %49 = vector.load %arg10[%c1_41, %c1_42, %c0_43] : memref<18x32x128xbf16, #tpu.memory_space<vmem>>, vector<16x16x128xbf16>
    %c1_44 = arith.constant 1 : index
    %c2_45 = arith.constant 2 : index
    %c0_46 = arith.constant 0 : index
    %50 = vector.load %arg10[%c1_44, %c2_45, %c0_46] : memref<18x32x128xbf16, #tpu.memory_space<vmem>>, vector<16x16x128xbf16>
    %51 = tpu.concatenate %48, %49, %50 in 2 : vector<16x16x128xbf16>, vector<16x16x128xbf16>, vector<16x16x128xbf16> -> vector<16x16x384xbf16>
    %52 = vector.shape_cast %51 : vector<16x16x384xbf16> to vector<256x384xbf16>
    %c1_47 = arith.constant 1 : index
    %c0_48 = arith.constant 0 : index
    %c0_49 = arith.constant 0 : index
    %53 = vector.load %arg7[%c1_47, %c0_48, %c0_49] : memref<3x384x128xbf16, #tpu.memory_space<vmem>>, vector<1x384x128xbf16>
    %54 = vector.shape_cast %53 : vector<1x384x128xbf16> to vector<384x128xbf16>
    %cst_50 = arith.constant dense<0.000000e+00> : vector<256x128xf32>
    %55 = tpu.matmul %52, %54, %cst_50 {dimension_numbers = #tpu.dot_dimension_numbers<[1], [0], [0], [1], [0, 0, 1, 1], [], []>} : vector<256x384xbf16>, vector<384x128xbf16>, vector<256x128xf32> -> vector<256x128xf32>
    %56 = arith.addf %47, %55 : vector<256x128xf32>
    %c2_51 = arith.constant 2 : index
    %c0_52 = arith.constant 0 : index
    %c0_53 = arith.constant 0 : index
    %57 = vector.load %arg10[%c2_51, %c0_52, %c0_53] : memref<18x32x128xbf16, #tpu.memory_space<vmem>>, vector<16x16x128xbf16>
    %c2_54 = arith.constant 2 : index
    %c1_55 = arith.constant 1 : index
    %c0_56 = arith.constant 0 : index
    %58 = vector.load %arg10[%c2_54, %c1_55, %c0_56] : memref<18x32x128xbf16, #tpu.memory_space<vmem>>, vector<16x16x128xbf16>
    %c2_57 = arith.constant 2 : index
    %c2_58 = arith.constant 2 : index
    %c0_59 = arith.constant 0 : index
    %59 = vector.load %arg10[%c2_57, %c2_58, %c0_59] : memref<18x32x128xbf16, #tpu.memory_space<vmem>>, vector<16x16x128xbf16>
    %60 = tpu.concatenate %57, %58, %59 in 2 : vector<16x16x128xbf16>, vector<16x16x128xbf16>, vector<16x16x128xbf16> -> vector<16x16x384xbf16>
    %61 = vector.shape_cast %60 : vector<16x16x384xbf16> to vector<256x384xbf16>
    %c2_60 = arith.constant 2 : index
    %c0_61 = arith.constant 0 : index
    %c0_62 = arith.constant 0 : index
    %62 = vector.load %arg7[%c2_60, %c0_61, %c0_62] : memref<3x384x128xbf16, #tpu.memory_space<vmem>>, vector<1x384x128xbf16>
    %63 = vector.shape_cast %62 : vector<1x384x128xbf16> to vector<384x128xbf16>
    %cst_63 = arith.constant dense<0.000000e+00> : vector<256x128xf32>
    %64 = tpu.matmul %61, %63, %cst_63 {dimension_numbers = #tpu.dot_dimension_numbers<[1], [0], [0], [1], [0, 0, 1, 1], [], []>} : vector<256x384xbf16>, vector<384x128xbf16>, vector<256x128xf32> -> vector<256x128xf32>
    %65 = arith.addf %56, %64 : vector<256x128xf32>
    %c0_64 = arith.constant 0 : index
    %c0_65 = arith.constant 0 : index
    %66 = vector.load %arg8[%c0_64, %c0_65] : memref<1x128xf32, #tpu.memory_space<vmem>>, vector<1x128xf32>
    %67 = vector.broadcast %66 : vector<1x128xf32> to vector<256x128xf32>
    %68 = arith.addf %65, %67 : vector<256x128xf32>
    %cst_66 = arith.constant 0.000000e+00 : f32
    %69 = vector.broadcast %cst_66 : f32 to vector<256x128xf32>
    %70 = arith.maximumf %68, %69 : vector<256x128xf32>
    %71 = arith.addf %70, %20 : vector<256x128xf32>
    %72 = vector.shape_cast %71 : vector<256x128xf32> to vector<16x16x128xf32>
    %73 = arith.truncf %72 : vector<16x16x128xf32> to vector<16x16x128xbf16>
    %c0_67 = arith.constant 0 : index
    %c0_68 = arith.constant 0 : index
    %c0_69 = arith.constant 0 : index
    %c0_70 = arith.constant 0 : index
    %74 = vector.load %arg9[%c0_67, %c0_68, %c0_69, %c0_70] : memref<1x16x16x128xbf16, #tpu.memory_space<vmem>>, vector<1x16x16x128xbf16>
    %75 = vector.shape_cast %74 : vector<1x16x16x128xbf16> to vector<16x16x128xbf16>
    %76 = vector.shape_cast %73 : vector<16x16x128xbf16> to vector<1x16x16x128xbf16>
    tpu.vector_store %arg9[%c0_67, %c0_68, %c0_69, %c0_70], %76 {strides = array<i32>} : memref<1x16x16x128xbf16, #tpu.memory_space<vmem>>, vector<1x16x16x128xbf16>,
    return
  }
  func.func @transform_0(%arg0: i32, %arg1: i32) -> (i32, i32, i32, i32, i32) {
    %c0_i32 = arith.constant 0 : i32
    %c0_i32_0 = arith.constant 0 : i32
    %c0_i32_1 = arith.constant 0 : i32
    %c0_i32_2 = arith.constant 0 : i32
    return %arg0, %arg1, %c0_i32, %c0_i32_0, %c0_i32_1 : i32, i32, i32, i32, i32
  }
  func.func @transform_1(%arg0: i32, %arg1: i32) -> (i32, i32) {
    %c0_i32 = arith.constant 0 : i32
    %c0_i32_0 = arith.constant 0 : i32
    %c0_i32_1 = arith.constant 0 : i32
    return %c0_i32, %c0_i32_0 : i32, i32
  }
  func.func @transform_2(%arg0: i32, %arg1: i32) -> (i32, i32) {
    %c0_i32 = arith.constant 0 : i32
    %c0_i32_0 = arith.constant 0 : i32
    %c0_i32_1 = arith.constant 0 : i32
    return %c0_i32, %c0_i32_0 : i32, i32
  }
  func.func @transform_3(%arg0: i32, %arg1: i32) -> (i32, i32) {
    %c0_i32 = arith.constant 0 : i32
    %c0_i32_0 = arith.constant 0 : i32
    %c0_i32_1 = arith.constant 0 : i32
    return %c0_i32, %c0_i32_0 : i32, i32
  }
  func.func @transform_4(%arg0: i32, %arg1: i32) -> (i32, i32) {
    %c0_i32 = arith.constant 0 : i32
    %c0_i32_0 = arith.constant 0 : i32
    %c0_i32_1 = arith.constant 0 : i32
    return %c0_i32, %c0_i32_0 : i32, i32
  }
  func.func @transform_5(%arg0: i32, %arg1: i32) -> (i32, i32, i32) {
    %c0_i32 = arith.constant 0 : i32
    %c0_i32_0 = arith.constant 0 : i32
    %c0_i32_1 = arith.constant 0 : i32
    %c0_i32_2 = arith.constant 0 : i32
    return %c0_i32, %c0_i32_0, %c0_i32_1 : i32, i32, i32
  }
  func.func @transform_6(%arg0: i32, %arg1: i32) -> (i32, i32) {
    %c0_i32 = arith.constant 0 : i32
    %c0_i32_0 = arith.constant 0 : i32
    %c0_i32_1 = arith.constant 0 : i32
    return %c0_i32, %c0_i32_0 : i32, i32
  }
  func.func @transform_7(%arg0: i32, %arg1: i32) -> (i32, i32, i32, i32) {
    %c0_i32 = arith.constant 0 : i32
    %c0_i32_0 = arith.constant 0 : i32
    %c0_i32_1 = arith.constant 0 : i32
    return %arg0, %arg1, %c0_i32, %c0_i32_0 : i32, i32, i32, i32
  }
}

</mosaic_0001>

<bundles_post_ra>
// kernel: tpu_custom_call.1
= control target key start
LH: loop header
LB: loop body
LE: loop exit
PB: predicated region body
PF: predicated region fallthrough
CT: control target
= control target key end

     0   :  { %s8097_s0 = inlined_call_operand.hbm [shape: bf16[2,1,18,16,128], index: 0, kind: input, shape index: {}]   ;;  %s8098_s1 = inlined_call_operand.hbm [shape: bf16[128,128], index: 1, kind: input, shape index: {}]   ;;  %s8099_s2 = inlined_call_operand.vmem [shape: f32[1,128], index: 2, kind: input, shape index: {}]   ;;  %s8100_s3 = inlined_call_operand.hbm [shape: bf16[128,128], index: 3, kind: input, shape index: {}]   ;;  %s8101_s4 = inlined_call_operand.vmem [shape: f32[1,128], index: 4, kind: input, shape index: {}]   ;;  %s8102_s5 = inlined_call_operand.hbm [shape: bf16[3,384,128], index: 5, kind: input, shape index: {}]   ;;  %s8103_s6 = inlined_call_operand.vmem [shape: f32[1,128], index: 6, kind: input, shape index: {}]   ;;  %s8104_s7 = inlined_call_operand.hbm [shape: bf16[2,16,16,128], index: 7, kind: output, shape index: {}]  }
   0x1   :  { %8165 = sst [smem:[#allocation71_spill]] %s8104_s7 }
   0x2   :  { %12 = vsyncpa [#allocation4], 0 }
   0x3   :  { %14 = vsyncpa [#allocation4 + $0x1], 0 }
   0x4   :  { %15 = vsyncpa [#allocation7], 0 }
   0x5   :  { %16 = vsyncpa [#allocation10], 0 }
   0x6   :  { %17 = vsyncpa [#allocation5], 0 }
   0x7   :  { %19 = vsyncpa [#allocation5 + $0x1], 0  ;;  %s6339_s24 = smov 0   ;;  %s6341_s25 = smov 0  }
   0x8   :  { %s6343_s26 = smov 0   ;;  %s6345_s27 = smov 0  }
   0x9   :  { %s6347_s28 = smov 0   ;;  %s6349_s29 = smov 0  }
   0xa LB: > { %8166 = sst [smem:[#allocation16_spill]] %s6267_s24  ;;  %s4704_s30 = sadd.s32 4294967295, %s6287_s29   ;;  %s6287_s29 = sphi %s6349_s29, %s25_s29   ;;  %s6283_s28 = sphi %s6347_s28, %s8303_s28   ;;  %s6279_s27 = sphi %s6345_s27, %s8302_s27   ;;  %s6275_s26 = sphi %s6343_s26, %s8301_s26   ;;  %s6271_s25 = sphi %s6341_s25, %s8300_s25   ;;  %s6267_s24 = sphi %s6339_s24, %s8299_s24  }
   0xb   : > { %8167 = sst [smem:[#allocation17_spill]] %s6279_s27  ;;  %s4705_s8 = sadd.s32 4294967294, %s6287_s29  }
   0xc   : > { %p59_p0 = scmp.ne.s32.totalorder %s6271_s25, %s6267_s24  ;;  %p6373_p1 = scmp.eq.s32.totalorder %s4704_s30, 0 }
   0xd   : > { %p6377_p2 = scmp.eq.s32.totalorder %s4704_s30, 1  ;;  %p217_p3 = scmp.eq.s32.totalorder %s4705_s8, 1 }
   0xe   : > { %s8168_s9 = scalar_select %p6373_p1, 1, 0 }
   0xf   : > { %s8169_s10 = scalar_select %p6377_p2, 1, 0 }
  0x10   : > { %p6383_p4 = por %p6373_p1, %p59_p0  ;;  %p4706_p5 = scmp.ge.s32.totalorder %s6287_s29, 1 }
  0x11   : > { %p6388_p6 = por %p217_p3, %p59_p0  ;;  %p224_p7 = scmp.lt.s32.totalorder %s6287_s29, 3 }
  0x12   : > { %s8170_s11 = scalar_select %p6383_p4, 1, 0 }
  0x13   : > { %s8171_s12 = scalar_select %p6388_p6, 1, 0 }
  0x14   : > { %p6393_p8 = pnand %p4706_p5, %p224_p7  ;;  %s6289_s14 = smov [#allocation6]  }
  0x15   : > { %8172 = sst [smem:[#allocation18_spill]] %s8171_s12  ;;  %s236_s15 = sshll.u32 %s6289_s14, 4  ;;  %s6397_s15 = int_to_ptr.vmem [resolvable:$true] %s236_s15 }
  0x16   : > { %s8173_s13 = scalar_select %p6393_p8, 1, 0 }
  0x17   : > { %p5894_p9 = pneg %p6393_p8  ;;  %s6290_s17 = smov [#allocation8]  }
  0x18   : > { %s252_s18 = sshll.u32 %s6290_s17, 4  ;;  %s6291_s19 = smov [#allocation9]   ;;  %s6408_s18 = int_to_ptr.vmem [resolvable:$true] %s252_s18 }
  0x19   : > { %p6404_p11 = pnand %p5894_p9, %p6373_p1  ;;  %s6410_s20 = sshll.u32 %s6291_s19, 4  ;;  %s269_s20 = int_to_ptr.vmem [resolvable:$true] %s6410_s20 }
  0x1a   : > { %s6083_s23 = scalar_lea.hbm %s8098_s1, 1024 }
  0x1b   : > { %p6084_p12 = scmp.ne.s32.totalorder %s8098_s1, %s6083_s23  ;;  %p6420_p13 = pneg %p6404_p11 }
  0x1c   : > { %p6090_p5 = scmp.lt.u32.totalorder %s6083_s23, %s8098_s1 }
  0x1d   : > { %p6086_p0 = pnand %p6420_p13, %p6084_p12 }
  0x1f   : > { %p6087_p3 = pneg %p6086_p0 }
  0x21   : > { %p6092_p7 = pnand %p6090_p5, %p6087_p3 }
  0x23   : > { %6095 = shalt.err (!%p6092_p7)
}
  0x24   : > { %s6096_s21 = scalar_lea.vmem %s6397_s15, 1024  ;;  %p6104_p1 = scmp.lt.s32.totalorder %s6397_s15, %s6397_s15 }
  0x25   : > { %p6097_p9 = scmp.ne.s32.totalorder %s6397_s15, %s6096_s21  ;;  %p6105_p4 = scmp.lt.s32.totalorder %s6096_s21, %s6096_s21 }
  0x27   : > { %p6099_p10 = pnand %p6097_p9, %p6420_p13  ;;  %p6106_p12 = por %p6105_p4, %p6104_p1 }
  0x29   : > { %p6100_p6 = pneg %p6099_p10 }
  0x2b   : > { %p6107_p0 = pnand %p6106_p12, %p6100_p6 }
  0x2d   : > { %6110 = shalt.err (!%p6107_p0)
}
  0x2e   : > { %s8112_s22 = smov 64   ;;  %s6293_s23 = smov 4  }
  0x2f   : > { %5897 = dma.hbm_to_vmem [thread:$0]  (!%p6404_p11), %s8098_s1, 1024, %s6397_s15, [#allocation7], %s8112_s22, %s8112_s22, %s6293_s23  }
  0x30   : > { %s6111_s21 = scalar_lea.hbm %s8100_s3, 1024 }
  0x31   : > { %p6112_p1 = scmp.ne.s32.totalorder %s8100_s3, %s6111_s21  ;;  %p6118_p10 = scmp.lt.u32.totalorder %s6111_s21, %s8100_s3 }
  0x33   : > { %p6114_p4 = pnand %p6112_p1, %p6420_p13 }
  0x35   : > { %p6115_p6 = pneg %p6114_p4 }
  0x37   : > { %p6120_p3 = pnand %p6118_p10, %p6115_p6 }
  0x39   : > { %6123 = shalt.err (!%p6120_p3)
}
  0x3a   : > { %s6124_s15 = scalar_lea.vmem %s6408_s18, 1024  ;;  %p6132_p12 = scmp.lt.s32.totalorder %s6408_s18, %s6408_s18 }
  0x3b   : > { %p6125_p5 = scmp.ne.s32.totalorder %s6408_s18, %s6124_s15  ;;  %p6133_p0 = scmp.lt.s32.totalorder %s6124_s15, %s6124_s15 }
  0x3d   : > { %p6127_p7 = pnand %p6125_p5, %p6420_p13  ;;  %p6134_p1 = por %p6133_p0, %p6132_p12 }
  0x3f   : > { %p6128_p9 = pneg %p6127_p7 }
  0x41   : > { %p6135_p4 = pnand %p6134_p1, %p6128_p9 }
  0x43   : > { %6138 = shalt.err (!%p6135_p4)
}
  0x44   : > { %5900 = dma.hbm_to_vmem [thread:$0]  (!%p6404_p11), %s8100_s3, 1024, %s6408_s18, [#allocation7], %s8112_s22, %s8112_s22, %s6293_s23  }
  0x45   : > { %s6139_s30 = scalar_lea.hbm %s8102_s5, 9216 }
  0x46   : > { %p6140_p6 = scmp.ne.s32.totalorder %s8102_s5, %s6139_s30  ;;  %p6146_p5 = scmp.lt.u32.totalorder %s6139_s30, %s8102_s5 }
  0x48   : > { %p6142_p10 = pnand %p6140_p6, %p6420_p13 }
  0x4a   : > { %p6143_p3 = pneg %p6142_p10 }
  0x4c   : > { %p6148_p7 = pnand %p6146_p5, %p6143_p3 }
  0x4e   : > { %6151 = shalt.err (!%p6148_p7)
}
  0x4f   : > { %s6152_s15 = scalar_lea.vmem %s269_s20, 9216  ;;  %p6160_p1 = scmp.lt.s32.totalorder %s269_s20, %s269_s20 }
  0x50   : > { %p6153_p9 = scmp.ne.s32.totalorder %s269_s20, %s6152_s15  ;;  %p6161_p4 = scmp.lt.s32.totalorder %s6152_s15, %s6152_s15 }
  0x52   : > { %p6155_p12 = pnand %p6153_p9, %p6420_p13  ;;  %p6162_p8 = por %p6161_p4, %p6160_p1 }
  0x54   : > { %p6156_p0 = pneg %p6155_p12 }
  0x56   : > { %p6163_p2 = pnand %p6162_p8, %p6156_p0 }
  0x58   : > { %6166 = shalt.err (!%p6163_p2)
}
  0x59   : > { %5903 = dma.hbm_to_vmem [thread:$0]  (!%p6404_p11), %s8102_s5, 9216, %s269_s20, [#allocation10], %s8112_s22, %s8112_s22, %s6293_s23  }
  0x5a   : > { %s46_s14 = sadd.s32 1, %s6275_s26  ;;  %s37_s16 = sadd.s32 1, %s6283_s28 }
  0x5b   : > { %p53_p2 = scmp.ne.s32.totalorder %s6275_s26, %s6271_s25  ;;  %p39_p8 = scmp.ge.s32.totalorder %s37_s16, 2 }
  0x5c   : > { %p54_p13 = scmp.eq.s32.totalorder %s6287_s29, 0  ;;  %p8176_p6 = scmp.ne.s32.totalorder %s8169_s10, 0 }
  0x5d   : > { %p5915_p3 = scmp.lt.s32.totalorder %s6287_s29, 2  ;;  %s8305_s16 = smov (%p39_p8, %s37_s16), 0 }
  0x5e   : > { %p6499_p10 = por %p8176_p6, %p53_p2  ;;  %p55_p5 = por %p54_p13, %p53_p2 }
  0x5f   : > { %s285_s27 = sand.u32 1, %s6275_s26   ;;  %s41_s12 = ssub.s32 %s6283_s28, %s8305_s16 }
  0x60   : > { %p44_p7 = scmp.eq.s32.totalorder %s41_s12, 0  ;;  %s5875_s20 = smul.u32 144, %s285_s27 }
  0x61   : > { %s5876_s30 = smul.u32 2304, %s6283_s28  ;;  %p6510_p11 = pnand %p5915_p3, %p55_p5 }
  0x62   : > { %s6515_s10 = scalar_select %p44_p7, %s6275_s26, %s46_s14  }
  0x63   : > { %s6520_s21 = scalar_lea.hbm %s8097_s0, %s5876_s30  ;;  %s289_s15 = scalar_lea.vmem [#allocation3], %s5875_s20 }
  0x64   : > { %s298_s18 = sshll.u32 %s289_s15, 4  ;;  %s6524_s7 = scalar_lea.sflag [#allocation4], %s285_s27  ;;  %s6522_s18 = int_to_ptr.vmem [resolvable:$true] %s298_s18 }
  0x65   : > { %s6167_s12 = scalar_lea.hbm %s6520_s21, 2304  ;;  %p6169_p12 = pneg %p6510_p11 }
  0x66   : > { %p6168_p9 = scmp.ne.s32.totalorder %s6520_s21, %s6167_s12  ;;  %s6172_s17 = scalar_lea.hbm %s8097_s0, 4608 }
  0x67   : > { %p6173_p4 = scmp.lt.u32.totalorder %s6520_s21, %s8097_s0  ;;  %p6174_p2 = scmp.lt.u32.totalorder %s6172_s17, %s6167_s12 }
  0x68   : > { %p6170_p0 = pnand %p6169_p12, %p6168_p9  ;;  %p6176_p13 = scmp.lt.u32.totalorder %s6167_s12, %s6520_s21 }
  0x69   : > { %p6175_p8 = por %p6174_p2, %p6173_p4 }
  0x6a   : > { %p6171_p1 = pneg %p6170_p0 }
  0x6b   : > { %p6177_p6 = por %p6176_p13, %p6175_p8 }
  0x6d   : > { %p6178_p3 = pnand %p6177_p6, %p6171_p1 }
  0x6f   : > { %6181 = shalt.err (!%p6178_p3)
}
  0x70   : > { %s6182_s27 = scalar_lea.vmem %s6522_s18, 2304  ;;  %s6294_s20 = smov [#allocation3]  }
  0x71   : > { %p6183_p5 = scmp.ne.s32.totalorder %s6522_s18, %s6182_s27  ;;  %s6187_s15 = sshll.u32 %s6294_s20, 4  ;;  %s6188_s15 = int_to_ptr.vmem [resolvable:$false] %s6187_s15 }
  0x72   : > { %s6189_s22 = scalar_lea.vmem %s6188_s15, 4608  ;;  %p6190_p0 = scmp.lt.s32.totalorder %s6522_s18, %s6188_s15 }
  0x73   : > { %p6185_p7 = pnand %p6183_p5, %p6169_p12  ;;  %p6191_p4 = scmp.lt.s32.totalorder %s6189_s22, %s6182_s27 }
  0x75   : > { %p6186_p9 = pneg %p6185_p7  ;;  %p6192_p2 = por %p6191_p4, %p6190_p0 }
  0x77   : > { %p6193_p8 = pnand %p6192_p2, %p6186_p9 }
  0x79   : > { %6196 = shalt.err (!%p6193_p8)
}
  0x7a   : > { %s8179_s12 = smov 64   ;;  %p8180_p12 = scmp.ne.s32.totalorder %s8173_s13, 0 }
  0x7b   : > { %5907 = dma.hbm_to_vmem [thread:$0]  (!%p6510_p11), %s6520_s21, 2304, %s6522_s18, %s6524_s7, %s8179_s12, %s8179_s12, %s6293_s23  }
  0x7c   : > { %310 = sbr.rel (%p8180_p12) target bundleno = 1213 (0x4bd), region = 48 }
  0x83   : > { %s6558_s14 = sand.u32 1, %s6271_s25   ;;  %p8181_p1 = scmp.ne.s32.totalorder %s8170_s11, 0 }
  0x84   : > { %s5877_s30 = smul.u32 144, %s6558_s14  ;;  %s313_s17 = scalar_lea.sflag [#allocation4], %s6558_s14 }
  0x86   : > { %s6562_s19 = scalar_lea.vmem [#allocation3], %s5877_s30 }
  0x87   : > { %6250 = dma.done.wait (%p8181_p1), %s313_s17, 2304  }
  0x88   : > { %6252 = vsyncadd (%p8181_p1), %s313_s17, 4294964992  ;;  %p8182_p11 = scmp.ne.s32.totalorder %s8168_s9, 0 }
  0x8a   : > { %6254 = dma.done.wait (%p8182_p11), [#allocation7], 2048  }
  0x8b   : > { %6256 = vsyncadd (%p8182_p11), [#allocation7], 4294965248 }
  0x8c   : > { %6258 = dma.done.wait (%p8182_p11), [#allocation10], 9216  }
  0x8d   : > { %6260 = vsyncadd (%p8182_p11), [#allocation10], 4294958080  ;;  %v5976_v0 = vld [vmem:[#allocation6] sm:$0xff]   ;;  %v5977_v1 = vld [vmem:[#allocation6 + $0x8] sm:$0xff]   ;;  %vm1287_vm0 = vcmask 1040384   ;;  %vm1562_vm5 = vcmask 1047552  }
  0x8e   : > { %5451 = vmatprep.subr.bf16.mxu0 %v5976_v0  ;;  %v5978_v2 = vld [vmem:[#allocation6 + $0x10] sm:$0xff]   ;;  %v5979_v3 = vld [vmem:[#allocation6 + $0x18] sm:$0xff]   ;;  %v5980_v5 = vld [vmem:[#allocation6 + $0x20] sm:$0xff]   ;;  %vm1344_vm1 = vsmask.f32 7938  ;;  %vm1961_vm7 = vcmask 1046528  }
  0x8f   : > { %5452 = vmatpush3.bf16.msra.mxu0 %v5976_v0  ;;  %v5984_v4 = vld [vmem:[%s6562_s19] sm:$0xff]   ;;  %v5981_v6 = vld [vmem:[#allocation6 + $0x28] sm:$0xff]   ;;  %v5983_v8 = vld [vmem:[#allocation6 + $0x38] sm:$0xff]   ;;  %vm1288_vm3 = vsmask.f32 256  ;;  %s4716_s18 = sshll.u32 %s6558_s14, 7 }
  0x90   : > { %5453 = vmatprep.subr.bf16.mxu0 %v5977_v1  ;;  %5467 = vmatprep.mubr.bf16.mxu0 %v5984_v4  ;;  %v5982_v7 = vld [vmem:[#allocation6 + $0x30] sm:$0xff]   ;;  %v6002_v9 = vld [vmem:[#allocation8] sm:$0xff]   ;;  %v6003_v10 = vld [vmem:[#allocation8 + $0x8] sm:$0xff]   ;;  %vm1720_vm8 = vsmask.f32 7424  ;;  %s7919_s7 = scalar_lea.vmem [#allocation11], %s4716_s18 }
  0x91   : > { %5699 = vmatprep.subr.bf16.mxu1 %v6002_v9  ;;  %v5985_v11 = vld [vmem:[%s6562_s19 + $0x8] sm:$0xff]   ;;  %v5986_v12 = vld [vmem:[%s6562_s19 + $0x10] sm:$0xff]   ;;  %v5987_v15 = vld [vmem:[%s6562_s19 + $0x18] sm:$0xff]   ;;  %s8285_s27 = sld [smem:[#allocation17_spill]]  ;;  %s4588_s15 = sshll.u32 %s7919_s7, 4  ;;  %s8046_s15 = int_to_ptr.vmem [resolvable:$true] %s4588_s15 }
  0x92   : > { %5707 = vmatpush3.bf16.msra.mxu1 %v6002_v9  ;;  %v6004_v13 = vld [vmem:[#allocation8 + $0x10] sm:$0xff]   ;;  %v6005_v14 = vld [vmem:[#allocation8 + $0x18] sm:$0xff]   ;;  %v6006_v17 = vld [vmem:[#allocation8 + $0x20] sm:$0xff]   ;;  %s8294_s30 = sld [smem:[#allocation71_spill]]  ;;  %s6197_s9 = scalar_lea.vmem %s8046_s15, 2048 }
  0x93   : > { %5454 = vmatpush3.bf16.msra.mxu0 %v5977_v1  ;;  %5700 = vmatprep.subr.bf16.mxu1 %v6003_v10  ;;  %v5988_v16 = vld [vmem:[%s6562_s19 + $0x20] sm:$0xff]   ;;  %v6007_v18 = vld [vmem:[#allocation8 + $0x28] sm:$0xff]   ;;  %v5990_v20 = vld [vmem:[%s6562_s19 + $0x30] sm:$0xff]   ;;  %p6198_p13 = scmp.ne.s32.totalorder %s8046_s15, %s6197_s9  ;;  %s6296_s11 = smov [#allocation11]  }
  0x94   : > { %5455 = vmatprep.subr.bf16.mxu0 %v5978_v2  ;;  %v5989_v19 = vld [vmem:[%s6562_s19 + $0x28] sm:$0xff]   ;;  %v6008_v21 = vld [vmem:[#allocation8 + $0x30] sm:$0xff]   ;;  %v5991_v22 = vld [vmem:[%s6562_s19 + $0x38] sm:$0xff]   ;;  %s6201_s13 = sshll.u32 %s6296_s11, 4  ;;  %s6202_s13 = int_to_ptr.vmem [resolvable:$false] %s6201_s13 }
  0x95   : > { %v5992_v23 = vld [vmem:[%s6562_s19 + $0x40] sm:$0xff]   ;;  %v5993_v24 = vld [vmem:[%s6562_s19 + $0x48] sm:$0xff]   ;;  %v5994_v25 = vld [vmem:[%s6562_s19 + $0x50] sm:$0xff]   ;;  %p6199_p6 = pnand %p6198_p13, %p6499_p10  ;;  %s6203_s23 = scalar_lea.vmem %s6202_s13, 4096 }
  0x96   : > { %5708 = vmatpush3.bf16.msra.mxu1 %v6003_v10  ;;  %v5995_v26 = vld [vmem:[%s6562_s19 + $0x58] sm:$0xff]   ;;  %v5996_v27 = vld [vmem:[%s6562_s19 + $0x60] sm:$0xff]   ;;  %v5997_v28 = vld [vmem:[%s6562_s19 + $0x68] sm:$0xff]   ;;  %p6204_p5 = scmp.lt.s32.totalorder %s8046_s15, %s6202_s13  ;;  %p6205_p7 = scmp.lt.s32.totalorder %s6203_s23, %s6197_s9 }
  0x97   : > { %5456 = vmatpush3.bf16.msra.mxu0 %v5978_v2  ;;  %5701 = vmatprep.subr.bf16.mxu1 %v6004_v13  ;;  %v5998_v29 = vld [vmem:[%s6562_s19 + $0x70] sm:$0xff]   ;;  %v5999_v30 = vld [vmem:[%s6562_s19 + $0x78] sm:$0xff]   ;;  %v6000_v31 = vld [vmem:[%s6562_s19 + $0x80] sm:$0xff]   ;;  %s4895_s20 = sshll.u32 %s8285_s27, 11  ;;  %p6200_p3 = pneg %p6199_p6 }
  0x98   : > { %5457 = vmatprep.subr.bf16.mxu0 %v5979_v3  ;;  %v6001_v32 = vld [vmem:[%s6562_s19 + $0x88] sm:$0xff]   ;;  %v6594_v34 = vld [vmem:[#allocation9 + $0x140] sm:$0xff]   ;;  %vm6736_vm2 = vmand %vm1287_vm0, %vm1344_vm1  ;;  %s8044_s17 = scalar_lea.hbm %s8294_s30, %s4895_s20  ;;  %s4572_s19 = scalar_lea.sflag [#allocation5], %s6558_s14 }
  0x99   : > { %v6009_v33 = vld [vmem:[#allocation8 + $0x38] sm:$0xff]   ;;  %v6600_v35 = vld [vmem:[%s8099_s2] ss:$0 sm:$0xff]  ;;  %vm6742_vm4 = vmand %vm1287_vm0, %vm1288_vm3  ;;  %p6206_p9 = por %p6205_p7, %p6204_p5 }
  0x9a   : > { %5709 = vmatpush3.bf16.msra.mxu1 %v6004_v13  ;;  %vm6815_vm6 = vmand %vm1562_vm5, %vm1344_vm1 }
  0x9b   : > { %5458 = vmatpush3.bf16.msra.mxu0 %v5979_v3  ;;  %5702 = vmatprep.subr.bf16.mxu1 %v6005_v14  ;;  %p6207_p0 = pnand %p6206_p9, %p6200_p3 }
  0x9c   : > { %5459 = vmatprep.subr.bf16.mxu0 %v5980_v5 }
  0x9e   : > { %5710 = vmatpush3.bf16.msra.mxu1 %v6005_v14 }
  0x9f   : > { %5460 = vmatpush3.bf16.msra.mxu0 %v5980_v5  ;;  %5703 = vmatprep.subr.bf16.mxu1 %v6006_v17 }
  0xa0   : > { %5461 = vmatprep.subr.bf16.mxu0 %v5981_v6 }
  0xa2   : > { %5711 = vmatpush3.bf16.msra.mxu1 %v6006_v17 }
  0xa3   : > { %5462 = vmatpush3.bf16.msra.mxu0 %v5981_v6  ;;  %5704 = vmatprep.subr.bf16.mxu1 %v6007_v18 }
  0xa4   : > { %5463 = vmatprep.subr.bf16.mxu0 %v5982_v7 }
  0xa6   : > { %5712 = vmatpush3.bf16.msra.mxu1 %v6007_v18 }
  0xa7   : > { %5464 = vmatpush3.bf16.msra.mxu0 %v5982_v7  ;;  %5705 = vmatprep.subr.bf16.mxu1 %v6008_v21 }
  0xa8   : > { %5465 = vmatprep.subr.bf16.mxu0 %v5983_v8 }
  0xaa   : > { %5713 = vmatpush3.bf16.msra.mxu1 %v6008_v21 }
  0xab   : > { %5466 = vmatpush3.bf16.msra.mxu0 %v5983_v8  ;;  %5706 = vmatprep.subr.bf16.mxu1 %v6009_v33 }
  0xac   : > { %5503 = vmatprep.subr.bf16.mxu0 %v6002_v9 }
  0xae   : > { %5468 = vmatmul.mubr.bf16.vlgmr.msra.gmra.mrb[0].mxu0 %v5985_v11  ;;  %5714 = vmatpush3.bf16.msra.mxu1 %v6009_v33 }
  0xaf   : > { %5471 = vmatprep.mubr.bf16.mxu0 %v5986_v12  ;;  %5504 = vmatpush3.bf16.msra.mxu0 %v6002_v9 }
  0xb0   : > { %5505 = vmatprep.subr.bf16.mxu0 %v6003_v10  ;;  %5555 = vmatprep.subr.bf16.mxu1 %v6594_v34 }
  0xb3   : > { %5506 = vmatpush3.bf16.msra.mxu0 %v6003_v10 }
  0xb4   : > { %5507 = vmatprep.subr.bf16.mxu0 %v6004_v13 }
  0xb6   : > { %5472 = vmatmul.mubr.bf16.gmra.mrb[4].mxu0 %v5987_v15 }
  0xb7   : > { %5475 = vmatprep.mubr.bf16.mxu0 %v5988_v16  ;;  %5508 = vmatpush3.bf16.msra.mxu0 %v6004_v13 }
  0xb8   : > { %5509 = vmatprep.subr.bf16.mxu0 %v6005_v14 }
  0xbb   : > { %5510 = vmatpush3.bf16.msra.mxu0 %v6005_v14 }
  0xbc   : > { %5511 = vmatprep.subr.bf16.mxu0 %v6006_v17 }
  0xbe   : > { %5476 = vmatmul.mubr.bf16.gmra.mrb[8].mxu0 %v5989_v19 }
  0xbf   : > { %5479 = vmatprep.mubr.bf16.mxu0 %v5990_v20  ;;  %5512 = vmatpush3.bf16.msra.mxu0 %v6006_v17 }
  0xc0   : > { %5513 = vmatprep.subr.bf16.mxu0 %v6007_v18 }
  0xc3   : > { %5514 = vmatpush3.bf16.msra.mxu0 %v6007_v18 }
  0xc4   : > { %5515 = vmatprep.subr.bf16.mxu0 %v6008_v21 }
  0xc6   : > { %5480 = vmatmul.mubr.bf16.gmra.mrb[12].mxu0 %v5991_v22 }
  0xc7   : > { %5483 = vmatprep.mubr.bf16.mxu0 %v5992_v23  ;;  %5516 = vmatpush3.bf16.msra.mxu0 %v6008_v21 }
  0xc8   : > { %5517 = vmatprep.subr.bf16.mxu0 %v6009_v33 }
  0xcb   : > { %5518 = vmatpush3.bf16.msra.mxu0 %v6009_v33 }
  0xce   : > { %5484 = vmatmul.mubr.bf16.gmra.mrb[16].mxu0 %v5993_v24 }
  0xcf   : > { %5487 = vmatprep.mubr.bf16.mxu0 %v5994_v25 }
  0xd6   : > { %5488 = vmatmul.mubr.bf16.gmra.mrb[20].mxu0 %v5995_v26 }
  0xd7   : > { %5491 = vmatprep.mubr.bf16.mxu0 %v5996_v27 }
  0xde   : > { %5492 = vmatmul.mubr.bf16.gmra.mrb[24].mxu0 %v5997_v28 }
  0xdf   : > { %5495 = vmatprep.mubr.bf16.mxu0 %v5998_v29 }
  0xe6   : > { %5496 = vmatmul.mubr.bf16.gmra.mrb[28].mxu0 %v5999_v30 }
  0xe7   : > { %5499 = vmatprep.mubr.bf16.mxu0 %v6000_v31 }
  0xee   : > { %5500 = vmatmul.mubr.bf16.gmra.mrb[32].mxu0 %v6001_v32 }
 0x181   : > { %v5469_v36 = vpop.f32.mrb[0].mxu0 }
 0x182   : > { %v610_v37 = vpop.f32.mrb[1].mxu0  ;;  %v619_v40 = vadd.f32 %v5469_v36, %v6600_v35 }
 0x183   : > { %v611_v38 = vadd.f32 %v6600_v35, %v610_v37  ;;  %v5470_v39 = vpop.f32.mrb[2].mxu0 }
 0x184   : > { %v622_v41 = vadd.f32 %v5470_v39, %v6600_v35  ;;  %v613_v42 = vpop.f32.mrb[3].mxu0  ;;  %v6608_v47 = vmax.f32 %v619_v40, 0.0 }
 0x185   : > { %v614_v43 = vadd.f32 %v6600_v35, %v613_v42  ;;  %v753_v45 = vmax.f32 %v611_v38, 0.0 }
 0x186   : > { %v6606_v44 = vmax.f32 %v622_v41, 0.0 }
 0x187   : > { %v754_v46 = vmax.f32 %v614_v43, 0.0 }
 0x188   : > { %v790_v50 = vpack.c.bf16 %v6606_v44, %v6608_v47 }
 0x189   : > { %v789_v48 = vpack.c.bf16 %v754_v46, %v753_v45  ;;  %v5473_v49 = vpop.f32.mrb[4].mxu0 }
 0x18a   : > { %v626_v51 = vpop.f32.mrb[5].mxu0  ;;  %v635_v54 = vadd.f32 %v5473_v49, %v6600_v35 }
 0x18b   : > { %v627_v52 = vadd.f32 %v6600_v35, %v626_v51  ;;  %v5474_v53 = vpop.f32.mrb[6].mxu0  ;;  %5519 = vmatprep.mubr.bf16.mxu0 %v789_v48 }
 0x18c   : > { %v638_v55 = vadd.f32 %v5474_v53, %v6600_v35  ;;  %v629_v56 = vpop.f32.mrb[7].mxu0  ;;  %5520 = vmatmul.mubr.bf16.vlgmr.msra.gmra.mrb[36].mxu0 %v790_v50  ;;  %v6622_v61 = vmax.f32 %v635_v54, 0.0 }
 0x18d   : > { %v630_v57 = vadd.f32 %v6600_v35, %v629_v56  ;;  %v6618_v59 = vmax.f32 %v627_v52, 0.0 }
 0x18e   : > { %v6616_v58 = vmax.f32 %v638_v55, 0.0  ;;  %8184 = vst [vmem:[#allocation20_spill] sm:$0xff] %v6622_v61 }
 0x18f   : > { %v6620_v60 = vmax.f32 %v630_v57, 0.0 }
 0x190   : > { %8183 = vst [vmem:[#allocation19_spill] sm:$0xff] %v6616_v58  ;;  %v792_v1 = vpack.c.bf16 %v6616_v58, %v6622_v61 }
 0x191   : > { %v5477_v62 = vpop.f32.mrb[8].mxu0  ;;  %v791_v63 = vpack.c.bf16 %v6620_v60, %v6618_v59 }
 0x192   : > { %v642_v0 = vpop.f32.mrb[9].mxu0  ;;  %v651_v4 = vadd.f32 %v5477_v62, %v6600_v35 }
 0x193   : > { %v643_v2 = vadd.f32 %v6600_v35, %v642_v0  ;;  %v5478_v3 = vpop.f32.mrb[10].mxu0  ;;  %5523 = vmatprep.mubr.bf16.mxu0 %v791_v63 }
 0x194   : > { %v654_v5 = vadd.f32 %v5478_v3, %v6600_v35  ;;  %v645_v6 = vpop.f32.mrb[11].mxu0  ;;  %5524 = vmatmul.mubr.bf16.gmra.mrb[40].mxu0 %v792_v1  ;;  %v6638_v11 = vmax.f32 %v651_v4, 0.0 }
 0x195   : > { %v646_v7 = vadd.f32 %v6600_v35, %v645_v6  ;;  %v6634_v9 = vmax.f32 %v643_v2, 0.0 }
 0x196   : > { %v6632_v8 = vmax.f32 %v654_v5, 0.0  ;;  %8188 = vst [vmem:[#allocation24_spill] sm:$0xff] %v6638_v11 }
 0x197   : > { %8186 = vst [vmem:[#allocation22_spill] sm:$0xff] %v6634_v9  ;;  %v6636_v10 = vmax.f32 %v646_v7, 0.0 }
 0x198   : > { %8185 = vst [vmem:[#allocation21_spill] sm:$0xff] %v6632_v8  ;;  %v794_v15 = vpack.c.bf16 %v6632_v8, %v6638_v11 }
 0x199   : > { %8187 = vst [vmem:[#allocation23_spill] sm:$0xff] %v6636_v10  ;;  %v5481_v12 = vpop.f32.mrb[12].mxu0  ;;  %v793_v13 = vpack.c.bf16 %v6636_v10, %v6634_v9 }
 0x19a   : > { %v658_v14 = vpop.f32.mrb[13].mxu0  ;;  %v667_v18 = vadd.f32 %v5481_v12, %v6600_v35 }
 0x19b   : > { %v659_v16 = vadd.f32 %v6600_v35, %v658_v14  ;;  %v5482_v17 = vpop.f32.mrb[14].mxu0  ;;  %5527 = vmatprep.mubr.bf16.mxu0 %v793_v13 }
 0x19c   : > { %v670_v19 = vadd.f32 %v5482_v17, %v6600_v35  ;;  %v661_v20 = vpop.f32.mrb[15].mxu0  ;;  %5528 = vmatmul.mubr.bf16.gmra.mrb[44].mxu0 %v794_v15  ;;  %v6654_v25 = vmax.f32 %v667_v18, 0.0 }
 0x19d   : > { %v662_v21 = vadd.f32 %v6600_v35, %v661_v20  ;;  %v6650_v23 = vmax.f32 %v659_v16, 0.0 }
 0x19e   : > { %v6648_v22 = vmax.f32 %v670_v19, 0.0  ;;  %8192 = vst [vmem:[#allocation28_spill] sm:$0xff] %v6654_v25 }
 0x19f   : > { %8190 = vst [vmem:[#allocation26_spill] sm:$0xff] %v6650_v23  ;;  %v6652_v24 = vmax.f32 %v662_v21, 0.0 }
 0x1a0   : > { %8189 = vst [vmem:[#allocation25_spill] sm:$0xff] %v6648_v22  ;;  %v796_v29 = vpack.c.bf16 %v6648_v22, %v6654_v25 }
 0x1a1   : > { %8191 = vst [vmem:[#allocation27_spill] sm:$0xff] %v6652_v24  ;;  %v5485_v26 = vpop.f32.mrb[16].mxu0  ;;  %v795_v27 = vpack.c.bf16 %v6652_v24, %v6650_v23 }
 0x1a2   : > { %v674_v28 = vpop.f32.mrb[17].mxu0  ;;  %v683_v32 = vadd.f32 %v5485_v26, %v6600_v35 }
 0x1a3   : > { %v675_v30 = vadd.f32 %v6600_v35, %v674_v28  ;;  %v5486_v31 = vpop.f32.mrb[18].mxu0  ;;  %5531 = vmatprep.mubr.bf16.mxu0 %v795_v27 }
 0x1a4   : > { %v686_v33 = vadd.f32 %v5486_v31, %v6600_v35  ;;  %v677_v36 = vpop.f32.mrb[19].mxu0  ;;  %5532 = vmatmul.mubr.bf16.gmra.mrb[48].mxu0 %v796_v29  ;;  %v6670_v41 = vmax.f32 %v683_v32, 0.0 }
 0x1a5   : > { %v678_v37 = vadd.f32 %v6600_v35, %v677_v36  ;;  %v6666_v39 = vmax.f32 %v675_v30, 0.0 }
 0x1a6   : > { %v6664_v38 = vmax.f32 %v686_v33, 0.0  ;;  %8196 = vst [vmem:[#allocation32_spill] sm:$0xff] %v6670_v41 }
 0x1a7   : > { %8194 = vst [vmem:[#allocation30_spill] sm:$0xff] %v6666_v39  ;;  %v6668_v40 = vmax.f32 %v678_v37, 0.0 }
 0x1a8   : > { %8193 = vst [vmem:[#allocation29_spill] sm:$0xff] %v6664_v38  ;;  %v798_v46 = vpack.c.bf16 %v6664_v38, %v6670_v41 }
 0x1a9   : > { %8195 = vst [vmem:[#allocation31_spill] sm:$0xff] %v6668_v40  ;;  %v5489_v42 = vpop.f32.mrb[20].mxu0  ;;  %v797_v43 = vpack.c.bf16 %v6668_v40, %v6666_v39 }
 0x1aa   : > { %v690_v45 = vpop.f32.mrb[21].mxu0  ;;  %v699_v50 = vadd.f32 %v5489_v42, %v6600_v35 }
 0x1ab   : > { %v691_v48 = vadd.f32 %v6600_v35, %v690_v45  ;;  %v5490_v49 = vpop.f32.mrb[22].mxu0  ;;  %5535 = vmatprep.mubr.bf16.mxu1 %v797_v43 }
 0x1ac   : > { %v702_v51 = vadd.f32 %v5490_v49, %v6600_v35  ;;  %v693_v52 = vpop.f32.mrb[23].mxu0  ;;  %5536 = vmatmul.mubr.bf16.vlgmr.msra.gmra.mrb[0].mxu1 %v798_v46  ;;  %v6687_v57 = vmax.f32 %v699_v50, 0.0 }
 0x1ad   : > { %v694_v53 = vadd.f32 %v6600_v35, %v693_v52  ;;  %5556 = vmatpush3.bf16.msra.mxu1 %v6594_v34  ;;  %v6683_v55 = vmax.f32 %v691_v48, 0.0 }
 0x1ae   : > { %v6681_v54 = vmax.f32 %v702_v51, 0.0  ;;  %8199 = vst [vmem:[#allocation35_spill] sm:$0xff] %v6687_v57 }
 0x1af   : > { %8198 = vst [vmem:[#allocation34_spill] sm:$0xff] %v6683_v55  ;;  %v6685_v56 = vmax.f32 %v694_v53, 0.0 }
 0x1b0   : > { %8197 = vst [vmem:[#allocation33_spill] sm:$0xff] %v6681_v54  ;;  %v800_v1 = vpack.c.bf16 %v6681_v54, %v6687_v57 }
 0x1b1   : > { %v5493_v62 = vpop.f32.mrb[24].mxu0  ;;  %v799_v63 = vpack.c.bf16 %v6685_v56, %v6683_v55 }
 0x1b2   : > { %v706_v0 = vpop.f32.mrb[25].mxu0  ;;  %v715_v34 = vadd.f32 %v5493_v62, %v6600_v35 }
 0x1b3   : > { %v707_v2 = vadd.f32 %v6600_v35, %v706_v0  ;;  %v5494_v3 = vpop.f32.mrb[26].mxu0  ;;  %5539 = vmatprep.mubr.bf16.mxu1 %v799_v63 }
 0x1b4   : > { %v718_v4 = vadd.f32 %v5494_v3, %v6600_v35  ;;  %v709_v5 = vpop.f32.mrb[27].mxu0  ;;  %5540 = vmatmul.mubr.bf16.gmra.mrb[4].mxu1 %v800_v1  ;;  %v6703_v14 = vmax.f32 %v715_v34, 0.0  ;;  %v6011_v1 = vld [vmem:[#allocation9 + $0x100] sm:$0xff]   ;;  %v6014_v3 = vld [vmem:[#allocation9 + $0x108] sm:$0xff]  }
 0x1b5   : > { %v710_v6 = vadd.f32 %v6600_v35, %v709_v5  ;;  %v6699_v12 = vmax.f32 %v707_v2, 0.0  ;;  %v6013_v2 = vld [vmem:[#allocation9 + $0xc0] sm:$0xff]   ;;  %5043 = vmatprep.subr.bf16.mxu0 %v6011_v1  ;;  %v6015_v34 = vld [vmem:[#allocation9 + $0xc8] sm:$0xff]   ;;  %v1349_v5 = vld [vmem:[#allocation2 + $0x18] sm:$0x1] }
 0x1b6   : > { %v6697_v7 = vmax.f32 %v718_v4, 0.0  ;;  %8202 = vst [vmem:[#allocation38_spill] sm:$0xff] %v6703_v14  ;;  %5044 = vmatpush3.bf16.msra.mxu0 %v6013_v2  ;;  %v6029_v1 = vld [vmem:[#allocation9 + $0xf0] sm:$0xff]  }
 0x1b7   : > { %v6701_v13 = vmax.f32 %v710_v6, 0.0  ;;  %5045 = vmatprep.subr.bf16.mxu0 %v6014_v3  ;;  %v6018_v6 = vld [vmem:[#allocation9 + $0xd0] sm:$0xff]   ;;  %v1358_v3 = vld [vmem:[#allocation2 + $0x48] sm:$0x1] }
 0x1b8   : > { %8200 = vst [vmem:[#allocation36_spill] sm:$0xff] %v6697_v7  ;;  %v802_v18 = vpack.c.bf16 %v6697_v7, %v6703_v14 }
 0x1b9   : > { %8201 = vst [vmem:[#allocation37_spill] sm:$0xff] %v6701_v13  ;;  %v5497_v15 = vpop.f32.mrb[28].mxu0  ;;  %v801_v16 = vpack.c.bf16 %v6701_v13, %v6699_v12 }
 0x1ba   : > { %v722_v17 = vpop.f32.mrb[29].mxu0  ;;  %v731_v21 = vadd.f32 %v5497_v15, %v6600_v35  ;;  %5046 = vmatpush3.bf16.msra.mxu0 %v6015_v34  ;;  %v1350_v15 = vsel %vm6736_vm2, 0, %v1349_v5  ;;  %v1305_v34 = vld [vmem:[#allocation2 + $0x50] sm:$0x1] }
 0x1bb   : > { %v723_v19 = vadd.f32 %v6600_v35, %v722_v17  ;;  %v5498_v20 = vpop.f32.mrb[30].mxu0  ;;  %5543 = vmatprep.mubr.bf16.mxu1 %v801_v16  ;;  %v1293_v17 = vld [vmem:[#allocation2 + $0x10] sm:$0x1]  ;;  %1351 = vst [vmem:[#allocation2 + $0x18] sm:$0x1] %v1350_v15  ;;  %v1306_v5 = vsel %vm6742_vm4, 0, %v1305_v34 }
 0x1bc   : > { %v734_v26 = vadd.f32 %v5498_v20, %v6600_v35  ;;  %v725_v27 = vpop.f32.mrb[31].mxu0  ;;  %5544 = vmatmul.mubr.bf16.gmra.mrb[8].mxu1 %v802_v18  ;;  %v6719_v32 = vmax.f32 %v731_v21, 0.0  ;;  %v1294_v18 = vsel %vm6742_vm4, 0, %v1293_v17  ;;  %v6020_v20 = vld [vmem:[#allocation9 + $0x118] sm:$0xff]   ;;  %v6026_v15 = vld [vmem:[#allocation9 + $0x168] sm:$0xff]  }
 0x1bd   : > { %v726_v28 = vadd.f32 %v6600_v35, %v725_v27  ;;  %v6715_v30 = vmax.f32 %v723_v19, 0.0  ;;  %v6012_v19 = vld [vmem:[#allocation9 + $0x148] sm:$0xff]   ;;  %1295 = vst [vmem:[#allocation2 + $0x10] sm:$0x1] %v1294_v18  ;;  %v6021_v21 = vld [vmem:[#allocation9 + $0xd8] sm:$0xff]   ;;  %v6023_v27 = vld [vmem:[#allocation9 + $0x120] sm:$0xff]  }
 0x1be   : > { %v6713_v29 = vmax.f32 %v734_v26, 0.0  ;;  %8206 = vst [vmem:[#allocation42_spill] sm:$0xff] %v6719_v32  ;;  %5557 = vmatprep.subr.bf16.mxu1 %v6012_v19  ;;  %v6016_v26 = vld [vmem:[#allocation9 + $0x150] sm:$0xff]   ;;  %1307 = vst [vmem:[#allocation2 + $0x50] sm:$0x1] %v1306_v5 }
 0x1bf   : > { %8204 = vst [vmem:[#allocation40_spill] sm:$0xff] %v6715_v30  ;;  %v6717_v31 = vmax.f32 %v726_v28, 0.0  ;;  %5558 = vmatpush3.bf16.msra.mxu1 %v6012_v19  ;;  %v1355_v28 = vld [vmem:[#allocation2 + $0x38] sm:$0x1]  ;;  %v6030_v18 = vld [vmem:[#allocation9 + $0x170] sm:$0xff]  }
 0x1c0   : > { %8203 = vst [vmem:[#allocation39_spill] sm:$0xff] %v6713_v29  ;;  %v804_v43 = vpack.c.bf16 %v6713_v29, %v6719_v32  ;;  %5559 = vmatprep.subr.bf16.mxu1 %v6016_v26  ;;  %v1367_v19 = vld [vmem:[#allocation2 + $0x78] sm:$0x1]  ;;  %v1376_v5 = vld [vmem:[#allocation2 + $0xa8] sm:$0x1] }
 0x1c1   : > { %8205 = vst [vmem:[#allocation41_spill] sm:$0xff] %v6717_v31  ;;  %v5501_v33 = vpop.f32.mrb[32].mxu0  ;;  %v803_v36 = vpack.c.bf16 %v6717_v31, %v6715_v30 }
 0x1c2   : > { %v747_v37 = vadd.f32 %v5501_v33, %v6600_v35  ;;  %v738_v42 = vpop.f32.mrb[33].mxu0  ;;  %v6024_v33 = vld [vmem:[#allocation9 + $0xe0] sm:$0xff]  }
 0x1c3   : > { %v739_v45 = vadd.f32 %v6600_v35, %v738_v42  ;;  %v5502_v46 = vpop.f32.mrb[34].mxu0  ;;  %5547 = vmatprep.mubr.bf16.mxu1 %v803_v36  ;;  %v1356_v36 = vsel %vm6736_vm2, 0, %v1355_v28  ;;  %5560 = vmatpush3.bf16.msra.mxu1 %v6016_v26  ;;  %v1299_v42 = vld [vmem:[#allocation2 + $0x30] sm:$0x1]  ;;  %v6031_v26 = vld [vmem:[#allocation9 + $0x138] sm:$0xff]  }
 0x1c4   : > { %v750_v48 = vadd.f32 %v5502_v46, %v6600_v35  ;;  %v741_v49 = vpop.f32.mrb[35].mxu0  ;;  %5548 = vmatmul.mubr.bf16.gmra.mrb[12].mxu1 %v804_v43  ;;  %v787_v51 = vmax.f32 %v747_v37, 0.0  ;;  %v1352_v37 = vld [vmem:[#allocation2 + $0x28] sm:$0x1]  ;;  %1357 = vst [vmem:[#allocation2 + $0x38] sm:$0x1] %v1356_v36 }
 0x1c5   : > { %v742_v50 = vadd.f32 %v6600_v35, %v741_v49  ;;  %v6729_v53 = vmax.f32 %v739_v45, 0.0  ;;  %v6017_v35 = vld [vmem:[#allocation9 + $0x110] sm:$0xff]   ;;  %v1353_v43 = vsel %vm6736_vm2, 0, %v1352_v37  ;;  %v1300_v45 = vsel %vm6742_vm4, 0, %v1299_v42  ;;  %v1296_v46 = vld [vmem:[#allocation2 + $0x20] sm:$0x1] }
 0x1c6   : > { %v788_v52 = vmax.f32 %v750_v48, 0.0  ;;  %5047 = vmatprep.subr.bf16.mxu0 %v6017_v35  ;;  %1354 = vst [vmem:[#allocation2 + $0x28] sm:$0x1] %v1353_v43  ;;  %1301 = vst [vmem:[#allocation2 + $0x30] sm:$0x1] %v1300_v45  ;;  %v1297_v48 = vsel %vm6742_vm4, 0, %v1296_v46 }
 0x1c7   : > { %8207 = vst [vmem:[#allocation43_spill] sm:$0xff] %v6729_v53  ;;  %v6731_v62 = vmax.f32 %v742_v50, 0.0  ;;  %5048 = vmatpush3.bf16.msra.mxu0 %v6018_v6  ;;  %v6019_v49 = vld [vmem:[#allocation9 + $0x158] sm:$0xff]   ;;  %v6025_v50 = vld [vmem:[#allocation9 + $0x128] sm:$0xff]   ;;  %1298 = vst [vmem:[#allocation2 + $0x20] sm:$0x1] %v1297_v48 }
 0x1c8   : > { %v806_v63 = vpack.c.bf16 %v788_v52, %v787_v51  ;;  %5049 = vmatprep.subr.bf16.mxu0 %v6020_v20  ;;  %v6027_v51 = vld [vmem:[#allocation9 + $0xe8] sm:$0xff]   ;;  %5561 = vmatprep.subr.bf16.mxu1 %v6019_v49  ;;  %v6022_v52 = vld [vmem:[#allocation9 + $0x160] sm:$0xff]   ;;  %v1359_v35 = vsel %vm6736_vm2, 0, %v1358_v3  ;;  %v1368_v20 = vsel %vm6736_vm2, 0, %v1367_v19  ;;  %v6033_v43 = vld [vmem:[#allocation9 + $0x178] sm:$0xff]  }
 0x1c9   : > { %8208 = vst [vmem:[#allocation44_spill] sm:$0xff] %v6731_v62  ;;  %v805_v0 = vpack.c.bf16 %v6731_v62, %v6729_v53  ;;  %5562 = vmatpush3.bf16.msra.mxu1 %v6019_v49  ;;  %v1302_v6 = vld [vmem:[#allocation2 + $0x40] sm:$0x1]  ;;  %1360 = vst [vmem:[#allocation2 + $0x48] sm:$0x1] %v1359_v35 }
 0x1ca   : > { %5563 = vmatprep.subr.bf16.mxu1 %v6022_v52  ;;  %v1303_v17 = vsel %vm6742_vm4, 0, %v1302_v6  ;;  %1369 = vst [vmem:[#allocation2 + $0x78] sm:$0x1] %v1368_v20  ;;  %v1308_v37 = vld [vmem:[#allocation2 + $0x60] sm:$0x1] }
 0x1cb   : > { %5551 = vmatprep.mubr.bf16.mxu1 %v805_v0  ;;  %5050 = vmatpush3.bf16.msra.mxu0 %v6021_v21  ;;  %v1361_v0 = vld [vmem:[#allocation2 + $0x58] sm:$0x1]  ;;  %1304 = vst [vmem:[#allocation2 + $0x40] sm:$0x1] %v1303_v17  ;;  %v1364_v21 = vld [vmem:[#allocation2 + $0x68] sm:$0x1] }
 0x1cc   : > { %5552 = vmatmul.mubr.bf16.gmra.mrb[16].mxu1 %v806_v63  ;;  %5051 = vmatprep.subr.bf16.mxu0 %v6023_v27  ;;  %v6028_v63 = vld [vmem:[#allocation9 + $0x130] sm:$0xff]   ;;  %v1362_v2 = vsel %vm6736_vm2, 0, %v1361_v0  ;;  %v1365_v28 = vsel %vm6736_vm2, 0, %v1364_v21  ;;  %v1309_v42 = vsel %vm6742_vm4, 0, %v1308_v37  ;;  %v1373_v46 = vld [vmem:[#allocation2 + $0x98] sm:$0x1] }
 0x1cd   : > { %1363 = vst [vmem:[#allocation2 + $0x58] sm:$0x1] %v1362_v2  ;;  %5564 = vmatpush3.bf16.msra.mxu1 %v6022_v52  ;;  %v1311_v27 = vld [vmem:[#allocation2 + $0x70] sm:$0x1]  ;;  %1366 = vst [vmem:[#allocation2 + $0x68] sm:$0x1] %v1365_v28 }
 0x1ce   : > { %5565 = vmatprep.subr.bf16.mxu1 %v6026_v15  ;;  %v1312_v36 = vsel %vm6742_vm4, 0, %v1311_v27  ;;  %1310 = vst [vmem:[#allocation2 + $0x60] sm:$0x1] %v1309_v42  ;;  %v1317_v45 = vld [vmem:[#allocation2 + $0x90] sm:$0x1]  ;;  %v1374_v49 = vsel %vm6736_vm2, 0, %v1373_v46 }
 0x1cf   : > { %5052 = vmatpush3.bf16.msra.mxu0 %v6024_v33  ;;  %v6032_v33 = vld [vmem:[#allocation9 + $0xf8] sm:$0xff]   ;;  %1313 = vst [vmem:[#allocation2 + $0x70] sm:$0x1] %v1312_v36  ;;  %v1318_v48 = vsel %vm6742_vm4, 0, %v1317_v45  ;;  %1375 = vst [vmem:[#allocation2 + $0x98] sm:$0x1] %v1374_v49 }
 0x1d0   : > { %5053 = vmatprep.subr.bf16.mxu0 %v6025_v50  ;;  %1319 = vst [vmem:[#allocation2 + $0x90] sm:$0x1] %v1318_v48  ;;  %v1314_v50 = vld [vmem:[#allocation2 + $0x80] sm:$0x1]  ;;  %v1370_v52 = vld [vmem:[#allocation2 + $0x88] sm:$0x1] }
 0x1d1   : > { %5566 = vmatpush3.bf16.msra.mxu1 %v6026_v15  ;;  %v6034_v0 = vld [vmem:[#allocation9 + $0x40] sm:$0xff]   ;;  %v1379_v3 = vld [vmem:[#allocation2 + $0xb8] sm:$0x1]  ;;  %v1377_v15 = vsel %vm6736_vm2, 0, %v1376_v5  ;;  %v1329_v17 = vld [vmem:[#allocation2 + $0xd0] sm:$0x1] }
 0x1d2   : > { %5567 = vmatprep.subr.bf16.mxu1 %v6030_v18  ;;  %v1380_v34 = vsel %vm6736_vm2, 0, %v1379_v3  ;;  %v1320_v35 = vld [vmem:[#allocation2 + $0xa0] sm:$0x1]  ;;  %1378 = vst [vmem:[#allocation2 + $0xa8] sm:$0x1] %v1377_v15 }
 0x1d3   : > { %5054 = vmatpush3.bf16.msra.mxu0 %v6027_v51  ;;  %v1315_v51 = vsel %vm6742_vm4, 0, %v1314_v50  ;;  %1381 = vst [vmem:[#allocation2 + $0xb8] sm:$0x1] %v1380_v34  ;;  %v1321_v6 = vsel %vm6742_vm4, 0, %v1320_v35  ;;  %v1385_v19 = vld [vmem:[#allocation2 + $0xd8] sm:$0x1] }
 0x1d4   : > { %5055 = vmatprep.subr.bf16.mxu0 %v6028_v63  ;;  %1316 = vst [vmem:[#allocation2 + $0x80] sm:$0x1] %v1315_v51  ;;  %v1371_v63 = vsel %vm6736_vm2, 0, %v1370_v52  ;;  %1322 = vst [vmem:[#allocation2 + $0xa0] sm:$0x1] %v1321_v6  ;;  %v1386_v20 = vsel %vm6736_vm2, 0, %v1385_v19 }
 0x1d5   : > { %5568 = vmatpush3.bf16.msra.mxu1 %v6030_v18  ;;  %1372 = vst [vmem:[#allocation2 + $0x88] sm:$0x1] %v1371_v63  ;;  %v1330_v18 = vsel %vm6742_vm4, 0, %v1329_v17  ;;  %1387 = vst [vmem:[#allocation2 + $0xd8] sm:$0x1] %v1386_v20  ;;  %v6050_v63 = vld [vmem:[#allocation9 + $0x1c0] sm:$0xff]  }
 0x1d6   : > { %5569 = vmatprep.subr.bf16.mxu1 %v6033_v43  ;;  %1331 = vst [vmem:[#allocation2 + $0xd0] sm:$0x1] %v1330_v18  ;;  %v1326_v21 = vld [vmem:[#allocation2 + $0xc0] sm:$0x1]  ;;  %v1391_v36 = vld [vmem:[#allocation2 + $0xf8] sm:$0x1] }
 0x1d7   : > { %5056 = vmatpush3.bf16.msra.mxu0 %v6029_v1  ;;  %v1323_v1 = vld [vmem:[#allocation2 + $0xb0] sm:$0x1]  ;;  %v1327_v27 = vsel %vm6742_vm4, 0, %v1326_v21  ;;  %v1392_v42 = vsel %vm6736_vm2, 0, %v1391_v36  ;;  %v1388_v46 = vld [vmem:[#allocation2 + $0xe8] sm:$0x1] }
 0x1d8   : > { %5057 = vmatprep.subr.bf16.mxu0 %v6031_v26  ;;  %v1324_v2 = vsel %vm6742_vm4, 0, %v1323_v1  ;;  %v1382_v26 = vld [vmem:[#allocation2 + $0xc8] sm:$0x1]  ;;  %1328 = vst [vmem:[#allocation2 + $0xc0] sm:$0x1] %v1327_v27  ;;  %v1389_v48 = vsel %vm6736_vm2, 0, %v1388_v46 }
 0x1d9   : > { %5570 = vmatpush3.bf16.msra.mxu1 %v6033_v43  ;;  %1325 = vst [vmem:[#allocation2 + $0xb0] sm:$0x1] %v1324_v2  ;;  %v1383_v28 = vsel %vm6736_vm2, 0, %v1382_v26  ;;  %1393 = vst [vmem:[#allocation2 + $0xf8] sm:$0x1] %v1392_v42  ;;  %v6295_v34 = vmov 0  }
 0x1da   : > { %5179 = vmatprep.subr.bf16.mxu1 %v6034_v0  ;;  %1384 = vst [vmem:[#allocation2 + $0xc8] sm:$0x1] %v1383_v28  ;;  %v1332_v43 = vld [vmem:[#allocation2 + $0xe0] sm:$0x1]  ;;  %v1394_v50 = vld [vmem:[#allocation2 + $0x108] sm:$0x1] }
 0x1db   : > { %5058 = vmatpush3.bf16.msra.mxu0 %v6032_v33  ;;  %v1335_v33 = vld [vmem:[#allocation2 + $0xf0] sm:$0x1]  ;;  %v1333_v45 = vsel %vm6742_vm4, 0, %v1332_v43  ;;  %v1338_v49 = vld [vmem:[#allocation2 + $0x100] sm:$0x1]  ;;  %v1395_v52 = vsel %vm6736_vm2, 0, %v1394_v50 }
 0x1dc   : > { %v1336_v37 = vsel %vm6742_vm4, 0, %v1335_v33  ;;  %1334 = vst [vmem:[#allocation2 + $0xe0] sm:$0x1] %v1333_v45  ;;  %1390 = vst [vmem:[#allocation2 + $0xe8] sm:$0x1] %v1389_v48  ;;  %v1339_v51 = vsel %vm6742_vm4, 0, %v1338_v49  ;;  %5315 = vmatprep.subr.bf16.mxu0 %v6050_v63 }
 0x1dd   : > { %1337 = vst [vmem:[#allocation2 + $0xf0] sm:$0x1] %v1336_v37  ;;  %1340 = vst [vmem:[#allocation2 + $0x100] sm:$0x1] %v1339_v51  ;;  %v1290_v0 = vld [vmem:[#allocation2] sm:$0x1] }
 0x1de   : > { %1396 = vst [vmem:[#allocation2 + $0x108] sm:$0x1] %v1395_v52  ;;  %v1346_v1 = vld [vmem:[#allocation2 + $0x8] sm:$0x1]  ;;  %v1291_v2 = vsel %vm6742_vm4, 0, %v1290_v0  ;;  %v6812_v35 = vrot.slane %v6295_v34, 7 }
 0x1df   : > { %v1347_v3 = vsel %vm6736_vm2, 0, %v1346_v1  ;;  %1292 = vst [vmem:[#allocation2] sm:$0x1] %v1291_v2  ;;  %v6828_v19 = vld [vmem:[%s8101_s4] ss:$0 sm:$0xff] }
 0x1e0   : > { %1348 = vst [vmem:[#allocation2 + $0x8] sm:$0x1] %v1347_v3  ;;  %v1573_v2 = vld [vmem:[#allocation2 + $0x18] sm:$0x1] }
 0x1e6   : > { %v1564_v6 = vld [vmem:[#allocation2] sm:$0xff] }
 0x1e7   : > { %v1567_v15 = vld [vmem:[#allocation2 + $0x8] sm:$0x1]  ;;  %v1565_v17 = vsel %vm6815_vm6, %v6812_v35, %v1564_v6 }
 0x1e8   : > { %v1568_v18 = vsel %vm6742_vm4, %v6812_v35, %v1567_v15  ;;  %1566 = vst [vmem:[#allocation2] sm:$0xff] %v1565_v17 }
 0x1e9   : > { %1569 = vst [vmem:[#allocation2 + $0x8] sm:$0x1] %v1568_v18  ;;  %v1570_v18 = vld [vmem:[#allocation2 + $0x10] sm:$0xff] }
 0x25f   : > { %v5521_v20 = vpop.f32.mrb[36].mxu0 }
 0x260   : > { %v921_v21 = vadd.f32 %v5521_v20, %v6828_v19  ;;  %v912_v26 = vpop.f32.mrb[37].mxu0 }
 0x261   : > { %v5522_v27 = vpop.f32.mrb[38].mxu0 }
 0x262   : > { %v1057_v28 = vmax.f32 %v921_v21, 0.0  ;;  %v924_v33 = vadd.f32 %v5522_v27, %v6828_v19  ;;  %v915_v36 = vpop.f32.mrb[39].mxu0 }
 0x264   : > { %v1058_v37 = vmax.f32 %v924_v33, 0.0  ;;  %v6833_v42 = vadd.f32 %v1057_v28, %v6608_v47 }
 0x266   : > { %v6836_v43 = vadd.f32 %v1058_v37, %v6606_v44 }
 0x267   : > { %v5525_v45 = vpop.f32.mrb[40].mxu0 }
 0x268   : > { %8215 = vst [vmem:[#allocation45_spill] sm:$0xff] %v6836_v43  ;;  %v1270_v46 = vpack.c.bf16 %v6836_v43, %v6833_v42  ;;  %v937_v48 = vadd.f32 %v5525_v45, %v6828_v19  ;;  %v928_v49 = vpop.f32.mrb[41].mxu0 }
 0x269   : > { %v929_v50 = vadd.f32 %v6828_v19, %v928_v49  ;;  %v5526_v51 = vpop.f32.mrb[42].mxu0 }
 0x26a   : > { %v1408_v52 = vshrl.u32 %v1270_v46, 16  ;;  %v1061_v63 = vmax.f32 %v937_v48, 0.0  ;;  %v940_v0 = vadd.f32 %v5526_v51, %v6828_v19  ;;  %v931_v1 = vpop.f32.mrb[43].mxu0  ;;  %v1411_v15 = vshll.u32 %v1270_v46, 16 }
 0x26b   : > { %v1059_v3 = vmax.f32 %v929_v50, 0.0  ;;  %v932_v34 = vadd.f32 %v6828_v19, %v931_v1 }
 0x26c   : > { %v1410_v6 = vrot.slane %v1408_v52, 7  ;;  %v1062_v17 = vmax.f32 %v940_v0, 0.0  ;;  %v6847_v27 = vadd.f32 %v1061_v63, %v6622_v61 }
 0x26d   : > { %v1060_v20 = vmax.f32 %v932_v34, 0.0  ;;  %v6853_v33 = vadd.f32 %v1059_v3, %v6618_v59  ;;  %v1585_v3 = vld [vmem:[#allocation2 + $0x38] sm:$0x1] }
 0x26e   : > { %v1413_v21 = vor.u32 %v1411_v15, %v1410_v6  ;;  %v1574_v26 = vsel %vm6742_vm4, %v1410_v6, %v1573_v2  ;;  %8216 = vst [vmem:[#allocation46_spill] sm:$0xff] %v6847_v27  ;;  %v6850_v28 = vadd.f32 %v1062_v17, %v6616_v58 }
 0x26f   : > { %1575 = vst [vmem:[#allocation2 + $0x18] sm:$0x1] %v1574_v26  ;;  %v6856_v36 = vadd.f32 %v1060_v20, %v6620_v60  ;;  %v5529_v37 = vpop.f32.mrb[44].mxu0  ;;  %v1579_v20 = vld [vmem:[#allocation2 + $0x28] sm:$0x1]  ;;  %v1582_v26 = vld [vmem:[#allocation2 + $0x30] sm:$0xff] }
 0x270   : > { %8217 = vst [vmem:[#allocation47_spill] sm:$0xff] %v6850_v28  ;;  %v6860_v45 = vsel %vm6815_vm6, %v1413_v21, %v1570_v18  ;;  %v1272_v46 = vpack.c.bf16 %v6850_v28, %v6847_v27  ;;  %v953_v48 = vadd.f32 %v5529_v37, %v6828_v19  ;;  %v944_v49 = vpop.f32.mrb[45].mxu0  ;;  %v1576_v27 = vld [vmem:[#allocation2 + $0x20] sm:$0xff] }
 0x271   : > { %1572 = vst [vmem:[#allocation2 + $0x10] sm:$0xff] %v6860_v45  ;;  %v1271_v50 = vpack.c.bf16 %v6856_v36, %v6853_v33  ;;  %v945_v51 = vadd.f32 %v6828_v19, %v944_v49  ;;  %v5530_v52 = vpop.f32.mrb[46].mxu0 }
 0x272   : > { %v1422_v63 = vshrl.u32 %v1272_v46, 16  ;;  %v1065_v0 = vmax.f32 %v953_v48, 0.0  ;;  %v956_v1 = vadd.f32 %v5530_v52, %v6828_v19  ;;  %v947_v2 = vpop.f32.mrb[47].mxu0  ;;  %v1425_v18 = vshll.u32 %v1272_v46, 16 }
 0x273   : > { %v1415_v34 = vshrl.u32 %v1271_v50, 16  ;;  %v1063_v6 = vmax.f32 %v945_v51, 0.0  ;;  %v948_v15 = vadd.f32 %v6828_v19, %v947_v2  ;;  %v1418_v28 = vshll.u32 %v1271_v50, 16 }
 0x274   : > { %v1424_v17 = vrot.slane %v1422_v63, 7  ;;  %v1066_v21 = vmax.f32 %v956_v1, 0.0  ;;  %v6874_v52 = vadd.f32 %v1065_v0, %v6638_v11 }
 0x275   : > { %v1417_v37 = vrot.slane %v1415_v34, 7  ;;  %v1064_v58 = vmax.f32 %v948_v15, 0.0  ;;  %v6882_v1 = vadd.f32 %v1063_v6, %v6634_v9 }
 0x276   : > { %v1427_v49 = vor.u32 %v1425_v18, %v1424_v17  ;;  %v1586_v48 = vsel %vm6742_vm4, %v1424_v17, %v1585_v3  ;;  %8218 = vst [vmem:[#allocation48_spill] sm:$0xff] %v6874_v52  ;;  %v6877_v51 = vadd.f32 %v1066_v21, %v6632_v8  ;;  %v1597_v21 = vld [vmem:[#allocation2 + $0x58] sm:$0x1]  ;;  %v1591_v8 = vld [vmem:[#allocation2 + $0x48] sm:$0x1] }
 0x277   : > { %1587 = vst [vmem:[#allocation2 + $0x38] sm:$0x1] %v1586_v48  ;;  %v1420_v63 = vor.u32 %v1418_v28, %v1417_v37  ;;  %v1580_v46 = vsel %vm6742_vm4, %v1417_v37, %v1579_v20  ;;  %8220 = vst [vmem:[#allocation50_spill] sm:$0xff] %v6882_v1  ;;  %v6885_v50 = vadd.f32 %v1064_v58, %v6636_v10  ;;  %v5533_v2 = vpop.f32.mrb[48].mxu0 }
 0x278   : > { %8219 = vst [vmem:[#allocation49_spill] sm:$0xff] %v6877_v51  ;;  %v6889_v3 = vsel %vm6815_vm6, %v1427_v49, %v1582_v26  ;;  %1581 = vst [vmem:[#allocation2 + $0x28] sm:$0x1] %v1580_v46  ;;  %v1274_v0 = vpack.c.bf16 %v6877_v51, %v6874_v52  ;;  %v969_v28 = vadd.f32 %v5533_v2, %v6828_v19  ;;  %v960_v34 = vpop.f32.mrb[49].mxu0  ;;  %v2107_v18 = vld [vmem:[#allocation2 + $0x10] sm:$0xfe] }
 0x279   : > { %8221 = vst [vmem:[#allocation51_spill] sm:$0xff] %v6885_v50  ;;  %1584 = vst [vmem:[#allocation2 + $0x30] sm:$0xff] %v6889_v3  ;;  %v6897_v6 = vsel %vm6815_vm6, %v1420_v63, %v1576_v27  ;;  %v1273_v58 = vpack.c.bf16 %v6885_v50, %v6882_v1  ;;  %v961_v15 = vadd.f32 %v6828_v19, %v960_v34  ;;  %v5534_v17 = vpop.f32.mrb[50].mxu0  ;;  %v2091_v63 = vld [vmem:[#allocation2 + $0x18] sm:$0x1]  ;;  %v2126_v2 = vshll.u32 %v6860_v45, 16 }
 0x27a   : > { %1578 = vst [vmem:[#allocation2 + $0x20] sm:$0xff] %v6897_v6  ;;  %v1436_v20 = vshrl.u32 %v1274_v0, 16  ;;  %v1069_v26 = vmax.f32 %v969_v28, 0.0  ;;  %v972_v37 = vadd.f32 %v5534_v17, %v6828_v19  ;;  %v963_v49 = vpop.f32.mrb[51].mxu0  ;;  %v1439_v34 = vshll.u32 %v1274_v0, 16  ;;  %v1594_v50 = vld [vmem:[#allocation2 + $0x50] sm:$0xff] }
 0x27b   : > { %v1429_v48 = vshrl.u32 %v1273_v58, 16  ;;  %v1067_v46 = vmax.f32 %v961_v15, 0.0  ;;  %v964_v27 = vadd.f32 %v6828_v19, %v963_v49  ;;  %v2363_v11 = vrot.slane %v2107_v18, 1  ;;  %v1588_v49 = vld [vmem:[#allocation2 + $0x40] sm:$0xff] }
 0x27c   : > { %v1438_v51 = vrot.slane %v1436_v20, 7  ;;  %v1070_v52 = vmax.f32 %v972_v37, 0.0  ;;  %v1432_v61 = vshll.u32 %v1273_v58, 16  ;;  %v6907_v28 = vadd.f32 %v1069_v26, %v6654_v25  ;;  %v1600_v25 = vld [vmem:[#allocation2 + $0x60] sm:$0xff] }
 0x27d   : > { %v1431_v10 = vrot.slane %v1429_v48, 7  ;;  %v1068_v17 = vmax.f32 %v964_v27, 0.0  ;;  %v2364_v20 = vrot.slane %v2091_v63, 1  ;;  %v6917_v58 = vadd.f32 %v1067_v46, %v6650_v23 }
 0x27e   : > { %8222 = vst [vmem:[#allocation52_spill] sm:$0xff] %v6907_v28  ;;  %v1441_v1 = vor.u32 %v1439_v34, %v1438_v51  ;;  %v1598_v15 = vsel %vm6742_vm4, %v1438_v51, %v1597_v21  ;;  %v6912_v9 = vadd.f32 %v1070_v52, %v6648_v22 }
 0x27f   : > { %1599 = vst [vmem:[#allocation2 + $0x58] sm:$0x1] %v1598_v15  ;;  %v1434_v0 = vor.u32 %v1432_v61, %v1431_v10  ;;  %v1592_v18 = vsel %vm6742_vm4, %v1431_v10, %v1591_v8  ;;  %8224 = vst [vmem:[#allocation54_spill] sm:$0xff] %v6917_v58  ;;  %v6920_v26 = vadd.f32 %v1068_v17, %v6652_v24  ;;  %v5537_v37 = vpop.f32.mrb[0].mxu1  ;;  %v1609_v17 = vld [vmem:[#allocation2 + $0x78] sm:$0x1] }
 0x280   : > { %8223 = vst [vmem:[#allocation53_spill] sm:$0xff] %v6912_v9  ;;  %v6924_v51 = vsel %vm6815_vm6, %v1441_v1, %v1594_v50  ;;  %1593 = vst [vmem:[#allocation2 + $0x48] sm:$0x1] %v1592_v18  ;;  %v1276_v52 = vpack.c.bf16 %v6912_v9, %v6907_v28  ;;  %v2365_v61 = vsel %vm1961_vm7, %v2363_v11, %v2364_v20  ;;  %v976_v21 = vpop.f32.mrb[1].mxu1  ;;  %v2128_v11 = vrot.slane %v2126_v2, 1  ;;  %v1606_v18 = vld [vmem:[#allocation2 + $0x70] sm:$0xff] }
 0x281   : > { %8225 = vst [vmem:[#allocation55_spill] sm:$0xff] %v6920_v26  ;;  %1596 = vst [vmem:[#allocation2 + $0x50] sm:$0xff] %v6924_v51  ;;  %v6932_v8 = vsel %vm6815_vm6, %v1434_v0, %v1588_v49  ;;  %v1275_v10 = vpack.c.bf16 %v6920_v26, %v6917_v58  ;;  %5571 = vmatprep.mubr.bf16.mxu1 %v2365_v61  ;;  %v985_v1 = vadd.f32 %v5537_v37, %v6828_v19  ;;  %v5538_v50 = vpop.f32.mrb[2].mxu1  ;;  %v1603_v9 = vld [vmem:[#allocation2 + $0x68] sm:$0x1] }
 0x282   : > { %1590 = vst [vmem:[#allocation2 + $0x40] sm:$0xff] %v6932_v8  ;;  %v1450_v48 = vshrl.u32 %v1276_v52, 16  ;;  %v977_v46 = vadd.f32 %v6828_v19, %v976_v21  ;;  %v979_v27 = vpop.f32.mrb[3].mxu1  ;;  %v1453_v34 = vshll.u32 %v1276_v52, 16  ;;  %v2124_v49 = vshrl.u32 %v6860_v45, 16  ;;  %v6051_v52 = vld [vmem:[#allocation9 + $0x180] sm:$0xff]  }
 0x283   : > { %v1443_v15 = vshrl.u32 %v1275_v10, 16  ;;  %v2131_v20 = vshll.u32 %v2091_v63, 16  ;;  %v1446_v61 = vshll.u32 %v1275_v10, 16  ;;  %v1073_v37 = vmax.f32 %v985_v1, 0.0  ;;  %v6942_v24 = vld [vmem:[#allocation2 + $0x28] sm:$0x1] }
 0x284   : > { %v1452_v0 = vrot.slane %v1450_v48, 7  ;;  %v988_v22 = vadd.f32 %v5538_v50, %v6828_v19  ;;  %v2129_v26 = vor.u32 %v2128_v11, %v2124_v49  ;;  %v980_v2 = vadd.f32 %v6828_v19, %v979_v27  ;;  %v2108_v10 = vld [vmem:[#allocation2 + $0x20] sm:$0xfe]  ;;  %v2109_v43 = vld [vmem:[#allocation2 + $0x30] sm:$0xfe]  ;;  %v6053_v49 = vld [vmem:[#allocation9 + $0x1c8] sm:$0xff]  }
 0x285   : > { %v1445_v28 = vrot.slane %v1443_v15, 7  ;;  %v2133_v21 = vrot.slane %v2131_v20, 1  ;;  %v1071_v48 = vmax.f32 %v977_v46, 0.0  ;;  %v6949_v15 = vld [vmem:[#allocation2 + $0x38] sm:$0x1]  ;;  %v6035_v20 = vld [vmem:[#allocation9] sm:$0xff]  }
 0x286   : > { %v1455_v58 = vor.u32 %v1453_v34, %v1452_v0  ;;  %v1610_v63 = vsel %vm6742_vm4, %v1452_v0, %v1609_v17  ;;  %v1074_v23 = vmax.f32 %v988_v22, 0.0  ;;  %v6956_v22 = vadd.f32 %v1073_v37, %v6670_v41 }
 0x287   : > { %1611 = vst [vmem:[#allocation2 + $0x78] sm:$0x1] %v1610_v63  ;;  %v1448_v1 = vor.u32 %v1446_v61, %v1445_v28  ;;  %v1604_v50 = vsel %vm6742_vm4, %v1445_v28, %v1603_v9  ;;  %v2134_v11 = vsel %vm1720_vm8, %v2129_v26, %v2133_v21  ;;  %v5541_v27 = vpop.f32.mrb[4].mxu1  ;;  %v1072_v17 = vmax.f32 %v980_v2, 0.0  ;;  %v6036_v21 = vld [vmem:[#allocation9 + $0x48] sm:$0xff]  }
 0x288   : > { %v6953_v34 = vsel %vm6815_vm6, %v1455_v58, %v1606_v18  ;;  %1605 = vst [vmem:[#allocation2 + $0x68] sm:$0x1] %v1604_v50  ;;  %8226 = vst [vmem:[#allocation56_spill] sm:$0xff] %v6956_v22  ;;  %2652 = vmatprep.mubr.bf16.mxu0 %v2134_v11  ;;  %v6959_v46 = vadd.f32 %v1074_v23, %v6664_v38  ;;  %v992_v9 = vpop.f32.mrb[5].mxu1  ;;  %v2366_v58 = vrot.slane %v2108_v10, 1  ;;  %v2367_v26 = vrot.slane %v6942_v24, 1 }
 0x289   : > { %1608 = vst [vmem:[#allocation2 + $0x70] sm:$0xff] %v6953_v34  ;;  %v6964_v28 = vsel %vm6815_vm6, %v1448_v1, %v1600_v25  ;;  %2653 = vmatmul.mubr.bf16.vlgmr.msra.gmra.mrb[52].mxu0 %v6860_v45  ;;  %v2369_v0 = vrot.slane %v2109_v43, 1  ;;  %v5542_v18 = vpop.f32.mrb[6].mxu1  ;;  %v6970_v23 = vadd.f32 %v1071_v48, %v6666_v39  ;;  %v6975_v37 = vadd.f32 %v1072_v17, %v6668_v40  ;;  %v6054_v10 = vld [vmem:[#allocation9 + $0x188] sm:$0xff]   ;;  %v6056_v11 = vld [vmem:[#allocation9 + $0x1d0] sm:$0xff]  }
 0x28a   : > { %8227 = vst [vmem:[#allocation57_spill] sm:$0xff] %v6959_v46  ;;  %1602 = vst [vmem:[#allocation2 + $0x60] sm:$0xff] %v6964_v28  ;;  %v1278_v61 = vpack.c.bf16 %v6959_v46, %v6956_v22  ;;  %v2370_v25 = vrot.slane %v6949_v15, 1  ;;  %v6978_v45 = vpop.f32.mrb[7].mxu1  ;;  %5316 = vmatpush3.bf16.msra.mxu0 %v6051_v52  ;;  %v2368_v43 = vsel %vm1961_vm7, %v2366_v58, %v2367_v26  ;;  %v1621_v17 = vld [vmem:[#allocation2 + $0x98] sm:$0x1] }
 0x28b   : > { %8228 = vst [vmem:[#allocation58_spill] sm:$0xff] %v6970_v23  ;;  %8229 = vst [vmem:[#allocation59_spill] sm:$0xff] %v6975_v37  ;;  %v1001_v2 = vadd.f32 %v5541_v27, %v6828_v19  ;;  %v993_v63 = vadd.f32 %v6828_v19, %v992_v9  ;;  %v1004_v48 = vadd.f32 %v5542_v18, %v6828_v19  ;;  %5317 = vmatprep.subr.bf16.mxu0 %v6053_v49  ;;  %v6037_v27 = vld [vmem:[#allocation9 + $0x8] sm:$0xff]   ;;  %v1618_v22 = vld [vmem:[#allocation2 + $0x90] sm:$0xff] }
 0x28c   : > { %v1464_v1 = vshrl.u32 %v1278_v61, 16  ;;  %v1277_v50 = vpack.c.bf16 %v6975_v37, %v6970_v23  ;;  %5572 = vmatmul.mubr.bf16.vlgmr.msra.gmra.mrb[20].mxu1 %v2368_v43  ;;  %v2371_v52 = vsel %vm1961_vm7, %v2369_v0, %v2370_v25  ;;  %v1467_v9 = vshll.u32 %v1278_v61, 16  ;;  %v6038_v49 = vld [vmem:[#allocation9 + $0x50] sm:$0xff]   ;;  %v1615_v40 = vld [vmem:[#allocation2 + $0x88] sm:$0x1] }
 0x28d   : > { %5180 = vmatpush3.bf16.msra.mxu1 %v6035_v20  ;;  %v1077_v46 = vmax.f32 %v1001_v2, 0.0  ;;  %v1075_v58 = vmax.f32 %v993_v63, 0.0  ;;  %v1078_v26 = vmax.f32 %v1004_v48, 0.0  ;;  %5575 = vmatprep.mubr.bf16.mxu1 %v2371_v52  ;;  %v2138_v0 = vshll.u32 %v6897_v6, 16  ;;  %v6057_v2 = vld [vmem:[#allocation9 + $0x190] sm:$0xff]  }
 0x28e   : > { %v1466_v38 = vrot.slane %v1464_v1, 7  ;;  %v1457_v18 = vshrl.u32 %v1277_v50, 16  ;;  %5181 = vmatprep.subr.bf16.mxu1 %v6036_v21  ;;  %v1460_v41 = vshll.u32 %v1277_v50, 16  ;;  %5318 = vmatpush3.bf16.msra.mxu0 %v6054_v10  ;;  %v2143_v48 = vshll.u32 %v6942_v24, 16  ;;  %v1612_v50 = vld [vmem:[#allocation2 + $0x80] sm:$0xff] }
 0x28f   : > { %v6988_v43 = vadd.f32 %v1077_v46, %v6687_v57  ;;  %v6991_v20 = vadd.f32 %v1078_v26, %v6681_v54  ;;  %v6994_v25 = vpop.f32.mrb[8].mxu1  ;;  %5319 = vmatprep.subr.bf16.mxu0 %v6056_v11  ;;  %v6059_v46 = vld [vmem:[#allocation9 + $0x1d8] sm:$0xff]   ;;  %v7002_v52 = vadd.f32 %v1075_v58, %v6683_v55  ;;  %v2136_v26 = vshrl.u32 %v6897_v6, 16  ;;  %v2110_v54 = vld [vmem:[#allocation2 + $0x40] sm:$0xfe] }
 0x290   : > { %v1469_v61 = vor.u32 %v1467_v9, %v1466_v38  ;;  %v1622_v63 = vsel %vm6742_vm4, %v1466_v38, %v1621_v17  ;;  %v1459_v21 = vrot.slane %v1457_v18, 7  ;;  %v6999_v1 = vpop.f32.mrb[9].mxu1  ;;  %v6039_v38 = vld [vmem:[#allocation9 + $0x10] sm:$0xff]   ;;  %v6040_v17 = vld [vmem:[#allocation9 + $0x58] sm:$0xff]   ;;  %v2140_v58 = vrot.slane %v2138_v0, 1 }
 0x291   : > { %8230 = vst [vmem:[#allocation60_spill] sm:$0xff] %v6988_v43  ;;  %8231 = vst [vmem:[#allocation61_spill] sm:$0xff] %v6991_v20  ;;  %v1280_v10 = vpack.c.bf16 %v6991_v20, %v6988_v43  ;;  %5182 = vmatpush3.bf16.msra.mxu1 %v6037_v27  ;;  %v7007_v9 = vpop.f32.mrb[10].mxu1  ;;  %v2145_v57 = vrot.slane %v2143_v48, 1  ;;  %v1633_v0 = vld [vmem:[#allocation2 + $0xb8] sm:$0x1] }
 0x292   : > { %1623 = vst [vmem:[#allocation2 + $0x98] sm:$0x1] %v1622_v63  ;;  %v7011_v24 = vsel %vm6815_vm6, %v1469_v61, %v1618_v22  ;;  %v1462_v11 = vor.u32 %v1460_v41, %v1459_v21  ;;  %v1616_v18 = vsel %vm6742_vm4, %v1459_v21, %v1615_v40  ;;  %v7015_v63 = vld [vmem:[#allocation2 + $0x48] sm:$0x1]  ;;  %v7017_v20 = vpop.f32.mrb[11].mxu1  ;;  %5183 = vmatprep.subr.bf16.mxu1 %v6038_v49  ;;  %v6060_v61 = vld [vmem:[#allocation9 + $0x198] sm:$0xff]  }
 0x293   : > { %1620 = vst [vmem:[#allocation2 + $0x90] sm:$0xff] %v7011_v24  ;;  %1617 = vst [vmem:[#allocation2 + $0x88] sm:$0x1] %v1616_v18  ;;  %v1478_v27 = vshrl.u32 %v1280_v10, 16  ;;  %v1481_v43 = vshll.u32 %v1280_v10, 16  ;;  %v996_v22 = vadd.f32 %v6828_v19, %v6978_v45  ;;  %5320 = vmatpush3.bf16.msra.mxu0 %v6057_v2  ;;  %v2141_v21 = vor.u32 %v2140_v58, %v2136_v26  ;;  %v6061_v18 = vld [vmem:[#allocation9 + $0x1e0] sm:$0xff]  }
 0x294   : > { %v2111_v41 = vld [vmem:[#allocation2 + $0x50] sm:$0xfe]  ;;  %v7024_v40 = vsel %vm6815_vm6, %v1462_v11, %v1612_v50  ;;  %v2148_v49 = vshrl.u32 %v6889_v3, 16  ;;  %v2150_v55 = vshll.u32 %v6889_v3, 16  ;;  %5321 = vmatprep.subr.bf16.mxu0 %v6059_v46  ;;  %v2155_v45 = vshll.u32 %v6949_v15, 16  ;;  %v6041_v46 = vld [vmem:[#allocation9 + $0x18] sm:$0xff]  }
 0x295   : > { %1614 = vst [vmem:[#allocation2 + $0x80] sm:$0xff] %v7024_v40  ;;  %v1480_v48 = vrot.slane %v1478_v27, 7  ;;  %v1076_v10 = vmax.f32 %v996_v22, 0.0  ;;  %v2372_v2 = vrot.slane %v2110_v54, 1  ;;  %v7030_v37 = vld [vmem:[#allocation2 + $0x58] sm:$0x1]  ;;  %5184 = vmatpush3.bf16.msra.mxu1 %v6039_v38  ;;  %v2146_v11 = vsel %vm1720_vm8, %v2141_v21, %v2145_v57 }
 0x296   : > { %v1630_v50 = vld [vmem:[#allocation2 + $0xb0] sm:$0xff]  ;;  %v2152_v26 = vrot.slane %v2150_v55, 1  ;;  %v2373_v58 = vrot.slane %v7015_v63, 1  ;;  %v2375_v23 = vrot.slane %v2111_v41, 1  ;;  %5185 = vmatprep.subr.bf16.mxu1 %v6040_v17  ;;  %2660 = vmatprep.mubr.bf16.mxu0 %v2146_v11  ;;  %v2157_v54 = vrot.slane %v2155_v45, 1  ;;  %v6042_v41 = vld [vmem:[#allocation9 + $0x60] sm:$0xff]  }
 0x297   : > { %v1483_v39 = vor.u32 %v1481_v43, %v1480_v48  ;;  %v1634_v27 = vsel %vm6742_vm4, %v1480_v48, %v1633_v0  ;;  %v7037_v15 = vadd.f32 %v1076_v10, %v6685_v56  ;;  %v7039_v22 = vpop.f32.mrb[12].mxu1  ;;  %5322 = vmatpush3.bf16.msra.mxu0 %v6060_v61  ;;  %v2376_v38 = vrot.slane %v7030_v37, 1  ;;  %v6062_v0 = vld [vmem:[#allocation9 + $0x1a0] sm:$0xff]   ;;  %v6064_v48 = vld [vmem:[#allocation9 + $0x1e8] sm:$0xff]  }
 0x298   : > { %1635 = vst [vmem:[#allocation2 + $0xb8] sm:$0x1] %v1634_v27  ;;  %2661 = vmatmul.mubr.bf16.gmra.mrb[56].mxu0 %v6897_v6  ;;  %v2153_v55 = vor.u32 %v2152_v26, %v2148_v49  ;;  %v2374_v57 = vsel %vm1961_vm7, %v2372_v2, %v2373_v58  ;;  %v1017_v43 = vadd.f32 %v6994_v25, %v6828_v19  ;;  %v7046_v17 = vpop.f32.mrb[13].mxu1  ;;  %v6043_v2 = vld [vmem:[#allocation9 + $0x20] sm:$0xff]   ;;  %v1627_v11 = vld [vmem:[#allocation2 + $0xa8] sm:$0x1] }
 0x299   : > { %5323 = vmatprep.subr.bf16.mxu0 %v6061_v18  ;;  %v7050_v21 = vsel %vm6815_vm6, %v1483_v39, %v1630_v50  ;;  %v1279_v6 = vpack.c.bf16 %v7037_v15, %v7002_v52  ;;  %5576 = vmatmul.mubr.bf16.gmra.mrb[24].mxu1 %v2374_v57  ;;  %v1009_v61 = vadd.f32 %v6828_v19, %v6999_v1  ;;  %v7056_v49 = vpop.f32.mrb[14].mxu1  ;;  %v6044_v58 = vld [vmem:[#allocation9 + $0x68] sm:$0xff]   ;;  %v1624_v57 = vld [vmem:[#allocation2 + $0xa0] sm:$0xff] }
 0x29a   : > { %1632 = vst [vmem:[#allocation2 + $0xb0] sm:$0xff] %v7050_v21  ;;  %v2158_v25 = vsel %vm1720_vm8, %v2153_v55, %v2157_v54  ;;  %v2377_v18 = vsel %vm1961_vm7, %v2375_v23, %v2376_v38  ;;  %v1081_v10 = vmax.f32 %v1017_v43, 0.0  ;;  %v1020_v39 = vadd.f32 %v7007_v9, %v6828_v19  ;;  %v7063_v45 = vpop.f32.mrb[15].mxu1  ;;  %5186 = vmatpush3.bf16.msra.mxu1 %v6041_v46  ;;  %v2112_v55 = vld [vmem:[#allocation2 + $0x60] sm:$0xfe] }
 0x29b   : > { %v1471_v50 = vshrl.u32 %v1279_v6, 16  ;;  %2668 = vmatprep.mubr.bf16.mxu0 %v2158_v25  ;;  %5579 = vmatprep.mubr.bf16.mxu1 %v2377_v18  ;;  %v1079_v1 = vmax.f32 %v1009_v61, 0.0  ;;  %v1012_v26 = vadd.f32 %v6828_v19, %v7017_v20  ;;  %v1474_v27 = vshll.u32 %v1279_v6, 16  ;;  %v6065_v61 = vld [vmem:[#allocation9 + $0x1a8] sm:$0xff]  }
 0x29c   : > { %v1082_v54 = vmax.f32 %v1020_v39, 0.0  ;;  %v2162_v23 = vshll.u32 %v6932_v8, 16  ;;  %5187 = vmatprep.subr.bf16.mxu1 %v6042_v41  ;;  %5324 = vmatpush3.bf16.msra.mxu0 %v6062_v0  ;;  %v7069_v46 = vadd.f32 %v1081_v10, %v6703_v14  ;;  %v2167_v43 = vshll.u32 %v7015_v63, 16  ;;  %v7079_v0 = vld [vmem:[#allocation2 + $0x68] sm:$0x1]  ;;  %v6066_v10 = vld [vmem:[#allocation9 + $0x1f0] sm:$0xff]  }
 0x29d   : > { %v1473_v9 = vrot.slane %v1471_v50, 7  ;;  %v1080_v38 = vmax.f32 %v1012_v26, 0.0  ;;  %5325 = vmatprep.subr.bf16.mxu0 %v6064_v48  ;;  %v7073_v20 = vadd.f32 %v1079_v1, %v6699_v12  ;;  %v2160_v25 = vshrl.u32 %v6932_v8, 16  ;;  %v6045_v18 = vld [vmem:[#allocation9 + $0x28] sm:$0xff]   ;;  %v2113_v1 = vld [vmem:[#allocation2 + $0x70] sm:$0xfe] }
 0x29e   : > { %8232 = vst [vmem:[#allocation62_spill] sm:$0xff] %v7069_v46  ;;  %v7076_v6 = vadd.f32 %v1082_v54, %v6697_v7  ;;  %v2164_v41 = vrot.slane %v2162_v23, 1  ;;  %5188 = vmatpush3.bf16.msra.mxu1 %v6043_v2  ;;  %v2378_v50 = vrot.slane %v2112_v55, 1  ;;  %v6046_v54 = vld [vmem:[#allocation9 + $0x70] sm:$0xff]   ;;  %v2169_v7 = vrot.slane %v2167_v43, 1 }
 0x29f   : > { %v1476_v39 = vor.u32 %v1474_v27, %v1473_v9  ;;  %v1628_v63 = vsel %vm6742_vm4, %v1473_v9, %v1627_v11  ;;  %v7084_v48 = vadd.f32 %v1080_v38, %v6701_v13  ;;  %v5553_v26 = vpop.f32.mrb[16].mxu1  ;;  %5189 = vmatprep.subr.bf16.mxu1 %v6044_v58  ;;  %v7089_v27 = vld [vmem:[#allocation2 + $0x78] sm:$0x1]  ;;  %v2379_v55 = vrot.slane %v7079_v0, 1  ;;  %v6067_v38 = vld [vmem:[#allocation9 + $0x1b0] sm:$0xff]  }
 0x2a0   : > { %8233 = vst [vmem:[#allocation63_spill] sm:$0xff] %v7076_v6  ;;  %1629 = vst [vmem:[#allocation2 + $0xa8] sm:$0x1] %v1628_v63  ;;  %v1282_v23 = vpack.c.bf16 %v7076_v6, %v7069_v46  ;;  %2669 = vmatmul.mubr.bf16.gmra.mrb[60].mxu0 %v6889_v3  ;;  %v2165_v2 = vor.u32 %v2164_v41, %v2160_v25  ;;  %v7091_v14 = vpop.f32.mrb[17].mxu1  ;;  %v1645_v43 = vld [vmem:[#allocation2 + $0xd8] sm:$0x1] }
 0x2a1   : > { %8234 = vst [vmem:[#allocation64_spill] sm:$0xff] %v7084_v48  ;;  %v7095_v11 = vsel %vm6815_vm6, %v1476_v39, %v1624_v57  ;;  %v1281_v58 = vpack.c.bf16 %v7084_v48, %v7073_v20  ;;  %v5554_v9 = vpop.f32.mrb[18].mxu1  ;;  %5326 = vmatpush3.bf16.msra.mxu0 %v6065_v61  ;;  %v2381_v41 = vrot.slane %v2113_v1, 1  ;;  %v6047_v57 = vld [vmem:[#allocation9 + $0x30] sm:$0xff]   ;;  %v2380_v6 = vsel %vm1961_vm7, %v2378_v50, %v2379_v55  ;;  %v6068_v46 = vld [vmem:[#allocation9 + $0x1f8] sm:$0xff]  }
 0x2a2   : > { %1626 = vst [vmem:[#allocation2 + $0xa0] sm:$0xff] %v7095_v11  ;;  %v1492_v3 = vshrl.u32 %v1282_v23, 16  ;;  %v2170_v25 = vsel %vm1720_vm8, %v2165_v2, %v2169_v7  ;;  %v7102_v63 = vpop.f32.mrb[19].mxu1  ;;  %5190 = vmatpush3.bf16.msra.mxu1 %v6045_v18  ;;  %5327 = vmatprep.subr.bf16.mxu0 %v6066_v10  ;;  %v1495_v39 = vshll.u32 %v1282_v23, 16  ;;  %v2382_v61 = vrot.slane %v7089_v27, 1  ;;  %v6048_v9 = vld [vmem:[#allocation9 + $0x78] sm:$0xff]  }
 0x2a3   : > { %v1485_v26 = vshrl.u32 %v1281_v58, 16  ;;  %2676 = vmatprep.mubr.bf16.mxu0 %v2170_v25  ;;  %5191 = vmatprep.subr.bf16.mxu1 %v6046_v54  ;;  %v1639_v13 = vld [vmem:[#allocation2 + $0xc8] sm:$0x1]  ;;  %v1033_v7 = vadd.f32 %v7039_v22, %v6828_v19  ;;  %v1025_v18 = vadd.f32 %v6828_v19, %v7046_v17  ;;  %v1036_v10 = vadd.f32 %v7056_v49, %v6828_v19  ;;  %v1642_v1 = vld [vmem:[#allocation2 + $0xd0] sm:$0xff]  ;;  %v6069_v55 = vld [vmem:[#allocation9 + $0x1b8] sm:$0xff]  }
 0x2a4   : > { %v1494_v48 = vrot.slane %v1492_v3, 7  ;;  %5580 = vmatmul.mubr.bf16.gmra.mrb[28].mxu1 %v2380_v6  ;;  %v1488_v50 = vshll.u32 %v1281_v58, 16  ;;  %v2383_v2 = vsel %vm1961_vm7, %v2381_v41, %v2382_v61  ;;  %v1028_v54 = vadd.f32 %v6828_v19, %v7063_v45  ;;  %v1636_v3 = vld [vmem:[#allocation2 + $0xc0] sm:$0xff]  ;;  %v6049_v49 = vld [vmem:[#allocation9 + $0x38] sm:$0xff]  }
 0x2a5   : > { %v1487_v23 = vrot.slane %v1485_v26, 7  ;;  %5328 = vmatpush3.bf16.msra.mxu0 %v6067_v38  ;;  %5583 = vmatprep.mubr.bf16.mxu1 %v2383_v2  ;;  %v1085_v17 = vmax.f32 %v1033_v7, 0.0  ;;  %v1083_v25 = vmax.f32 %v1025_v18, 0.0  ;;  %v1086_v41 = vmax.f32 %v1036_v10, 0.0  ;;  %v2114_v45 = vld [vmem:[#allocation2 + $0x80] sm:$0xfe] }
 0x2a6   : > { %v1497_v6 = vor.u32 %v1495_v39, %v1494_v48  ;;  %v1646_v22 = vsel %vm6742_vm4, %v1494_v48, %v1645_v43  ;;  %5192 = vmatpush3.bf16.msra.mxu1 %v6047_v57  ;;  %v1084_v61 = vmax.f32 %v1028_v54, 0.0  ;;  %v7119_v38 = vld [vmem:[#allocation9 + $0x80] sm:$0xff]   ;;  %5329 = vmatprep.subr.bf16.mxu0 %v6068_v46  ;;  %v2179_v7 = vshll.u32 %v7030_v37, 16  ;;  %v7145_v18 = vld [vmem:[#allocation2 + $0x88] sm:$0x1] }
 0x2a7   : > { %1647 = vst [vmem:[#allocation2 + $0xd8] sm:$0x1] %v1646_v22  ;;  %v1490_v26 = vor.u32 %v1488_v50, %v1487_v23  ;;  %v1640_v58 = vsel %vm6742_vm4, %v1487_v23, %v1639_v13  ;;  %5193 = vmatprep.subr.bf16.mxu1 %v6048_v9  ;;  %v7126_v43 = vadd.f32 %v1085_v17, %v6719_v32  ;;  %v2174_v13 = vshll.u32 %v6924_v51, 16  ;;  %v2115_v10 = vld [vmem:[#allocation2 + $0x90] sm:$0xfe] }
 0x2a8   : > { %v7123_v48 = vsel %vm6815_vm6, %v1497_v6, %v1642_v1  ;;  %1641 = vst [vmem:[#allocation2 + $0xc8] sm:$0x1] %v1640_v58  ;;  %v7129_v57 = vadd.f32 %v1083_v25, %v6715_v30  ;;  %2677 = vmatmul.mubr.bf16.gmra.mrb[64].mxu0 %v6932_v8  ;;  %v7139_v39 = vadd.f32 %v1086_v41, %v6713_v29  ;;  %v2172_v8 = vshrl.u32 %v6924_v51, 16  ;;  %v7153_v54 = vld [vmem:[#allocation2 + $0x98] sm:$0x1] }
 0x2a9   : > { %8235 = vst [vmem:[#allocation65_spill] sm:$0xff] %v7126_v43  ;;  %1644 = vst [vmem:[#allocation2 + $0xd0] sm:$0xff] %v7123_v48  ;;  %v7136_v46 = vsel %vm6815_vm6, %v1490_v26, %v1636_v3  ;;  %v7142_v9 = vadd.f32 %v1084_v61, %v6717_v31  ;;  %5330 = vmatpush3.bf16.msra.mxu0 %v6069_v55  ;;  %v2176_v1 = vrot.slane %v2174_v13, 1  ;;  %v2384_v23 = vrot.slane %v2114_v45, 1  ;;  %v1657_v26 = vld [vmem:[#allocation2 + $0xf8] sm:$0x1] }
 0x2aa   : > { %8236 = vst [vmem:[#allocation66_spill] sm:$0xff] %v7129_v57  ;;  %8237 = vst [vmem:[#allocation67_spill] sm:$0xff] %v7139_v39  ;;  %5194 = vmatpush3.bf16.msra.mxu1 %v6049_v49  ;;  %v1284_v50 = vpack.c.bf16 %v7139_v39, %v7126_v43  ;;  %v2181_v6 = vrot.slane %v2179_v7, 1  ;;  %v2385_v55 = vrot.slane %v7145_v18, 1  ;;  %v2387_v22 = vrot.slane %v2115_v10, 1  ;;  %v1648_v39 = vld [vmem:[#allocation2 + $0xe0] sm:$0xff] }
 0x2ab   : > { %8238 = vst [vmem:[#allocation68_spill] sm:$0xff] %v7142_v9  ;;  %1638 = vst [vmem:[#allocation2 + $0xc0] sm:$0xff] %v7136_v46  ;;  %v1283_v2 = vpack.c.bf16 %v7142_v9, %v7129_v57  ;;  %5603 = vmatprep.subr.bf16.mxu1 %v7119_v38  ;;  %v2177_v37 = vor.u32 %v2176_v1, %v2172_v8  ;;  %v1651_v49 = vld [vmem:[#allocation2 + $0xe8] sm:$0x1]  ;;  %v2388_v61 = vrot.slane %v7153_v54, 1  ;;  %v1654_v8 = vld [vmem:[#allocation2 + $0xf0] sm:$0xff] }
 0x2ac   : > { %v1506_v3 = vshrl.u32 %v1284_v50, 16  ;;  %v1509_v17 = vshll.u32 %v1284_v50, 16  ;;  %v2386_v41 = vsel %vm1961_vm7, %v2384_v23, %v2385_v55  ;;  %v1041_v45 = vadd.f32 %v6828_v19, %v7091_v14  ;;  %v7164_v50 = vld [vmem:[#allocation2 + $0xa8] sm:$0x1]  ;;  %v2116_v55 = vld [vmem:[#allocation2 + $0xa0] sm:$0xfe] }
 0x2ad   : > { %v1499_v25 = vshrl.u32 %v1283_v2, 16  ;;  %v2182_v58 = vsel %vm1720_vm8, %v2177_v37, %v2181_v6  ;;  %v1502_v1 = vshll.u32 %v1283_v2, 16  ;;  %5584 = vmatmul.mubr.bf16.gmra.mrb[32].mxu1 %v2386_v41  ;;  %v1044_v10 = vadd.f32 %v6828_v19, %v7102_v63  ;;  %v2117_v63 = vld [vmem:[#allocation2 + $0xb0] sm:$0xfe]  ;;  %v7453_v43 = vld [vmem:[#allocation2 + $0x78] sm:$0x1] }
 0x2ae   : > { %v1508_v13 = vrot.slane %v1506_v3, 7  ;;  %2684 = vmatprep.mubr.bf16.mxu0 %v2182_v58  ;;  %v2389_v37 = vsel %vm1961_vm7, %v2387_v22, %v2388_v61  ;;  %v1087_v23 = vmax.f32 %v1041_v45, 0.0  ;;  %v2186_v6 = vshll.u32 %v6964_v28, 16  ;;  %v7175_v61 = vld [vmem:[#allocation2 + $0xb8] sm:$0x1] }
 0x2af   : > { %v1501_v7 = vrot.slane %v1499_v25, 7  ;;  %v2191_v14 = vshll.u32 %v7079_v0, 16  ;;  %5587 = vmatprep.mubr.bf16.mxu1 %v2389_v37  ;;  %v1088_v22 = vmax.f32 %v1044_v10, 0.0  ;;  %v2198_v37 = vshll.u32 %v6953_v34, 16  ;;  %v7489_v9 = vld [vmem:[#allocation2 + $0x98] sm:$0x1] }
 0x2b0   : > { %2685 = vmatmul.mubr.bf16.gmra.mrb[68].mxu0 %v6924_v51  ;;  %v1511_v3 = vor.u32 %v1509_v17, %v1508_v13  ;;  %v1658_v2 = vsel %vm6742_vm4, %v1508_v13, %v1657_v26  ;;  %v2184_v51 = vshrl.u32 %v6964_v28, 16  ;;  %v2188_v58 = vrot.slane %v2186_v6, 1  ;;  %v7507_v57 = vld [vmem:[#allocation2 + $0xa8] sm:$0x1] }
 0x2b1   : > { %v1504_v25 = vor.u32 %v1502_v1, %v1501_v7  ;;  %v1652_v19 = vsel %vm6742_vm4, %v1501_v7, %v1651_v49  ;;  %1659 = vst [vmem:[#allocation2 + $0xf8] sm:$0x1] %v1658_v2  ;;  %v2193_v41 = vrot.slane %v2191_v14, 1  ;;  %v2390_v26 = vrot.slane %v2116_v55, 1  ;;  %v7201_v55 = vld [vmem:[#allocation2 + $0xc8] sm:$0x1] }
 0x2b2   : > { %1653 = vst [vmem:[#allocation2 + $0xe8] sm:$0x1] %v1652_v19  ;;  %v7179_v0 = vsel %vm6815_vm6, %v1511_v3, %v1654_v8  ;;  %v2391_v49 = vrot.slane %v7164_v50, 1  ;;  %v7189_v45 = vadd.f32 %v1087_v23, %v6729_v53  ;;  %v7192_v13 = vadd.f32 %v1088_v22, %v6731_v62  ;;  %v2118_v1 = vld [vmem:[#allocation2 + $0xc0] sm:$0xfe] }
 0x2b3   : > { %v7183_v17 = vsel %vm6815_vm6, %v1504_v25, %v1648_v39  ;;  %1656 = vst [vmem:[#allocation2 + $0xf0] sm:$0xff] %v7179_v0  ;;  %v2189_v7 = vor.u32 %v2188_v58, %v2184_v51  ;;  %v2393_v8 = vrot.slane %v2117_v63, 1  ;;  %v2394_v39 = vrot.slane %v7175_v61, 1  ;;  %v2119_v51 = vld [vmem:[#allocation2 + $0xd0] sm:$0xfe] }
 0x2b4   : > { %1650 = vst [vmem:[#allocation2 + $0xe0] sm:$0xff] %v7183_v17  ;;  %8239 = vst [vmem:[#allocation69_spill] sm:$0xff] %v7189_v45  ;;  %v2392_v10 = vsel %vm1961_vm7, %v2390_v26, %v2391_v49  ;;  %v1285_v6 = vpack.c.bf16 %v7192_v13, %v7189_v45  ;;  %v2203_v23 = vshll.u32 %v7089_v27, 16  ;;  %v2196_v2 = vshrl.u32 %v6953_v34, 16  ;;  %v1663_v58 = vld [vmem:[#allocation2 + $0x108] sm:$0x1] }
 0x2b5   : > { %8240 = vst [vmem:[#allocation70_spill] sm:$0xff] %v7192_v13  ;;  %v2194_v14 = vsel %vm1720_vm8, %v2189_v7, %v2193_v41  ;;  %5588 = vmatmul.mubr.bf16.gmra.mrb[36].mxu1 %v2392_v10  ;;  %v2395_v3 = vsel %vm1961_vm7, %v2393_v8, %v2394_v39  ;;  %v2200_v25 = vrot.slane %v2198_v37, 1  ;;  %v2396_v19 = vrot.slane %v2118_v1, 1  ;;  %v7207_v7 = vld [vmem:[#allocation2 + $0xd8] sm:$0x1]  ;;  %v1660_v39 = vld [vmem:[#allocation2 + $0x100] sm:$0xff] }
 0x2b6   : > { %2692 = vmatprep.mubr.bf16.mxu0 %v2194_v14  ;;  %v1513_v63 = vshrl.u32 %v1285_v6, 16  ;;  %5591 = vmatprep.mubr.bf16.mxu1 %v2395_v3  ;;  %v2205_v22 = vrot.slane %v2203_v23, 1  ;;  %v2397_v27 = vrot.slane %v7201_v55, 1  ;;  %v1516_v49 = vshll.u32 %v1285_v6, 16  ;;  %v7385_v62 = vld [vmem:[#allocation2 + $0x98] sm:$0x1] }
 0x2b7   : > { %v2201_v41 = vor.u32 %v2200_v25, %v2196_v2  ;;  %v2210_v8 = vshll.u32 %v7024_v40, 16  ;;  %v2215_v10 = vshll.u32 %v7145_v18, 16  ;;  %v2208_v14 = vshrl.u32 %v7024_v40, 16  ;;  %v7471_v45 = vld [vmem:[#allocation2 + $0x88] sm:$0x1] }
 0x2b8   : > { %2693 = vmatmul.mubr.bf16.gmra.mrb[72].mxu0 %v6964_v28  ;;  %v1515_v26 = vrot.slane %v1513_v63, 7  ;;  %v2398_v37 = vsel %vm1961_vm7, %v2396_v19, %v2397_v27  ;;  %v2399_v28 = vrot.slane %v2119_v51, 1  ;;  %v2400_v25 = vrot.slane %v7207_v7, 1 }
 0x2b9   : > { %v2206_v1 = vsel %vm1720_vm8, %v2201_v41, %v2205_v22  ;;  %v2212_v6 = vrot.slane %v2210_v8, 1  ;;  %v2217_v2 = vrot.slane %v2215_v10, 1  ;;  %v2222_v19 = vshll.u32 %v7011_v24, 16  ;;  %v6082_v8 = vld [vmem:[#allocation2] sm:$0xff] }
 0x2ba   : > { %v1518_v23 = vor.u32 %v1516_v49, %v1515_v26  ;;  %v1664_v3 = vsel %vm6742_vm4, %v1515_v26, %v1663_v58  ;;  %2700 = vmatprep.mubr.bf16.mxu0 %v2206_v1  ;;  %v2401_v51 = vsel %vm1961_vm7, %v2399_v28, %v2400_v25  ;;  %v7224_v58 = vld [vmem:[#allocation2 + $0xe8] sm:$0x1]  ;;  %v2121_v26 = vld [vmem:[#allocation2 + $0xf0] sm:$0xfe]  ;;  %v2227_v49 = vshll.u32 %v7153_v54, 16 }
 0x2bb   : > { %1665 = vst [vmem:[#allocation2 + $0x108] sm:$0x1] %v1664_v3  ;;  %v2120_v63 = vld [vmem:[#allocation2 + $0xe0] sm:$0xfe]  ;;  %v2213_v22 = vor.u32 %v2212_v6, %v2208_v14  ;;  %v1724_v10 = vshll.u32 %v6082_v8, 16  ;;  %v2405_v14 = vrot.slane %v2121_v26, 1 }
 0x2bc   : > { %v7219_v18 = vsel %vm6815_vm6, %v1518_v23, %v1660_v39  ;;  %v2402_v27 = vrot.slane %v2120_v63, 1  ;;  %v2403_v39 = vrot.slane %v7224_v58, 1  ;;  %v7230_v1 = vld [vmem:[#allocation2 + $0xf8] sm:$0x1]  ;;  %v7232_v28 = vld [vmem:[#allocation2 + $0x8] sm:$0x1] }
 0x2bd   : > { %1662 = vst [vmem:[#allocation2 + $0x100] sm:$0xff] %v7219_v18  ;;  %5592 = vmatmul.mubr.bf16.gmra.mrb[40].mxu1 %v2398_v37  ;;  %v2218_v41 = vsel %vm1720_vm8, %v2213_v22, %v2217_v2  ;;  %v2224_v37 = vrot.slane %v2222_v19, 1  ;;  %v2229_v3 = vrot.slane %v2227_v49, 1  ;;  %v2406_v6 = vrot.slane %v7230_v1, 1 }
 0x2be   : > { %5595 = vmatprep.mubr.bf16.mxu1 %v2401_v51  ;;  %v2404_v23 = vsel %vm1961_vm7, %v2402_v27, %v2403_v39  ;;  %v1722_v2 = vshrl.u32 %v6082_v8, 16  ;;  %v1726_v54 = vrot.slane %v1724_v10, 1  ;;  %v1729_v25 = vshll.u32 %v7232_v28, 16  ;;  %v1673_v10 = vld [vmem:[#allocation2 + $0x10] sm:$0xff] }
 0x2bf   : > { %v2234_v51 = vshll.u32 %v7095_v11, 16  ;;  %v2407_v19 = vsel %vm1961_vm7, %v2405_v14, %v2406_v6  ;;  %v2239_v49 = vshll.u32 %v7164_v50, 16  ;;  %v2232_v6 = vshrl.u32 %v7095_v11, 16 }
 0x2c0   : > { %2701 = vmatmul.mubr.bf16.gmra.mrb[76].mxu0 %v6953_v34  ;;  %v2220_v34 = vshrl.u32 %v7011_v24, 16  ;;  %v1727_v39 = vor.u32 %v1726_v54, %v1722_v2  ;;  %v7254_v54 = vld [vmem:[#allocation2 + $0x20] sm:$0xff]  ;;  %v3561_v30 = vshll.u32 %v7507_v57, 16 }
 0x2c1   : > { %2708 = vmatprep.mubr.bf16.mxu0 %v2218_v41  ;;  %v2236_v29 = vrot.slane %v2234_v51, 1  ;;  %v2251_v51 = vshll.u32 %v7175_v61, 16  ;;  %v7265_v61 = vld [vmem:[#allocation2 + $0x30] sm:$0xff] }
 0x2c2   : > { %v2225_v63 = vor.u32 %v2224_v37, %v2220_v34  ;;  %v7240_v41 = vld [vmem:[#allocation2 + $0x108] sm:$0x1]  ;;  %v1731_v37 = vrot.slane %v1729_v25, 1  ;;  %v1734_v25 = vshrl.u32 %v1673_v10, 16 }
 0x2c3   : > { %v2409_v34 = vrot.slane %v7240_v41, 1  ;;  %v2237_v13 = vor.u32 %v2236_v29, %v2232_v6  ;;  %v2258_v6 = vshll.u32 %v7136_v46, 16 }
 0x2c4   : > { %v2122_v22 = vld [vmem:[#allocation2 + $0x100] sm:$0xfe]  ;;  %v2230_v27 = vsel %vm1720_vm8, %v2225_v63, %v2229_v3  ;;  %v7249_v3 = vld [vmem:[#allocation2 + $0x18] sm:$0x1]  ;;  %v2246_v63 = vshll.u32 %v7050_v21, 16 }
 0x2c5   : > { %5596 = vmatmul.mubr.bf16.gmra.mrb[44].mxu1 %v2404_v23  ;;  %v2408_v26 = vrot.slane %v2122_v22, 1  ;;  %v1736_v23 = vshll.u32 %v1673_v10, 16  ;;  %v1741_v22 = vshll.u32 %v7249_v3, 16 }
 0x2c6   : > { %5599 = vmatprep.mubr.bf16.mxu1 %v2407_v19  ;;  %v2241_v19 = vrot.slane %v2239_v49, 1 }
 0x2c7   : > { %v2410_v14 = vsel %vm1961_vm7, %v2408_v26, %v2409_v34  ;;  %v1738_v50 = vrot.slane %v1736_v23, 1  ;;  %v1748_v26 = vshll.u32 %v7254_v54, 16  ;;  %v1743_v49 = vrot.slane %v1741_v22, 1  ;;  %v7260_v34 = vld [vmem:[#allocation2 + $0x28] sm:$0x1] }
 0x2c8   : > { %2709 = vmatmul.mubr.bf16.gmra.mrb[80].mxu0 %v7024_v40  ;;  %v1732_v40 = vsel %vm1720_vm8, %v1727_v39, %v1731_v37  ;;  %v2242_v2 = vsel %vm1720_vm8, %v2237_v13, %v2241_v19  ;;  %v2244_v39 = vshrl.u32 %v7050_v21, 16  ;;  %v2253_v37 = vrot.slane %v2251_v51, 1 }
 0x2c9   : > { %2716 = vmatprep.mubr.bf16.mxu0 %v2230_v27  ;;  %v1739_v29 = vor.u32 %v1738_v50, %v1734_v25  ;;  %v2248_v27 = vrot.slane %v2246_v63, 1  ;;  %v1753_v50 = vshll.u32 %v7260_v34, 16  ;;  %v6058_v63 = vld [vmem:[#allocation9 + $0x90] sm:$0xff]   ;;  %v2260_v25 = vrot.slane %v2258_v6, 1 }
 0x2cb   : > { %v1744_v13 = vsel %vm1720_vm8, %v1739_v29, %v1743_v49  ;;  %v2249_v23 = vor.u32 %v2248_v27, %v2244_v39  ;;  %v1755_v22 = vrot.slane %v1753_v50, 1  ;;  %v6063_v29 = vld [vmem:[#allocation9 + $0x98] sm:$0xff]   ;;  %v2270_v39 = vshll.u32 %v7123_v48, 16 }
 0x2cc   : > { %v7276_v27 = vld [vmem:[#allocation2 + $0x38] sm:$0x1] }
 0x2cd   : > { %5600 = vmatmul.mubr.bf16.gmra.mrb[48].mxu1 %v2410_v14  ;;  %v1750_v14 = vrot.slane %v1748_v26, 1  ;;  %v2254_v19 = vsel %vm1720_vm8, %v2249_v23, %v2253_v37  ;;  %v7281_v37 = vld [vmem:[#allocation2 + $0x40] sm:$0xff]  ;;  %v1765_v23 = vshll.u32 %v7276_v27, 16 }
 0x2ce   : > { %3118 = vmatprep.mubr.bf16.mxu1 %v1732_v40  ;;  %v1746_v40 = vshrl.u32 %v7254_v54, 16 }
 0x2cf   : > { %v1767_v50 = vrot.slane %v1765_v23, 1 }
 0x2d0   : > { %2717 = vmatmul.mubr.bf16.gmra.mrb[84].mxu0 %v7011_v24  ;;  %v6055_v24 = vld [vmem:[#allocation9 + $0x88] sm:$0xff]  }
 0x2d1   : > { %2724 = vmatprep.mubr.bf16.mxu0 %v2242_v2  ;;  %v7272_v2 = vor.u32 %v1750_v14, %v1746_v40  ;;  %v6070_v14 = vld [vmem:[#allocation9 + $0xa0] sm:$0xff]   ;;  %v1772_v40 = vshll.u32 %v7281_v37, 16 }
 0x2d5   : > { %3119 = vmatmul.mubr.bf16.vlgmr.msra.gmra.mrb[52].mxu1 %v6082_v8  ;;  %v2263_v8 = vshll.u32 %v7201_v55, 16  ;;  %v1756_v55 = vsel %vm1720_vm8, %v7272_v2, %v1755_v22  ;;  %v1774_v22 = vrot.slane %v1772_v40, 1  ;;  %v7309_v40 = vld [vmem:[#allocation2 + $0x58] sm:$0x1] }
 0x2d6   : > { %5604 = vmatpush3.bf16.msra.mxu1 %v7119_v38  ;;  %3126 = vmatprep.mubr.bf16.mxu1 %v1744_v13  ;;  %v1760_v38 = vshll.u32 %v7265_v61, 16  ;;  %v1758_v13 = vshrl.u32 %v7265_v61, 16 }
 0x2d7   : > { %5605 = vmatprep.subr.bf16.mxu1 %v6055_v24  ;;  %v2265_v51 = vrot.slane %v2263_v8, 1 }
 0x2d8   : > { %2725 = vmatmul.mubr.bf16.gmra.mrb[88].mxu0 %v7095_v11  ;;  %v2256_v11 = vshrl.u32 %v7136_v46, 16  ;;  %v1762_v49 = vrot.slane %v1760_v38, 1 }
 0x2d9   : > { %2732 = vmatprep.mubr.bf16.mxu0 %v2254_v19  ;;  %v2272_v19 = vrot.slane %v2270_v39, 1  ;;  %v6072_v39 = vld [vmem:[#allocation9 + $0xb0] sm:$0xff]  }
 0x2da   : > { %5606 = vmatpush3.bf16.msra.mxu1 %v6055_v24  ;;  %v2261_v26 = vor.u32 %v2260_v25, %v2256_v11  ;;  %v7288_v6 = vor.u32 %v1762_v49, %v1758_v13  ;;  %v7292_v25 = vld [vmem:[#allocation2 + $0x48] sm:$0x1]  ;;  %v2282_v11 = vshll.u32 %v7183_v17, 16  ;;  %v2287_v49 = vshll.u32 %v7224_v58, 16 }
 0x2db   : > { %5607 = vmatprep.subr.bf16.mxu1 %v6058_v63 }
 0x2dc   : > { %v2266_v24 = vsel %vm1720_vm8, %v2261_v26, %v2265_v51  ;;  %v7298_v51 = vld [vmem:[#allocation2 + $0x50] sm:$0xff]  ;;  %v1777_v26 = vshll.u32 %v7292_v25, 16  ;;  %v2284_v13 = vrot.slane %v2282_v11, 1  ;;  %v2299_v11 = vshll.u32 %v7230_v1, 16 }
 0x2dd   : > { %3127 = vmatmul.mubr.bf16.gmra.mrb[56].mxu1 %v1673_v10  ;;  %v2275_v10 = vshll.u32 %v7207_v7, 16  ;;  %v1768_v7 = vsel %vm1720_vm8, %v7288_v6, %v1767_v50  ;;  %v1784_v23 = vshll.u32 %v7298_v51, 16 }
 0x2de   : > { %3134 = vmatprep.mubr.bf16.mxu1 %v1756_v55  ;;  %5608 = vmatpush3.bf16.msra.mxu1 %v6058_v63  ;;  %v6071_v63 = vld [vmem:[#allocation9 + $0xa8] sm:$0xff]   ;;  %v1770_v55 = vshrl.u32 %v7281_v37, 16 }
 0x2df   : > { %5609 = vmatprep.subr.bf16.mxu1 %v6063_v29  ;;  %v2277_v8 = vrot.slane %v2275_v10, 1  ;;  %v1779_v10 = vrot.slane %v1777_v26, 1 }
 0x2e0   : > { %2733 = vmatmul.mubr.bf16.gmra.mrb[92].mxu0 %v7050_v21  ;;  %v2268_v21 = vshrl.u32 %v7123_v48, 16 }
 0x2e1   : > { %2740 = vmatprep.mubr.bf16.mxu0 %v2266_v24  ;;  %v7305_v24 = vor.u32 %v1774_v22, %v1770_v55  ;;  %v1789_v22 = vshll.u32 %v7309_v40, 16 }
 0x2e2   : > { %5610 = vmatpush3.bf16.msra.mxu1 %v6063_v29  ;;  %v2273_v38 = vor.u32 %v2272_v19, %v2268_v21  ;;  %v6073_v19 = vld [vmem:[#allocation9 + $0xb8] sm:$0xff]   ;;  %v1786_v21 = vrot.slane %v1784_v23, 1  ;;  %v7329_v23 = vld [vmem:[#allocation2 + $0x68] sm:$0x1] }
 0x2e3   : > { %5611 = vmatprep.subr.bf16.mxu1 %v6070_v14  ;;  %v1780_v58 = vsel %vm1720_vm8, %v7305_v24, %v1779_v10 }
 0x2e4   : > { %v2278_v29 = vsel %vm1720_vm8, %v2273_v38, %v2277_v8  ;;  %v2294_v8 = vshll.u32 %v7179_v0, 16  ;;  %v1782_v38 = vshrl.u32 %v7298_v51, 16 }
 0x2e5   : > { %3135 = vmatmul.mubr.bf16.gmra.mrb[60].mxu1 %v7254_v54 }
 0x2e6   : > { %3142 = vmatprep.mubr.bf16.mxu1 %v1768_v7  ;;  %5612 = vmatpush3.bf16.msra.mxu1 %v6070_v14  ;;  %v2289_v14 = vrot.slane %v2287_v49, 1  ;;  %v7315_v7 = vld [vmem:[#allocation2 + $0x60] sm:$0xff]  ;;  %v7324_v55 = vor.u32 %v1786_v21, %v1782_v38  ;;  %v2296_v26 = vrot.slane %v2294_v8, 1  ;;  %v1801_v21 = vshll.u32 %v7329_v23, 16 }
 0x2e7   : > { %5613 = vmatprep.subr.bf16.mxu1 %v6071_v63  ;;  %v1796_v49 = vshll.u32 %v7315_v7, 16  ;;  %v2311_v8 = vshll.u32 %v7240_v41, 16  ;;  %v7351_v41 = vld [vmem:[#allocation2 + $0x28] sm:$0x1] }
 0x2e8   : > { %2741 = vmatmul.mubr.bf16.gmra.mrb[96].mxu0 %v7136_v46  ;;  %v2280_v46 = vshrl.u32 %v7183_v17, 16 }
 0x2e9   : > { %2748 = vmatprep.mubr.bf16.mxu0 %v2278_v29  ;;  %v7322_v29 = vld [vmem:[#allocation9 + $0x200] sm:$0xff]  }
 0x2ea   : > { %5614 = vmatpush3.bf16.msra.mxu1 %v6071_v63  ;;  %v2285_v50 = vor.u32 %v2284_v13, %v2280_v46  ;;  %v2301_v13 = vrot.slane %v2299_v11, 1  ;;  %v1798_v46 = vrot.slane %v1796_v49, 1  ;;  %v1803_v11 = vrot.slane %v1801_v21, 1 }
 0x2eb   : > { %5615 = vmatprep.subr.bf16.mxu1 %v6072_v39  ;;  %v2313_v49 = vrot.slane %v2311_v8, 1 }
 0x2ec   : > { %v2290_v63 = vsel %vm1720_vm8, %v2285_v50, %v2289_v14  ;;  %v2306_v14 = vshll.u32 %v7219_v18, 16  ;;  %v1794_v50 = vshrl.u32 %v7315_v7, 16 }
 0x2ed   : > { %3143 = vmatmul.mubr.bf16.gmra.mrb[64].mxu1 %v7265_v61 }
 0x2ee   : > { %3150 = vmatprep.mubr.bf16.mxu1 %v1780_v58  ;;  %5616 = vmatpush3.bf16.msra.mxu1 %v6072_v39  ;;  %v1791_v39 = vrot.slane %v1789_v22, 1  ;;  %v7335_v58 = vld [vmem:[#allocation2 + $0x70] sm:$0xff]  ;;  %v2308_v38 = vrot.slane %v2306_v14, 1 }
 0x2ef   : > { %5617 = vmatprep.subr.bf16.mxu1 %v6073_v19  ;;  %v1808_v22 = vshll.u32 %v7335_v58, 16 }
 0x2f0   : > { %2749 = vmatmul.mubr.bf16.gmra.mrb[100].mxu0 %v7123_v48  ;;  %v2292_v48 = vshrl.u32 %v7179_v0, 16  ;;  %v1792_v1 = vsel %vm1720_vm8, %v7324_v55, %v1791_v39  ;;  %v7346_v39 = vld [vmem:[#allocation2 + $0x78] sm:$0x1] }
 0x2f1   : > { %2756 = vmatprep.mubr.bf16.mxu0 %v2290_v63  ;;  %v7342_v63 = vor.u32 %v1798_v46, %v1794_v50  ;;  %v1806_v46 = vshrl.u32 %v7335_v58, 16  ;;  %v1813_v14 = vshll.u32 %v7346_v39, 16  ;;  %v3465_v50 = vshll.u32 %v7351_v41, 16 }
 0x2f2   : > { %5618 = vmatpush3.bf16.msra.mxu1 %v6073_v19  ;;  %v2297_v10 = vor.u32 %v2296_v26, %v2292_v48  ;;  %v2304_v26 = vshrl.u32 %v7219_v18, 16 }
 0x2f3   : > { %5651 = vmatprep.subr.bf16.mxu1 %v7322_v29  ;;  %v1815_v8 = vrot.slane %v1813_v14, 1 }
 0x2f4   : > { %v2302_v19 = vsel %vm1720_vm8, %v2297_v10, %v2301_v13  ;;  %v2309_v48 = vor.u32 %v2308_v38, %v2304_v26  ;;  %v1810_v13 = vrot.slane %v1808_v22, 1  ;;  %v7363_v38 = vld [vmem:[#allocation2 + $0x88] sm:$0x1]  ;;  %v3467_v22 = vrot.slane %v3465_v50, 1  ;;  %v7368_v26 = vld [vmem:[#allocation2 + $0x38] sm:$0x1] }
 0x2f5   : > { %3151 = vmatmul.mubr.bf16.gmra.mrb[68].mxu1 %v7281_v37 }
 0x2f6   : > { %3158 = vmatprep.mubr.bf16.mxu1 %v1792_v1  ;;  %v7353_v1 = vld [vmem:[#allocation2 + $0x80] sm:$0xff]  ;;  %v2314_v10 = vsel %vm1720_vm8, %v2309_v48, %v2313_v49  ;;  %v1341_v48 = vld [vmem:[#allocation2 + $0x110] sm:$0x1] }
 0x2f7   : > { %v1820_v21 = vshll.u32 %v7353_v1, 16  ;;  %v1818_v49 = vshrl.u32 %v7353_v1, 16  ;;  %v1342_v14 = vsel %vm6742_vm4, 0, %v1341_v48  ;;  %v7390_v48 = vld [vmem:[#allocation2 + $0x48] sm:$0x1] }
 0x2f8   : > { %2757 = vmatmul.mubr.bf16.gmra.mrb[104].mxu0 %v7183_v17  ;;  %v1804_v17 = vsel %vm1720_vm8, %v7342_v63, %v1803_v11  ;;  %1343 = vst [vmem:[#allocation2 + $0x110] sm:$0x1] %v1342_v14 }
 0x2f9   : > { %2764 = vmatprep.mubr.bf16.mxu0 %v2302_v19  ;;  %v7359_v19 = vor.u32 %v1810_v13, %v1806_v46  ;;  %v1822_v11 = vrot.slane %v1820_v21, 1  ;;  %v1397_v13 = vld [vmem:[#allocation2 + $0x118] sm:$0x1]  ;;  %v1825_v46 = vshll.u32 %v7363_v38, 16 }
 0x2fa   : > { %v1398_v50 = vsel %vm6736_vm2, 0, %v1397_v13  ;;  %v7392_v13 = vld [vmem:[#allocation2 + $0xa0] sm:$0xff] }
 0x2fb   : > { %1399 = vst [vmem:[#allocation2 + $0x118] sm:$0x1] %v1398_v50  ;;  %v7381_v21 = vor.u32 %v1822_v11, %v1818_v49 }
 0x2fd   : > { %3159 = vmatmul.mubr.bf16.gmra.mrb[72].mxu1 %v7298_v51 }
 0x2fe   : > { %3166 = vmatprep.mubr.bf16.mxu1 %v1804_v17  ;;  %v7371_v17 = vld [vmem:[#allocation2 + $0x90] sm:$0xff] }
 0x2ff   : > { %v1830_v49 = vshrl.u32 %v7371_v17, 16 }
 0x300   : > { %2765 = vmatmul.mubr.bf16.gmra.mrb[108].mxu0 %v7179_v0  ;;  %v1816_v0 = vsel %vm1720_vm8, %v7359_v19, %v1815_v8  ;;  %v3477_v8 = vshll.u32 %v7368_v26, 16 }
 0x301   : > { %2772 = vmatprep.mubr.bf16.mxu0 %v2314_v10  ;;  %v3468_v10 = vsel %vm1720_vm8, %v7272_v2, %v3467_v22 }
 0x302   : > { %v3479_v22 = vrot.slane %v3477_v8, 1  ;;  %v1669_v14 = vld [vmem:[#allocation2 + $0x118] sm:$0x1] }
 0x303   : > { %v1670_v8 = vsel %vm6742_vm4, %v6812_v35, %v1669_v14 }
 0x304   : > { %v3480_v11 = vsel %vm1720_vm8, %v7288_v6, %v3479_v22  ;;  %v3489_v6 = vshll.u32 %v7390_v48, 16  ;;  %1671 = vst [vmem:[#allocation2 + $0x118] sm:$0x1] %v1670_v8 }
 0x305   : > { %3167 = vmatmul.mubr.bf16.gmra.mrb[76].mxu1 %v7315_v7 }
 0x306   : > { %3174 = vmatprep.mubr.bf16.mxu1 %v1816_v0  ;;  %v1827_v0 = vrot.slane %v1825_v46, 1  ;;  %v1666_v46 = vld [vmem:[#allocation2 + $0x110] sm:$0xff]  ;;  %v3491_v22 = vrot.slane %v3489_v6, 1 }
 0x307   : > { %v7402_v50 = vsel %vm6815_vm6, %v6812_v35, %v1666_v46  ;;  %v7417_v35 = vld [vmem:[#allocation2 + $0x58] sm:$0x1] }
 0x308   : > { %2773 = vmatmul.mubr.bf16.gmra.mrb[112].mxu0 %v7219_v18  ;;  %v1832_v18 = vshll.u32 %v7371_v17, 16  ;;  %v1828_v2 = vsel %vm1720_vm8, %v7381_v21, %v1827_v0  ;;  %1668 = vst [vmem:[#allocation2 + $0x110] sm:$0xff] %v7402_v50  ;;  %v3501_v14 = vshll.u32 %v7417_v35, 16 }
 0x309   : > { %3986 = vmatprep.mubr.bf16.mxu0 %v3468_v10  ;;  %v1837_v10 = vshll.u32 %v7385_v62, 16 }
 0x30a   : > { %v1834_v4 = vrot.slane %v1832_v18, 1  ;;  %v1844_v18 = vshll.u32 %v7392_v13, 16 }
 0x30b   : > { %v1839_v0 = vrot.slane %v1837_v10, 1 }
 0x30c   : > { %v1846_v16 = vrot.slane %v1844_v18, 1  ;;  %v7430_v18 = vld [vmem:[#allocation2 + $0xb8] sm:$0x1] }
 0x30d   : > { %3175 = vmatmul.mubr.bf16.gmra.mrb[80].mxu1 %v7335_v58 }
 0x30e   : > { %3182 = vmatprep.mubr.bf16.mxu1 %v1828_v2  ;;  %v7412_v2 = vld [vmem:[#allocation2 + $0xa8] sm:$0x1] }
 0x30f   : > { %v1849_v10 = vshll.u32 %v7412_v2, 16 }
 0x310   : > { %3987 = vmatmul.mubr.bf16.vlgmr.msra.gmra.mrb[116].mxu0 %v7254_v54  ;;  %v7407_v54 = vor.u32 %v1834_v4, %v1830_v49  ;;  %v7419_v4 = vld [vmem:[#allocation2 + $0xb0] sm:$0xff]  ;;  %v1842_v49 = vshrl.u32 %v7392_v13, 16 }
 0x311   : > { %3994 = vmatprep.mubr.bf16.mxu0 %v3480_v11  ;;  %v3492_v11 = vsel %vm1720_vm8, %v7305_v24, %v3491_v22  ;;  %v1856_v8 = vshll.u32 %v7419_v4, 16  ;;  %v1851_v6 = vrot.slane %v1849_v10, 1  ;;  %v3503_v24 = vrot.slane %v3501_v14, 1  ;;  %v7437_v22 = vld [vmem:[#allocation2 + $0xc0] sm:$0xff] }
 0x312   : > { %v1840_v5 = vsel %vm1720_vm8, %v7407_v54, %v1839_v0  ;;  %v7426_v46 = vor.u32 %v1846_v16, %v1842_v49  ;;  %v1861_v49 = vshll.u32 %v7430_v18, 16 }
 0x313   : > { %v1858_v0 = vrot.slane %v1856_v8, 1  ;;  %v3504_v16 = vsel %vm1720_vm8, %v7324_v55, %v3503_v24  ;;  %v1868_v8 = vshll.u32 %v7437_v22, 16 }
 0x315   : > { %3183 = vmatmul.mubr.bf16.gmra.mrb[84].mxu1 %v7353_v1  ;;  %v1870_v24 = vrot.slane %v1868_v8, 1 }
 0x316   : > { %3190 = vmatprep.mubr.bf16.mxu1 %v1840_v5  ;;  %v7435_v5 = vld [vmem:[#allocation2 + $0x68] sm:$0x1] }
 0x317   : > { %v3513_v14 = vshll.u32 %v7435_v5, 16 }
 0x318   : > { %3995 = vmatmul.mubr.bf16.gmra.mrb[120].mxu0 %v7265_v61  ;;  %v1852_v61 = vsel %vm1720_vm8, %v7426_v46, %v1851_v6  ;;  %v1863_v6 = vrot.slane %v1861_v49, 1 }
 0x319   : > { %4002 = vmatprep.mubr.bf16.mxu0 %v3492_v11  ;;  %v1854_v11 = vshrl.u32 %v7419_v4, 16  ;;  %v3515_v55 = vrot.slane %v3513_v14, 1  ;;  %v3525_v14 = vshll.u32 %v7453_v43, 16 }
 0x31b   : > { %v7444_v10 = vor.u32 %v1858_v0, %v1854_v11  ;;  %v3516_v0 = vsel %vm1720_vm8, %v7342_v63, %v3515_v55  ;;  %v1866_v11 = vshrl.u32 %v7437_v22, 16  ;;  %v3527_v63 = vrot.slane %v3525_v14, 1 }
 0x31c   : > { %v3537_v14 = vshll.u32 %v7471_v45, 16 }
 0x31d   : > { %3191 = vmatmul.mubr.bf16.gmra.mrb[88].mxu1 %v7371_v17  ;;  %v7462_v32 = vor.u32 %v1870_v24, %v1866_v11  ;;  %v3528_v24 = vsel %vm1720_vm8, %v7359_v19, %v3527_v63 }
 0x31e   : > { %3198 = vmatprep.mubr.bf16.mxu1 %v1852_v61  ;;  %v7448_v61 = vld [vmem:[#allocation2 + $0xc8] sm:$0x1]  ;;  %v3539_v19 = vrot.slane %v3537_v14, 1  ;;  %v3549_v14 = vshll.u32 %v7489_v9, 16 }
 0x31f   : > { %v1873_v49 = vshll.u32 %v7448_v61, 16 }
 0x320   : > { %4003 = vmatmul.mubr.bf16.gmra.mrb[124].mxu0 %v7281_v37  ;;  %v1864_v37 = vsel %vm1720_vm8, %v7444_v10, %v1863_v6 }
 0x321   : > { %4010 = vmatprep.mubr.bf16.mxu0 %v3504_v16  ;;  %v7455_v16 = vld [vmem:[#allocation2 + $0xd0] sm:$0xff]  ;;  %v1875_v6 = vrot.slane %v1873_v49, 1 }
 0x322   : > { %v1880_v8 = vshll.u32 %v7455_v16, 16  ;;  %v1878_v11 = vshrl.u32 %v7455_v16, 16 }
 0x324   : > { %v1882_v55 = vrot.slane %v1880_v8, 1 }
 0x325   : > { %3199 = vmatmul.mubr.bf16.gmra.mrb[92].mxu1 %v7392_v13 }
 0x326   : > { %3206 = vmatprep.mubr.bf16.mxu1 %v1864_v37  ;;  %v7466_v37 = vld [vmem:[#allocation2 + $0xd8] sm:$0x1]  ;;  %v7480_v53 = vor.u32 %v1882_v55, %v1878_v11  ;;  %v3540_v55 = vsel %vm1720_vm8, %v7381_v21, %v3539_v19  ;;  %v3551_v21 = vrot.slane %v3549_v14, 1  ;;  %v1704_v14 = vld [vmem:[#allocation2] sm:$0xfe] }
 0x327   : > { %v1885_v49 = vshll.u32 %v7466_v37, 16 }
 0x328   : > { %4011 = vmatmul.mubr.bf16.gmra.mrb[128].mxu0 %v7298_v51  ;;  %v1876_v51 = vsel %vm1720_vm8, %v7462_v32, %v1875_v6 }
 0x329   : > { %4018 = vmatprep.mubr.bf16.mxu0 %v3516_v0  ;;  %v7473_v0 = vld [vmem:[#allocation2 + $0xe0] sm:$0xff]  ;;  %v1887_v6 = vrot.slane %v1885_v49, 1 }
 0x32a   : > { %v1892_v8 = vshll.u32 %v7473_v0, 16  ;;  %v1890_v11 = vshrl.u32 %v7473_v0, 16 }
 0x32c   : > { %v1894_v63 = vrot.slane %v1892_v8, 1 }
 0x32d   : > { %3207 = vmatmul.mubr.bf16.gmra.mrb[96].mxu1 %v7419_v4 }
 0x32e   : > { %3214 = vmatprep.mubr.bf16.mxu1 %v1876_v51  ;;  %v7484_v51 = vld [vmem:[#allocation2 + $0xe8] sm:$0x1]  ;;  %v7498_v31 = vor.u32 %v1894_v63, %v1890_v11  ;;  %v3552_v63 = vsel %vm1720_vm8, %v7407_v54, %v3551_v21  ;;  %v1962_v21 = vrot.slane %v1704_v14, 1 }
 0x32f   : > { %v1897_v49 = vshll.u32 %v7484_v51, 16 }
 0x330   : > { %4019 = vmatmul.mubr.bf16.gmra.mrb[132].mxu0 %v7315_v7  ;;  %v1888_v7 = vsel %vm1720_vm8, %v7480_v53, %v1887_v6 }
 0x331   : > { %4026 = vmatprep.mubr.bf16.mxu0 %v3528_v24  ;;  %v7491_v24 = vld [vmem:[#allocation2 + $0xf0] sm:$0xff]  ;;  %v1899_v6 = vrot.slane %v1897_v49, 1 }
 0x332   : > { %v1904_v8 = vshll.u32 %v7491_v24, 16 }
 0x334   : > { %v1906_v19 = vrot.slane %v1904_v8, 1 }
 0x335   : > { %3215 = vmatmul.mubr.bf16.gmra.mrb[100].mxu1 %v7437_v22 }
 0x336   : > { %3222 = vmatprep.mubr.bf16.mxu1 %v1888_v7  ;;  %v7502_v7 = vld [vmem:[#allocation2 + $0xf8] sm:$0x1] }
 0x337   : > { %v1909_v11 = vshll.u32 %v7502_v7, 16 }
 0x338   : > { %4027 = vmatmul.mubr.bf16.gmra.mrb[136].mxu0 %v7335_v58  ;;  %v1900_v58 = vsel %vm1720_vm8, %v7498_v31, %v1899_v6 }
 0x339   : > { %4034 = vmatprep.mubr.bf16.mxu0 %v3540_v55  ;;  %v1902_v55 = vshrl.u32 %v7491_v24, 16  ;;  %v1911_v6 = vrot.slane %v1909_v11, 1 }
 0x33b   : > { %v7514_v49 = vor.u32 %v1906_v19, %v1902_v55  ;;  %v1963_v19 = vrot.slane %v7232_v28, 1 }
 0x33d   : > { %3223 = vmatmul.mubr.bf16.gmra.mrb[104].mxu1 %v7455_v16  ;;  %v1912_v8 = vsel %vm1720_vm8, %v7514_v49, %v1911_v6  ;;  %v1964_v55 = vsel %vm1961_vm7, %v1962_v21, %v1963_v19  ;;  %v1706_v6 = vld [vmem:[#allocation2 + $0x20] sm:$0xfe]  ;;  %v6075_v21 = vld [vmem:[#allocation9 + $0x208] sm:$0xff]  }
 0x33e   : > { %3230 = vmatprep.mubr.bf16.mxu1 %v1900_v58  ;;  %v7520_v58 = vld [vmem:[#allocation2 + $0xb8] sm:$0x1] }
 0x340   : > { %4035 = vmatmul.mubr.bf16.gmra.mrb[140].mxu0 %v7353_v1  ;;  %v3563_v1 = vrot.slane %v3561_v30, 1  ;;  %v1705_v30 = vld [vmem:[#allocation2 + $0x10] sm:$0xfe] }
 0x341   : > { %4042 = vmatprep.mubr.bf16.mxu0 %v3552_v63  ;;  %v3573_v63 = vshll.u32 %v7520_v58, 16  ;;  %v1965_v28 = vrot.slane %v1705_v30, 1 }
 0x342   : > { %v3564_v54 = vsel %vm1720_vm8, %v7426_v46, %v3563_v1  ;;  %v1968_v46 = vrot.slane %v1706_v6, 1  ;;  %v1966_v1 = vrot.slane %v7249_v3, 1 }
 0x343   : > { %v3575_v11 = vrot.slane %v3573_v63, 1 }
 0x344   : > { %v1967_v19 = vsel %vm1961_vm7, %v1965_v28, %v1966_v1  ;;  %v1972_v28 = vrot.slane %v7276_v27, 1  ;;  %v6077_v1 = vld [vmem:[#allocation9 + $0x218] sm:$0xff]   ;;  %v1710_v27 = vld [vmem:[#allocation2 + $0x60] sm:$0xfe] }
 0x345   : > { %3231 = vmatmul.mubr.bf16.gmra.mrb[108].mxu1 %v7473_v0 }
 0x346   : > { %3238 = vmatprep.mubr.bf16.mxu1 %v1912_v8  ;;  %v7529_v8 = vld [vmem:[#allocation2 + $0xc8] sm:$0x1] }
 0x347   : > { %v3585_v14 = vshll.u32 %v7529_v8, 16 }
 0x348   : > { %4043 = vmatmul.mubr.bf16.gmra.mrb[144].mxu0 %v7371_v17  ;;  %v3576_v17 = vsel %vm1720_vm8, %v7444_v10, %v3575_v11  ;;  %v1708_v10 = vld [vmem:[#allocation2 + $0x40] sm:$0xfe]  ;;  %v7540_v11 = vld [vmem:[#allocation2 + $0xd8] sm:$0x1] }
 0x349   : > { %4050 = vmatprep.mubr.bf16.mxu0 %v3564_v54  ;;  %v1969_v54 = vrot.slane %v7260_v34, 1  ;;  %v6076_v34 = vld [vmem:[#allocation9 + $0x210] sm:$0xff]   ;;  %v1974_v6 = vrot.slane %v1708_v10, 1 }
 0x34b   : > { %v1970_v63 = vsel %vm1961_vm7, %v1968_v46, %v1969_v54  ;;  %v1975_v46 = vrot.slane %v7292_v25, 1  ;;  %v7554_v25 = vld [vmem:[#allocation2 + $0xe8] sm:$0x1] }
 0x34d   : > { %3239 = vmatmul.mubr.bf16.gmra.mrb[112].mxu1 %v7491_v24 }
 0x34e   : > { %5619 = vmatprep.mubr.bf16.mxu1 %v1964_v55  ;;  %v3587_v55 = vrot.slane %v3585_v14, 1 }
 0x350   : > { %4051 = vmatmul.mubr.bf16.gmra.mrb[148].mxu0 %v7392_v13  ;;  %v1707_v13 = vld [vmem:[#allocation2 + $0x30] sm:$0xfe]  ;;  %v3588_v3 = vsel %vm1720_vm8, %v7462_v32, %v3587_v55 }
 0x351   : > { %4058 = vmatprep.mubr.bf16.mxu0 %v3576_v17  ;;  %v1971_v30 = vrot.slane %v1707_v13, 1  ;;  %v3597_v17 = vshll.u32 %v7540_v11, 16  ;;  %v1709_v55 = vld [vmem:[#allocation2 + $0x50] sm:$0xfe] }
 0x355   : > { %5620 = vmatmul.mubr.bf16.vlgmr.msra.gmra.mrb[20].mxu1 %v1967_v19  ;;  %v1976_v19 = vsel %vm1961_vm7, %v1974_v6, %v1975_v46  ;;  %v1980_v6 = vrot.slane %v1710_v27, 1  ;;  %v1984_v27 = vrot.slane %v7346_v39, 1 }
 0x356   : > { %5652 = vmatpush3.bf16.msra.mxu1 %v7322_v29  ;;  %5623 = vmatprep.mubr.bf16.mxu1 %v1970_v63  ;;  %v3599_v63 = vrot.slane %v3597_v17, 1  ;;  %v3609_v17 = vshll.u32 %v7554_v25, 16 }
 0x357   : > { %5653 = vmatprep.subr.bf16.mxu1 %v6075_v21 }
 0x358   : > { %4059 = vmatmul.mubr.bf16.gmra.mrb[152].mxu0 %v7419_v4  ;;  %v1973_v4 = vsel %vm1961_vm7, %v1971_v30, %v1972_v28  ;;  %v3600_v10 = vsel %vm1720_vm8, %v7480_v53, %v3599_v63  ;;  %v1977_v30 = vrot.slane %v1709_v55, 1  ;;  %v1978_v28 = vrot.slane %v7309_v40, 1 }
 0x359   : > { %4066 = vmatprep.mubr.bf16.mxu0 %v3588_v3  ;;  %v6078_v3 = vld [vmem:[#allocation9 + $0x220] sm:$0xff]   ;;  %v3611_v53 = vrot.slane %v3609_v17, 1 }
 0x35a   : > { %5654 = vmatpush3.bf16.msra.mxu1 %v6075_v21  ;;  %v1979_v46 = vsel %vm1961_vm7, %v1977_v30, %v1978_v28 }
 0x35b   : > { %5655 = vmatprep.subr.bf16.mxu1 %v6076_v34  ;;  %v3612_v40 = vsel %vm1720_vm8, %v7498_v31, %v3611_v53  ;;  %v7581_v53 = vld [vmem:[#allocation2 + $0x108] sm:$0x1] }
 0x35c   : > { %v5059_v29 = vpop.f32.mrb[52].mxu0 }
 0x35d   : > { %v5060_v14 = vpop.f32.mrb[53].mxu0  ;;  %5624 = vmatmul.mubr.bf16.gmra.mrb[24].mxu1 %v1973_v4  ;;  %v1712_v4 = vld [vmem:[#allocation2 + $0x80] sm:$0xfe] }
 0x35e   : > { %v7549_v54 = vadd.f32 %v5060_v14, %v5059_v29  ;;  %v5062_v32 = vpop.f32.mrb[54].mxu0  ;;  %5627 = vmatprep.mubr.bf16.mxu1 %v1976_v19  ;;  %5656 = vmatpush3.bf16.msra.mxu1 %v6076_v34  ;;  %v1981_v34 = vrot.slane %v7329_v23, 1  ;;  %v6079_v29 = vld [vmem:[#allocation9 + $0x228] sm:$0xff]   ;;  %v1711_v14 = vld [vmem:[#allocation2 + $0x70] sm:$0xfe]  ;;  %v7569_v19 = vld [vmem:[#allocation2 + $0x100] sm:$0xff] }
 0x35f   : > { %v5063_v13 = vpop.f32.mrb[55].mxu0  ;;  %5657 = vmatprep.subr.bf16.mxu1 %v6077_v1  ;;  %v6080_v23 = vld [vmem:[#allocation9 + $0x230] sm:$0xff]   ;;  %v1986_v55 = vrot.slane %v1712_v4, 1  ;;  %v3628_v31 = vshll.u32 %v7569_v19, 16 }
 0x360   : > { %v7552_v21 = vadd.f32 %v5063_v13, %v5062_v32  ;;  %4067 = vmatmul.mubr.bf16.gmra.mrb[156].mxu0 %v7437_v22  ;;  %v1982_v22 = vsel %vm1961_vm7, %v1980_v6, %v1981_v34  ;;  %v7564_v32 = vld [vmem:[#allocation2 + $0xf8] sm:$0x1]  ;;  %v1713_v34 = vld [vmem:[#allocation2 + $0x90] sm:$0xfe] }
 0x361   : > { %4074 = vmatprep.mubr.bf16.mxu0 %v3600_v10  ;;  %v3621_v13 = vshll.u32 %v7564_v32, 16  ;;  %v6081_v6 = vld [vmem:[#allocation9 + $0x238] sm:$0xff]   ;;  %v1989_v4 = vrot.slane %v1713_v34, 1 }
 0x362   : > { %5658 = vmatpush3.bf16.msra.mxu1 %v6077_v1  ;;  %v1983_v1 = vrot.slane %v1711_v14, 1  ;;  %v3630_v14 = vrot.slane %v3628_v31, 1 }
 0x363   : > { %5659 = vmatprep.subr.bf16.mxu1 %v6078_v3  ;;  %v3623_v39 = vrot.slane %v3621_v13, 1  ;;  %v3640_v13 = vshll.u32 %v7402_v50, 16 }
 0x364   : > { %v1985_v17 = vsel %vm1961_vm7, %v1983_v1, %v1984_v27  ;;  %v3633_v1 = vshll.u32 %v7581_v53, 16  ;;  %v1990_v27 = vrot.slane %v7385_v62, 1  ;;  %v1715_v62 = vld [vmem:[#allocation2 + $0xb0] sm:$0xfe] }
 0x365   : > { %5628 = vmatmul.mubr.bf16.gmra.mrb[28].mxu1 %v1979_v46 }
 0x366   : > { %5631 = vmatprep.mubr.bf16.mxu1 %v1982_v22  ;;  %5660 = vmatpush3.bf16.msra.mxu1 %v6078_v3  ;;  %v1991_v31 = vsel %vm1961_vm7, %v1989_v4, %v1990_v27  ;;  %v3635_v34 = vrot.slane %v3633_v1, 1 }
 0x367   : > { %5661 = vmatprep.subr.bf16.mxu1 %v6079_v29 }
 0x368   : > { %4075 = vmatmul.mubr.bf16.gmra.mrb[160].mxu0 %v7455_v16  ;;  %v1987_v16 = vrot.slane %v7363_v38, 1  ;;  %v3624_v38 = vsel %vm1720_vm8, %v7514_v49, %v3623_v39  ;;  %v3638_v39 = vshrl.u32 %v7402_v50, 16 }
 0x369   : > { %4082 = vmatprep.mubr.bf16.mxu0 %v3612_v40 }
 0x36a   : > { %5662 = vmatpush3.bf16.msra.mxu1 %v6079_v29  ;;  %v1988_v46 = vsel %vm1961_vm7, %v1986_v55, %v1987_v16  ;;  %v1714_v29 = vld [vmem:[#allocation2 + $0xa0] sm:$0xfe]  ;;  %v3626_v55 = vshrl.u32 %v7569_v19, 16 }
 0x36b   : > { %v5065_v63 = vpop.f32.mrb[56].mxu0  ;;  %5663 = vmatprep.subr.bf16.mxu1 %v6080_v23  ;;  %v1992_v40 = vrot.slane %v1714_v29, 1 }
 0x36c   : > { %v5066_v10 = vpop.f32.mrb[57].mxu0 }
 0x36d   : > { %v7573_v3 = vadd.f32 %v5066_v10, %v5065_v63  ;;  %v5068_v30 = vpop.f32.mrb[58].mxu0  ;;  %5632 = vmatmul.mubr.bf16.gmra.mrb[32].mxu1 %v1985_v17  ;;  %v7591_v10 = vld [vmem:[#allocation2 + $0x118] sm:$0x1] }
 0x36e   : > { %v5069_v28 = vpop.f32.mrb[59].mxu0  ;;  %5635 = vmatprep.mubr.bf16.mxu1 %v1988_v46  ;;  %5664 = vmatpush3.bf16.msra.mxu1 %v6080_v23  ;;  %v3645_v29 = vshll.u32 %v7591_v10, 16 }
 0x36f   : > { %v7579_v22 = vadd.f32 %v5069_v28, %v5068_v30  ;;  %5665 = vmatprep.subr.bf16.mxu1 %v6081_v6  ;;  %v3631_v30 = vor.u32 %v3630_v14, %v3626_v55  ;;  %v1995_v14 = vrot.slane %v1715_v62, 1  ;;  %v1996_v55 = vrot.slane %v7430_v18, 1 }
 0x370   : > { %4083 = vmatmul.mubr.bf16.gmra.mrb[164].mxu0 %v7473_v0  ;;  %v1993_v0 = vrot.slane %v7412_v2, 1  ;;  %v3642_v2 = vrot.slane %v3640_v13, 1  ;;  %v1999_v13 = vrot.slane %v7448_v61, 1 }
 0x371   : > { %4090 = vmatprep.mubr.bf16.mxu0 %v3624_v38  ;;  %v3636_v38 = vsel %vm1720_vm8, %v3631_v30, %v3635_v34  ;;  %v1718_v34 = vld [vmem:[#allocation2 + $0xe0] sm:$0xfe] }
 0x372   : > { %5666 = vmatpush3.bf16.msra.mxu1 %v6081_v6  ;;  %v1994_v17 = vsel %vm1961_vm7, %v1992_v40, %v1993_v0  ;;  %v1716_v6 = vld [vmem:[#allocation2 + $0xc0] sm:$0xfe]  ;;  %v3643_v1 = vor.u32 %v3642_v2, %v3638_v39  ;;  %v2004_v61 = vrot.slane %v1718_v34, 1  ;;  %v2002_v39 = vrot.slane %v7466_v37, 1 }
 0x373   : > { %v5071_v63 = vpop.f32.mrb[60].mxu0  ;;  %v1998_v40 = vrot.slane %v1716_v6, 1  ;;  %v2005_v6 = vrot.slane %v7484_v51, 1 }
 0x374   : > { %v5072_v23 = vpop.f32.mrb[61].mxu0 }
 0x375   : > { %v7593_v49 = vadd.f32 %v5072_v23, %v5071_v63  ;;  %v5074_v16 = vpop.f32.mrb[62].mxu0  ;;  %5636 = vmatmul.mubr.bf16.gmra.mrb[36].mxu1 %v1991_v31  ;;  %v3647_v63 = vrot.slane %v3645_v29, 1 }
 0x376   : > { %v5075_v28 = vpop.f32.mrb[63].mxu0  ;;  %5639 = vmatprep.mubr.bf16.mxu1 %v1994_v17  ;;  %v1717_v17 = vld [vmem:[#allocation2 + $0xd0] sm:$0xfe] }
 0x377   : > { %v7597_v46 = vadd.f32 %v5075_v28, %v5074_v16  ;;  %v1997_v16 = vsel %vm1961_vm7, %v1995_v14, %v1996_v55  ;;  %v3648_v28 = vsel %vm1720_vm8, %v3643_v1, %v3647_v63  ;;  %v2001_v18 = vrot.slane %v1717_v17, 1  ;;  %v3441_v63 = vld [vmem:[#allocation2 + $0x20] sm:$0xfe] }
 0x378   : > { %4091 = vmatmul.mubr.bf16.gmra.mrb[168].mxu0 %v7491_v24  ;;  %v2000_v24 = vsel %vm1961_vm7, %v1998_v40, %v1999_v13  ;;  %v2006_v40 = vsel %vm1961_vm7, %v2004_v61, %v2005_v6  ;;  %v2008_v13 = vrot.slane %v7502_v7, 1 }
 0x379   : > { %4098 = vmatprep.mubr.bf16.mxu0 %v3636_v38  ;;  %v2003_v14 = vsel %vm1961_vm7, %v2001_v18, %v2002_v39  ;;  %v3443_v18 = vld [vmem:[#allocation2 + $0x40] sm:$0xfe]  ;;  %v3701_v39 = vrot.slane %v7368_v26, 1 }
 0x37a   : > { %v3703_v7 = vrot.slane %v3443_v18, 1  ;;  %v3446_v18 = vld [vmem:[#allocation2 + $0x70] sm:$0xfe] }
 0x37b   : > { %v5077_v4 = vpop.f32.mrb[64].mxu0 }
 0x37c   : > { %v5078_v27 = vpop.f32.mrb[65].mxu0 }
 0x37d   : > { %v7604_v23 = vadd.f32 %v5078_v27, %v5077_v4  ;;  %v5080_v0 = vpop.f32.mrb[66].mxu0  ;;  %5640 = vmatmul.mubr.bf16.gmra.mrb[40].mxu1 %v1997_v16  ;;  %v3697_v27 = vrot.slane %v3441_v63, 1  ;;  %v3698_v16 = vrot.slane %v7351_v41, 1  ;;  %v3704_v41 = vrot.slane %v7390_v48, 1  ;;  %v3444_v63 = vld [vmem:[#allocation2 + $0x50] sm:$0xfe] }
 0x37e   : > { %v5081_v31 = vpop.f32.mrb[67].mxu0  ;;  %5643 = vmatprep.mubr.bf16.mxu1 %v2000_v24  ;;  %v3710_v48 = vrot.slane %v7435_v5, 1  ;;  %v3716_v5 = vrot.slane %v7471_v45, 1  ;;  %v3719_v45 = vrot.slane %v7489_v9, 1 }
 0x37f   : > { %v7609_v30 = vadd.f32 %v5081_v31, %v5080_v0 }
 0x380   : > { %4099 = vmatmul.mubr.bf16.gmra.mrb[172].mxu0 %v7569_v19  ;;  %v1719_v19 = vld [vmem:[#allocation2 + $0xf0] sm:$0xfe] }
 0x381   : > { %4106 = vmatprep.mubr.bf16.mxu0 %v3648_v28  ;;  %v2007_v37 = vrot.slane %v1719_v19, 1  ;;  %v3699_v28 = vsel %vm1961_vm7, %v3697_v27, %v3698_v16 }
 0x383   : > { %v5083_v62 = vpop.f32.mrb[68].mxu0  ;;  %v2009_v24 = vsel %vm1961_vm7, %v2007_v37, %v2008_v13  ;;  %v3445_v37 = vld [vmem:[#allocation2 + $0x60] sm:$0xfe]  ;;  %v3707_v13 = vrot.slane %v7417_v35, 1 }
 0x384   : > { %v5084_v2 = vpop.f32.mrb[69].mxu0  ;;  %v3709_v26 = vrot.slane %v3445_v37, 1  ;;  %v3448_v37 = vld [vmem:[#allocation2 + $0x90] sm:$0xfe] }
 0x385   : > { %v7614_v29 = vadd.f32 %v5084_v2, %v5083_v62  ;;  %v5086_v38 = vpop.f32.mrb[70].mxu0  ;;  %5644 = vmatmul.mubr.bf16.gmra.mrb[44].mxu1 %v2003_v14 }
 0x386   : > { %v5087_v4 = vpop.f32.mrb[71].mxu0  ;;  %5647 = vmatprep.mubr.bf16.mxu1 %v2006_v40  ;;  %v3705_v40 = vsel %vm1961_vm7, %v3703_v7, %v3704_v41 }
 0x387   : > { %v7619_v1 = vadd.f32 %v5087_v4, %v5086_v38 }
 0x388   : > { %4107 = vmatmul.mubr.bf16.gmra.mrb[176].mxu0 %v7402_v50  ;;  %v3442_v50 = vld [vmem:[#allocation2 + $0x30] sm:$0xfe] }
 0x389   : > { %v3700_v62 = vrot.slane %v3442_v50, 1 }
 0x38b   : > { %v5089_v55 = vpop.f32.mrb[72].mxu0  ;;  %v3702_v14 = vsel %vm1961_vm7, %v3700_v62, %v3701_v39  ;;  %v3447_v62 = vld [vmem:[#allocation2 + $0x80] sm:$0xfe]  ;;  %v3713_v39 = vrot.slane %v7453_v43, 1 }
 0x38c   : > { %v5090_v51 = vpop.f32.mrb[73].mxu0  ;;  %v3715_v35 = vrot.slane %v3447_v62, 1 }
 0x38d   : > { %v7623_v0 = vadd.f32 %v5090_v51, %v5089_v55  ;;  %v5092_v31 = vpop.f32.mrb[74].mxu0  ;;  %5648 = vmatmul.mubr.bf16.gmra.mrb[48].mxu1 %v2009_v24  ;;  %v3706_v55 = vrot.slane %v3444_v63, 1 }
 0x38e   : > { %v5093_v17 = vpop.f32.mrb[75].mxu0  ;;  %5667 = vmatprep.mubr.bf16.mxu1 %v3699_v28  ;;  %v3711_v28 = vsel %vm1961_vm7, %v3709_v26, %v3710_v48  ;;  %v3718_v26 = vrot.slane %v3448_v37, 1 }
 0x38f   : > { %v7628_v34 = vadd.f32 %v5093_v17, %v5092_v31  ;;  %v3708_v24 = vsel %vm1961_vm7, %v3706_v55, %v3707_v13  ;;  %v3449_v55 = vld [vmem:[#allocation2 + $0xa0] sm:$0xfe] }
 0x390   : > { %v3721_v13 = vrot.slane %v3449_v55, 1 }
 0x393   : > { %v5095_v61 = vpop.f32.mrb[76].mxu0 }
 0x394   : > { %v5096_v2 = vpop.f32.mrb[77].mxu0 }
 0x395   : > { %v7631_v6 = vadd.f32 %v5096_v2, %v5095_v61  ;;  %v5098_v38 = vpop.f32.mrb[78].mxu0  ;;  %5668 = vmatmul.mubr.bf16.vlgmr.msra.gmra.mrb[20].mxu1 %v3702_v14  ;;  %v3712_v61 = vrot.slane %v3446_v18, 1 }
 0x396   : > { %v5099_v4 = vpop.f32.mrb[79].mxu0  ;;  %5671 = vmatprep.mubr.bf16.mxu1 %v3705_v40  ;;  %v3717_v40 = vsel %vm1961_vm7, %v3715_v35, %v3716_v5  ;;  %v3450_v5 = vld [vmem:[#allocation2 + $0xb0] sm:$0xfe] }
 0x397   : > { %v7636_v19 = vadd.f32 %v5099_v4, %v5098_v38  ;;  %v3714_v14 = vsel %vm1961_vm7, %v3712_v61, %v3713_v39  ;;  %v3720_v61 = vsel %vm1961_vm7, %v3718_v26, %v3719_v45  ;;  %v3725_v26 = vrot.slane %v7520_v58, 1 }
 0x39b   : > { %v5101_v27 = vpop.f32.mrb[80].mxu0 }
 0x39c   : > { %v5102_v51 = vpop.f32.mrb[81].mxu0 }
 0x39d   : > { %v7639_v16 = vadd.f32 %v5102_v51, %v5101_v27  ;;  %v5104_v31 = vpop.f32.mrb[82].mxu0  ;;  %5672 = vmatmul.mubr.bf16.gmra.mrb[24].mxu1 %v3708_v24 }
 0x39e   : > { %v5105_v17 = vpop.f32.mrb[83].mxu0  ;;  %5675 = vmatprep.mubr.bf16.mxu1 %v3711_v28  ;;  %v3722_v28 = vrot.slane %v7507_v57, 1  ;;  %v3451_v57 = vld [vmem:[#allocation2 + $0xc0] sm:$0xfe] }
 0x39f   : > { %v7644_v50 = vadd.f32 %v5105_v17, %v5104_v31 }
 0x3a0   : > { %v3723_v39 = vsel %vm1961_vm7, %v3721_v13, %v3722_v28 }
 0x3a3   : > { %v5107_v7 = vpop.f32.mrb[84].mxu0 }
 0x3a4   : > { %v5108_v2 = vpop.f32.mrb[85].mxu0 }
 0x3a5   : > { %v7647_v41 = vadd.f32 %v5108_v2, %v5107_v7  ;;  %v5110_v38 = vpop.f32.mrb[86].mxu0  ;;  %5676 = vmatmul.mubr.bf16.gmra.mrb[28].mxu1 %v3714_v14  ;;  %v3724_v14 = vrot.slane %v3450_v5, 1 }
 0x3a6   : > { %v5111_v4 = vpop.f32.mrb[87].mxu0  ;;  %5679 = vmatprep.mubr.bf16.mxu1 %v3717_v40  ;;  %v3727_v40 = vrot.slane %v3451_v57, 1 }
 0x3a7   : > { %v7652_v63 = vadd.f32 %v5111_v4, %v5110_v38 }
 0x3a8   : > { %v5195_v27 = vpop.f32.mrb[52].mxu1 }
 0x3a9   : > { %v5196_v43 = vpop.f32.mrb[53].mxu1 }
 0x3aa   : > { %v5197_v51 = vadd.f32 %v5196_v43, %v5195_v27  ;;  %v5198_v48 = vpop.f32.mrb[54].mxu1 }
 0x3ab   : > { %v5113_v31 = vpop.f32.mrb[88].mxu0  ;;  %v5199_v24 = vpop.f32.mrb[55].mxu1 }
 0x3ac   : > { %v5114_v17 = vpop.f32.mrb[89].mxu0  ;;  %v7657_v18 = vadd.f32 %v5197_v51, %v7549_v54  ;;  %v5200_v62 = vadd.f32 %v5199_v24, %v5198_v48  ;;  %v3728_v51 = vrot.slane %v7529_v8, 1  ;;  %v3453_v8 = vld [vmem:[#allocation2 + $0xe0] sm:$0xfe] }
 0x3ad   : > { %v7660_v7 = vadd.f32 %v5114_v17, %v5113_v31  ;;  %v5116_v35 = vpop.f32.mrb[90].mxu0  ;;  %5680 = vmatmul.mubr.bf16.gmra.mrb[32].mxu1 %v3720_v61  ;;  %v3726_v31 = vsel %vm1961_vm7, %v3724_v14, %v3725_v26  ;;  %v3731_v14 = vrot.slane %v7540_v11, 1 }
 0x3ae   : > { %v5117_v2 = vpop.f32.mrb[91].mxu0  ;;  %v7664_v9 = vadd.f32 %v5200_v62, %v7552_v21  ;;  %5683 = vmatprep.mubr.bf16.mxu1 %v3723_v39  ;;  %v3729_v17 = vsel %vm1961_vm7, %v3727_v40, %v3728_v51  ;;  %v3452_v62 = vld [vmem:[#allocation2 + $0xd0] sm:$0xfe] }
 0x3af   : > { %v7666_v38 = vadd.f32 %v5117_v2, %v5116_v35  ;;  %v3730_v35 = vrot.slane %v3452_v62, 1  ;;  %v3733_v2 = vrot.slane %v3453_v8, 1 }
 0x3b0   : > { %v5201_v54 = vpop.f32.mrb[56].mxu1 }
 0x3b1   : > { %v5202_v4 = vpop.f32.mrb[57].mxu1 }
 0x3b2   : > { %v5203_v37 = vadd.f32 %v5202_v4, %v5201_v54  ;;  %v5204_v55 = vpop.f32.mrb[58].mxu1 }
 0x3b3   : > { %v5119_v27 = vpop.f32.mrb[92].mxu0  ;;  %v5205_v43 = vpop.f32.mrb[59].mxu1 }
 0x3b4   : > { %v5120_v13 = vpop.f32.mrb[93].mxu0  ;;  %v7671_v21 = vadd.f32 %v5203_v37, %v7573_v3  ;;  %v5206_v48 = vadd.f32 %v5205_v43, %v5204_v55  ;;  %v3734_v37 = vrot.slane %v7554_v25, 1  ;;  %v3455_v25 = vld [vmem:[#allocation2 + $0x100] sm:$0xfe] }
 0x3b5   : > { %v7674_v45 = vadd.f32 %v5120_v13, %v5119_v27  ;;  %v5122_v24 = vpop.f32.mrb[94].mxu0  ;;  %5684 = vmatmul.mubr.bf16.gmra.mrb[36].mxu1 %v3726_v31  ;;  %v3732_v27 = vsel %vm1961_vm7, %v3730_v35, %v3731_v14  ;;  %v3737_v35 = vrot.slane %v7564_v32, 1 }
 0x3b6   : > { %v5123_v28 = vpop.f32.mrb[95].mxu0  ;;  %v7678_v58 = vadd.f32 %v5206_v48, %v7579_v22  ;;  %5687 = vmatprep.mubr.bf16.mxu1 %v3729_v17  ;;  %v3735_v13 = vsel %vm1961_vm7, %v3733_v2, %v3734_v37  ;;  %v3454_v48 = vld [vmem:[#allocation2 + $0xf0] sm:$0xfe] }
 0x3b7   : > { %v7680_v61 = vadd.f32 %v5123_v28, %v5122_v24  ;;  %v3736_v24 = vrot.slane %v3454_v48, 1  ;;  %v3739_v28 = vrot.slane %v3455_v25, 1 }
 0x3b8   : > { %v5207_v3 = vpop.f32.mrb[60].mxu1 }
 0x3b9   : > { %v5208_v39 = vpop.f32.mrb[61].mxu1  ;;  %v3738_v14 = vsel %vm1961_vm7, %v3736_v24, %v3737_v35 }
 0x3ba   : > { %v5209_v5 = vadd.f32 %v5208_v39, %v5207_v3  ;;  %v5210_v57 = vpop.f32.mrb[62].mxu1 }
 0x3bb   : > { %v5125_v54 = vpop.f32.mrb[96].mxu0  ;;  %v5211_v4 = vpop.f32.mrb[63].mxu1 }
 0x3bc   : > { %v5126_v40 = vpop.f32.mrb[97].mxu0  ;;  %v7685_v22 = vadd.f32 %v5209_v5, %v7593_v49  ;;  %v5212_v55 = vadd.f32 %v5211_v4, %v5210_v57  ;;  %v3740_v5 = vrot.slane %v7581_v53, 1  ;;  %v3456_v57 = vld [vmem:[#allocation2 + $0x110] sm:$0xfe] }
 0x3bd   : > { %v7688_v26 = vadd.f32 %v5126_v40, %v5125_v54  ;;  %v5128_v43 = vpop.f32.mrb[98].mxu0  ;;  %5688 = vmatmul.mubr.bf16.gmra.mrb[40].mxu1 %v3732_v27  ;;  %v3742_v53 = vrot.slane %v3456_v57, 1 }
 0x3be   : > { %v5129_v51 = vpop.f32.mrb[99].mxu0  ;;  %v7692_v11 = vadd.f32 %v5212_v55, %v7597_v46  ;;  %5691 = vmatprep.mubr.bf16.mxu1 %v3735_v13  ;;  %v3741_v37 = vsel %vm1961_vm7, %v3739_v28, %v3740_v5 }
 0x3bf   : > { %v7694_v31 = vadd.f32 %v5129_v51, %v5128_v43 }
 0x3c0   : > { %v5213_v49 = vpop.f32.mrb[64].mxu1 }
 0x3c1   : > { %v5214_v17 = vpop.f32.mrb[65].mxu1 }
 0x3c2   : > { %v5215_v62 = vadd.f32 %v5214_v17, %v5213_v49  ;;  %v5216_v8 = vpop.f32.mrb[66].mxu1 }
 0x3c3   : > { %v5131_v3 = vpop.f32.mrb[100].mxu0  ;;  %v5217_v39 = vpop.f32.mrb[67].mxu1 }
 0x3c4   : > { %v5132_v2 = vpop.f32.mrb[101].mxu0  ;;  %v7699_v46 = vadd.f32 %v5215_v62, %v7604_v23  ;;  %v5218_v54 = vadd.f32 %v5217_v39, %v5216_v8  ;;  %v3743_v23 = vrot.slane %v7591_v10, 1 }
 0x3c5   : > { %v7702_v4 = vadd.f32 %v5132_v2, %v5131_v3  ;;  %v5134_v40 = vpop.f32.mrb[102].mxu0  ;;  %5692 = vmatmul.mubr.bf16.gmra.mrb[44].mxu1 %v3738_v14 }
 0x3c6   : > { %v5135_v55 = vpop.f32.mrb[103].mxu0  ;;  %v7706_v32 = vadd.f32 %v5218_v54, %v7609_v30  ;;  %5695 = vmatprep.mubr.bf16.mxu1 %v3741_v37  ;;  %v3744_v49 = vsel %vm1961_vm7, %v3742_v53, %v3743_v23 }
 0x3c7   : > { %v7708_v27 = vadd.f32 %v5135_v55, %v5134_v40 }
 0x3c8   : > { %v5219_v43 = vpop.f32.mrb[68].mxu1 }
 0x3c9   : > { %v5220_v13 = vpop.f32.mrb[69].mxu1 }
 0x3ca   : > { %v5221_v51 = vadd.f32 %v5220_v13, %v5219_v43  ;;  %v5222_v48 = vpop.f32.mrb[70].mxu1 }
 0x3cb   : > { %v5137_v25 = vpop.f32.mrb[104].mxu0  ;;  %v5223_v24 = vpop.f32.mrb[71].mxu1 }
 0x3cc   : > { %v5138_v17 = vpop.f32.mrb[105].mxu0  ;;  %v7713_v28 = vadd.f32 %v5221_v51, %v7614_v29  ;;  %v5224_v30 = vadd.f32 %v5223_v24, %v5222_v48 }
 0x3cd   : > { %v7715_v62 = vadd.f32 %v5138_v17, %v5137_v25  ;;  %v5140_v8 = vpop.f32.mrb[106].mxu0  ;;  %5696 = vmatmul.mubr.bf16.gmra.mrb[48].mxu1 %v3744_v49 }
 0x3ce   : > { %v5141_v3 = vpop.f32.mrb[107].mxu0  ;;  %v7718_v10 = vadd.f32 %v5224_v30, %v7619_v1 }
 0x3cf   : > { %v7720_v35 = vadd.f32 %v5141_v3, %v5140_v8 }
 0x3d0   : > { %v5225_v39 = vpop.f32.mrb[72].mxu1 }
 0x3d1   : > { %v5226_v2 = vpop.f32.mrb[73].mxu1 }
 0x3d2   : > { %v5227_v5 = vadd.f32 %v5226_v2, %v5225_v39  ;;  %v5228_v57 = vpop.f32.mrb[74].mxu1 }
 0x3d3   : > { %v5143_v54 = vpop.f32.mrb[108].mxu0  ;;  %v5229_v14 = vpop.f32.mrb[75].mxu1 }
 0x3d4   : > { %v5144_v40 = vpop.f32.mrb[109].mxu0  ;;  %v7723_v29 = vadd.f32 %v5227_v5, %v7623_v0  ;;  %v5230_v37 = vadd.f32 %v5229_v14, %v5228_v57 }
 0x3d5   : > { %v7725_v55 = vadd.f32 %v5144_v40, %v5143_v54  ;;  %v5146_v53 = vpop.f32.mrb[110].mxu0 }
 0x3d6   : > { %v5147_v23 = vpop.f32.mrb[111].mxu0  ;;  %v7728_v1 = vadd.f32 %v5230_v37, %v7628_v34 }
 0x3d7   : > { %v7730_v43 = vadd.f32 %v5147_v23, %v5146_v53 }
 0x3d8   : > { %v5231_v13 = vpop.f32.mrb[76].mxu1 }
 0x3d9   : > { %v5232_v51 = vpop.f32.mrb[77].mxu1 }
 0x3da   : > { %v5233_v48 = vadd.f32 %v5232_v51, %v5231_v13  ;;  %v5234_v25 = vpop.f32.mrb[78].mxu1 }
 0x3db   : > { %v5149_v49 = vpop.f32.mrb[112].mxu0  ;;  %v5235_v24 = vpop.f32.mrb[79].mxu1 }
 0x3dc   : > { %v5150_v17 = vpop.f32.mrb[113].mxu0  ;;  %v7733_v0 = vadd.f32 %v5233_v48, %v7631_v6  ;;  %v5236_v30 = vadd.f32 %v5235_v24, %v5234_v25 }
 0x3dd   : > { %v7735_v8 = vadd.f32 %v5150_v17, %v5149_v49  ;;  %v5152_v3 = vpop.f32.mrb[114].mxu0 }
 0x3de   : > { %v5153_v39 = vpop.f32.mrb[115].mxu0  ;;  %v7738_v34 = vadd.f32 %v5236_v30, %v7636_v19 }
 0x3df   : > { %v7740_v2 = vadd.f32 %v5153_v39, %v5152_v3 }
 0x3e0   : > { %v5237_v5 = vpop.f32.mrb[80].mxu1 }
 0x3e1   : > { %v5238_v57 = vpop.f32.mrb[81].mxu1 }
 0x3e2   : > { %v5239_v54 = vadd.f32 %v5238_v57, %v5237_v5  ;;  %v5240_v14 = vpop.f32.mrb[82].mxu1 }
 0x3e3   : > { %v5331_v40 = vpop.f32.mrb[116].mxu0  ;;  %v5241_v37 = vpop.f32.mrb[83].mxu1 }
 0x3e4   : > { %v5332_v53 = vpop.f32.mrb[117].mxu0  ;;  %v7743_v6 = vadd.f32 %v5239_v54, %v7639_v16  ;;  %v5242_v23 = vadd.f32 %v5241_v37, %v5240_v14 }
 0x3e5   : > { %v5333_v13 = vadd.f32 %v5332_v53, %v5331_v40  ;;  %v5334_v51 = vpop.f32.mrb[118].mxu0 }
 0x3e6   : > { %v5335_v48 = vpop.f32.mrb[119].mxu0  ;;  %v7746_v25 = vadd.f32 %v5242_v23, %v7644_v50 }
 0x3e7   : > { %v5336_v19 = vadd.f32 %v5335_v48, %v5334_v51  ;;  %v7749_v49 = vadd.f32 %v7657_v18, %v5333_v13 }
 0x3e8   : > { %v5243_v24 = vpop.f32.mrb[84].mxu1 }
 0x3e9   : > { %v7752_v17 = vadd.f32 %v7664_v9, %v5336_v19  ;;  %v5244_v30 = vpop.f32.mrb[85].mxu1 }
 0x3ea   : > { %v5245_v3 = vadd.f32 %v5244_v30, %v5243_v24  ;;  %v5246_v39 = vpop.f32.mrb[86].mxu1 }
 0x3eb   : > { %v5337_v16 = vpop.f32.mrb[120].mxu0  ;;  %v5247_v5 = vpop.f32.mrb[87].mxu1 }
 0x3ec   : > { %v5338_v57 = vpop.f32.mrb[121].mxu0  ;;  %v7755_v54 = vadd.f32 %v5245_v3, %v7647_v41  ;;  %v5248_v14 = vadd.f32 %v5247_v5, %v5246_v39 }
 0x3ed   : > { %v5339_v50 = vadd.f32 %v5338_v57, %v5337_v16  ;;  %v5340_v40 = vpop.f32.mrb[122].mxu0 }
 0x3ee   : > { %v5341_v37 = vpop.f32.mrb[123].mxu0  ;;  %v7758_v18 = vadd.f32 %v5248_v14, %v7652_v63 }
 0x3ef   : > { %v5342_v53 = vadd.f32 %v5341_v37, %v5340_v40  ;;  %v7761_v9 = vadd.f32 %v7671_v21, %v5339_v50 }
 0x3f0   : > { %v5249_v23 = vpop.f32.mrb[88].mxu1 }
 0x3f1   : > { %v7764_v13 = vadd.f32 %v7678_v58, %v5342_v53  ;;  %v5250_v51 = vpop.f32.mrb[89].mxu1 }
 0x3f2   : > { %v5251_v48 = vadd.f32 %v5250_v51, %v5249_v23  ;;  %v5252_v19 = vpop.f32.mrb[90].mxu1 }
 0x3f3   : > { %v5343_v41 = vpop.f32.mrb[124].mxu0  ;;  %v5253_v24 = vpop.f32.mrb[91].mxu1 }
 0x3f4   : > { %v5344_v30 = vpop.f32.mrb[125].mxu0  ;;  %v7767_v3 = vadd.f32 %v5251_v48, %v7660_v7  ;;  %v5254_v39 = vadd.f32 %v5253_v24, %v5252_v19 }
 0x3f5   : > { %v5345_v63 = vadd.f32 %v5344_v30, %v5343_v41  ;;  %v5346_v16 = vpop.f32.mrb[126].mxu0 }
 0x3f6   : > { %v5347_v5 = vpop.f32.mrb[127].mxu0  ;;  %v7770_v21 = vadd.f32 %v5254_v39, %v7666_v38 }
 0x3f7   : > { %v5348_v57 = vadd.f32 %v5347_v5, %v5346_v16  ;;  %v7773_v58 = vadd.f32 %v7685_v22, %v5345_v63 }
 0x3f8   : > { %v5255_v14 = vpop.f32.mrb[92].mxu1 }
 0x3f9   : > { %v7776_v50 = vadd.f32 %v7692_v11, %v5348_v57  ;;  %v5256_v40 = vpop.f32.mrb[93].mxu1 }
 0x3fa   : > { %v5257_v37 = vadd.f32 %v5256_v40, %v5255_v14  ;;  %v5258_v53 = vpop.f32.mrb[94].mxu1 }
 0x3fb   : > { %v5349_v7 = vpop.f32.mrb[128].mxu0  ;;  %v5259_v23 = vpop.f32.mrb[95].mxu1 }
 0x3fc   : > { %v5350_v51 = vpop.f32.mrb[129].mxu0  ;;  %v7779_v48 = vadd.f32 %v5257_v37, %v7674_v45  ;;  %v5260_v19 = vadd.f32 %v5259_v23, %v5258_v53 }
 0x3fd   : > { %v5351_v38 = vadd.f32 %v5350_v51, %v5349_v7  ;;  %v5352_v41 = vpop.f32.mrb[130].mxu0 }
 0x3fe   : > { %v5353_v24 = vpop.f32.mrb[131].mxu0  ;;  %v7782_v22 = vadd.f32 %v5260_v19, %v7680_v61 }
 0x3ff   : > { %v5354_v30 = vadd.f32 %v5353_v24, %v5352_v41  ;;  %v7785_v11 = vadd.f32 %v7699_v46, %v5351_v38 }
 0x400   : > { %v5261_v39 = vpop.f32.mrb[96].mxu1 }
 0x401   : > { %v7788_v63 = vadd.f32 %v7706_v32, %v5354_v30  ;;  %v5262_v16 = vpop.f32.mrb[97].mxu1 }
 0x402   : > { %v5263_v5 = vadd.f32 %v5262_v16, %v5261_v39  ;;  %v5264_v57 = vpop.f32.mrb[98].mxu1 }
 0x403   : > { %v5355_v45 = vpop.f32.mrb[132].mxu0  ;;  %v5265_v14 = vpop.f32.mrb[99].mxu1 }
 0x404   : > { %v5356_v40 = vpop.f32.mrb[133].mxu0  ;;  %v7791_v37 = vadd.f32 %v5263_v5, %v7688_v26  ;;  %v5266_v53 = vadd.f32 %v5265_v14, %v5264_v57 }
 0x405   : > { %v5357_v61 = vadd.f32 %v5356_v40, %v5355_v45  ;;  %v5358_v7 = vpop.f32.mrb[134].mxu0 }
 0x406   : > { %v5359_v23 = vpop.f32.mrb[135].mxu0  ;;  %v7794_v46 = vadd.f32 %v5266_v53, %v7694_v31 }
 0x407   : > { %v5360_v51 = vadd.f32 %v5359_v23, %v5358_v7  ;;  %v7797_v32 = vadd.f32 %v7713_v28, %v5357_v61 }
 0x408   : > { %v5267_v19 = vpop.f32.mrb[100].mxu1 }
 0x409   : > { %v7800_v38 = vadd.f32 %v7718_v10, %v5360_v51  ;;  %v5268_v41 = vpop.f32.mrb[101].mxu1 }
 0x40a   : > { %v5269_v24 = vadd.f32 %v5268_v41, %v5267_v19  ;;  %v5270_v30 = vpop.f32.mrb[102].mxu1 }
 0x40b   : > { %v5361_v26 = vpop.f32.mrb[136].mxu0  ;;  %v5271_v39 = vpop.f32.mrb[103].mxu1 }
 0x40c   : > { %v5362_v16 = vpop.f32.mrb[137].mxu0  ;;  %v7803_v5 = vadd.f32 %v5269_v24, %v7702_v4  ;;  %v5272_v57 = vadd.f32 %v5271_v39, %v5270_v30 }
 0x40d   : > { %v5363_v31 = vadd.f32 %v5362_v16, %v5361_v26  ;;  %v5364_v45 = vpop.f32.mrb[138].mxu0 }
 0x40e   : > { %v5365_v14 = vpop.f32.mrb[139].mxu0  ;;  %v7806_v28 = vadd.f32 %v5272_v57, %v7708_v27 }
 0x40f   : > { %v5366_v40 = vadd.f32 %v5365_v14, %v5364_v45  ;;  %v7809_v10 = vadd.f32 %v7723_v29, %v5363_v31 }
 0x410   : > { %v5273_v53 = vpop.f32.mrb[104].mxu1 }
 0x411   : > { %v7812_v61 = vadd.f32 %v7728_v1, %v5366_v40  ;;  %v5274_v7 = vpop.f32.mrb[105].mxu1 }
 0x412   : > { %v5275_v23 = vadd.f32 %v5274_v7, %v5273_v53  ;;  %v5276_v51 = vpop.f32.mrb[106].mxu1 }
 0x413   : > { %v5367_v4 = vpop.f32.mrb[140].mxu0  ;;  %v5277_v19 = vpop.f32.mrb[107].mxu1 }
 0x414   : > { %v5368_v41 = vpop.f32.mrb[141].mxu0  ;;  %v7815_v24 = vadd.f32 %v5275_v23, %v7715_v62  ;;  %v5278_v30 = vadd.f32 %v5277_v19, %v5276_v51 }
 0x415   : > { %v5369_v27 = vadd.f32 %v5368_v41, %v5367_v4  ;;  %v5370_v26 = vpop.f32.mrb[142].mxu0 }
 0x416   : > { %v5371_v39 = vpop.f32.mrb[143].mxu0  ;;  %v7818_v29 = vadd.f32 %v5278_v30, %v7720_v35 }
 0x417   : > { %v5372_v16 = vadd.f32 %v5371_v39, %v5370_v26  ;;  %v7821_v1 = vadd.f32 %v7733_v0, %v5369_v27 }
 0x418   : > { %v5279_v57 = vpop.f32.mrb[108].mxu1 }
 0x419   : > { %v7824_v31 = vadd.f32 %v7738_v34, %v5372_v16  ;;  %v5280_v45 = vpop.f32.mrb[109].mxu1 }
 0x41a   : > { %v5281_v14 = vadd.f32 %v5280_v45, %v5279_v57  ;;  %v5282_v40 = vpop.f32.mrb[110].mxu1 }
 0x41b   : > { %v5373_v62 = vpop.f32.mrb[144].mxu0  ;;  %v5283_v53 = vpop.f32.mrb[111].mxu1 }
 0x41c   : > { %v5374_v7 = vpop.f32.mrb[145].mxu0  ;;  %v7827_v23 = vadd.f32 %v5281_v14, %v7725_v55  ;;  %v5284_v51 = vadd.f32 %v5283_v53, %v5282_v40 }
 0x41d   : > { %v5375_v35 = vadd.f32 %v5374_v7, %v5373_v62  ;;  %v5376_v4 = vpop.f32.mrb[146].mxu0 }
 0x41e   : > { %v5377_v19 = vpop.f32.mrb[147].mxu0  ;;  %v7830_v0 = vadd.f32 %v5284_v51, %v7730_v43 }
 0x41f   : > { %v5378_v41 = vadd.f32 %v5377_v19, %v5376_v4  ;;  %v7833_v34 = vadd.f32 %v7743_v6, %v5375_v35 }
 0x420   : > { %v5285_v30 = vpop.f32.mrb[112].mxu1 }
 0x421   : > { %v7836_v27 = vadd.f32 %v7746_v25, %v5378_v41  ;;  %v5286_v26 = vpop.f32.mrb[113].mxu1 }
 0x422   : > { %v5287_v39 = vadd.f32 %v5286_v26, %v5285_v30  ;;  %v5288_v16 = vpop.f32.mrb[114].mxu1 }
 0x423   : > { %v5379_v55 = vpop.f32.mrb[148].mxu0  ;;  %v5289_v57 = vpop.f32.mrb[115].mxu1 }
 0x424   : > { %v5380_v45 = vpop.f32.mrb[149].mxu0  ;;  %v7839_v14 = vadd.f32 %v5287_v39, %v7735_v8  ;;  %v5290_v40 = vadd.f32 %v5289_v57, %v5288_v16 }
 0x425   : > { %v5381_v43 = vadd.f32 %v5380_v45, %v5379_v55  ;;  %v5382_v62 = vpop.f32.mrb[150].mxu0 }
 0x426   : > { %v5383_v53 = vpop.f32.mrb[151].mxu0  ;;  %v5805_v6 = vadd.f32 %v5290_v40, %v7740_v2 }
 0x427   : > { %v5384_v7 = vadd.f32 %v5383_v53, %v5382_v62  ;;  %v7843_v51 = vadd.f32 %v7755_v54, %v5381_v43 }
 0x429   : > { %v7846_v25 = vadd.f32 %v7758_v18, %v5384_v7 }
 0x42b   : > { %v5385_v35 = vpop.f32.mrb[152].mxu0 }
 0x42c   : > { %v5386_v4 = vpop.f32.mrb[153].mxu0 }
 0x42d   : > { %v5387_v19 = vadd.f32 %v5386_v4, %v5385_v35  ;;  %v5388_v41 = vpop.f32.mrb[154].mxu0 }
 0x42e   : > { %v5389_v30 = vpop.f32.mrb[155].mxu0 }
 0x42f   : > { %v5390_v8 = vadd.f32 %v5389_v30, %v5388_v41  ;;  %v7849_v26 = vadd.f32 %v7767_v3, %v5387_v19 }
 0x431   : > { %v7852_v39 = vadd.f32 %v7770_v21, %v5390_v8 }
 0x433   : > { %v5391_v2 = vpop.f32.mrb[156].mxu0 }
 0x434   : > { %v5392_v16 = vpop.f32.mrb[157].mxu0 }
 0x435   : > { %v5393_v55 = vadd.f32 %v5392_v16, %v5391_v2  ;;  %v5394_v54 = vpop.f32.mrb[158].mxu0 }
 0x436   : > { %v5395_v57 = vpop.f32.mrb[159].mxu0 }
 0x437   : > { %v5396_v45 = vadd.f32 %v5395_v57, %v5394_v54  ;;  %v7855_v18 = vadd.f32 %v7779_v48, %v5393_v55 }
 0x439   : > { %v7858_v40 = vadd.f32 %v7782_v22, %v5396_v45 }
 0x43b   : > { %v5397_v43 = vpop.f32.mrb[160].mxu0 }
 0x43c   : > { %v5398_v62 = vpop.f32.mrb[161].mxu0 }
 0x43d   : > { %v5399_v53 = vadd.f32 %v5398_v62, %v5397_v43  ;;  %v5400_v3 = vpop.f32.mrb[162].mxu0 }
 0x43e   : > { %v5401_v7 = vpop.f32.mrb[163].mxu0 }
 0x43f   : > { %v5402_v35 = vadd.f32 %v5401_v7, %v5400_v3  ;;  %v7861_v21 = vadd.f32 %v7791_v37, %v5399_v53 }
 0x441   : > { %v7864_v4 = vadd.f32 %v7794_v46, %v5402_v35 }
 0x443   : > { %v5403_v19 = vpop.f32.mrb[164].mxu0 }
 0x444   : > { %v5404_v41 = vpop.f32.mrb[165].mxu0 }
 0x445   : > { %v5405_v30 = vadd.f32 %v5404_v41, %v5403_v19  ;;  %v5406_v48 = vpop.f32.mrb[166].mxu0 }
 0x446   : > { %v5407_v8 = vpop.f32.mrb[167].mxu0 }
 0x447   : > { %v5408_v2 = vadd.f32 %v5407_v8, %v5406_v48  ;;  %v7867_v22 = vadd.f32 %v7803_v5, %v5405_v30 }
 0x449   : > { %v7870_v16 = vadd.f32 %v7806_v28, %v5408_v2 }
 0x44b   : > { %v5409_v55 = vpop.f32.mrb[168].mxu0 }
 0x44c   : > { %v5410_v54 = vpop.f32.mrb[169].mxu0 }
 0x44d   : > { %v5411_v57 = vadd.f32 %v5410_v54, %v5409_v55  ;;  %v5412_v37 = vpop.f32.mrb[170].mxu0 }
 0x44e   : > { %v5413_v45 = vpop.f32.mrb[171].mxu0 }
 0x44f   : > { %v5414_v43 = vadd.f32 %v5413_v45, %v5412_v37  ;;  %v7873_v46 = vadd.f32 %v7815_v24, %v5411_v57 }
 0x451   : > { %v7876_v62 = vadd.f32 %v7818_v29, %v5414_v43 }
 0x453   : > { %v5415_v53 = vpop.f32.mrb[172].mxu0 }
 0x454   : > { %v5416_v3 = vpop.f32.mrb[173].mxu0 }
 0x455   : > { %v5417_v7 = vadd.f32 %v5416_v3, %v5415_v53  ;;  %v5418_v5 = vpop.f32.mrb[174].mxu0 }
 0x456   : > { %v5419_v35 = vpop.f32.mrb[175].mxu0 }
 0x457   : > { %v5420_v19 = vadd.f32 %v5419_v35, %v5418_v5  ;;  %v7879_v28 = vadd.f32 %v7827_v23, %v5417_v7  ;;  %v7892_v23 = vld [vmem:[%s8103_s6] ss:$0 sm:$0xff]  ;;  %v1129_v5 = vadd.f32 %v6853_v33, %v6618_v59 }
 0x459   : > { %v7882_v41 = vadd.f32 %v7830_v0, %v5420_v19  ;;  %v1127_v19 = vadd.f32 %v6833_v42, %v6608_v47 }
 0x45b   : > { %v5421_v30 = vpop.f32.mrb[176].mxu0 }
 0x45c   : > { %v5422_v48 = vpop.f32.mrb[177].mxu0 }
 0x45d   : > { %v5423_v8 = vadd.f32 %v5422_v48, %v5421_v30  ;;  %v5424_v24 = vpop.f32.mrb[178].mxu0 }
 0x45e   : > { %v5425_v2 = vpop.f32.mrb[179].mxu0 }
 0x45f   : > { %v5426_v55 = vadd.f32 %v5425_v2, %v5424_v24  ;;  %v7885_v29 = vadd.f32 %v7839_v14, %v5423_v8 }
 0x461   : > { %v7887_v54 = vadd.f32 %v5805_v6, %v5426_v55 }
 0x468   : > { %v5669_v57 = vpop.f32.mrb[20].mxu1 }
 0x469   : > { %v5717_v0 = vadd.f32 %v7761_v9, %v5669_v57  ;;  %v4149_v37 = vpop.f32.mrb[21].mxu1 }
 0x46a   : > { %v5720_v45 = vadd.f32 %v7749_v49, %v4149_v37  ;;  %v5670_v43 = vpop.f32.mrb[22].mxu1 }
 0x46b   : > { %v4317_v53 = vadd.f32 %v5717_v0, %v7892_v23  ;;  %v5723_v14 = vadd.f32 %v7764_v13, %v5670_v43  ;;  %v4152_v3 = vpop.f32.mrb[23].mxu1  ;;  %v1130_v13 = vadd.f32 %v6856_v36, %v6620_v60 }
 0x46c   : > { %v4315_v6 = vadd.f32 %v5720_v45, %v7892_v23  ;;  %v5726_v7 = vadd.f32 %v7752_v17, %v4152_v3  ;;  %v8241_v17 = vld [vmem:[#allocation45_spill] sm:$0xff]  ;;  %v8242_v3 = vld [vmem:[#allocation22_spill] sm:$0xff] }
 0x46d   : > { %v4349_v35 = vmax.f32 %v4317_v53, 0.0  ;;  %v4318_v9 = vadd.f32 %v5723_v14, %v7892_v23  ;;  %v1128_v24 = vadd.f32 %v8241_v17, %v6606_v44  ;;  %v8249_v17 = vld [vmem:[#allocation47_spill] sm:$0xff] }
 0x46e   : > { %v4347_v49 = vmax.f32 %v4315_v6, 0.0  ;;  %v4316_v30 = vadd.f32 %v5726_v7, %v7892_v23  ;;  %v8243_v6 = vld [vmem:[#allocation50_spill] sm:$0xff] }
 0x46f   : > { %v4381_v48 = vadd.f32 %v4349_v35, %v1129_v5  ;;  %v4350_v8 = vmax.f32 %v4318_v9, 0.0  ;;  %v1133_v7 = vadd.f32 %v8243_v6, %v8242_v3  ;;  %v8244_v5 = vld [vmem:[#allocation20_spill] sm:$0xff]  ;;  %v8245_v35 = vld [vmem:[#allocation46_spill] sm:$0xff] }
 0x470   : > { %v4379_v2 = vadd.f32 %v4347_v49, %v1127_v19  ;;  %v4348_v59 = vmax.f32 %v4316_v30, 0.0  ;;  %v5673_v33 = vpop.f32.mrb[24].mxu1  ;;  %v8246_v49 = vld [vmem:[#allocation23_spill] sm:$0xff]  ;;  %v8250_v3 = vld [vmem:[#allocation26_spill] sm:$0xff] }
 0x471   : > { %v4382_v55 = vadd.f32 %v4350_v8, %v1130_v13  ;;  %v5729_v57 = vadd.f32 %v7785_v11, %v5673_v33  ;;  %v4165_v0 = vpop.f32.mrb[25].mxu1  ;;  %v8248_v8 = vld [vmem:[#allocation19_spill] sm:$0xff]  ;;  %v8251_v6 = vld [vmem:[#allocation54_spill] sm:$0xff] }
 0x472   : > { %v4380_v47 = vadd.f32 %v4348_v59, %v1128_v24  ;;  %v5732_v42 = vadd.f32 %v7773_v58, %v4165_v0  ;;  %v5674_v37 = vpop.f32.mrb[26].mxu1  ;;  %v1132_v24 = vadd.f32 %v8249_v17, %v8248_v8 }
 0x473   : > { %v4904_v45 = vpack.c.bf16 %v4382_v55, %v4381_v48  ;;  %v4321_v60 = vadd.f32 %v5729_v57, %v7892_v23  ;;  %v5735_v36 = vadd.f32 %v7788_v63, %v5674_v37  ;;  %v4168_v43 = vpop.f32.mrb[27].mxu1  ;;  %v1131_v63 = vadd.f32 %v8245_v35, %v8244_v5 }
 0x474   : > { %v4899_v53 = vpack.c.bf16 %v4380_v47, %v4379_v2  ;;  %v4319_v44 = vadd.f32 %v5732_v42, %v7892_v23  ;;  %v5738_v14 = vadd.f32 %v7776_v50, %v4168_v43  ;;  %v8247_v50 = vld [vmem:[#allocation51_spill] sm:$0xff] }
 0x475   : > { %4976 = vst [vmem:[%s7919_s7 + $0x8] sm:$0xff] %v4904_v45   ;;  %v4353_v58 = vmax.f32 %v4321_v60, 0.0  ;;  %v4322_v11 = vadd.f32 %v5735_v36, %v7892_v23  ;;  %v1134_v30 = vadd.f32 %v8247_v50, %v8246_v49 }
 0x476   : > { %4900 = vst [vmem:[%s7919_s7] sm:$0xff] %v4899_v53   ;;  %v4351_v9 = vmax.f32 %v4319_v44, 0.0  ;;  %v4320_v19 = vadd.f32 %v5738_v14, %v7892_v23 }
 0x477   : > { %v4385_v13 = vadd.f32 %v4353_v58, %v1133_v7  ;;  %v4354_v48 = vmax.f32 %v4322_v11, 0.0  ;;  %v8253_v11 = vld [vmem:[#allocation48_spill] sm:$0xff] }
 0x478   : > { %v4383_v2 = vadd.f32 %v4351_v9, %v1131_v63  ;;  %v4352_v59 = vmax.f32 %v4320_v19, 0.0  ;;  %v5677_v33 = vpop.f32.mrb[28].mxu1  ;;  %v8254_v63 = vld [vmem:[#allocation27_spill] sm:$0xff] }
 0x479   : > { %v4386_v55 = vadd.f32 %v4354_v48, %v1134_v30  ;;  %v5741_v57 = vadd.f32 %v7809_v10, %v5677_v33  ;;  %v4181_v0 = vpop.f32.mrb[29].mxu1  ;;  %v1137_v10 = vadd.f32 %v8251_v6, %v8250_v3  ;;  %v8255_v9 = vld [vmem:[#allocation55_spill] sm:$0xff]  ;;  %v8257_v30 = vld [vmem:[#allocation49_spill] sm:$0xff]  ;;  %v8261_v3 = vld [vmem:[#allocation52_spill] sm:$0xff] }
 0x47a   : > { %v4384_v47 = vadd.f32 %v4352_v59, %v1132_v24  ;;  %v5744_v42 = vadd.f32 %v7797_v32, %v4181_v0  ;;  %v5678_v37 = vpop.f32.mrb[30].mxu1  ;;  %v8252_v32 = vld [vmem:[#allocation24_spill] sm:$0xff]  ;;  %v1138_v19 = vadd.f32 %v8255_v9, %v8254_v63 }
 0x47b   : > { %v4914_v45 = vpack.c.bf16 %v4386_v55, %v4385_v13  ;;  %v4325_v60 = vadd.f32 %v5741_v57, %v7892_v23  ;;  %v5747_v36 = vadd.f32 %v7812_v61, %v5678_v37  ;;  %v4184_v43 = vpop.f32.mrb[31].mxu1  ;;  %v1135_v5 = vadd.f32 %v8253_v11, %v8252_v32 }
 0x47c   : > { %v4909_v53 = vpack.c.bf16 %v4384_v47, %v4383_v2  ;;  %v4323_v44 = vadd.f32 %v5744_v42, %v7892_v23  ;;  %v5750_v14 = vadd.f32 %v7800_v38, %v4184_v43  ;;  %v8256_v38 = vld [vmem:[#allocation21_spill] sm:$0xff]  ;;  %v8258_v43 = vld [vmem:[#allocation30_spill] sm:$0xff] }
 0x47d   : > { %4978 = vst [vmem:[%s7919_s7 + $0x18] sm:$0xff] %v4914_v45   ;;  %v4357_v7 = vmax.f32 %v4325_v60, 0.0  ;;  %v4326_v58 = vadd.f32 %v5747_v36, %v7892_v23  ;;  %v1136_v13 = vadd.f32 %v8257_v30, %v8256_v38 }
 0x47e   : > { %4977 = vst [vmem:[%s7919_s7 + $0x10] sm:$0xff] %v4909_v53   ;;  %v4355_v35 = vmax.f32 %v4323_v44, 0.0  ;;  %v4324_v61 = vadd.f32 %v5750_v14, %v7892_v23  ;;  %v8259_v53 = vld [vmem:[#allocation58_spill] sm:$0xff] }
 0x47f   : > { %v4389_v49 = vadd.f32 %v4357_v7, %v1137_v10  ;;  %v4358_v50 = vmax.f32 %v4326_v58, 0.0  ;;  %v8262_v7 = vld [vmem:[#allocation31_spill] sm:$0xff] }
 0x480   : > { %v4387_v48 = vadd.f32 %v4355_v35, %v1135_v5  ;;  %v4356_v8 = vmax.f32 %v4324_v61, 0.0  ;;  %v5681_v17 = vpop.f32.mrb[32].mxu1  ;;  %v8263_v58 = vld [vmem:[#allocation59_spill] sm:$0xff]  ;;  %v8265_v35 = vld [vmem:[#allocation53_spill] sm:$0xff] }
 0x481   : > { %v4390_v24 = vadd.f32 %v4358_v50, %v1138_v19  ;;  %v5753_v2 = vadd.f32 %v7833_v34, %v5681_v17  ;;  %v4197_v59 = vpop.f32.mrb[33].mxu1  ;;  %v1141_v34 = vadd.f32 %v8259_v53, %v8258_v43  ;;  %v1142_v32 = vadd.f32 %v8263_v58, %v8262_v7  ;;  %v8270_v53 = vld [vmem:[#allocation57_spill] sm:$0xff] }
 0x482   : > { %v4388_v33 = vadd.f32 %v4356_v8, %v1136_v13  ;;  %v5756_v55 = vadd.f32 %v7821_v1, %v4197_v59  ;;  %v5682_v57 = vpop.f32.mrb[34].mxu1  ;;  %v8260_v1 = vld [vmem:[#allocation28_spill] sm:$0xff] }
 0x483   : > { %v4924_v0 = vpack.c.bf16 %v4390_v24, %v4389_v49  ;;  %v4329_v47 = vadd.f32 %v5753_v2, %v7892_v23  ;;  %v5759_v42 = vadd.f32 %v7836_v27, %v5682_v57  ;;  %v4200_v37 = vpop.f32.mrb[35].mxu1  ;;  %v1139_v6 = vadd.f32 %v8261_v3, %v8260_v1  ;;  %v8266_v57 = vld [vmem:[#allocation34_spill] sm:$0xff] }
 0x484   : > { %v4919_v45 = vpack.c.bf16 %v4388_v33, %v4387_v48  ;;  %v4327_v60 = vadd.f32 %v5756_v55, %v7892_v23  ;;  %v5762_v36 = vadd.f32 %v7824_v31, %v4200_v37  ;;  %v8264_v31 = vld [vmem:[#allocation25_spill] sm:$0xff] }
 0x485   : > { %4980 = vst [vmem:[%s7919_s7 + $0x28] sm:$0xff] %v4924_v0   ;;  %v4361_v44 = vmax.f32 %v4329_v47, 0.0  ;;  %v4330_v14 = vadd.f32 %v5759_v42, %v7892_v23  ;;  %v1140_v61 = vadd.f32 %v8265_v35, %v8264_v31  ;;  %v8268_v42 = vld [vmem:[#allocation56_spill] sm:$0xff] }
 0x486   : > { %4979 = vst [vmem:[%s7919_s7 + $0x20] sm:$0xff] %v4919_v45   ;;  %v4359_v10 = vmax.f32 %v4327_v60, 0.0  ;;  %v4328_v27 = vadd.f32 %v5762_v36, %v7892_v23  ;;  %v1146_v60 = vadd.f32 %v7037_v15, %v6685_v56 }
 0x487   : > { %v4393_v11 = vadd.f32 %v4361_v44, %v1141_v34  ;;  %v4362_v5 = vmax.f32 %v4330_v14, 0.0 }
 0x488   : > { %v4391_v63 = vadd.f32 %v4359_v10, %v1139_v6  ;;  %v4360_v9 = vmax.f32 %v4328_v27, 0.0  ;;  %v5685_v19 = vpop.f32.mrb[36].mxu1 }
 0x489   : > { %v4394_v49 = vadd.f32 %v4362_v5, %v1142_v32  ;;  %v5765_v50 = vadd.f32 %v7849_v26, %v5685_v19  ;;  %v4213_v38 = vpop.f32.mrb[37].mxu1  ;;  %v1145_v26 = vadd.f32 %v7002_v52, %v8266_v57 }
 0x48a   : > { %v4392_v30 = vadd.f32 %v4360_v9, %v1140_v61  ;;  %v5768_v13 = vadd.f32 %v7843_v51, %v4213_v38  ;;  %v5686_v48 = vpop.f32.mrb[38].mxu1  ;;  %v8267_v51 = vld [vmem:[#allocation32_spill] sm:$0xff] }
 0x48b   : > { %v4934_v8 = vpack.c.bf16 %v4394_v49, %v4393_v11  ;;  %v4333_v17 = vadd.f32 %v5765_v50, %v7892_v23  ;;  %v5771_v24 = vadd.f32 %v7852_v39, %v5686_v48  ;;  %v4216_v2 = vpop.f32.mrb[39].mxu1  ;;  %v1143_v37 = vadd.f32 %v8268_v42, %v8267_v51  ;;  %v8273_v49 = vld [vmem:[#allocation37_spill] sm:$0xff]  ;;  %v8274_v50 = vld [vmem:[#allocation64_spill] sm:$0xff] }
 0x48c   : > { %v4929_v59 = vpack.c.bf16 %v4392_v30, %v4391_v63  ;;  %v4331_v33 = vadd.f32 %v5768_v13, %v7892_v23  ;;  %v5774_v55 = vadd.f32 %v7846_v25, %v4216_v2  ;;  %v8269_v25 = vld [vmem:[#allocation29_spill] sm:$0xff]  ;;  %v8272_v63 = vld [vmem:[#allocation60_spill] sm:$0xff]  ;;  %v1150_v38 = vadd.f32 %v8274_v50, %v8273_v49 }
 0x48d   : > { %4982 = vst [vmem:[%s7919_s7 + $0x38] sm:$0xff] %v4934_v8   ;;  %v4365_v0 = vmax.f32 %v4333_v17, 0.0  ;;  %v4334_v47 = vadd.f32 %v5771_v24, %v7892_v23  ;;  %v1144_v34 = vadd.f32 %v8270_v53, %v8269_v25  ;;  %v8276_v48 = vld [vmem:[#allocation61_spill] sm:$0xff]  ;;  %v8280_v25 = vld [vmem:[#allocation62_spill] sm:$0xff] }
 0x48e   : > { %4981 = vst [vmem:[%s7919_s7 + $0x30] sm:$0xff] %v4929_v59   ;;  %v4363_v45 = vmax.f32 %v4331_v33, 0.0  ;;  %v4332_v39 = vadd.f32 %v5774_v55, %v7892_v23 }
 0x48f   : > { %v4397_v36 = vadd.f32 %v4365_v0, %v1145_v26  ;;  %v4366_v43 = vmax.f32 %v4334_v47, 0.0 }
 0x490   : > { %v4395_v52 = vadd.f32 %v4363_v45, %v1143_v37  ;;  %v4364_v44 = vmax.f32 %v4332_v39, 0.0  ;;  %v5689_v14 = vpop.f32.mrb[40].mxu1  ;;  %v8277_v39 = vld [vmem:[#allocation40_spill] sm:$0xff] }
 0x491   : > { %v4398_v1 = vadd.f32 %v4366_v43, %v1146_v60  ;;  %v5777_v3 = vadd.f32 %v7861_v21, %v5689_v14  ;;  %v4229_v6 = vpop.f32.mrb[41].mxu1  ;;  %v1149_v21 = vadd.f32 %v7073_v20, %v6699_v12  ;;  %v8278_v60 = vld [vmem:[#allocation66_spill] sm:$0xff] }
 0x492   : > { %v4396_v10 = vadd.f32 %v4364_v44, %v1144_v34  ;;  %v5780_v27 = vadd.f32 %v7855_v18, %v4229_v6  ;;  %v5690_v7 = vpop.f32.mrb[42].mxu1  ;;  %v8271_v18 = vld [vmem:[#allocation35_spill] sm:$0xff]  ;;  %v8282_v44 = vld [vmem:[#allocation68_spill] sm:$0xff] }
 0x493   : > { %v4944_v58 = vpack.c.bf16 %v4398_v1, %v4397_v36  ;;  %v4337_v56 = vadd.f32 %v5777_v3, %v7892_v23  ;;  %v5783_v15 = vadd.f32 %v7864_v4, %v5690_v7  ;;  %v4232_v32 = vpop.f32.mrb[43].mxu1  ;;  %v1147_v9 = vadd.f32 %v8272_v63, %v8271_v18  ;;  %v8284_v6 = vld [vmem:[#allocation63_spill] sm:$0xff] }
 0x494   : > { %v4939_v11 = vpack.c.bf16 %v4396_v10, %v4395_v52  ;;  %v4335_v5 = vadd.f32 %v5780_v27, %v7892_v23  ;;  %v5786_v31 = vadd.f32 %v7858_v40, %v4232_v32  ;;  %v8275_v40 = vld [vmem:[#allocation33_spill] sm:$0xff] }
 0x495   : > { %4984 = vst [vmem:[%s7919_s7 + $0x48] sm:$0xff] %v4944_v58   ;;  %v4369_v35 = vmax.f32 %v4337_v56, 0.0  ;;  %v4338_v61 = vadd.f32 %v5783_v15, %v7892_v23  ;;  %v1148_v8 = vadd.f32 %v8276_v48, %v8275_v40  ;;  %v8281_v52 = vld [vmem:[#allocation41_spill] sm:$0xff]  ;;  %v8290_v48 = vld [vmem:[#allocation44_spill] sm:$0xff] }
 0x496   : > { %4983 = vst [vmem:[%s7919_s7 + $0x40] sm:$0xff] %v4939_v11   ;;  %v4367_v19 = vmax.f32 %v4335_v5, 0.0  ;;  %v4336_v4 = vadd.f32 %v5786_v31, %v7892_v23  ;;  %v1154_v14 = vadd.f32 %v8282_v44, %v8281_v52 }
 0x497   : > { %v4401_v30 = vadd.f32 %v4369_v35, %v1149_v21  ;;  %v4370_v13 = vmax.f32 %v4338_v61, 0.0 }
 0x498   : > { %v4399_v12 = vadd.f32 %v4367_v19, %v1147_v9  ;;  %v4368_v20 = vmax.f32 %v4336_v4, 0.0  ;;  %v5693_v17 = vpop.f32.mrb[44].mxu1  ;;  %v8286_v4 = vld [vmem:[#allocation43_spill] sm:$0xff] }
 0x499   : > { %v4402_v24 = vadd.f32 %v4370_v13, %v1150_v38  ;;  %v5789_v2 = vadd.f32 %v7873_v46, %v5693_v17  ;;  %v4245_v59 = vpop.f32.mrb[45].mxu1  ;;  %v1153_v46 = vadd.f32 %v8278_v60, %v8277_v39  ;;  %v8288_v38 = vld [vmem:[#allocation42_spill] sm:$0xff]  ;;  %v8292_v17 = vld [vmem:[#allocation39_spill] sm:$0xff] }
 0x49a   : > { %v4400_v33 = vadd.f32 %v4368_v20, %v1148_v8  ;;  %v5792_v55 = vadd.f32 %v7867_v22, %v4245_v59  ;;  %v5694_v57 = vpop.f32.mrb[46].mxu1  ;;  %v8279_v22 = vld [vmem:[#allocation38_spill] sm:$0xff] }
 0x49b   : > { %v4954_v26 = vpack.c.bf16 %v4402_v24, %v4401_v30  ;;  %v4341_v0 = vadd.f32 %v5789_v2, %v7892_v23  ;;  %v5795_v47 = vadd.f32 %v7876_v62, %v5694_v57  ;;  %v4248_v51 = vpop.f32.mrb[47].mxu1  ;;  %v1151_v53 = vadd.f32 %v8280_v25, %v8279_v22  ;;  %v8289_v30 = vld [vmem:[#allocation65_spill] sm:$0xff]  ;;  %v8291_v8 = vld [vmem:[#allocation70_spill] sm:$0xff]  ;;  %v8293_v24 = vld [vmem:[#allocation67_spill] sm:$0xff] }
 0x49c   : > { %v4949_v42 = vpack.c.bf16 %v4400_v33, %v4399_v12  ;;  %v4339_v37 = vadd.f32 %v5792_v55, %v7892_v23  ;;  %v5798_v45 = vadd.f32 %v7870_v16, %v4248_v51  ;;  %v8283_v16 = vld [vmem:[#allocation36_spill] sm:$0xff]  ;;  %v1155_v13 = vadd.f32 %v8289_v30, %v8288_v38 }
 0x49d   : > { %4986 = vst [vmem:[%s7919_s7 + $0x58] sm:$0xff] %v4954_v26   ;;  %v4373_v36 = vmax.f32 %v4341_v0, 0.0  ;;  %v4342_v43 = vadd.f32 %v5795_v47, %v7892_v23  ;;  %v1152_v10 = vadd.f32 %v8284_v6, %v8283_v16  ;;  %v1156_v2 = vadd.f32 %v8293_v24, %v8292_v17 }
 0x49e   : > { %4985 = vst [vmem:[%s7919_s7 + $0x50] sm:$0xff] %v4949_v42   ;;  %v4371_v34 = vmax.f32 %v4339_v37, 0.0  ;;  %v4340_v62 = vadd.f32 %v5798_v45, %v7892_v23 }
 0x49f   : > { %v4405_v1 = vadd.f32 %v4373_v36, %v1153_v46  ;;  %v4374_v3 = vmax.f32 %v4342_v43, 0.0 }
 0x4a0   : > { %v4403_v27 = vadd.f32 %v4371_v34, %v1151_v53  ;;  %v4372_v7 = vmax.f32 %v4340_v62, 0.0  ;;  %v5697_v58 = vpop.f32.mrb[48].mxu1 }
 0x4a1   : > { %v4406_v56 = vadd.f32 %v4374_v3, %v1154_v14  ;;  %v5801_v15 = vadd.f32 %v7885_v29, %v5697_v58  ;;  %v4261_v32 = vpop.f32.mrb[49].mxu1  ;;  %v8287_v29 = vld [vmem:[#allocation69_spill] sm:$0xff] }
 0x4a2   : > { %v4404_v11 = vadd.f32 %v4372_v7, %v1152_v10  ;;  %v5804_v5 = vadd.f32 %v7879_v28, %v4261_v32  ;;  %v5698_v31 = vpop.f32.mrb[50].mxu1  ;;  %v1157_v49 = vadd.f32 %v8287_v29, %v8286_v4 }
 0x4a3   : > { %v4964_v21 = vpack.c.bf16 %v4406_v56, %v4405_v1  ;;  %v4345_v35 = vadd.f32 %v5801_v15, %v7892_v23  ;;  %v5807_v61 = vadd.f32 %v7887_v54, %v5698_v31  ;;  %v4264_v18 = vpop.f32.mrb[51].mxu1 }
 0x4a4   : > { %v4959_v63 = vpack.c.bf16 %v4404_v11, %v4403_v27  ;;  %v4343_v9 = vadd.f32 %v5804_v5, %v7892_v23  ;;  %v5810_v19 = vadd.f32 %v7882_v41, %v4264_v18  ;;  %v1158_v41 = vadd.f32 %v8291_v8, %v8290_v48 }
 0x4a5   : > { %4988 = vst [vmem:[%s7919_s7 + $0x68] sm:$0xff] %v4964_v21   ;;  %v4377_v50 = vmax.f32 %v4345_v35, 0.0  ;;  %v4346_v28 = vadd.f32 %v5807_v61, %v7892_v23 }
 0x4a6   : > { %4987 = vst [vmem:[%s7919_s7 + $0x60] sm:$0xff] %v4959_v63   ;;  %v4375_v54 = vmax.f32 %v4343_v9, 0.0  ;;  %v4344_v40 = vadd.f32 %v5810_v19, %v7892_v23 }
 0x4a7   : > { %v4409_v12 = vadd.f32 %v4377_v50, %v1157_v49  ;;  %v4378_v20 = vmax.f32 %v4346_v28, 0.0 }
 0x4a8   : > { %v4407_v59 = vadd.f32 %v4375_v54, %v1155_v13  ;;  %v4376_v33 = vmax.f32 %v4344_v40, 0.0 }
 0x4a9   : > { %v4410_v55 = vadd.f32 %v4378_v20, %v1158_v41 }
 0x4aa   : > { %v4408_v57 = vadd.f32 %v4376_v33, %v1156_v2 }
 0x4ab   : > { %v4974_v26 = vpack.c.bf16 %v4410_v55, %v4409_v12 }
 0x4ac   : > { %v4969_v23 = vpack.c.bf16 %v4408_v57, %v4407_v59 }
 0x4ad   : > { %4990 = vst [vmem:[%s7919_s7 + $0x78] sm:$0xff] %v4974_v26  }
 0x4ae   : > { %4989 = vst [vmem:[%s7919_s7 + $0x70] sm:$0xff] %v4969_v23  }
 0x4af   : > { %6210 = shalt.err (!%p6207_p0)
}
 0x4b0   : > { %s6211_s8 = scalar_lea.hbm %s8044_s17, 2048  ;;  %s6215_s7 = scalar_lea.hbm %s8294_s30, 4096 }
 0x4b1   : > { %p6212_p4 = scmp.ne.s32.totalorder %s8044_s17, %s6211_s8  ;;  %p6216_p12 = scmp.lt.u32.totalorder %s8044_s17, %s8294_s30 }
 0x4b2   : > { %p6217_p1 = scmp.lt.u32.totalorder %s6215_s7, %s6211_s8  ;;  %p6219_p13 = scmp.lt.u32.totalorder %s6211_s8, %s8044_s17 }
 0x4b3   : > { %p6213_p2 = pnand %p6212_p4, %p6499_p10 }
 0x4b4   : > { %p6218_p11 = por %p6217_p1, %p6216_p12 }
 0x4b5   : > { %p6214_p8 = pneg %p6213_p2 }
 0x4b6   : > { %p6220_p6 = por %p6219_p13, %p6218_p11 }
 0x4b8   : > { %p6221_p3 = pnand %p6220_p6, %p6214_p8 }
 0x4ba   : > { %6224 = shalt.err (!%p6221_p3)
}
 0x4bb   : > { %s6297_s22 = smov 64   ;;  %s6298_s12 = smov 4  }
 0x4bc   : > { %5892 = dma.vmem_to_hbm [thread:$0]  (%p6499_p10), %s8046_s15, 2048, %s8044_s17, %s4572_s19, %s6297_s22, %s6297_s22, %s6298_s12  }
 0x4bd PF: > { %s8295_s9 = sld [smem:[#allocation16_spill]]  ;;  %s8296_s11 = sld [smem:[#allocation18_spill]] }
 0x4be   : > { %p8298_p7 = scmp.ge.s32.totalorder %s6287_s29, 2 }
 0x4c3   : > { %s4603_s13 = sand.u32 1, %s8295_s9   ;;  %p8297_p5 = scmp.ne.s32.totalorder %s8296_s11, 0 }
 0x4c4   : > { %s4604_s23 = scalar_lea.sflag [#allocation5], %s4603_s13 }
 0x4c5   : > { %p5909_p9 = pnand %p8298_p7, %p8297_p5 }
 0x4c7   : > { %6262 = dma.done.wait (!%p5909_p9), %s4604_s23, 2048  }
 0x4c8   : > { %6264 = vsyncadd (!%p5909_p9), %s4604_s23, 4294965248  ;;  %s25_s29 = sadd.s32 1, %s6287_s29   ;;  %s8299_s24 = smov %s6271_s25 }
 0x4c9   : > { %p22_p0 = scmp.ge.s32.totalorder %s25_s29, 4   ;;  %s8300_s25 = smov %s6275_s26 }
 0x4ca   : > { %s8301_s26 = smov %s6515_s10  ;;  %s8302_s27 = smov %s6283_s28 }
 0x4cb   : > { %s8303_s28 = smov %s8305_s16  ;;  %24 = sbr.rel (!%p22_p0) target bundleno = 10 (0xa), region = 109 }
 0x4d2   :  { %4609 = vsyncpa [#allocation4], 1 }
 0x4d3   :  { %4611 = vsyncpa [#allocation4 + $0x1], 1 }
 0x4d4   :  { %4612 = vsyncpa [#allocation7], 1 }
 0x4d5   :  { %4613 = vsyncpa [#allocation10], 1 }
 0x4d6   :  { %4614 = vsyncpa [#allocation5], 1 }
 0x4d7   :  { %4616 = vsyncpa [#allocation5 + $0x1], 1 }

// kernel: tpu_custom_call.1
= control target key start
LH: loop header
LB: loop body
LE: loop exit
PB: predicated region body
PF: predicated region fallthrough
CT: control target
= control target key end

     0   :  { %s8097_s0 = inlined_call_operand.hbm [shape: bf16[2,1,18,16,128], index: 0, kind: input, shape index: {}]   ;;  %s8098_s1 = inlined_call_operand.hbm [shape: bf16[128,128], index: 1, kind: input, shape index: {}]   ;;  %s8099_s2 = inlined_call_operand.vmem [shape: f32[1,128], index: 2, kind: input, shape index: {}]   ;;  %s8100_s3 = inlined_call_operand.hbm [shape: bf16[128,128], index: 3, kind: input, shape index: {}]   ;;  %s8101_s4 = inlined_call_operand.vmem [shape: f32[1,128], index: 4, kind: input, shape index: {}]   ;;  %s8102_s5 = inlined_call_operand.hbm [shape: bf16[3,384,128], index: 5, kind: input, shape index: {}]   ;;  %s8103_s6 = inlined_call_operand.vmem [shape: f32[1,128], index: 6, kind: input, shape index: {}]   ;;  %s8104_s7 = inlined_call_operand.hbm [shape: bf16[2,16,16,128], index: 7, kind: output, shape index: {}]  }
   0x1   :  { %8165 = sst [smem:[#allocation71_spill]] %s8104_s7 }
   0x2   :  { %12 = vsyncpa [#allocation4], 0 }
   0x3   :  { %14 = vsyncpa [#allocation4 + $0x1], 0 }
   0x4   :  { %15 = vsyncpa [#allocation7], 0 }
   0x5   :  { %16 = vsyncpa [#allocation10], 0 }
   0x6   :  { %17 = vsyncpa [#allocation5], 0 }
   0x7   :  { %19 = vsyncpa [#allocation5 + $0x1], 0  ;;  %s6339_s24 = smov 0   ;;  %s6341_s25 = smov 0  }
   0x8   :  { %s6343_s26 = smov 0   ;;  %s6345_s27 = smov 0  }
   0x9   :  { %s6347_s28 = smov 0   ;;  %s6349_s29 = smov 0  }
   0xa LB: > { %8166 = sst [smem:[#allocation16_spill]] %s6267_s24  ;;  %s4704_s30 = sadd.s32 4294967295, %s6287_s29   ;;  %s6287_s29 = sphi %s6349_s29, %s25_s29   ;;  %s6283_s28 = sphi %s6347_s28, %s8303_s28   ;;  %s6279_s27 = sphi %s6345_s27, %s8302_s27   ;;  %s6275_s26 = sphi %s6343_s26, %s8301_s26   ;;  %s6271_s25 = sphi %s6341_s25, %s8300_s25   ;;  %s6267_s24 = sphi %s6339_s24, %s8299_s24  }
   0xb   : > { %8167 = sst [smem:[#allocation17_spill]] %s6279_s27  ;;  %s4705_s8 = sadd.s32 4294967294, %s6287_s29  }
   0xc   : > { %p59_p0 = scmp.ne.s32.totalorder %s6271_s25, %s6267_s24  ;;  %p6373_p1 = scmp.eq.s32.totalorder %s4704_s30, 0 }
   0xd   : > { %p6377_p2 = scmp.eq.s32.totalorder %s4704_s30, 1  ;;  %p217_p3 = scmp.eq.s32.totalorder %s4705_s8, 1 }
   0xe   : > { %s8168_s9 = scalar_select %p6373_p1, 1, 0 }
   0xf   : > { %s8169_s10 = scalar_select %p6377_p2, 1, 0 }
  0x10   : > { %p6383_p4 = por %p6373_p1, %p59_p0  ;;  %p4706_p5 = scmp.ge.s32.totalorder %s6287_s29, 1 }
  0x11   : > { %p6388_p6 = por %p217_p3, %p59_p0  ;;  %p224_p7 = scmp.lt.s32.totalorder %s6287_s29, 3 }
  0x12   : > { %s8170_s11 = scalar_select %p6383_p4, 1, 0 }
  0x13   : > { %s8171_s12 = scalar_select %p6388_p6, 1, 0 }
  0x14   : > { %p6393_p8 = pnand %p4706_p5, %p224_p7  ;;  %s6289_s14 = smov [#allocation6]  }
  0x15   : > { %8172 = sst [smem:[#allocation18_spill]] %s8171_s12  ;;  %s236_s15 = sshll.u32 %s6289_s14, 4  ;;  %s6397_s15 = int_to_ptr.vmem [resolvable:$true] %s236_s15 }
  0x16   : > { %s8173_s13 = scalar_select %p6393_p8, 1, 0 }
  0x17   : > { %p5894_p9 = pneg %p6393_p8  ;;  %s6290_s17 = smov [#allocation8]  }
  0x18   : > { %s252_s18 = sshll.u32 %s6290_s17, 4  ;;  %s6291_s19 = smov [#allocation9]   ;;  %s6408_s18 = int_to_ptr.vmem [resolvable:$true] %s252_s18 }
  0x19   : > { %p6404_p11 = pnand %p5894_p9, %p6373_p1  ;;  %s6410_s20 = sshll.u32 %s6291_s19, 4  ;;  %s269_s20 = int_to_ptr.vmem [resolvable:$true] %s6410_s20 }
  0x1a   : > { %s6083_s23 = scalar_lea.hbm %s8098_s1, 1024 }
  0x1b   : > { %p6084_p12 = scmp.ne.s32.totalorder %s8098_s1, %s6083_s23  ;;  %p6420_p13 = pneg %p6404_p11 }
  0x1c   : > { %p6090_p5 = scmp.lt.u32.totalorder %s6083_s23, %s8098_s1 }
  0x1d   : > { %p6086_p0 = pnand %p6420_p13, %p6084_p12 }
  0x1f   : > { %p6087_p3 = pneg %p6086_p0 }
  0x21   : > { %p6092_p7 = pnand %p6090_p5, %p6087_p3 }
  0x23   : > { %6095 = shalt.err (!%p6092_p7)
}
  0x24   : > { %s6096_s21 = scalar_lea.vmem %s6397_s15, 1024  ;;  %p6104_p1 = scmp.lt.s32.totalorder %s6397_s15, %s6397_s15 }
  0x25   : > { %p6097_p9 = scmp.ne.s32.totalorder %s6397_s15, %s6096_s21  ;;  %p6105_p4 = scmp.lt.s32.totalorder %s6096_s21, %s6096_s21 }
  0x27   : > { %p6099_p10 = pnand %p6097_p9, %p6420_p13  ;;  %p6106_p12 = por %p6105_p4, %p6104_p1 }
  0x29   : > { %p6100_p6 = pneg %p6099_p10 }
  0x2b   : > { %p6107_p0 = pnand %p6106_p12, %p6100_p6 }
  0x2d   : > { %6110 = shalt.err (!%p6107_p0)
}
  0x2e   : > { %s8112_s22 = smov 64   ;;  %s6293_s23 = smov 4  }
  0x2f   : > { %5897 = dma.hbm_to_vmem [thread:$0]  (!%p6404_p11), %s8098_s1, 1024, %s6397_s15, [#allocation7], %s8112_s22, %s8112_s22, %s6293_s23  }
  0x30   : > { %s6111_s21 = scalar_lea.hbm %s8100_s3, 1024 }
  0x31   : > { %p6112_p1 = scmp.ne.s32.totalorder %s8100_s3, %s6111_s21  ;;  %p6118_p10 = scmp.lt.u32.totalorder %s6111_s21, %s8100_s3 }
  0x33   : > { %p6114_p4 = pnand %p6112_p1, %p6420_p13 }
  0x35   : > { %p6115_p6 = pneg %p6114_p4 }
  0x37   : > { %p6120_p3 = pnand %p6118_p10, %p6115_p6 }
  0x39   : > { %6123 = shalt.err (!%p6120_p3)
}
  0x3a   : > { %s6124_s15 = scalar_lea.vmem %s6408_s18, 1024  ;;  %p6132_p12 = scmp.lt.s32.totalorder %s6408_s18, %s6408_s18 }
  0x3b   : > { %p6125_p5 = scmp.ne.s32.totalorder %s6408_s18, %s6124_s15  ;;  %p6133_p0 = scmp.lt.s32.totalorder %s6124_s15, %s6124_s15 }
  0x3d   : > { %p6127_p7 = pnand %p6125_p5, %p6420_p13  ;;  %p6134_p1 = por %p6133_p0, %p6132_p12 }
  0x3f   : > { %p6128_p9 = pneg %p6127_p7 }
  0x41   : > { %p6135_p4 = pnand %p6134_p1, %p6128_p9 }
  0x43   : > { %6138 = shalt.err (!%p6135_p4)
}
  0x44   : > { %5900 = dma.hbm_to_vmem [thread:$0]  (!%p6404_p11), %s8100_s3, 1024, %s6408_s18, [#allocation7], %s8112_s22, %s8112_s22, %s6293_s23  }
  0x45   : > { %s6139_s30 = scalar_lea.hbm %s8102_s5, 9216 }
  0x46   : > { %p6140_p6 = scmp.ne.s32.totalorder %s8102_s5, %s6139_s30  ;;  %p6146_p5 = scmp.lt.u32.totalorder %s6139_s30, %s8102_s5 }
  0x48   : > { %p6142_p10 = pnand %p6140_p6, %p6420_p13 }
  0x4a   : > { %p6143_p3 = pneg %p6142_p10 }
  0x4c   : > { %p6148_p7 = pnand %p6146_p5, %p6143_p3 }
  0x4e   : > { %6151 = shalt.err (!%p6148_p7)
}
  0x4f   : > { %s6152_s15 = scalar_lea.vmem %s269_s20, 9216  ;;  %p6160_p1 = scmp.lt.s32.totalorder %s269_s20, %s269_s20 }
  0x50   : > { %p6153_p9 = scmp.ne.s32.totalorder %s269_s20, %s6152_s15  ;;  %p6161_p4 = scmp.lt.s32.totalorder %s6152_s15, %s6152_s15 }
  0x52   : > { %p6155_p12 = pnand %p6153_p9, %p6420_p13  ;;  %p6162_p8 = por %p6161_p4, %p6160_p1 }
  0x54   : > { %p6156_p0 = pneg %p6155_p12 }
  0x56   : > { %p6163_p2 = pnand %p6162_p8, %p6156_p0 }
  0x58   : > { %6166 = shalt.err (!%p6163_p2)
}
  0x59   : > { %5903 = dma.hbm_to_vmem [thread:$0]  (!%p6404_p11), %s8102_s5, 9216, %s269_s20, [#allocation10], %s8112_s22, %s8112_s22, %s6293_s23  }
  0x5a   : > { %s46_s14 = sadd.s32 1, %s6275_s26  ;;  %s37_s16 = sadd.s32 1, %s6283_s28 }
  0x5b   : > { %p53_p2 = scmp.ne.s32.totalorder %s6275_s26, %s6271_s25  ;;  %p39_p8 = scmp.ge.s32.totalorder %s37_s16, 2 }
  0x5c   : > { %p54_p13 = scmp.eq.s32.totalorder %s6287_s29, 0  ;;  %p8176_p6 = scmp.ne.s32.totalorder %s8169_s10, 0 }
  0x5d   : > { %p5915_p3 = scmp.lt.s32.totalorder %s6287_s29, 2  ;;  %s8305_s16 = smov (%p39_p8, %s37_s16), 0 }
  0x5e   : > { %p6499_p10 = por %p8176_p6, %p53_p2  ;;  %p55_p5 = por %p54_p13, %p53_p2 }
  0x5f   : > { %s285_s27 = sand.u32 1, %s6275_s26   ;;  %s41_s12 = ssub.s32 %s6283_s28, %s8305_s16 }
  0x60   : > { %p44_p7 = scmp.eq.s32.totalorder %s41_s12, 0  ;;  %s5875_s20 = smul.u32 144, %s285_s27 }
  0x61   : > { %s5876_s30 = smul.u32 2304, %s6283_s28  ;;  %p6510_p11 = pnand %p5915_p3, %p55_p5 }
  0x62   : > { %s6515_s10 = scalar_select %p44_p7, %s6275_s26, %s46_s14  }
  0x63   : > { %s6520_s21 = scalar_lea.hbm %s8097_s0, %s5876_s30  ;;  %s289_s15 = scalar_lea.vmem [#allocation3], %s5875_s20 }
  0x64   : > { %s298_s18 = sshll.u32 %s289_s15, 4  ;;  %s6524_s7 = scalar_lea.sflag [#allocation4], %s285_s27  ;;  %s6522_s18 = int_to_ptr.vmem [resolvable:$true] %s298_s18 }
  0x65   : > { %s6167_s12 = scalar_lea.hbm %s6520_s21, 2304  ;;  %p6169_p12 = pneg %p6510_p11 }
  0x66   : > { %p6168_p9 = scmp.ne.s32.totalorder %s6520_s21, %s6167_s12  ;;  %s6172_s17 = scalar_lea.hbm %s8097_s0, 4608 }
  0x67   : > { %p6173_p4 = scmp.lt.u32.totalorder %s6520_s21, %s8097_s0  ;;  %p6174_p2 = scmp.lt.u32.totalorder %s6172_s17, %s6167_s12 }
  0x68   : > { %p6170_p0 = pnand %p6169_p12, %p6168_p9  ;;  %p6176_p13 = scmp.lt.u32.totalorder %s6167_s12, %s6520_s21 }
  0x69   : > { %p6175_p8 = por %p6174_p2, %p6173_p4 }
  0x6a   : > { %p6171_p1 = pneg %p6170_p0 }
  0x6b   : > { %p6177_p6 = por %p6176_p13, %p6175_p8 }
  0x6d   : > { %p6178_p3 = pnand %p6177_p6, %p6171_p1 }
  0x6f   : > { %6181 = shalt.err (!%p6178_p3)
}
  0x70   : > { %s6182_s27 = scalar_lea.vmem %s6522_s18, 2304  ;;  %s6294_s20 = smov [#allocation3]  }
  0x71   : > { %p6183_p5 = scmp.ne.s32.totalorder %s6522_s18, %s6182_s27  ;;  %s6187_s15 = sshll.u32 %s6294_s20, 4  ;;  %s6188_s15 = int_to_ptr.vmem [resolvable:$false] %s6187_s15 }
  0x72   : > { %s6189_s22 = scalar_lea.vmem %s6188_s15, 4608  ;;  %p6190_p0 = scmp.lt.s32.totalorder %s6522_s18, %s6188_s15 }
  0x73   : > { %p6185_p7 = pnand %p6183_p5, %p6169_p12  ;;  %p6191_p4 = scmp.lt.s32.totalorder %s6189_s22, %s6182_s27 }
  0x75   : > { %p6186_p9 = pneg %p6185_p7  ;;  %p6192_p2 = por %p6191_p4, %p6190_p0 }
  0x77   : > { %p6193_p8 = pnand %p6192_p2, %p6186_p9 }
  0x79   : > { %6196 = shalt.err (!%p6193_p8)
}
  0x7a   : > { %s8179_s12 = smov 64   ;;  %p8180_p12 = scmp.ne.s32.totalorder %s8173_s13, 0 }
  0x7b   : > { %5907 = dma.hbm_to_vmem [thread:$0]  (!%p6510_p11), %s6520_s21, 2304, %s6522_s18, %s6524_s7, %s8179_s12, %s8179_s12, %s6293_s23  }
  0x7c   : > { %310 = sbr.rel (%p8180_p12) target bundleno = 1213 (0x4bd), region = 48 }
  0x83   : > { %s6558_s14 = sand.u32 1, %s6271_s25   ;;  %p8181_p1 = scmp.ne.s32.totalorder %s8170_s11, 0 }
  0x84   : > { %s5877_s30 = smul.u32 144, %s6558_s14  ;;  %s313_s17 = scalar_lea.sflag [#allocation4], %s6558_s14 }
  0x86   : > { %s6562_s19 = scalar_lea.vmem [#allocation3], %s5877_s30 }
  0x87   : > { %6250 = dma.done.wait (%p8181_p1), %s313_s17, 2304  }
  0x88   : > { %6252 = vsyncadd (%p8181_p1), %s313_s17, 4294964992  ;;  %p8182_p11 = scmp.ne.s32.totalorder %s8168_s9, 0 }
  0x8a   : > { %6254 = dma.done.wait (%p8182_p11), [#allocation7], 2048  }
  0x8b   : > { %6256 = vsyncadd (%p8182_p11), [#allocation7], 4294965248 }
  0x8c   : > { %6258 = dma.done.wait (%p8182_p11), [#allocation10], 9216  }
  0x8d   : > { %6260 = vsyncadd (%p8182_p11), [#allocation10], 4294958080  ;;  %v5976_v0 = vld [vmem:[#allocation6] sm:$0xff]   ;;  %v5977_v1 = vld [vmem:[#allocation6 + $0x8] sm:$0xff]   ;;  %vm1287_vm0 = vcmask 1040384   ;;  %vm1562_vm5 = vcmask 1047552  }
  0x8e   : > { %5451 = vmatprep.subr.bf16.mxu0 %v5976_v0  ;;  %v5978_v2 = vld [vmem:[#allocation6 + $0x10] sm:$0xff]   ;;  %v5979_v3 = vld [vmem:[#allocation6 + $0x18] sm:$0xff]   ;;  %v5980_v5 = vld [vmem:[#allocation6 + $0x20] sm:$0xff]   ;;  %vm1344_vm1 = vsmask.f32 7938  ;;  %vm1961_vm7 = vcmask 1046528  }
  0x8f   : > { %5452 = vmatpush3.bf16.msra.mxu0 %v5976_v0  ;;  %v5984_v4 = vld [vmem:[%s6562_s19] sm:$0xff]   ;;  %v5981_v6 = vld [vmem:[#allocation6 + $0x28] sm:$0xff]   ;;  %v5983_v8 = vld [vmem:[#allocation6 + $0x38] sm:$0xff]   ;;  %vm1288_vm3 = vsmask.f32 256  ;;  %s4716_s18 = sshll.u32 %s6558_s14, 7 }
  0x90   : > { %5453 = vmatprep.subr.bf16.mxu0 %v5977_v1  ;;  %5467 = vmatprep.mubr.bf16.mxu0 %v5984_v4  ;;  %v5982_v7 = vld [vmem:[#allocation6 + $0x30] sm:$0xff]   ;;  %v6002_v9 = vld [vmem:[#allocation8] sm:$0xff]   ;;  %v6003_v10 = vld [vmem:[#allocation8 + $0x8] sm:$0xff]   ;;  %vm1720_vm8 = vsmask.f32 7424  ;;  %s7919_s7 = scalar_lea.vmem [#allocation11], %s4716_s18 }
  0x91   : > { %5699 = vmatprep.subr.bf16.mxu1 %v6002_v9  ;;  %v5985_v11 = vld [vmem:[%s6562_s19 + $0x8] sm:$0xff]   ;;  %v5986_v12 = vld [vmem:[%s6562_s19 + $0x10] sm:$0xff]   ;;  %v5987_v15 = vld [vmem:[%s6562_s19 + $0x18] sm:$0xff]   ;;  %s8285_s27 = sld [smem:[#allocation17_spill]]  ;;  %s4588_s15 = sshll.u32 %s7919_s7, 4  ;;  %s8046_s15 = int_to_ptr.vmem [resolvable:$true] %s4588_s15 }
  0x92   : > { %5707 = vmatpush3.bf16.msra.mxu1 %v6002_v9  ;;  %v6004_v13 = vld [vmem:[#allocation8 + $0x10] sm:$0xff]   ;;  %v6005_v14 = vld [vmem:[#allocation8 + $0x18] sm:$0xff]   ;;  %v6006_v17 = vld [vmem:[#allocation8 + $0x20] sm:$0xff]   ;;  %s8294_s30 = sld [smem:[#allocation71_spill]]  ;;  %s6197_s9 = scalar_lea.vmem %s8046_s15, 2048 }
  0x93   : > { %5454 = vmatpush3.bf16.msra.mxu0 %v5977_v1  ;;  %5700 = vmatprep.subr.bf16.mxu1 %v6003_v10  ;;  %v5988_v16 = vld [vmem:[%s6562_s19 + $0x20] sm:$0xff]   ;;  %v6007_v18 = vld [vmem:[#allocation8 + $0x28] sm:$0xff]   ;;  %v5990_v20 = vld [vmem:[%s6562_s19 + $0x30] sm:$0xff]   ;;  %p6198_p13 = scmp.ne.s32.totalorder %s8046_s15, %s6197_s9  ;;  %s6296_s11 = smov [#allocation11]  }
  0x94   : > { %5455 = vmatprep.subr.bf16.mxu0 %v5978_v2  ;;  %v5989_v19 = vld [vmem:[%s6562_s19 + $0x28] sm:$0xff]   ;;  %v6008_v21 = vld [vmem:[#allocation8 + $0x30] sm:$0xff]   ;;  %v5991_v22 = vld [vmem:[%s6562_s19 + $0x38] sm:$0xff]   ;;  %s6201_s13 = sshll.u32 %s6296_s11, 4  ;;  %s6202_s13 = int_to_ptr.vmem [resolvable:$false] %s6201_s13 }
  0x95   : > { %v5992_v23 = vld [vmem:[%s6562_s19 + $0x40] sm:$0xff]   ;;  %v5993_v24 = vld [vmem:[%s6562_s19 + $0x48] sm:$0xff]   ;;  %v5994_v25 = vld [vmem:[%s6562_s19 + $0x50] sm:$0xff]   ;;  %p6199_p6 = pnand %p6198_p13, %p6499_p10  ;;  %s6203_s23 = scalar_lea.vmem %s6202_s13, 4096 }
  0x96   : > { %5708 = vmatpush3.bf16.msra.mxu1 %v6003_v10  ;;  %v5995_v26 = vld [vmem:[%s6562_s19 + $0x58] sm:$0xff]   ;;  %v5996_v27 = vld [vmem:[%s6562_s19 + $0x60] sm:$0xff]   ;;  %v5997_v28 = vld [vmem:[%s6562_s19 + $0x68] sm:$0xff]   ;;  %p6204_p5 = scmp.lt.s32.totalorder %s8046_s15, %s6202_s13  ;;  %p6205_p7 = scmp.lt.s32.totalorder %s6203_s23, %s6197_s9 }
  0x97   : > { %5456 = vmatpush3.bf16.msra.mxu0 %v5978_v2  ;;  %5701 = vmatprep.subr.bf16.mxu1 %v6004_v13  ;;  %v5998_v29 = vld [vmem:[%s6562_s19 + $0x70] sm:$0xff]   ;;  %v5999_v30 = vld [vmem:[%s6562_s19 + $0x78] sm:$0xff]   ;;  %v6000_v31 = vld [vmem:[%s6562_s19 + $0x80] sm:$0xff]   ;;  %s4895_s20 = sshll.u32 %s8285_s27, 11  ;;  %p6200_p3 = pneg %p6199_p6 }
  0x98   : > { %5457 = vmatprep.subr.bf16.mxu0 %v5979_v3  ;;  %v6001_v32 = vld [vmem:[%s6562_s19 + $0x88] sm:$0xff]   ;;  %v6594_v34 = vld [vmem:[#allocation9 + $0x140] sm:$0xff]   ;;  %vm6736_vm2 = vmand %vm1287_vm0, %vm1344_vm1  ;;  %s8044_s17 = scalar_lea.hbm %s8294_s30, %s4895_s20  ;;  %s4572_s19 = scalar_lea.sflag [#allocation5], %s6558_s14 }
  0x99   : > { %v6009_v33 = vld [vmem:[#allocation8 + $0x38] sm:$0xff]   ;;  %v6600_v35 = vld [vmem:[%s8099_s2] ss:$0 sm:$0xff]  ;;  %vm6742_vm4 = vmand %vm1287_vm0, %vm1288_vm3  ;;  %p6206_p9 = por %p6205_p7, %p6204_p5 }
  0x9a   : > { %5709 = vmatpush3.bf16.msra.mxu1 %v6004_v13  ;;  %vm6815_vm6 = vmand %vm1562_vm5, %vm1344_vm1 }
  0x9b   : > { %5458 = vmatpush3.bf16.msra.mxu0 %v5979_v3  ;;  %5702 = vmatprep.subr.bf16.mxu1 %v6005_v14  ;;  %p6207_p0 = pnand %p6206_p9, %p6200_p3 }
  0x9c   : > { %5459 = vmatprep.subr.bf16.mxu0 %v5980_v5 }
  0x9e   : > { %5710 = vmatpush3.bf16.msra.mxu1 %v6005_v14 }
  0x9f   : > { %5460 = vmatpush3.bf16.msra.mxu0 %v5980_v5  ;;  %5703 = vmatprep.subr.bf16.mxu1 %v6006_v17 }
  0xa0   : > { %5461 = vmatprep.subr.bf16.mxu0 %v5981_v6 }
  0xa2   : > { %5711 = vmatpush3.bf16.msra.mxu1 %v6006_v17 }
  0xa3   : > { %5462 = vmatpush3.bf16.msra.mxu0 %v5981_v6  ;;  %5704 = vmatprep.subr.bf16.mxu1 %v6007_v18 }
  0xa4   : > { %5463 = vmatprep.subr.bf16.mxu0 %v5982_v7 }
  0xa6   : > { %5712 = vmatpush3.bf16.msra.mxu1 %v6007_v18 }
  0xa7   : > { %5464 = vmatpush3.bf16.msra.mxu0 %v5982_v7  ;;  %5705 = vmatprep.subr.bf16.mxu1 %v6008_v21 }
  0xa8   : > { %5465 = vmatprep.subr.bf16.mxu0 %v5983_v8 }
  0xaa   : > { %5713 = vmatpush3.bf16.msra.mxu1 %v6008_v21 }
  0xab   : > { %5466 = vmatpush3.bf16.msra.mxu0 %v5983_v8  ;;  %5706 = vmatprep.subr.bf16.mxu1 %v6009_v33 }
  0xac   : > { %5503 = vmatprep.subr.bf16.mxu0 %v6002_v9 }
  0xae   : > { %5468 = vmatmul.mubr.bf16.vlgmr.msra.gmra.mrb[0].mxu0 %v5985_v11  ;;  %5714 = vmatpush3.bf16.msra.mxu1 %v6009_v33 }
  0xaf   : > { %5471 = vmatprep.mubr.bf16.mxu0 %v5986_v12  ;;  %5504 = vmatpush3.bf16.msra.mxu0 %v6002_v9 }
  0xb0   : > { %5505 = vmatprep.subr.bf16.mxu0 %v6003_v10  ;;  %5555 = vmatprep.subr.bf16.mxu1 %v6594_v34 }
  0xb3   : > { %5506 = vmatpush3.bf16.msra.mxu0 %v6003_v10 }
  0xb4   : > { %5507 = vmatprep.subr.bf16.mxu0 %v6004_v13 }
  0xb6   : > { %5472 = vmatmul.mubr.bf16.gmra.mrb[4].mxu0 %v5987_v15 }
  0xb7   : > { %5475 = vmatprep.mubr.bf16.mxu0 %v5988_v16  ;;  %5508 = vmatpush3.bf16.msra.mxu0 %v6004_v13 }
  0xb8   : > { %5509 = vmatprep.subr.bf16.mxu0 %v6005_v14 }
  0xbb   : > { %5510 = vmatpush3.bf16.msra.mxu0 %v6005_v14 }
  0xbc   : > { %5511 = vmatprep.subr.bf16.mxu0 %v6006_v17 }
  0xbe   : > { %5476 = vmatmul.mubr.bf16.gmra.mrb[8].mxu0 %v5989_v19 }
  0xbf   : > { %5479 = vmatprep.mubr.bf16.mxu0 %v5990_v20  ;;  %5512 = vmatpush3.bf16.msra.mxu0 %v6006_v17 }
  0xc0   : > { %5513 = vmatprep.subr.bf16.mxu0 %v6007_v18 }
  0xc3   : > { %5514 = vmatpush3.bf16.msra.mxu0 %v6007_v18 }
  0xc4   : > { %5515 = vmatprep.subr.bf16.mxu0 %v6008_v21 }
  0xc6   : > { %5480 = vmatmul.mubr.bf16.gmra.mrb[12].mxu0 %v5991_v22 }
  0xc7   : > { %5483 = vmatprep.mubr.bf16.mxu0 %v5992_v23  ;;  %5516 = vmatpush3.bf16.msra.mxu0 %v6008_v21 }
  0xc8   : > { %5517 = vmatprep.subr.bf16.mxu0 %v6009_v33 }
  0xcb   : > { %5518 = vmatpush3.bf16.msra.mxu0 %v6009_v33 }
  0xce   : > { %5484 = vmatmul.mubr.bf16.gmra.mrb[16].mxu0 %v5993_v24 }
  0xcf   : > { %5487 = vmatprep.mubr.bf16.mxu0 %v5994_v25 }
  0xd6   : > { %5488 = vmatmul.mubr.bf16.gmra.mrb[20].mxu0 %v5995_v26 }
  0xd7   : > { %5491 = vmatprep.mubr.bf16.mxu0 %v5996_v27 }
  0xde   : > { %5492 = vmatmul.mubr.bf16.gmra.mrb[24].mxu0 %v5997_v28 }
  0xdf   : > { %5495 = vmatprep.mubr.bf16.mxu0 %v5998_v29 }
  0xe6   : > { %5496 = vmatmul.mubr.bf16.gmra.mrb[28].mxu0 %v5999_v30 }
  0xe7   : > { %5499 = vmatprep.mubr.bf16.mxu0 %v6000_v31 }
  0xee   : > { %5500 = vmatmul.mubr.bf16.gmra.mrb[32].mxu0 %v6001_v32 }
 0x181   : > { %v5469_v36 = vpop.f32.mrb[0].mxu0 }
 0x182   : > { %v610_v37 = vpop.f32.mrb[1].mxu0  ;;  %v619_v40 = vadd.f32 %v5469_v36, %v6600_v35 }
 0x183   : > { %v611_v38 = vadd.f32 %v6600_v35, %v610_v37  ;;  %v5470_v39 = vpop.f32.mrb[2].mxu0 }
 0x184   : > { %v622_v41 = vadd.f32 %v5470_v39, %v6600_v35  ;;  %v613_v42 = vpop.f32.mrb[3].mxu0  ;;  %v6608_v47 = vmax.f32 %v619_v40, 0.0 }
 0x185   : > { %v614_v43 = vadd.f32 %v6600_v35, %v613_v42  ;;  %v753_v45 = vmax.f32 %v611_v38, 0.0 }
 0x186   : > { %v6606_v44 = vmax.f32 %v622_v41, 0.0 }
 0x187   : > { %v754_v46 = vmax.f32 %v614_v43, 0.0 }
 0x188   : > { %v790_v50 = vpack.c.bf16 %v6606_v44, %v6608_v47 }
 0x189   : > { %v789_v48 = vpack.c.bf16 %v754_v46, %v753_v45  ;;  %v5473_v49 = vpop.f32.mrb[4].mxu0 }
 0x18a   : > { %v626_v51 = vpop.f32.mrb[5].mxu0  ;;  %v635_v54 = vadd.f32 %v5473_v49, %v6600_v35 }
 0x18b   : > { %v627_v52 = vadd.f32 %v6600_v35, %v626_v51  ;;  %v5474_v53 = vpop.f32.mrb[6].mxu0  ;;  %5519 = vmatprep.mubr.bf16.mxu0 %v789_v48 }
 0x18c   : > { %v638_v55 = vadd.f32 %v5474_v53, %v6600_v35  ;;  %v629_v56 = vpop.f32.mrb[7].mxu0  ;;  %5520 = vmatmul.mubr.bf16.vlgmr.msra.gmra.mrb[36].mxu0 %v790_v50  ;;  %v6622_v61 = vmax.f32 %v635_v54, 0.0 }
 0x18d   : > { %v630_v57 = vadd.f32 %v6600_v35, %v629_v56  ;;  %v6618_v59 = vmax.f32 %v627_v52, 0.0 }
 0x18e   : > { %v6616_v58 = vmax.f32 %v638_v55, 0.0  ;;  %8184 = vst [vmem:[#allocation20_spill] sm:$0xff] %v6622_v61 }
 0x18f   : > { %v6620_v60 = vmax.f32 %v630_v57, 0.0 }
 0x190   : > { %8183 = vst [vmem:[#allocation19_spill] sm:$0xff] %v6616_v58  ;;  %v792_v1 = vpack.c.bf16 %v6616_v58, %v6622_v61 }
 0x191   : > { %v5477_v62 = vpop.f32.mrb[8].mxu0  ;;  %v791_v63 = vpack.c.bf16 %v6620_v60, %v6618_v59 }
 0x192   : > { %v642_v0 = vpop.f32.mrb[9].mxu0  ;;  %v651_v4 = vadd.f32 %v5477_v62, %v6600_v35 }
 0x193   : > { %v643_v2 = vadd.f32 %v6600_v35, %v642_v0  ;;  %v5478_v3 = vpop.f32.mrb[10].mxu0  ;;  %5523 = vmatprep.mubr.bf16.mxu0 %v791_v63 }
 0x194   : > { %v654_v5 = vadd.f32 %v5478_v3, %v6600_v35  ;;  %v645_v6 = vpop.f32.mrb[11].mxu0  ;;  %5524 = vmatmul.mubr.bf16.gmra.mrb[40].mxu0 %v792_v1  ;;  %v6638_v11 = vmax.f32 %v651_v4, 0.0 }
 0x195   : > { %v646_v7 = vadd.f32 %v6600_v35, %v645_v6  ;;  %v6634_v9 = vmax.f32 %v643_v2, 0.0 }
 0x196   : > { %v6632_v8 = vmax.f32 %v654_v5, 0.0  ;;  %8188 = vst [vmem:[#allocation24_spill] sm:$0xff] %v6638_v11 }
 0x197   : > { %8186 = vst [vmem:[#allocation22_spill] sm:$0xff] %v6634_v9  ;;  %v6636_v10 = vmax.f32 %v646_v7, 0.0 }
 0x198   : > { %8185 = vst [vmem:[#allocation21_spill] sm:$0xff] %v6632_v8  ;;  %v794_v15 = vpack.c.bf16 %v6632_v8, %v6638_v11 }
 0x199   : > { %8187 = vst [vmem:[#allocation23_spill] sm:$0xff] %v6636_v10  ;;  %v5481_v12 = vpop.f32.mrb[12].mxu0  ;;  %v793_v13 = vpack.c.bf16 %v6636_v10, %v6634_v9 }
 0x19a   : > { %v658_v14 = vpop.f32.mrb[13].mxu0  ;;  %v667_v18 = vadd.f32 %v5481_v12, %v6600_v35 }
 0x19b   : > { %v659_v16 = vadd.f32 %v6600_v35, %v658_v14  ;;  %v5482_v17 = vpop.f32.mrb[14].mxu0  ;;  %5527 = vmatprep.mubr.bf16.mxu0 %v793_v13 }
 0x19c   : > { %v670_v19 = vadd.f32 %v5482_v17, %v6600_v35  ;;  %v661_v20 = vpop.f32.mrb[15].mxu0  ;;  %5528 = vmatmul.mubr.bf16.gmra.mrb[44].mxu0 %v794_v15  ;;  %v6654_v25 = vmax.f32 %v667_v18, 0.0 }
 0x19d   : > { %v662_v21 = vadd.f32 %v6600_v35, %v661_v20  ;;  %v6650_v23 = vmax.f32 %v659_v16, 0.0 }
 0x19e   : > { %v6648_v22 = vmax.f32 %v670_v19, 0.0  ;;  %8192 = vst [vmem:[#allocation28_spill] sm:$0xff] %v6654_v25 }
 0x19f   : > { %8190 = vst [vmem:[#allocation26_spill] sm:$0xff] %v6650_v23  ;;  %v6652_v24 = vmax.f32 %v662_v21, 0.0 }
 0x1a0   : > { %8189 = vst [vmem:[#allocation25_spill] sm:$0xff] %v6648_v22  ;;  %v796_v29 = vpack.c.bf16 %v6648_v22, %v6654_v25 }
 0x1a1   : > { %8191 = vst [vmem:[#allocation27_spill] sm:$0xff] %v6652_v24  ;;  %v5485_v26 = vpop.f32.mrb[16].mxu0  ;;  %v795_v27 = vpack.c.bf16 %v6652_v24, %v6650_v23 }
 0x1a2   : > { %v674_v28 = vpop.f32.mrb[17].mxu0  ;;  %v683_v32 = vadd.f32 %v5485_v26, %v6600_v35 }
 0x1a3   : > { %v675_v30 = vadd.f32 %v6600_v35, %v674_v28  ;;  %v5486_v31 = vpop.f32.mrb[18].mxu0  ;;  %5531 = vmatprep.mubr.bf16.mxu0 %v795_v27 }
 0x1a4   : > { %v686_v33 = vadd.f32 %v5486_v31, %v6600_v35  ;;  %v677_v36 = vpop.f32.mrb[19].mxu0  ;;  %5532 = vmatmul.mubr.bf16.gmra.mrb[48].mxu0 %v796_v29  ;;  %v6670_v41 = vmax.f32 %v683_v32, 0.0 }
 0x1a5   : > { %v678_v37 = vadd.f32 %v6600_v35, %v677_v36  ;;  %v6666_v39 = vmax.f32 %v675_v30, 0.0 }
 0x1a6   : > { %v6664_v38 = vmax.f32 %v686_v33, 0.0  ;;  %8196 = vst [vmem:[#allocation32_spill] sm:$0xff] %v6670_v41 }
 0x1a7   : > { %8194 = vst [vmem:[#allocation30_spill] sm:$0xff] %v6666_v39  ;;  %v6668_v40 = vmax.f32 %v678_v37, 0.0 }
 0x1a8   : > { %8193 = vst [vmem:[#allocation29_spill] sm:$0xff] %v6664_v38  ;;  %v798_v46 = vpack.c.bf16 %v6664_v38, %v6670_v41 }
 0x1a9   : > { %8195 = vst [vmem:[#allocation31_spill] sm:$0xff] %v6668_v40  ;;  %v5489_v42 = vpop.f32.mrb[20].mxu0  ;;  %v797_v43 = vpack.c.bf16 %v6668_v40, %v6666_v39 }
 0x1aa   : > { %v690_v45 = vpop.f32.mrb[21].mxu0  ;;  %v699_v50 = vadd.f32 %v5489_v42, %v6600_v35 }
 0x1ab   : > { %v691_v48 = vadd.f32 %v6600_v35, %v690_v45  ;;  %v5490_v49 = vpop.f32.mrb[22].mxu0  ;;  %5535 = vmatprep.mubr.bf16.mxu1 %v797_v43 }
 0x1ac   : > { %v702_v51 = vadd.f32 %v5490_v49, %v6600_v35  ;;  %v693_v52 = vpop.f32.mrb[23].mxu0  ;;  %5536 = vmatmul.mubr.bf16.vlgmr.msra.gmra.mrb[0].mxu1 %v798_v46  ;;  %v6687_v57 = vmax.f32 %v699_v50, 0.0 }
 0x1ad   : > { %v694_v53 = vadd.f32 %v6600_v35, %v693_v52  ;;  %5556 = vmatpush3.bf16.msra.mxu1 %v6594_v34  ;;  %v6683_v55 = vmax.f32 %v691_v48, 0.0 }
 0x1ae   : > { %v6681_v54 = vmax.f32 %v702_v51, 0.0  ;;  %8199 = vst [vmem:[#allocation35_spill] sm:$0xff] %v6687_v57 }
 0x1af   : > { %8198 = vst [vmem:[#allocation34_spill] sm:$0xff] %v6683_v55  ;;  %v6685_v56 = vmax.f32 %v694_v53, 0.0 }
 0x1b0   : > { %8197 = vst [vmem:[#allocation33_spill] sm:$0xff] %v6681_v54  ;;  %v800_v1 = vpack.c.bf16 %v6681_v54, %v6687_v57 }
 0x1b1   : > { %v5493_v62 = vpop.f32.mrb[24].mxu0  ;;  %v799_v63 = vpack.c.bf16 %v6685_v56, %v6683_v55 }
 0x1b2   : > { %v706_v0 = vpop.f32.mrb[25].mxu0  ;;  %v715_v34 = vadd.f32 %v5493_v62, %v6600_v35 }
 0x1b3   : > { %v707_v2 = vadd.f32 %v6600_v35, %v706_v0  ;;  %v5494_v3 = vpop.f32.mrb[26].mxu0  ;;  %5539 = vmatprep.mubr.bf16.mxu1 %v799_v63 }
 0x1b4   : > { %v718_v4 = vadd.f32 %v5494_v3, %v6600_v35  ;;  %v709_v5 = vpop.f32.mrb[27].mxu0  ;;  %5540 = vmatmul.mubr.bf16.gmra.mrb[4].mxu1 %v800_v1  ;;  %v6703_v14 = vmax.f32 %v715_v34, 0.0  ;;  %v6011_v1 = vld [vmem:[#allocation9 + $0x100] sm:$0xff]   ;;  %v6014_v3 = vld [vmem:[#allocation9 + $0x108] sm:$0xff]  }
 0x1b5   : > { %v710_v6 = vadd.f32 %v6600_v35, %v709_v5  ;;  %v6699_v12 = vmax.f32 %v707_v2, 0.0  ;;  %v6013_v2 = vld [vmem:[#allocation9 + $0xc0] sm:$0xff]   ;;  %5043 = vmatprep.subr.bf16.mxu0 %v6011_v1  ;;  %v6015_v34 = vld [vmem:[#allocation9 + $0xc8] sm:$0xff]   ;;  %v1349_v5 = vld [vmem:[#allocation2 + $0x18] sm:$0x1] }
 0x1b6   : > { %v6697_v7 = vmax.f32 %v718_v4, 0.0  ;;  %8202 = vst [vmem:[#allocation38_spill] sm:$0xff] %v6703_v14  ;;  %5044 = vmatpush3.bf16.msra.mxu0 %v6013_v2  ;;  %v6029_v1 = vld [vmem:[#allocation9 + $0xf0] sm:$0xff]  }
 0x1b7   : > { %v6701_v13 = vmax.f32 %v710_v6, 0.0  ;;  %5045 = vmatprep.subr.bf16.mxu0 %v6014_v3  ;;  %v6018_v6 = vld [vmem:[#allocation9 + $0xd0] sm:$0xff]   ;;  %v1358_v3 = vld [vmem:[#allocation2 + $0x48] sm:$0x1] }
 0x1b8   : > { %8200 = vst [vmem:[#allocation36_spill] sm:$0xff] %v6697_v7  ;;  %v802_v18 = vpack.c.bf16 %v6697_v7, %v6703_v14 }
 0x1b9   : > { %8201 = vst [vmem:[#allocation37_spill] sm:$0xff] %v6701_v13  ;;  %v5497_v15 = vpop.f32.mrb[28].mxu0  ;;  %v801_v16 = vpack.c.bf16 %v6701_v13, %v6699_v12 }
 0x1ba   : > { %v722_v17 = vpop.f32.mrb[29].mxu0  ;;  %v731_v21 = vadd.f32 %v5497_v15, %v6600_v35  ;;  %5046 = vmatpush3.bf16.msra.mxu0 %v6015_v34  ;;  %v1350_v15 = vsel %vm6736_vm2, 0, %v1349_v5  ;;  %v1305_v34 = vld [vmem:[#allocation2 + $0x50] sm:$0x1] }
 0x1bb   : > { %v723_v19 = vadd.f32 %v6600_v35, %v722_v17  ;;  %v5498_v20 = vpop.f32.mrb[30].mxu0  ;;  %5543 = vmatprep.mubr.bf16.mxu1 %v801_v16  ;;  %v1293_v17 = vld [vmem:[#allocation2 + $0x10] sm:$0x1]  ;;  %1351 = vst [vmem:[#allocation2 + $0x18] sm:$0x1] %v1350_v15  ;;  %v1306_v5 = vsel %vm6742_vm4, 0, %v1305_v34 }
 0x1bc   : > { %v734_v26 = vadd.f32 %v5498_v20, %v6600_v35  ;;  %v725_v27 = vpop.f32.mrb[31].mxu0  ;;  %5544 = vmatmul.mubr.bf16.gmra.mrb[8].mxu1 %v802_v18  ;;  %v6719_v32 = vmax.f32 %v731_v21, 0.0  ;;  %v1294_v18 = vsel %vm6742_vm4, 0, %v1293_v17  ;;  %v6020_v20 = vld [vmem:[#allocation9 + $0x118] sm:$0xff]   ;;  %v6026_v15 = vld [vmem:[#allocation9 + $0x168] sm:$0xff]  }
 0x1bd   : > { %v726_v28 = vadd.f32 %v6600_v35, %v725_v27  ;;  %v6715_v30 = vmax.f32 %v723_v19, 0.0  ;;  %v6012_v19 = vld [vmem:[#allocation9 + $0x148] sm:$0xff]   ;;  %1295 = vst [vmem:[#allocation2 + $0x10] sm:$0x1] %v1294_v18  ;;  %v6021_v21 = vld [vmem:[#allocation9 + $0xd8] sm:$0xff]   ;;  %v6023_v27 = vld [vmem:[#allocation9 + $0x120] sm:$0xff]  }
 0x1be   : > { %v6713_v29 = vmax.f32 %v734_v26, 0.0  ;;  %8206 = vst [vmem:[#allocation42_spill] sm:$0xff] %v6719_v32  ;;  %5557 = vmatprep.subr.bf16.mxu1 %v6012_v19  ;;  %v6016_v26 = vld [vmem:[#allocation9 + $0x150] sm:$0xff]   ;;  %1307 = vst [vmem:[#allocation2 + $0x50] sm:$0x1] %v1306_v5 }
 0x1bf   : > { %8204 = vst [vmem:[#allocation40_spill] sm:$0xff] %v6715_v30  ;;  %v6717_v31 = vmax.f32 %v726_v28, 0.0  ;;  %5558 = vmatpush3.bf16.msra.mxu1 %v6012_v19  ;;  %v1355_v28 = vld [vmem:[#allocation2 + $0x38] sm:$0x1]  ;;  %v6030_v18 = vld [vmem:[#allocation9 + $0x170] sm:$0xff]  }
 0x1c0   : > { %8203 = vst [vmem:[#allocation39_spill] sm:$0xff] %v6713_v29  ;;  %v804_v43 = vpack.c.bf16 %v6713_v29, %v6719_v32  ;;  %5559 = vmatprep.subr.bf16.mxu1 %v6016_v26  ;;  %v1367_v19 = vld [vmem:[#allocation2 + $0x78] sm:$0x1]  ;;  %v1376_v5 = vld [vmem:[#allocation2 + $0xa8] sm:$0x1] }
 0x1c1   : > { %8205 = vst [vmem:[#allocation41_spill] sm:$0xff] %v6717_v31  ;;  %v5501_v33 = vpop.f32.mrb[32].mxu0  ;;  %v803_v36 = vpack.c.bf16 %v6717_v31, %v6715_v30 }
 0x1c2   : > { %v747_v37 = vadd.f32 %v5501_v33, %v6600_v35  ;;  %v738_v42 = vpop.f32.mrb[33].mxu0  ;;  %v6024_v33 = vld [vmem:[#allocation9 + $0xe0] sm:$0xff]  }
 0x1c3   : > { %v739_v45 = vadd.f32 %v6600_v35, %v738_v42  ;;  %v5502_v46 = vpop.f32.mrb[34].mxu0  ;;  %5547 = vmatprep.mubr.bf16.mxu1 %v803_v36  ;;  %v1356_v36 = vsel %vm6736_vm2, 0, %v1355_v28  ;;  %5560 = vmatpush3.bf16.msra.mxu1 %v6016_v26  ;;  %v1299_v42 = vld [vmem:[#allocation2 + $0x30] sm:$0x1]  ;;  %v6031_v26 = vld [vmem:[#allocation9 + $0x138] sm:$0xff]  }
 0x1c4   : > { %v750_v48 = vadd.f32 %v5502_v46, %v6600_v35  ;;  %v741_v49 = vpop.f32.mrb[35].mxu0  ;;  %5548 = vmatmul.mubr.bf16.gmra.mrb[12].mxu1 %v804_v43  ;;  %v787_v51 = vmax.f32 %v747_v37, 0.0  ;;  %v1352_v37 = vld [vmem:[#allocation2 + $0x28] sm:$0x1]  ;;  %1357 = vst [vmem:[#allocation2 + $0x38] sm:$0x1] %v1356_v36 }
 0x1c5   : > { %v742_v50 = vadd.f32 %v6600_v35, %v741_v49  ;;  %v6729_v53 = vmax.f32 %v739_v45, 0.0  ;;  %v6017_v35 = vld [vmem:[#allocation9 + $0x110] sm:$0xff]   ;;  %v1353_v43 = vsel %vm6736_vm2, 0, %v1352_v37  ;;  %v1300_v45 = vsel %vm6742_vm4, 0, %v1299_v42  ;;  %v1296_v46 = vld [vmem:[#allocation2 + $0x20] sm:$0x1] }
 0x1c6   : > { %v788_v52 = vmax.f32 %v750_v48, 0.0  ;;  %5047 = vmatprep.subr.bf16.mxu0 %v6017_v35  ;;  %1354 = vst [vmem:[#allocation2 + $0x28] sm:$0x1] %v1353_v43  ;;  %1301 = vst [vmem:[#allocation2 + $0x30] sm:$0x1] %v1300_v45  ;;  %v1297_v48 = vsel %vm6742_vm4, 0, %v1296_v46 }
 0x1c7   : > { %8207 = vst [vmem:[#allocation43_spill] sm:$0xff] %v6729_v53  ;;  %v6731_v62 = vmax.f32 %v742_v50, 0.0  ;;  %5048 = vmatpush3.bf16.msra.mxu0 %v6018_v6  ;;  %v6019_v49 = vld [vmem:[#allocation9 + $0x158] sm:$0xff]   ;;  %v6025_v50 = vld [vmem:[#allocation9 + $0x128] sm:$0xff]   ;;  %1298 = vst [vmem:[#allocation2 + $0x20] sm:$0x1] %v1297_v48 }
 0x1c8   : > { %v806_v63 = vpack.c.bf16 %v788_v52, %v787_v51  ;;  %5049 = vmatprep.subr.bf16.mxu0 %v6020_v20  ;;  %v6027_v51 = vld [vmem:[#allocation9 + $0xe8] sm:$0xff]   ;;  %5561 = vmatprep.subr.bf16.mxu1 %v6019_v49  ;;  %v6022_v52 = vld [vmem:[#allocation9 + $0x160] sm:$0xff]   ;;  %v1359_v35 = vsel %vm6736_vm2, 0, %v1358_v3  ;;  %v1368_v20 = vsel %vm6736_vm2, 0, %v1367_v19  ;;  %v6033_v43 = vld [vmem:[#allocation9 + $0x178] sm:$0xff]  }
 0x1c9   : > { %8208 = vst [vmem:[#allocation44_spill] sm:$0xff] %v6731_v62  ;;  %v805_v0 = vpack.c.bf16 %v6731_v62, %v6729_v53  ;;  %5562 = vmatpush3.bf16.msra.mxu1 %v6019_v49  ;;  %v1302_v6 = vld [vmem:[#allocation2 + $0x40] sm:$0x1]  ;;  %1360 = vst [vmem:[#allocation2 + $0x48] sm:$0x1] %v1359_v35 }
 0x1ca   : > { %5563 = vmatprep.subr.bf16.mxu1 %v6022_v52  ;;  %v1303_v17 = vsel %vm6742_vm4, 0, %v1302_v6  ;;  %1369 = vst [vmem:[#allocation2 + $0x78] sm:$0x1] %v1368_v20  ;;  %v1308_v37 = vld [vmem:[#allocation2 + $0x60] sm:$0x1] }
 0x1cb   : > { %5551 = vmatprep.mubr.bf16.mxu1 %v805_v0  ;;  %5050 = vmatpush3.bf16.msra.mxu0 %v6021_v21  ;;  %v1361_v0 = vld [vmem:[#allocation2 + $0x58] sm:$0x1]  ;;  %1304 = vst [vmem:[#allocation2 + $0x40] sm:$0x1] %v1303_v17  ;;  %v1364_v21 = vld [vmem:[#allocation2 + $0x68] sm:$0x1] }
 0x1cc   : > { %5552 = vmatmul.mubr.bf16.gmra.mrb[16].mxu1 %v806_v63  ;;  %5051 = vmatprep.subr.bf16.mxu0 %v6023_v27  ;;  %v6028_v63 = vld [vmem:[#allocation9 + $0x130] sm:$0xff]   ;;  %v1362_v2 = vsel %vm6736_vm2, 0, %v1361_v0  ;;  %v1365_v28 = vsel %vm6736_vm2, 0, %v1364_v21  ;;  %v1309_v42 = vsel %vm6742_vm4, 0, %v1308_v37  ;;  %v1373_v46 = vld [vmem:[#allocation2 + $0x98] sm:$0x1] }
 0x1cd   : > { %1363 = vst [vmem:[#allocation2 + $0x58] sm:$0x1] %v1362_v2  ;;  %5564 = vmatpush3.bf16.msra.mxu1 %v6022_v52  ;;  %v1311_v27 = vld [vmem:[#allocation2 + $0x70] sm:$0x1]  ;;  %1366 = vst [vmem:[#allocation2 + $0x68] sm:$0x1] %v1365_v28 }
 0x1ce   : > { %5565 = vmatprep.subr.bf16.mxu1 %v6026_v15  ;;  %v1312_v36 = vsel %vm6742_vm4, 0, %v1311_v27  ;;  %1310 = vst [vmem:[#allocation2 + $0x60] sm:$0x1] %v1309_v42  ;;  %v1317_v45 = vld [vmem:[#allocation2 + $0x90] sm:$0x1]  ;;  %v1374_v49 = vsel %vm6736_vm2, 0, %v1373_v46 }
 0x1cf   : > { %5052 = vmatpush3.bf16.msra.mxu0 %v6024_v33  ;;  %v6032_v33 = vld [vmem:[#allocation9 + $0xf8] sm:$0xff]   ;;  %1313 = vst [vmem:[#allocation2 + $0x70] sm:$0x1] %v1312_v36  ;;  %v1318_v48 = vsel %vm6742_vm4, 0, %v1317_v45  ;;  %1375 = vst [vmem:[#allocation2 + $0x98] sm:$0x1] %v1374_v49 }
 0x1d0   : > { %5053 = vmatprep.subr.bf16.mxu0 %v6025_v50  ;;  %1319 = vst [vmem:[#allocation2 + $0x90] sm:$0x1] %v1318_v48  ;;  %v1314_v50 = vld [vmem:[#allocation2 + $0x80] sm:$0x1]  ;;  %v1370_v52 = vld [vmem:[#allocation2 + $0x88] sm:$0x1] }
 0x1d1   : > { %5566 = vmatpush3.bf16.msra.mxu1 %v6026_v15  ;;  %v6034_v0 = vld [vmem:[#allocation9 + $0x40] sm:$0xff]   ;;  %v1379_v3 = vld [vmem:[#allocation2 + $0xb8] sm:$0x1]  ;;  %v1377_v15 = vsel %vm6736_vm2, 0, %v1376_v5  ;;  %v1329_v17 = vld [vmem:[#allocation2 + $0xd0] sm:$0x1] }
 0x1d2   : > { %5567 = vmatprep.subr.bf16.mxu1 %v6030_v18  ;;  %v1380_v34 = vsel %vm6736_vm2, 0, %v1379_v3  ;;  %v1320_v35 = vld [vmem:[#allocation2 + $0xa0] sm:$0x1]  ;;  %1378 = vst [vmem:[#allocation2 + $0xa8] sm:$0x1] %v1377_v15 }
 0x1d3   : > { %5054 = vmatpush3.bf16.msra.mxu0 %v6027_v51  ;;  %v1315_v51 = vsel %vm6742_vm4, 0, %v1314_v50  ;;  %1381 = vst [vmem:[#allocation2 + $0xb8] sm:$0x1] %v1380_v34  ;;  %v1321_v6 = vsel %vm6742_vm4, 0, %v1320_v35  ;;  %v1385_v19 = vld [vmem:[#allocation2 + $0xd8] sm:$0x1] }
 0x1d4   : > { %5055 = vmatprep.subr.bf16.mxu0 %v6028_v63  ;;  %1316 = vst [vmem:[#allocation2 + $0x80] sm:$0x1] %v1315_v51  ;;  %v1371_v63 = vsel %vm6736_vm2, 0, %v1370_v52  ;;  %1322 = vst [vmem:[#allocation2 + $0xa0] sm:$0x1] %v1321_v6  ;;  %v1386_v20 = vsel %vm6736_vm2, 0, %v1385_v19 }
 0x1d5   : > { %5568 = vmatpush3.bf16.msra.mxu1 %v6030_v18  ;;  %1372 = vst [vmem:[#allocation2 + $0x88] sm:$0x1] %v1371_v63  ;;  %v1330_v18 = vsel %vm6742_vm4, 0, %v1329_v17  ;;  %1387 = vst [vmem:[#allocation2 + $0xd8] sm:$0x1] %v1386_v20  ;;  %v6050_v63 = vld [vmem:[#allocation9 + $0x1c0] sm:$0xff]  }
 0x1d6   : > { %5569 = vmatprep.subr.bf16.mxu1 %v6033_v43  ;;  %1331 = vst [vmem:[#allocation2 + $0xd0] sm:$0x1] %v1330_v18  ;;  %v1326_v21 = vld [vmem:[#allocation2 + $0xc0] sm:$0x1]  ;;  %v1391_v36 = vld [vmem:[#allocation2 + $0xf8] sm:$0x1] }
 0x1d7   : > { %5056 = vmatpush3.bf16.msra.mxu0 %v6029_v1  ;;  %v1323_v1 = vld [vmem:[#allocation2 + $0xb0] sm:$0x1]  ;;  %v1327_v27 = vsel %vm6742_vm4, 0, %v1326_v21  ;;  %v1392_v42 = vsel %vm6736_vm2, 0, %v1391_v36  ;;  %v1388_v46 = vld [vmem:[#allocation2 + $0xe8] sm:$0x1] }
 0x1d8   : > { %5057 = vmatprep.subr.bf16.mxu0 %v6031_v26  ;;  %v1324_v2 = vsel %vm6742_vm4, 0, %v1323_v1  ;;  %v1382_v26 = vld [vmem:[#allocation2 + $0xc8] sm:$0x1]  ;;  %1328 = vst [vmem:[#allocation2 + $0xc0] sm:$0x1] %v1327_v27  ;;  %v1389_v48 = vsel %vm6736_vm2, 0, %v1388_v46 }
 0x1d9   : > { %5570 = vmatpush3.bf16.msra.mxu1 %v6033_v43  ;;  %1325 = vst [vmem:[#allocation2 + $0xb0] sm:$0x1] %v1324_v2  ;;  %v1383_v28 = vsel %vm6736_vm2, 0, %v1382_v26  ;;  %1393 = vst [vmem:[#allocation2 + $0xf8] sm:$0x1] %v1392_v42  ;;  %v6295_v34 = vmov 0  }
 0x1da   : > { %5179 = vmatprep.subr.bf16.mxu1 %v6034_v0  ;;  %1384 = vst [vmem:[#allocation2 + $0xc8] sm:$0x1] %v1383_v28  ;;  %v1332_v43 = vld [vmem:[#allocation2 + $0xe0] sm:$0x1]  ;;  %v1394_v50 = vld [vmem:[#allocation2 + $0x108] sm:$0x1] }
 0x1db   : > { %5058 = vmatpush3.bf16.msra.mxu0 %v6032_v33  ;;  %v1335_v33 = vld [vmem:[#allocation2 + $0xf0] sm:$0x1]  ;;  %v1333_v45 = vsel %vm6742_vm4, 0, %v1332_v43  ;;  %v1338_v49 = vld [vmem:[#allocation2 + $0x100] sm:$0x1]  ;;  %v1395_v52 = vsel %vm6736_vm2, 0, %v1394_v50 }
 0x1dc   : > { %v1336_v37 = vsel %vm6742_vm4, 0, %v1335_v33  ;;  %1334 = vst [vmem:[#allocation2 + $0xe0] sm:$0x1] %v1333_v45  ;;  %1390 = vst [vmem:[#allocation2 + $0xe8] sm:$0x1] %v1389_v48  ;;  %v1339_v51 = vsel %vm6742_vm4, 0, %v1338_v49  ;;  %5315 = vmatprep.subr.bf16.mxu0 %v6050_v63 }
 0x1dd   : > { %1337 = vst [vmem:[#allocation2 + $0xf0] sm:$0x1] %v1336_v37  ;;  %1340 = vst [vmem:[#allocation2 + $0x100] sm:$0x1] %v1339_v51  ;;  %v1290_v0 = vld [vmem:[#allocation2] sm:$0x1] }
 0x1de   : > { %1396 = vst [vmem:[#allocation2 + $0x108] sm:$0x1] %v1395_v52  ;;  %v1346_v1 = vld [vmem:[#allocation2 + $0x8] sm:$0x1]  ;;  %v1291_v2 = vsel %vm6742_vm4, 0, %v1290_v0  ;;  %v6812_v35 = vrot.slane %v6295_v34, 7 }
 0x1df   : > { %v1347_v3 = vsel %vm6736_vm2, 0, %v1346_v1  ;;  %1292 = vst [vmem:[#allocation2] sm:$0x1] %v1291_v2  ;;  %v6828_v19 = vld [vmem:[%s8101_s4] ss:$0 sm:$0xff] }
 0x1e0   : > { %1348 = vst [vmem:[#allocation2 + $0x8] sm:$0x1] %v1347_v3  ;;  %v1573_v2 = vld [vmem:[#allocation2 + $0x18] sm:$0x1] }
 0x1e6   : > { %v1564_v6 = vld [vmem:[#allocation2] sm:$0xff] }
 0x1e7   : > { %v1567_v15 = vld [vmem:[#allocation2 + $0x8] sm:$0x1]  ;;  %v1565_v17 = vsel %vm6815_vm6, %v6812_v35, %v1564_v6 }
 0x1e8   : > { %v1568_v18 = vsel %vm6742_vm4, %v6812_v35, %v1567_v15  ;;  %1566 = vst [vmem:[#allocation2] sm:$0xff] %v1565_v17 }
 0x1e9   : > { %1569 = vst [vmem:[#allocation2 + $0x8] sm:$0x1] %v1568_v18  ;;  %v1570_v18 = vld [vmem:[#allocation2 + $0x10] sm:$0xff] }
 0x25f   : > { %v5521_v20 = vpop.f32.mrb[36].mxu0 }
 0x260   : > { %v921_v21 = vadd.f32 %v5521_v20, %v6828_v19  ;;  %v912_v26 = vpop.f32.mrb[37].mxu0 }
 0x261   : > { %v5522_v27 = vpop.f32.mrb[38].mxu0 }
 0x262   : > { %v1057_v28 = vmax.f32 %v921_v21, 0.0  ;;  %v924_v33 = vadd.f32 %v5522_v27, %v6828_v19  ;;  %v915_v36 = vpop.f32.mrb[39].mxu0 }
 0x264   : > { %v1058_v37 = vmax.f32 %v924_v33, 0.0  ;;  %v6833_v42 = vadd.f32 %v1057_v28, %v6608_v47 }
 0x266   : > { %v6836_v43 = vadd.f32 %v1058_v37, %v6606_v44 }
 0x267   : > { %v5525_v45 = vpop.f32.mrb[40].mxu0 }
 0x268   : > { %8215 = vst [vmem:[#allocation45_spill] sm:$0xff] %v6836_v43  ;;  %v1270_v46 = vpack.c.bf16 %v6836_v43, %v6833_v42  ;;  %v937_v48 = vadd.f32 %v5525_v45, %v6828_v19  ;;  %v928_v49 = vpop.f32.mrb[41].mxu0 }
 0x269   : > { %v929_v50 = vadd.f32 %v6828_v19, %v928_v49  ;;  %v5526_v51 = vpop.f32.mrb[42].mxu0 }
 0x26a   : > { %v1408_v52 = vshrl.u32 %v1270_v46, 16  ;;  %v1061_v63 = vmax.f32 %v937_v48, 0.0  ;;  %v940_v0 = vadd.f32 %v5526_v51, %v6828_v19  ;;  %v931_v1 = vpop.f32.mrb[43].mxu0  ;;  %v1411_v15 = vshll.u32 %v1270_v46, 16 }
 0x26b   : > { %v1059_v3 = vmax.f32 %v929_v50, 0.0  ;;  %v932_v34 = vadd.f32 %v6828_v19, %v931_v1 }
 0x26c   : > { %v1410_v6 = vrot.slane %v1408_v52, 7  ;;  %v1062_v17 = vmax.f32 %v940_v0, 0.0  ;;  %v6847_v27 = vadd.f32 %v1061_v63, %v6622_v61 }
 0x26d   : > { %v1060_v20 = vmax.f32 %v932_v34, 0.0  ;;  %v6853_v33 = vadd.f32 %v1059_v3, %v6618_v59  ;;  %v1585_v3 = vld [vmem:[#allocation2 + $0x38] sm:$0x1] }
 0x26e   : > { %v1413_v21 = vor.u32 %v1411_v15, %v1410_v6  ;;  %v1574_v26 = vsel %vm6742_vm4, %v1410_v6, %v1573_v2  ;;  %8216 = vst [vmem:[#allocation46_spill] sm:$0xff] %v6847_v27  ;;  %v6850_v28 = vadd.f32 %v1062_v17, %v6616_v58 }
 0x26f   : > { %1575 = vst [vmem:[#allocation2 + $0x18] sm:$0x1] %v1574_v26  ;;  %v6856_v36 = vadd.f32 %v1060_v20, %v6620_v60  ;;  %v5529_v37 = vpop.f32.mrb[44].mxu0  ;;  %v1579_v20 = vld [vmem:[#allocation2 + $0x28] sm:$0x1]  ;;  %v1582_v26 = vld [vmem:[#allocation2 + $0x30] sm:$0xff] }
 0x270   : > { %8217 = vst [vmem:[#allocation47_spill] sm:$0xff] %v6850_v28  ;;  %v6860_v45 = vsel %vm6815_vm6, %v1413_v21, %v1570_v18  ;;  %v1272_v46 = vpack.c.bf16 %v6850_v28, %v6847_v27  ;;  %v953_v48 = vadd.f32 %v5529_v37, %v6828_v19  ;;  %v944_v49 = vpop.f32.mrb[45].mxu0  ;;  %v1576_v27 = vld [vmem:[#allocation2 + $0x20] sm:$0xff] }
 0x271   : > { %1572 = vst [vmem:[#allocation2 + $0x10] sm:$0xff] %v6860_v45  ;;  %v1271_v50 = vpack.c.bf16 %v6856_v36, %v6853_v33  ;;  %v945_v51 = vadd.f32 %v6828_v19, %v944_v49  ;;  %v5530_v52 = vpop.f32.mrb[46].mxu0 }
 0x272   : > { %v1422_v63 = vshrl.u32 %v1272_v46, 16  ;;  %v1065_v0 = vmax.f32 %v953_v48, 0.0  ;;  %v956_v1 = vadd.f32 %v5530_v52, %v6828_v19  ;;  %v947_v2 = vpop.f32.mrb[47].mxu0  ;;  %v1425_v18 = vshll.u32 %v1272_v46, 16 }
 0x273   : > { %v1415_v34 = vshrl.u32 %v1271_v50, 16  ;;  %v1063_v6 = vmax.f32 %v945_v51, 0.0  ;;  %v948_v15 = vadd.f32 %v6828_v19, %v947_v2  ;;  %v1418_v28 = vshll.u32 %v1271_v50, 16 }
 0x274   : > { %v1424_v17 = vrot.slane %v1422_v63, 7  ;;  %v1066_v21 = vmax.f32 %v956_v1, 0.0  ;;  %v6874_v52 = vadd.f32 %v1065_v0, %v6638_v11 }
 0x275   : > { %v1417_v37 = vrot.slane %v1415_v34, 7  ;;  %v1064_v58 = vmax.f32 %v948_v15, 0.0  ;;  %v6882_v1 = vadd.f32 %v1063_v6, %v6634_v9 }
 0x276   : > { %v1427_v49 = vor.u32 %v1425_v18, %v1424_v17  ;;  %v1586_v48 = vsel %vm6742_vm4, %v1424_v17, %v1585_v3  ;;  %8218 = vst [vmem:[#allocation48_spill] sm:$0xff] %v6874_v52  ;;  %v6877_v51 = vadd.f32 %v1066_v21, %v6632_v8  ;;  %v1597_v21 = vld [vmem:[#allocation2 + $0x58] sm:$0x1]  ;;  %v1591_v8 = vld [vmem:[#allocation2 + $0x48] sm:$0x1] }
 0x277   : > { %1587 = vst [vmem:[#allocation2 + $0x38] sm:$0x1] %v1586_v48  ;;  %v1420_v63 = vor.u32 %v1418_v28, %v1417_v37  ;;  %v1580_v46 = vsel %vm6742_vm4, %v1417_v37, %v1579_v20  ;;  %8220 = vst [vmem:[#allocation50_spill] sm:$0xff] %v6882_v1  ;;  %v6885_v50 = vadd.f32 %v1064_v58, %v6636_v10  ;;  %v5533_v2 = vpop.f32.mrb[48].mxu0 }
 0x278   : > { %8219 = vst [vmem:[#allocation49_spill] sm:$0xff] %v6877_v51  ;;  %v6889_v3 = vsel %vm6815_vm6, %v1427_v49, %v1582_v26  ;;  %1581 = vst [vmem:[#allocation2 + $0x28] sm:$0x1] %v1580_v46  ;;  %v1274_v0 = vpack.c.bf16 %v6877_v51, %v6874_v52  ;;  %v969_v28 = vadd.f32 %v5533_v2, %v6828_v19  ;;  %v960_v34 = vpop.f32.mrb[49].mxu0  ;;  %v2107_v18 = vld [vmem:[#allocation2 + $0x10] sm:$0xfe] }
 0x279   : > { %8221 = vst [vmem:[#allocation51_spill] sm:$0xff] %v6885_v50  ;;  %1584 = vst [vmem:[#allocation2 + $0x30] sm:$0xff] %v6889_v3  ;;  %v6897_v6 = vsel %vm6815_vm6, %v1420_v63, %v1576_v27  ;;  %v1273_v58 = vpack.c.bf16 %v6885_v50, %v6882_v1  ;;  %v961_v15 = vadd.f32 %v6828_v19, %v960_v34  ;;  %v5534_v17 = vpop.f32.mrb[50].mxu0  ;;  %v2091_v63 = vld [vmem:[#allocation2 + $0x18] sm:$0x1]  ;;  %v2126_v2 = vshll.u32 %v6860_v45, 16 }
 0x27a   : > { %1578 = vst [vmem:[#allocation2 + $0x20] sm:$0xff] %v6897_v6  ;;  %v1436_v20 = vshrl.u32 %v1274_v0, 16  ;;  %v1069_v26 = vmax.f32 %v969_v28, 0.0  ;;  %v972_v37 = vadd.f32 %v5534_v17, %v6828_v19  ;;  %v963_v49 = vpop.f32.mrb[51].mxu0  ;;  %v1439_v34 = vshll.u32 %v1274_v0, 16  ;;  %v1594_v50 = vld [vmem:[#allocation2 + $0x50] sm:$0xff] }
 0x27b   : > { %v1429_v48 = vshrl.u32 %v1273_v58, 16  ;;  %v1067_v46 = vmax.f32 %v961_v15, 0.0  ;;  %v964_v27 = vadd.f32 %v6828_v19, %v963_v49  ;;  %v2363_v11 = vrot.slane %v2107_v18, 1  ;;  %v1588_v49 = vld [vmem:[#allocation2 + $0x40] sm:$0xff] }
 0x27c   : > { %v1438_v51 = vrot.slane %v1436_v20, 7  ;;  %v1070_v52 = vmax.f32 %v972_v37, 0.0  ;;  %v1432_v61 = vshll.u32 %v1273_v58, 16  ;;  %v6907_v28 = vadd.f32 %v1069_v26, %v6654_v25  ;;  %v1600_v25 = vld [vmem:[#allocation2 + $0x60] sm:$0xff] }
 0x27d   : > { %v1431_v10 = vrot.slane %v1429_v48, 7  ;;  %v1068_v17 = vmax.f32 %v964_v27, 0.0  ;;  %v2364_v20 = vrot.slane %v2091_v63, 1  ;;  %v6917_v58 = vadd.f32 %v1067_v46, %v6650_v23 }
 0x27e   : > { %8222 = vst [vmem:[#allocation52_spill] sm:$0xff] %v6907_v28  ;;  %v1441_v1 = vor.u32 %v1439_v34, %v1438_v51  ;;  %v1598_v15 = vsel %vm6742_vm4, %v1438_v51, %v1597_v21  ;;  %v6912_v9 = vadd.f32 %v1070_v52, %v6648_v22 }
 0x27f   : > { %1599 = vst [vmem:[#allocation2 + $0x58] sm:$0x1] %v1598_v15  ;;  %v1434_v0 = vor.u32 %v1432_v61, %v1431_v10  ;;  %v1592_v18 = vsel %vm6742_vm4, %v1431_v10, %v1591_v8  ;;  %8224 = vst [vmem:[#allocation54_spill] sm:$0xff] %v6917_v58  ;;  %v6920_v26 = vadd.f32 %v1068_v17, %v6652_v24  ;;  %v5537_v37 = vpop.f32.mrb[0].mxu1  ;;  %v1609_v17 = vld [vmem:[#allocation2 + $0x78] sm:$0x1] }
 0x280   : > { %8223 = vst [vmem:[#allocation53_spill] sm:$0xff] %v6912_v9  ;;  %v6924_v51 = vsel %vm6815_vm6, %v1441_v1, %v1594_v50  ;;  %1593 = vst [vmem:[#allocation2 + $0x48] sm:$0x1] %v1592_v18  ;;  %v1276_v52 = vpack.c.bf16 %v6912_v9, %v6907_v28  ;;  %v2365_v61 = vsel %vm1961_vm7, %v2363_v11, %v2364_v20  ;;  %v976_v21 = vpop.f32.mrb[1].mxu1  ;;  %v2128_v11 = vrot.slane %v2126_v2, 1  ;;  %v1606_v18 = vld [vmem:[#allocation2 + $0x70] sm:$0xff] }
 0x281   : > { %8225 = vst [vmem:[#allocation55_spill] sm:$0xff] %v6920_v26  ;;  %1596 = vst [vmem:[#allocation2 + $0x50] sm:$0xff] %v6924_v51  ;;  %v6932_v8 = vsel %vm6815_vm6, %v1434_v0, %v1588_v49  ;;  %v1275_v10 = vpack.c.bf16 %v6920_v26, %v6917_v58  ;;  %5571 = vmatprep.mubr.bf16.mxu1 %v2365_v61  ;;  %v985_v1 = vadd.f32 %v5537_v37, %v6828_v19  ;;  %v5538_v50 = vpop.f32.mrb[2].mxu1  ;;  %v1603_v9 = vld [vmem:[#allocation2 + $0x68] sm:$0x1] }
 0x282   : > { %1590 = vst [vmem:[#allocation2 + $0x40] sm:$0xff] %v6932_v8  ;;  %v1450_v48 = vshrl.u32 %v1276_v52, 16  ;;  %v977_v46 = vadd.f32 %v6828_v19, %v976_v21  ;;  %v979_v27 = vpop.f32.mrb[3].mxu1  ;;  %v1453_v34 = vshll.u32 %v1276_v52, 16  ;;  %v2124_v49 = vshrl.u32 %v6860_v45, 16  ;;  %v6051_v52 = vld [vmem:[#allocation9 + $0x180] sm:$0xff]  }
 0x283   : > { %v1443_v15 = vshrl.u32 %v1275_v10, 16  ;;  %v2131_v20 = vshll.u32 %v2091_v63, 16  ;;  %v1446_v61 = vshll.u32 %v1275_v10, 16  ;;  %v1073_v37 = vmax.f32 %v985_v1, 0.0  ;;  %v6942_v24 = vld [vmem:[#allocation2 + $0x28] sm:$0x1] }
 0x284   : > { %v1452_v0 = vrot.slane %v1450_v48, 7  ;;  %v988_v22 = vadd.f32 %v5538_v50, %v6828_v19  ;;  %v2129_v26 = vor.u32 %v2128_v11, %v2124_v49  ;;  %v980_v2 = vadd.f32 %v6828_v19, %v979_v27  ;;  %v2108_v10 = vld [vmem:[#allocation2 + $0x20] sm:$0xfe]  ;;  %v2109_v43 = vld [vmem:[#allocation2 + $0x30] sm:$0xfe]  ;;  %v6053_v49 = vld [vmem:[#allocation9 + $0x1c8] sm:$0xff]  }
 0x285   : > { %v1445_v28 = vrot.slane %v1443_v15, 7  ;;  %v2133_v21 = vrot.slane %v2131_v20, 1  ;;  %v1071_v48 = vmax.f32 %v977_v46, 0.0  ;;  %v6949_v15 = vld [vmem:[#allocation2 + $0x38] sm:$0x1]  ;;  %v6035_v20 = vld [vmem:[#allocation9] sm:$0xff]  }
 0x286   : > { %v1455_v58 = vor.u32 %v1453_v34, %v1452_v0  ;;  %v1610_v63 = vsel %vm6742_vm4, %v1452_v0, %v1609_v17  ;;  %v1074_v23 = vmax.f32 %v988_v22, 0.0  ;;  %v6956_v22 = vadd.f32 %v1073_v37, %v6670_v41 }
 0x287   : > { %1611 = vst [vmem:[#allocation2 + $0x78] sm:$0x1] %v1610_v63  ;;  %v1448_v1 = vor.u32 %v1446_v61, %v1445_v28  ;;  %v1604_v50 = vsel %vm6742_vm4, %v1445_v28, %v1603_v9  ;;  %v2134_v11 = vsel %vm1720_vm8, %v2129_v26, %v2133_v21  ;;  %v5541_v27 = vpop.f32.mrb[4].mxu1  ;;  %v1072_v17 = vmax.f32 %v980_v2, 0.0  ;;  %v6036_v21 = vld [vmem:[#allocation9 + $0x48] sm:$0xff]  }
 0x288   : > { %v6953_v34 = vsel %vm6815_vm6, %v1455_v58, %v1606_v18  ;;  %1605 = vst [vmem:[#allocation2 + $0x68] sm:$0x1] %v1604_v50  ;;  %8226 = vst [vmem:[#allocation56_spill] sm:$0xff] %v6956_v22  ;;  %2652 = vmatprep.mubr.bf16.mxu0 %v2134_v11  ;;  %v6959_v46 = vadd.f32 %v1074_v23, %v6664_v38  ;;  %v992_v9 = vpop.f32.mrb[5].mxu1  ;;  %v2366_v58 = vrot.slane %v2108_v10, 1  ;;  %v2367_v26 = vrot.slane %v6942_v24, 1 }
 0x289   : > { %1608 = vst [vmem:[#allocation2 + $0x70] sm:$0xff] %v6953_v34  ;;  %v6964_v28 = vsel %vm6815_vm6, %v1448_v1, %v1600_v25  ;;  %2653 = vmatmul.mubr.bf16.vlgmr.msra.gmra.mrb[52].mxu0 %v6860_v45  ;;  %v2369_v0 = vrot.slane %v2109_v43, 1  ;;  %v5542_v18 = vpop.f32.mrb[6].mxu1  ;;  %v6970_v23 = vadd.f32 %v1071_v48, %v6666_v39  ;;  %v6975_v37 = vadd.f32 %v1072_v17, %v6668_v40  ;;  %v6054_v10 = vld [vmem:[#allocation9 + $0x188] sm:$0xff]   ;;  %v6056_v11 = vld [vmem:[#allocation9 + $0x1d0] sm:$0xff]  }
 0x28a   : > { %8227 = vst [vmem:[#allocation57_spill] sm:$0xff] %v6959_v46  ;;  %1602 = vst [vmem:[#allocation2 + $0x60] sm:$0xff] %v6964_v28  ;;  %v1278_v61 = vpack.c.bf16 %v6959_v46, %v6956_v22  ;;  %v2370_v25 = vrot.slane %v6949_v15, 1  ;;  %v6978_v45 = vpop.f32.mrb[7].mxu1  ;;  %5316 = vmatpush3.bf16.msra.mxu0 %v6051_v52  ;;  %v2368_v43 = vsel %vm1961_vm7, %v2366_v58, %v2367_v26  ;;  %v1621_v17 = vld [vmem:[#allocation2 + $0x98] sm:$0x1] }
 0x28b   : > { %8228 = vst [vmem:[#allocation58_spill] sm:$0xff] %v6970_v23  ;;  %8229 = vst [vmem:[#allocation59_spill] sm:$0xff] %v6975_v37  ;;  %v1001_v2 = vadd.f32 %v5541_v27, %v6828_v19  ;;  %v993_v63 = vadd.f32 %v6828_v19, %v992_v9  ;;  %v1004_v48 = vadd.f32 %v5542_v18, %v6828_v19  ;;  %5317 = vmatprep.subr.bf16.mxu0 %v6053_v49  ;;  %v6037_v27 = vld [vmem:[#allocation9 + $0x8] sm:$0xff]   ;;  %v1618_v22 = vld [vmem:[#allocation2 + $0x90] sm:$0xff] }
 0x28c   : > { %v1464_v1 = vshrl.u32 %v1278_v61, 16  ;;  %v1277_v50 = vpack.c.bf16 %v6975_v37, %v6970_v23  ;;  %5572 = vmatmul.mubr.bf16.vlgmr.msra.gmra.mrb[20].mxu1 %v2368_v43  ;;  %v2371_v52 = vsel %vm1961_vm7, %v2369_v0, %v2370_v25  ;;  %v1467_v9 = vshll.u32 %v1278_v61, 16  ;;  %v6038_v49 = vld [vmem:[#allocation9 + $0x50] sm:$0xff]   ;;  %v1615_v40 = vld [vmem:[#allocation2 + $0x88] sm:$0x1] }
 0x28d   : > { %5180 = vmatpush3.bf16.msra.mxu1 %v6035_v20  ;;  %v1077_v46 = vmax.f32 %v1001_v2, 0.0  ;;  %v1075_v58 = vmax.f32 %v993_v63, 0.0  ;;  %v1078_v26 = vmax.f32 %v1004_v48, 0.0  ;;  %5575 = vmatprep.mubr.bf16.mxu1 %v2371_v52  ;;  %v2138_v0 = vshll.u32 %v6897_v6, 16  ;;  %v6057_v2 = vld [vmem:[#allocation9 + $0x190] sm:$0xff]  }
 0x28e   : > { %v1466_v38 = vrot.slane %v1464_v1, 7  ;;  %v1457_v18 = vshrl.u32 %v1277_v50, 16  ;;  %5181 = vmatprep.subr.bf16.mxu1 %v6036_v21  ;;  %v1460_v41 = vshll.u32 %v1277_v50, 16  ;;  %5318 = vmatpush3.bf16.msra.mxu0 %v6054_v10  ;;  %v2143_v48 = vshll.u32 %v6942_v24, 16  ;;  %v1612_v50 = vld [vmem:[#allocation2 + $0x80] sm:$0xff] }
 0x28f   : > { %v6988_v43 = vadd.f32 %v1077_v46, %v6687_v57  ;;  %v6991_v20 = vadd.f32 %v1078_v26, %v6681_v54  ;;  %v6994_v25 = vpop.f32.mrb[8].mxu1  ;;  %5319 = vmatprep.subr.bf16.mxu0 %v6056_v11  ;;  %v6059_v46 = vld [vmem:[#allocation9 + $0x1d8] sm:$0xff]   ;;  %v7002_v52 = vadd.f32 %v1075_v58, %v6683_v55  ;;  %v2136_v26 = vshrl.u32 %v6897_v6, 16  ;;  %v2110_v54 = vld [vmem:[#allocation2 + $0x40] sm:$0xfe] }
 0x290   : > { %v1469_v61 = vor.u32 %v1467_v9, %v1466_v38  ;;  %v1622_v63 = vsel %vm6742_vm4, %v1466_v38, %v1621_v17  ;;  %v1459_v21 = vrot.slane %v1457_v18, 7  ;;  %v6999_v1 = vpop.f32.mrb[9].mxu1  ;;  %v6039_v38 = vld [vmem:[#allocation9 + $0x10] sm:$0xff]   ;;  %v6040_v17 = vld [vmem:[#allocation9 + $0x58] sm:$0xff]   ;;  %v2140_v58 = vrot.slane %v2138_v0, 1 }
 0x291   : > { %8230 = vst [vmem:[#allocation60_spill] sm:$0xff] %v6988_v43  ;;  %8231 = vst [vmem:[#allocation61_spill] sm:$0xff] %v6991_v20  ;;  %v1280_v10 = vpack.c.bf16 %v6991_v20, %v6988_v43  ;;  %5182 = vmatpush3.bf16.msra.mxu1 %v6037_v27  ;;  %v7007_v9 = vpop.f32.mrb[10].mxu1  ;;  %v2145_v57 = vrot.slane %v2143_v48, 1  ;;  %v1633_v0 = vld [vmem:[#allocation2 + $0xb8] sm:$0x1] }
 0x292   : > { %1623 = vst [vmem:[#allocation2 + $0x98] sm:$0x1] %v1622_v63  ;;  %v7011_v24 = vsel %vm6815_vm6, %v1469_v61, %v1618_v22  ;;  %v1462_v11 = vor.u32 %v1460_v41, %v1459_v21  ;;  %v1616_v18 = vsel %vm6742_vm4, %v1459_v21, %v1615_v40  ;;  %v7015_v63 = vld [vmem:[#allocation2 + $0x48] sm:$0x1]  ;;  %v7017_v20 = vpop.f32.mrb[11].mxu1  ;;  %5183 = vmatprep.subr.bf16.mxu1 %v6038_v49  ;;  %v6060_v61 = vld [vmem:[#allocation9 + $0x198] sm:$0xff]  }
 0x293   : > { %1620 = vst [vmem:[#allocation2 + $0x90] sm:$0xff] %v7011_v24  ;;  %1617 = vst [vmem:[#allocation2 + $0x88] sm:$0x1] %v1616_v18  ;;  %v1478_v27 = vshrl.u32 %v1280_v10, 16  ;;  %v1481_v43 = vshll.u32 %v1280_v10, 16  ;;  %v996_v22 = vadd.f32 %v6828_v19, %v6978_v45  ;;  %5320 = vmatpush3.bf16.msra.mxu0 %v6057_v2  ;;  %v2141_v21 = vor.u32 %v2140_v58, %v2136_v26  ;;  %v6061_v18 = vld [vmem:[#allocation9 + $0x1e0] sm:$0xff]  }
 0x294   : > { %v2111_v41 = vld [vmem:[#allocation2 + $0x50] sm:$0xfe]  ;;  %v7024_v40 = vsel %vm6815_vm6, %v1462_v11, %v1612_v50  ;;  %v2148_v49 = vshrl.u32 %v6889_v3, 16  ;;  %v2150_v55 = vshll.u32 %v6889_v3, 16  ;;  %5321 = vmatprep.subr.bf16.mxu0 %v6059_v46  ;;  %v2155_v45 = vshll.u32 %v6949_v15, 16  ;;  %v6041_v46 = vld [vmem:[#allocation9 + $0x18] sm:$0xff]  }
 0x295   : > { %1614 = vst [vmem:[#allocation2 + $0x80] sm:$0xff] %v7024_v40  ;;  %v1480_v48 = vrot.slane %v1478_v27, 7  ;;  %v1076_v10 = vmax.f32 %v996_v22, 0.0  ;;  %v2372_v2 = vrot.slane %v2110_v54, 1  ;;  %v7030_v37 = vld [vmem:[#allocation2 + $0x58] sm:$0x1]  ;;  %5184 = vmatpush3.bf16.msra.mxu1 %v6039_v38  ;;  %v2146_v11 = vsel %vm1720_vm8, %v2141_v21, %v2145_v57 }
 0x296   : > { %v1630_v50 = vld [vmem:[#allocation2 + $0xb0] sm:$0xff]  ;;  %v2152_v26 = vrot.slane %v2150_v55, 1  ;;  %v2373_v58 = vrot.slane %v7015_v63, 1  ;;  %v2375_v23 = vrot.slane %v2111_v41, 1  ;;  %5185 = vmatprep.subr.bf16.mxu1 %v6040_v17  ;;  %2660 = vmatprep.mubr.bf16.mxu0 %v2146_v11  ;;  %v2157_v54 = vrot.slane %v2155_v45, 1  ;;  %v6042_v41 = vld [vmem:[#allocation9 + $0x60] sm:$0xff]  }
 0x297   : > { %v1483_v39 = vor.u32 %v1481_v43, %v1480_v48  ;;  %v1634_v27 = vsel %vm6742_vm4, %v1480_v48, %v1633_v0  ;;  %v7037_v15 = vadd.f32 %v1076_v10, %v6685_v56  ;;  %v7039_v22 = vpop.f32.mrb[12].mxu1  ;;  %5322 = vmatpush3.bf16.msra.mxu0 %v6060_v61  ;;  %v2376_v38 = vrot.slane %v7030_v37, 1  ;;  %v6062_v0 = vld [vmem:[#allocation9 + $0x1a0] sm:$0xff]   ;;  %v6064_v48 = vld [vmem:[#allocation9 + $0x1e8] sm:$0xff]  }
 0x298   : > { %1635 = vst [vmem:[#allocation2 + $0xb8] sm:$0x1] %v1634_v27  ;;  %2661 = vmatmul.mubr.bf16.gmra.mrb[56].mxu0 %v6897_v6  ;;  %v2153_v55 = vor.u32 %v2152_v26, %v2148_v49  ;;  %v2374_v57 = vsel %vm1961_vm7, %v2372_v2, %v2373_v58  ;;  %v1017_v43 = vadd.f32 %v6994_v25, %v6828_v19  ;;  %v7046_v17 = vpop.f32.mrb[13].mxu1  ;;  %v6043_v2 = vld [vmem:[#allocation9 + $0x20] sm:$0xff]   ;;  %v1627_v11 = vld [vmem:[#allocation2 + $0xa8] sm:$0x1] }
 0x299   : > { %5323 = vmatprep.subr.bf16.mxu0 %v6061_v18  ;;  %v7050_v21 = vsel %vm6815_vm6, %v1483_v39, %v1630_v50  ;;  %v1279_v6 = vpack.c.bf16 %v7037_v15, %v7002_v52  ;;  %5576 = vmatmul.mubr.bf16.gmra.mrb[24].mxu1 %v2374_v57  ;;  %v1009_v61 = vadd.f32 %v6828_v19, %v6999_v1  ;;  %v7056_v49 = vpop.f32.mrb[14].mxu1  ;;  %v6044_v58 = vld [vmem:[#allocation9 + $0x68] sm:$0xff]   ;;  %v1624_v57 = vld [vmem:[#allocation2 + $0xa0] sm:$0xff] }
 0x29a   : > { %1632 = vst [vmem:[#allocation2 + $0xb0] sm:$0xff] %v7050_v21  ;;  %v2158_v25 = vsel %vm1720_vm8, %v2153_v55, %v2157_v54  ;;  %v2377_v18 = vsel %vm1961_vm7, %v2375_v23, %v2376_v38  ;;  %v1081_v10 = vmax.f32 %v1017_v43, 0.0  ;;  %v1020_v39 = vadd.f32 %v7007_v9, %v6828_v19  ;;  %v7063_v45 = vpop.f32.mrb[15].mxu1  ;;  %5186 = vmatpush3.bf16.msra.mxu1 %v6041_v46  ;;  %v2112_v55 = vld [vmem:[#allocation2 + $0x60] sm:$0xfe] }
 0x29b   : > { %v1471_v50 = vshrl.u32 %v1279_v6, 16  ;;  %2668 = vmatprep.mubr.bf16.mxu0 %v2158_v25  ;;  %5579 = vmatprep.mubr.bf16.mxu1 %v2377_v18  ;;  %v1079_v1 = vmax.f32 %v1009_v61, 0.0  ;;  %v1012_v26 = vadd.f32 %v6828_v19, %v7017_v20  ;;  %v1474_v27 = vshll.u32 %v1279_v6, 16  ;;  %v6065_v61 = vld [vmem:[#allocation9 + $0x1a8] sm:$0xff]  }
 0x29c   : > { %v1082_v54 = vmax.f32 %v1020_v39, 0.0  ;;  %v2162_v23 = vshll.u32 %v6932_v8, 16  ;;  %5187 = vmatprep.subr.bf16.mxu1 %v6042_v41  ;;  %5324 = vmatpush3.bf16.msra.mxu0 %v6062_v0  ;;  %v7069_v46 = vadd.f32 %v1081_v10, %v6703_v14  ;;  %v2167_v43 = vshll.u32 %v7015_v63, 16  ;;  %v7079_v0 = vld [vmem:[#allocation2 + $0x68] sm:$0x1]  ;;  %v6066_v10 = vld [vmem:[#allocation9 + $0x1f0] sm:$0xff]  }
 0x29d   : > { %v1473_v9 = vrot.slane %v1471_v50, 7  ;;  %v1080_v38 = vmax.f32 %v1012_v26, 0.0  ;;  %5325 = vmatprep.subr.bf16.mxu0 %v6064_v48  ;;  %v7073_v20 = vadd.f32 %v1079_v1, %v6699_v12  ;;  %v2160_v25 = vshrl.u32 %v6932_v8, 16  ;;  %v6045_v18 = vld [vmem:[#allocation9 + $0x28] sm:$0xff]   ;;  %v2113_v1 = vld [vmem:[#allocation2 + $0x70] sm:$0xfe] }
 0x29e   : > { %8232 = vst [vmem:[#allocation62_spill] sm:$0xff] %v7069_v46  ;;  %v7076_v6 = vadd.f32 %v1082_v54, %v6697_v7  ;;  %v2164_v41 = vrot.slane %v2162_v23, 1  ;;  %5188 = vmatpush3.bf16.msra.mxu1 %v6043_v2  ;;  %v2378_v50 = vrot.slane %v2112_v55, 1  ;;  %v6046_v54 = vld [vmem:[#allocation9 + $0x70] sm:$0xff]   ;;  %v2169_v7 = vrot.slane %v2167_v43, 1 }
 0x29f   : > { %v1476_v39 = vor.u32 %v1474_v27, %v1473_v9  ;;  %v1628_v63 = vsel %vm6742_vm4, %v1473_v9, %v1627_v11  ;;  %v7084_v48 = vadd.f32 %v1080_v38, %v6701_v13  ;;  %v5553_v26 = vpop.f32.mrb[16].mxu1  ;;  %5189 = vmatprep.subr.bf16.mxu1 %v6044_v58  ;;  %v7089_v27 = vld [vmem:[#allocation2 + $0x78] sm:$0x1]  ;;  %v2379_v55 = vrot.slane %v7079_v0, 1  ;;  %v6067_v38 = vld [vmem:[#allocation9 + $0x1b0] sm:$0xff]  }
 0x2a0   : > { %8233 = vst [vmem:[#allocation63_spill] sm:$0xff] %v7076_v6  ;;  %1629 = vst [vmem:[#allocation2 + $0xa8] sm:$0x1] %v1628_v63  ;;  %v1282_v23 = vpack.c.bf16 %v7076_v6, %v7069_v46  ;;  %2669 = vmatmul.mubr.bf16.gmra.mrb[60].mxu0 %v6889_v3  ;;  %v2165_v2 = vor.u32 %v2164_v41, %v2160_v25  ;;  %v7091_v14 = vpop.f32.mrb[17].mxu1  ;;  %v1645_v43 = vld [vmem:[#allocation2 + $0xd8] sm:$0x1] }
 0x2a1   : > { %8234 = vst [vmem:[#allocation64_spill] sm:$0xff] %v7084_v48  ;;  %v7095_v11 = vsel %vm6815_vm6, %v1476_v39, %v1624_v57  ;;  %v1281_v58 = vpack.c.bf16 %v7084_v48, %v7073_v20  ;;  %v5554_v9 = vpop.f32.mrb[18].mxu1  ;;  %5326 = vmatpush3.bf16.msra.mxu0 %v6065_v61  ;;  %v2381_v41 = vrot.slane %v2113_v1, 1  ;;  %v6047_v57 = vld [vmem:[#allocation9 + $0x30] sm:$0xff]   ;;  %v2380_v6 = vsel %vm1961_vm7, %v2378_v50, %v2379_v55  ;;  %v6068_v46 = vld [vmem:[#allocation9 + $0x1f8] sm:$0xff]  }
 0x2a2   : > { %1626 = vst [vmem:[#allocation2 + $0xa0] sm:$0xff] %v7095_v11  ;;  %v1492_v3 = vshrl.u32 %v1282_v23, 16  ;;  %v2170_v25 = vsel %vm1720_vm8, %v2165_v2, %v2169_v7  ;;  %v7102_v63 = vpop.f32.mrb[19].mxu1  ;;  %5190 = vmatpush3.bf16.msra.mxu1 %v6045_v18  ;;  %5327 = vmatprep.subr.bf16.mxu0 %v6066_v10  ;;  %v1495_v39 = vshll.u32 %v1282_v23, 16  ;;  %v2382_v61 = vrot.slane %v7089_v27, 1  ;;  %v6048_v9 = vld [vmem:[#allocation9 + $0x78] sm:$0xff]  }
 0x2a3   : > { %v1485_v26 = vshrl.u32 %v1281_v58, 16  ;;  %2676 = vmatprep.mubr.bf16.mxu0 %v2170_v25  ;;  %5191 = vmatprep.subr.bf16.mxu1 %v6046_v54  ;;  %v1639_v13 = vld [vmem:[#allocation2 + $0xc8] sm:$0x1]  ;;  %v1033_v7 = vadd.f32 %v7039_v22, %v6828_v19  ;;  %v1025_v18 = vadd.f32 %v6828_v19, %v7046_v17  ;;  %v1036_v10 = vadd.f32 %v7056_v49, %v6828_v19  ;;  %v1642_v1 = vld [vmem:[#allocation2 + $0xd0] sm:$0xff]  ;;  %v6069_v55 = vld [vmem:[#allocation9 + $0x1b8] sm:$0xff]  }
 0x2a4   : > { %v1494_v48 = vrot.slane %v1492_v3, 7  ;;  %5580 = vmatmul.mubr.bf16.gmra.mrb[28].mxu1 %v2380_v6  ;;  %v1488_v50 = vshll.u32 %v1281_v58, 16  ;;  %v2383_v2 = vsel %vm1961_vm7, %v2381_v41, %v2382_v61  ;;  %v1028_v54 = vadd.f32 %v6828_v19, %v7063_v45  ;;  %v1636_v3 = vld [vmem:[#allocation2 + $0xc0] sm:$0xff]  ;;  %v6049_v49 = vld [vmem:[#allocation9 + $0x38] sm:$0xff]  }
 0x2a5   : > { %v1487_v23 = vrot.slane %v1485_v26, 7  ;;  %5328 = vmatpush3.bf16.msra.mxu0 %v6067_v38  ;;  %5583 = vmatprep.mubr.bf16.mxu1 %v2383_v2  ;;  %v1085_v17 = vmax.f32 %v1033_v7, 0.0  ;;  %v1083_v25 = vmax.f32 %v1025_v18, 0.0  ;;  %v1086_v41 = vmax.f32 %v1036_v10, 0.0  ;;  %v2114_v45 = vld [vmem:[#allocation2 + $0x80] sm:$0xfe] }
 0x2a6   : > { %v1497_v6 = vor.u32 %v1495_v39, %v1494_v48  ;;  %v1646_v22 = vsel %vm6742_vm4, %v1494_v48, %v1645_v43  ;;  %5192 = vmatpush3.bf16.msra.mxu1 %v6047_v57  ;;  %v1084_v61 = vmax.f32 %v1028_v54, 0.0  ;;  %v7119_v38 = vld [vmem:[#allocation9 + $0x80] sm:$0xff]   ;;  %5329 = vmatprep.subr.bf16.mxu0 %v6068_v46  ;;  %v2179_v7 = vshll.u32 %v7030_v37, 16  ;;  %v7145_v18 = vld [vmem:[#allocation2 + $0x88] sm:$0x1] }
 0x2a7   : > { %1647 = vst [vmem:[#allocation2 + $0xd8] sm:$0x1] %v1646_v22  ;;  %v1490_v26 = vor.u32 %v1488_v50, %v1487_v23  ;;  %v1640_v58 = vsel %vm6742_vm4, %v1487_v23, %v1639_v13  ;;  %5193 = vmatprep.subr.bf16.mxu1 %v6048_v9  ;;  %v7126_v43 = vadd.f32 %v1085_v17, %v6719_v32  ;;  %v2174_v13 = vshll.u32 %v6924_v51, 16  ;;  %v2115_v10 = vld [vmem:[#allocation2 + $0x90] sm:$0xfe] }
 0x2a8   : > { %v7123_v48 = vsel %vm6815_vm6, %v1497_v6, %v1642_v1  ;;  %1641 = vst [vmem:[#allocation2 + $0xc8] sm:$0x1] %v1640_v58  ;;  %v7129_v57 = vadd.f32 %v1083_v25, %v6715_v30  ;;  %2677 = vmatmul.mubr.bf16.gmra.mrb[64].mxu0 %v6932_v8  ;;  %v7139_v39 = vadd.f32 %v1086_v41, %v6713_v29  ;;  %v2172_v8 = vshrl.u32 %v6924_v51, 16  ;;  %v7153_v54 = vld [vmem:[#allocation2 + $0x98] sm:$0x1] }
 0x2a9   : > { %8235 = vst [vmem:[#allocation65_spill] sm:$0xff] %v7126_v43  ;;  %1644 = vst [vmem:[#allocation2 + $0xd0] sm:$0xff] %v7123_v48  ;;  %v7136_v46 = vsel %vm6815_vm6, %v1490_v26, %v1636_v3  ;;  %v7142_v9 = vadd.f32 %v1084_v61, %v6717_v31  ;;  %5330 = vmatpush3.bf16.msra.mxu0 %v6069_v55  ;;  %v2176_v1 = vrot.slane %v2174_v13, 1  ;;  %v2384_v23 = vrot.slane %v2114_v45, 1  ;;  %v1657_v26 = vld [vmem:[#allocation2 + $0xf8] sm:$0x1] }
 0x2aa   : > { %8236 = vst [vmem:[#allocation66_spill] sm:$0xff] %v7129_v57  ;;  %8237 = vst [vmem:[#allocation67_spill] sm:$0xff] %v7139_v39  ;;  %5194 = vmatpush3.bf16.msra.mxu1 %v6049_v49  ;;  %v1284_v50 = vpack.c.bf16 %v7139_v39, %v7126_v43  ;;  %v2181_v6 = vrot.slane %v2179_v7, 1  ;;  %v2385_v55 = vrot.slane %v7145_v18, 1  ;;  %v2387_v22 = vrot.slane %v2115_v10, 1  ;;  %v1648_v39 = vld [vmem:[#allocation2 + $0xe0] sm:$0xff] }
 0x2ab   : > { %8238 = vst [vmem:[#allocation68_spill] sm:$0xff] %v7142_v9  ;;  %1638 = vst [vmem:[#allocation2 + $0xc0] sm:$0xff] %v7136_v46  ;;  %v1283_v2 = vpack.c.bf16 %v7142_v9, %v7129_v57  ;;  %5603 = vmatprep.subr.bf16.mxu1 %v7119_v38  ;;  %v2177_v37 = vor.u32 %v2176_v1, %v2172_v8  ;;  %v1651_v49 = vld [vmem:[#allocation2 + $0xe8] sm:$0x1]  ;;  %v2388_v61 = vrot.slane %v7153_v54, 1  ;;  %v1654_v8 = vld [vmem:[#allocation2 + $0xf0] sm:$0xff] }
 0x2ac   : > { %v1506_v3 = vshrl.u32 %v1284_v50, 16  ;;  %v1509_v17 = vshll.u32 %v1284_v50, 16  ;;  %v2386_v41 = vsel %vm1961_vm7, %v2384_v23, %v2385_v55  ;;  %v1041_v45 = vadd.f32 %v6828_v19, %v7091_v14  ;;  %v7164_v50 = vld [vmem:[#allocation2 + $0xa8] sm:$0x1]  ;;  %v2116_v55 = vld [vmem:[#allocation2 + $0xa0] sm:$0xfe] }
 0x2ad   : > { %v1499_v25 = vshrl.u32 %v1283_v2, 16  ;;  %v2182_v58 = vsel %vm1720_vm8, %v2177_v37, %v2181_v6  ;;  %v1502_v1 = vshll.u32 %v1283_v2, 16  ;;  %5584 = vmatmul.mubr.bf16.gmra.mrb[32].mxu1 %v2386_v41  ;;  %v1044_v10 = vadd.f32 %v6828_v19, %v7102_v63  ;;  %v2117_v63 = vld [vmem:[#allocation2 + $0xb0] sm:$0xfe]  ;;  %v7453_v43 = vld [vmem:[#allocation2 + $0x78] sm:$0x1] }
 0x2ae   : > { %v1508_v13 = vrot.slane %v1506_v3, 7  ;;  %2684 = vmatprep.mubr.bf16.mxu0 %v2182_v58  ;;  %v2389_v37 = vsel %vm1961_vm7, %v2387_v22, %v2388_v61  ;;  %v1087_v23 = vmax.f32 %v1041_v45, 0.0  ;;  %v2186_v6 = vshll.u32 %v6964_v28, 16  ;;  %v7175_v61 = vld [vmem:[#allocation2 + $0xb8] sm:$0x1] }
 0x2af   : > { %v1501_v7 = vrot.slane %v1499_v25, 7  ;;  %v2191_v14 = vshll.u32 %v7079_v0, 16  ;;  %5587 = vmatprep.mubr.bf16.mxu1 %v2389_v37  ;;  %v1088_v22 = vmax.f32 %v1044_v10, 0.0  ;;  %v2198_v37 = vshll.u32 %v6953_v34, 16  ;;  %v7489_v9 = vld [vmem:[#allocation2 + $0x98] sm:$0x1] }
 0x2b0   : > { %2685 = vmatmul.mubr.bf16.gmra.mrb[68].mxu0 %v6924_v51  ;;  %v1511_v3 = vor.u32 %v1509_v17, %v1508_v13  ;;  %v1658_v2 = vsel %vm6742_vm4, %v1508_v13, %v1657_v26  ;;  %v2184_v51 = vshrl.u32 %v6964_v28, 16  ;;  %v2188_v58 = vrot.slane %v2186_v6, 1  ;;  %v7507_v57 = vld [vmem:[#allocation2 + $0xa8] sm:$0x1] }
 0x2b1   : > { %v1504_v25 = vor.u32 %v1502_v1, %v1501_v7  ;;  %v1652_v19 = vsel %vm6742_vm4, %v1501_v7, %v1651_v49  ;;  %1659 = vst [vmem:[#allocation2 + $0xf8] sm:$0x1] %v1658_v2  ;;  %v2193_v41 = vrot.slane %v2191_v14, 1  ;;  %v2390_v26 = vrot.slane %v2116_v55, 1  ;;  %v7201_v55 = vld [vmem:[#allocation2 + $0xc8] sm:$0x1] }
 0x2b2   : > { %1653 = vst [vmem:[#allocation2 + $0xe8] sm:$0x1] %v1652_v19  ;;  %v7179_v0 = vsel %vm6815_vm6, %v1511_v3, %v1654_v8  ;;  %v2391_v49 = vrot.slane %v7164_v50, 1  ;;  %v7189_v45 = vadd.f32 %v1087_v23, %v6729_v53  ;;  %v7192_v13 = vadd.f32 %v1088_v22, %v6731_v62  ;;  %v2118_v1 = vld [vmem:[#allocation2 + $0xc0] sm:$0xfe] }
 0x2b3   : > { %v7183_v17 = vsel %vm6815_vm6, %v1504_v25, %v1648_v39  ;;  %1656 = vst [vmem:[#allocation2 + $0xf0] sm:$0xff] %v7179_v0  ;;  %v2189_v7 = vor.u32 %v2188_v58, %v2184_v51  ;;  %v2393_v8 = vrot.slane %v2117_v63, 1  ;;  %v2394_v39 = vrot.slane %v7175_v61, 1  ;;  %v2119_v51 = vld [vmem:[#allocation2 + $0xd0] sm:$0xfe] }
 0x2b4   : > { %1650 = vst [vmem:[#allocation2 + $0xe0] sm:$0xff] %v7183_v17  ;;  %8239 = vst [vmem:[#allocation69_spill] sm:$0xff] %v7189_v45  ;;  %v2392_v10 = vsel %vm1961_vm7, %v2390_v26, %v2391_v49  ;;  %v1285_v6 = vpack.c.bf16 %v7192_v13, %v7189_v45  ;;  %v2203_v23 = vshll.u32 %v7089_v27, 16  ;;  %v2196_v2 = vshrl.u32 %v6953_v34, 16  ;;  %v1663_v58 = vld [vmem:[#allocation2 + $0x108] sm:$0x1] }
 0x2b5   : > { %8240 = vst [vmem:[#allocation70_spill] sm:$0xff] %v7192_v13  ;;  %v2194_v14 = vsel %vm1720_vm8, %v2189_v7, %v2193_v41  ;;  %5588 = vmatmul.mubr.bf16.gmra.mrb[36].mxu1 %v2392_v10  ;;  %v2395_v3 = vsel %vm1961_vm7, %v2393_v8, %v2394_v39  ;;  %v2200_v25 = vrot.slane %v2198_v37, 1  ;;  %v2396_v19 = vrot.slane %v2118_v1, 1  ;;  %v7207_v7 = vld [vmem:[#allocation2 + $0xd8] sm:$0x1]  ;;  %v1660_v39 = vld [vmem:[#allocation2 + $0x100] sm:$0xff] }
 0x2b6   : > { %2692 = vmatprep.mubr.bf16.mxu0 %v2194_v14  ;;  %v1513_v63 = vshrl.u32 %v1285_v6, 16  ;;  %5591 = vmatprep.mubr.bf16.mxu1 %v2395_v3  ;;  %v2205_v22 = vrot.slane %v2203_v23, 1  ;;  %v2397_v27 = vrot.slane %v7201_v55, 1  ;;  %v1516_v49 = vshll.u32 %v1285_v6, 16  ;;  %v7385_v62 = vld [vmem:[#allocation2 + $0x98] sm:$0x1] }
 0x2b7   : > { %v2201_v41 = vor.u32 %v2200_v25, %v2196_v2  ;;  %v2210_v8 = vshll.u32 %v7024_v40, 16  ;;  %v2215_v10 = vshll.u32 %v7145_v18, 16  ;;  %v2208_v14 = vshrl.u32 %v7024_v40, 16  ;;  %v7471_v45 = vld [vmem:[#allocation2 + $0x88] sm:$0x1] }
 0x2b8   : > { %2693 = vmatmul.mubr.bf16.gmra.mrb[72].mxu0 %v6964_v28  ;;  %v1515_v26 = vrot.slane %v1513_v63, 7  ;;  %v2398_v37 = vsel %vm1961_vm7, %v2396_v19, %v2397_v27  ;;  %v2399_v28 = vrot.slane %v2119_v51, 1  ;;  %v2400_v25 = vrot.slane %v7207_v7, 1 }
 0x2b9   : > { %v2206_v1 = vsel %vm1720_vm8, %v2201_v41, %v2205_v22  ;;  %v2212_v6 = vrot.slane %v2210_v8, 1  ;;  %v2217_v2 = vrot.slane %v2215_v10, 1  ;;  %v2222_v19 = vshll.u32 %v7011_v24, 16  ;;  %v6082_v8 = vld [vmem:[#allocation2] sm:$0xff] }
 0x2ba   : > { %v1518_v23 = vor.u32 %v1516_v49, %v1515_v26  ;;  %v1664_v3 = vsel %vm6742_vm4, %v1515_v26, %v1663_v58  ;;  %2700 = vmatprep.mubr.bf16.mxu0 %v2206_v1  ;;  %v2401_v51 = vsel %vm1961_vm7, %v2399_v28, %v2400_v25  ;;  %v7224_v58 = vld [vmem:[#allocation2 + $0xe8] sm:$0x1]  ;;  %v2121_v26 = vld [vmem:[#allocation2 + $0xf0] sm:$0xfe]  ;;  %v2227_v49 = vshll.u32 %v7153_v54, 16 }
 0x2bb   : > { %1665 = vst [vmem:[#allocation2 + $0x108] sm:$0x1] %v1664_v3  ;;  %v2120_v63 = vld [vmem:[#allocation2 + $0xe0] sm:$0xfe]  ;;  %v2213_v22 = vor.u32 %v2212_v6, %v2208_v14  ;;  %v1724_v10 = vshll.u32 %v6082_v8, 16  ;;  %v2405_v14 = vrot.slane %v2121_v26, 1 }
 0x2bc   : > { %v7219_v18 = vsel %vm6815_vm6, %v1518_v23, %v1660_v39  ;;  %v2402_v27 = vrot.slane %v2120_v63, 1  ;;  %v2403_v39 = vrot.slane %v7224_v58, 1  ;;  %v7230_v1 = vld [vmem:[#allocation2 + $0xf8] sm:$0x1]  ;;  %v7232_v28 = vld [vmem:[#allocation2 + $0x8] sm:$0x1] }
 0x2bd   : > { %1662 = vst [vmem:[#allocation2 + $0x100] sm:$0xff] %v7219_v18  ;;  %5592 = vmatmul.mubr.bf16.gmra.mrb[40].mxu1 %v2398_v37  ;;  %v2218_v41 = vsel %vm1720_vm8, %v2213_v22, %v2217_v2  ;;  %v2224_v37 = vrot.slane %v2222_v19, 1  ;;  %v2229_v3 = vrot.slane %v2227_v49, 1  ;;  %v2406_v6 = vrot.slane %v7230_v1, 1 }
 0x2be   : > { %5595 = vmatprep.mubr.bf16.mxu1 %v2401_v51  ;;  %v2404_v23 = vsel %vm1961_vm7, %v2402_v27, %v2403_v39  ;;  %v1722_v2 = vshrl.u32 %v6082_v8, 16  ;;  %v1726_v54 = vrot.slane %v1724_v10, 1  ;;  %v1729_v25 = vshll.u32 %v7232_v28, 16  ;;  %v1673_v10 = vld [vmem:[#allocation2 + $0x10] sm:$0xff] }
 0x2bf   : > { %v2234_v51 = vshll.u32 %v7095_v11, 16  ;;  %v2407_v19 = vsel %vm1961_vm7, %v2405_v14, %v2406_v6  ;;  %v2239_v49 = vshll.u32 %v7164_v50, 16  ;;  %v2232_v6 = vshrl.u32 %v7095_v11, 16 }
 0x2c0   : > { %2701 = vmatmul.mubr.bf16.gmra.mrb[76].mxu0 %v6953_v34  ;;  %v2220_v34 = vshrl.u32 %v7011_v24, 16  ;;  %v1727_v39 = vor.u32 %v1726_v54, %v1722_v2  ;;  %v7254_v54 = vld [vmem:[#allocation2 + $0x20] sm:$0xff]  ;;  %v3561_v30 = vshll.u32 %v7507_v57, 16 }
 0x2c1   : > { %2708 = vmatprep.mubr.bf16.mxu0 %v2218_v41  ;;  %v2236_v29 = vrot.slane %v2234_v51, 1  ;;  %v2251_v51 = vshll.u32 %v7175_v61, 16  ;;  %v7265_v61 = vld [vmem:[#allocation2 + $0x30] sm:$0xff] }
 0x2c2   : > { %v2225_v63 = vor.u32 %v2224_v37, %v2220_v34  ;;  %v7240_v41 = vld [vmem:[#allocation2 + $0x108] sm:$0x1]  ;;  %v1731_v37 = vrot.slane %v1729_v25, 1  ;;  %v1734_v25 = vshrl.u32 %v1673_v10, 16 }
 0x2c3   : > { %v2409_v34 = vrot.slane %v7240_v41, 1  ;;  %v2237_v13 = vor.u32 %v2236_v29, %v2232_v6  ;;  %v2258_v6 = vshll.u32 %v7136_v46, 16 }
 0x2c4   : > { %v2122_v22 = vld [vmem:[#allocation2 + $0x100] sm:$0xfe]  ;;  %v2230_v27 = vsel %vm1720_vm8, %v2225_v63, %v2229_v3  ;;  %v7249_v3 = vld [vmem:[#allocation2 + $0x18] sm:$0x1]  ;;  %v2246_v63 = vshll.u32 %v7050_v21, 16 }
 0x2c5   : > { %5596 = vmatmul.mubr.bf16.gmra.mrb[44].mxu1 %v2404_v23  ;;  %v2408_v26 = vrot.slane %v2122_v22, 1  ;;  %v1736_v23 = vshll.u32 %v1673_v10, 16  ;;  %v1741_v22 = vshll.u32 %v7249_v3, 16 }
 0x2c6   : > { %5599 = vmatprep.mubr.bf16.mxu1 %v2407_v19  ;;  %v2241_v19 = vrot.slane %v2239_v49, 1 }
 0x2c7   : > { %v2410_v14 = vsel %vm1961_vm7, %v2408_v26, %v2409_v34  ;;  %v1738_v50 = vrot.slane %v1736_v23, 1  ;;  %v1748_v26 = vshll.u32 %v7254_v54, 16  ;;  %v1743_v49 = vrot.slane %v1741_v22, 1  ;;  %v7260_v34 = vld [vmem:[#allocation2 + $0x28] sm:$0x1] }
 0x2c8   : > { %2709 = vmatmul.mubr.bf16.gmra.mrb[80].mxu0 %v7024_v40  ;;  %v1732_v40 = vsel %vm1720_vm8, %v1727_v39, %v1731_v37  ;;  %v2242_v2 = vsel %vm1720_vm8, %v2237_v13, %v2241_v19  ;;  %v2244_v39 = vshrl.u32 %v7050_v21, 16  ;;  %v2253_v37 = vrot.slane %v2251_v51, 1 }
 0x2c9   : > { %2716 = vmatprep.mubr.bf16.mxu0 %v2230_v27  ;;  %v1739_v29 = vor.u32 %v1738_v50, %v1734_v25  ;;  %v2248_v27 = vrot.slane %v2246_v63, 1  ;;  %v1753_v50 = vshll.u32 %v7260_v34, 16  ;;  %v6058_v63 = vld [vmem:[#allocation9 + $0x90] sm:$0xff]   ;;  %v2260_v25 = vrot.slane %v2258_v6, 1 }
 0x2cb   : > { %v1744_v13 = vsel %vm1720_vm8, %v1739_v29, %v1743_v49  ;;  %v2249_v23 = vor.u32 %v2248_v27, %v2244_v39  ;;  %v1755_v22 = vrot.slane %v1753_v50, 1  ;;  %v6063_v29 = vld [vmem:[#allocation9 + $0x98] sm:$0xff]   ;;  %v2270_v39 = vshll.u32 %v7123_v48, 16 }
 0x2cc   : > { %v7276_v27 = vld [vmem:[#allocation2 + $0x38] sm:$0x1] }
 0x2cd   : > { %5600 = vmatmul.mubr.bf16.gmra.mrb[48].mxu1 %v2410_v14  ;;  %v1750_v14 = vrot.slane %v1748_v26, 1  ;;  %v2254_v19 = vsel %vm1720_vm8, %v2249_v23, %v2253_v37  ;;  %v7281_v37 = vld [vmem:[#allocation2 + $0x40] sm:$0xff]  ;;  %v1765_v23 = vshll.u32 %v7276_v27, 16 }
 0x2ce   : > { %3118 = vmatprep.mubr.bf16.mxu1 %v1732_v40  ;;  %v1746_v40 = vshrl.u32 %v7254_v54, 16 }
 0x2cf   : > { %v1767_v50 = vrot.slane %v1765_v23, 1 }
 0x2d0   : > { %2717 = vmatmul.mubr.bf16.gmra.mrb[84].mxu0 %v7011_v24  ;;  %v6055_v24 = vld [vmem:[#allocation9 + $0x88] sm:$0xff]  }
 0x2d1   : > { %2724 = vmatprep.mubr.bf16.mxu0 %v2242_v2  ;;  %v7272_v2 = vor.u32 %v1750_v14, %v1746_v40  ;;  %v6070_v14 = vld [vmem:[#allocation9 + $0xa0] sm:$0xff]   ;;  %v1772_v40 = vshll.u32 %v7281_v37, 16 }
 0x2d5   : > { %3119 = vmatmul.mubr.bf16.vlgmr.msra.gmra.mrb[52].mxu1 %v6082_v8  ;;  %v2263_v8 = vshll.u32 %v7201_v55, 16  ;;  %v1756_v55 = vsel %vm1720_vm8, %v7272_v2, %v1755_v22  ;;  %v1774_v22 = vrot.slane %v1772_v40, 1  ;;  %v7309_v40 = vld [vmem:[#allocation2 + $0x58] sm:$0x1] }
 0x2d6   : > { %5604 = vmatpush3.bf16.msra.mxu1 %v7119_v38  ;;  %3126 = vmatprep.mubr.bf16.mxu1 %v1744_v13  ;;  %v1760_v38 = vshll.u32 %v7265_v61, 16  ;;  %v1758_v13 = vshrl.u32 %v7265_v61, 16 }
 0x2d7   : > { %5605 = vmatprep.subr.bf16.mxu1 %v6055_v24  ;;  %v2265_v51 = vrot.slane %v2263_v8, 1 }
 0x2d8   : > { %2725 = vmatmul.mubr.bf16.gmra.mrb[88].mxu0 %v7095_v11  ;;  %v2256_v11 = vshrl.u32 %v7136_v46, 16  ;;  %v1762_v49 = vrot.slane %v1760_v38, 1 }
 0x2d9   : > { %2732 = vmatprep.mubr.bf16.mxu0 %v2254_v19  ;;  %v2272_v19 = vrot.slane %v2270_v39, 1  ;;  %v6072_v39 = vld [vmem:[#allocation9 + $0xb0] sm:$0xff]  }
 0x2da   : > { %5606 = vmatpush3.bf16.msra.mxu1 %v6055_v24  ;;  %v2261_v26 = vor.u32 %v2260_v25, %v2256_v11  ;;  %v7288_v6 = vor.u32 %v1762_v49, %v1758_v13  ;;  %v7292_v25 = vld [vmem:[#allocation2 + $0x48] sm:$0x1]  ;;  %v2282_v11 = vshll.u32 %v7183_v17, 16  ;;  %v2287_v49 = vshll.u32 %v7224_v58, 16 }
 0x2db   : > { %5607 = vmatprep.subr.bf16.mxu1 %v6058_v63 }
 0x2dc   : > { %v2266_v24 = vsel %vm1720_vm8, %v2261_v26, %v2265_v51  ;;  %v7298_v51 = vld [vmem:[#allocation2 + $0x50] sm:$0xff]  ;;  %v1777_v26 = vshll.u32 %v7292_v25, 16  ;;  %v2284_v13 = vrot.slane %v2282_v11, 1  ;;  %v2299_v11 = vshll.u32 %v7230_v1, 16 }
 0x2dd   : > { %3127 = vmatmul.mubr.bf16.gmra.mrb[56].mxu1 %v1673_v10  ;;  %v2275_v10 = vshll.u32 %v7207_v7, 16  ;;  %v1768_v7 = vsel %vm1720_vm8, %v7288_v6, %v1767_v50  ;;  %v1784_v23 = vshll.u32 %v7298_v51, 16 }
 0x2de   : > { %3134 = vmatprep.mubr.bf16.mxu1 %v1756_v55  ;;  %5608 = vmatpush3.bf16.msra.mxu1 %v6058_v63  ;;  %v6071_v63 = vld [vmem:[#allocation9 + $0xa8] sm:$0xff]   ;;  %v1770_v55 = vshrl.u32 %v7281_v37, 16 }
 0x2df   : > { %5609 = vmatprep.subr.bf16.mxu1 %v6063_v29  ;;  %v2277_v8 = vrot.slane %v2275_v10, 1  ;;  %v1779_v10 = vrot.slane %v1777_v26, 1 }
 0x2e0   : > { %2733 = vmatmul.mubr.bf16.gmra.mrb[92].mxu0 %v7050_v21  ;;  %v2268_v21 = vshrl.u32 %v7123_v48, 16 }
 0x2e1   : > { %2740 = vmatprep.mubr.bf16.mxu0 %v2266_v24  ;;  %v7305_v24 = vor.u32 %v1774_v22, %v1770_v55  ;;  %v1789_v22 = vshll.u32 %v7309_v40, 16 }
 0x2e2   : > { %5610 = vmatpush3.bf16.msra.mxu1 %v6063_v29  ;;  %v2273_v38 = vor.u32 %v2272_v19, %v2268_v21  ;;  %v6073_v19 = vld [vmem:[#allocation9 + $0xb8] sm:$0xff]   ;;  %v1786_v21 = vrot.slane %v1784_v23, 1  ;;  %v7329_v23 = vld [vmem:[#allocation2 + $0x68] sm:$0x1] }
 0x2e3   : > { %5611 = vmatprep.subr.bf16.mxu1 %v6070_v14  ;;  %v1780_v58 = vsel %vm1720_vm8, %v7305_v24, %v1779_v10 }
 0x2e4   : > { %v2278_v29 = vsel %vm1720_vm8, %v2273_v38, %v2277_v8  ;;  %v2294_v8 = vshll.u32 %v7179_v0, 16  ;;  %v1782_v38 = vshrl.u32 %v7298_v51, 16 }
 0x2e5   : > { %3135 = vmatmul.mubr.bf16.gmra.mrb[60].mxu1 %v7254_v54 }
 0x2e6   : > { %3142 = vmatprep.mubr.bf16.mxu1 %v1768_v7  ;;  %5612 = vmatpush3.bf16.msra.mxu1 %v6070_v14  ;;  %v2289_v14 = vrot.slane %v2287_v49, 1  ;;  %v7315_v7 = vld [vmem:[#allocation2 + $0x60] sm:$0xff]  ;;  %v7324_v55 = vor.u32 %v1786_v21, %v1782_v38  ;;  %v2296_v26 = vrot.slane %v2294_v8, 1  ;;  %v1801_v21 = vshll.u32 %v7329_v23, 16 }
 0x2e7   : > { %5613 = vmatprep.subr.bf16.mxu1 %v6071_v63  ;;  %v1796_v49 = vshll.u32 %v7315_v7, 16  ;;  %v2311_v8 = vshll.u32 %v7240_v41, 16  ;;  %v7351_v41 = vld [vmem:[#allocation2 + $0x28] sm:$0x1] }
 0x2e8   : > { %2741 = vmatmul.mubr.bf16.gmra.mrb[96].mxu0 %v7136_v46  ;;  %v2280_v46 = vshrl.u32 %v7183_v17, 16 }
 0x2e9   : > { %2748 = vmatprep.mubr.bf16.mxu0 %v2278_v29  ;;  %v7322_v29 = vld [vmem:[#allocation9 + $0x200] sm:$0xff]  }
 0x2ea   : > { %5614 = vmatpush3.bf16.msra.mxu1 %v6071_v63  ;;  %v2285_v50 = vor.u32 %v2284_v13, %v2280_v46  ;;  %v2301_v13 = vrot.slane %v2299_v11, 1  ;;  %v1798_v46 = vrot.slane %v1796_v49, 1  ;;  %v1803_v11 = vrot.slane %v1801_v21, 1 }
 0x2eb   : > { %5615 = vmatprep.subr.bf16.mxu1 %v6072_v39  ;;  %v2313_v49 = vrot.slane %v2311_v8, 1 }
 0x2ec   : > { %v2290_v63 = vsel %vm1720_vm8, %v2285_v50, %v2289_v14  ;;  %v2306_v14 = vshll.u32 %v7219_v18, 16  ;;  %v1794_v50 = vshrl.u32 %v7315_v7, 16 }
 0x2ed   : > { %3143 = vmatmul.mubr.bf16.gmra.mrb[64].mxu1 %v7265_v61 }
 0x2ee   : > { %3150 = vmatprep.mubr.bf16.mxu1 %v1780_v58  ;;  %5616 = vmatpush3.bf16.msra.mxu1 %v6072_v39  ;;  %v1791_v39 = vrot.slane %v1789_v22, 1  ;;  %v7335_v58 = vld [vmem:[#allocation2 + $0x70] sm:$0xff]  ;;  %v2308_v38 = vrot.slane %v2306_v14, 1 }
 0x2ef   : > { %5617 = vmatprep.subr.bf16.mxu1 %v6073_v19  ;;  %v1808_v22 = vshll.u32 %v7335_v58, 16 }
 0x2f0   : > { %2749 = vmatmul.mubr.bf16.gmra.mrb[100].mxu0 %v7123_v48  ;;  %v2292_v48 = vshrl.u32 %v7179_v0, 16  ;;  %v1792_v1 = vsel %vm1720_vm8, %v7324_v55, %v1791_v39  ;;  %v7346_v39 = vld [vmem:[#allocation2 + $0x78] sm:$0x1] }
 0x2f1   : > { %2756 = vmatprep.mubr.bf16.mxu0 %v2290_v63  ;;  %v7342_v63 = vor.u32 %v1798_v46, %v1794_v50  ;;  %v1806_v46 = vshrl.u32 %v7335_v58, 16  ;;  %v1813_v14 = vshll.u32 %v7346_v39, 16  ;;  %v3465_v50 = vshll.u32 %v7351_v41, 16 }
 0x2f2   : > { %5618 = vmatpush3.bf16.msra.mxu1 %v6073_v19  ;;  %v2297_v10 = vor.u32 %v2296_v26, %v2292_v48  ;;  %v2304_v26 = vshrl.u32 %v7219_v18, 16 }
 0x2f3   : > { %5651 = vmatprep.subr.bf16.mxu1 %v7322_v29  ;;  %v1815_v8 = vrot.slane %v1813_v14, 1 }
 0x2f4   : > { %v2302_v19 = vsel %vm1720_vm8, %v2297_v10, %v2301_v13  ;;  %v2309_v48 = vor.u32 %v2308_v38, %v2304_v26  ;;  %v1810_v13 = vrot.slane %v1808_v22, 1  ;;  %v7363_v38 = vld [vmem:[#allocation2 + $0x88] sm:$0x1]  ;;  %v3467_v22 = vrot.slane %v3465_v50, 1  ;;  %v7368_v26 = vld [vmem:[#allocation2 + $0x38] sm:$0x1] }
 0x2f5   : > { %3151 = vmatmul.mubr.bf16.gmra.mrb[68].mxu1 %v7281_v37 }
 0x2f6   : > { %3158 = vmatprep.mubr.bf16.mxu1 %v1792_v1  ;;  %v7353_v1 = vld [vmem:[#allocation2 + $0x80] sm:$0xff]  ;;  %v2314_v10 = vsel %vm1720_vm8, %v2309_v48, %v2313_v49  ;;  %v1341_v48 = vld [vmem:[#allocation2 + $0x110] sm:$0x1] }
 0x2f7   : > { %v1820_v21 = vshll.u32 %v7353_v1, 16  ;;  %v1818_v49 = vshrl.u32 %v7353_v1, 16  ;;  %v1342_v14 = vsel %vm6742_vm4, 0, %v1341_v48  ;;  %v7390_v48 = vld [vmem:[#allocation2 + $0x48] sm:$0x1] }
 0x2f8   : > { %2757 = vmatmul.mubr.bf16.gmra.mrb[104].mxu0 %v7183_v17  ;;  %v1804_v17 = vsel %vm1720_vm8, %v7342_v63, %v1803_v11  ;;  %1343 = vst [vmem:[#allocation2 + $0x110] sm:$0x1] %v1342_v14 }
 0x2f9   : > { %2764 = vmatprep.mubr.bf16.mxu0 %v2302_v19  ;;  %v7359_v19 = vor.u32 %v1810_v13, %v1806_v46  ;;  %v1822_v11 = vrot.slane %v1820_v21, 1  ;;  %v1397_v13 = vld [vmem:[#allocation2 + $0x118] sm:$0x1]  ;;  %v1825_v46 = vshll.u32 %v7363_v38, 16 }
 0x2fa   : > { %v1398_v50 = vsel %vm6736_vm2, 0, %v1397_v13  ;;  %v7392_v13 = vld [vmem:[#allocation2 + $0xa0] sm:$0xff] }
 0x2fb   : > { %1399 = vst [vmem:[#allocation2 + $0x118] sm:$0x1] %v1398_v50  ;;  %v7381_v21 = vor.u32 %v1822_v11, %v1818_v49 }
 0x2fd   : > { %3159 = vmatmul.mubr.bf16.gmra.mrb[72].mxu1 %v7298_v51 }
 0x2fe   : > { %3166 = vmatprep.mubr.bf16.mxu1 %v1804_v17  ;;  %v7371_v17 = vld [vmem:[#allocation2 + $0x90] sm:$0xff] }
 0x2ff   : > { %v1830_v49 = vshrl.u32 %v7371_v17, 16 }
 0x300   : > { %2765 = vmatmul.mubr.bf16.gmra.mrb[108].mxu0 %v7179_v0  ;;  %v1816_v0 = vsel %vm1720_vm8, %v7359_v19, %v1815_v8  ;;  %v3477_v8 = vshll.u32 %v7368_v26, 16 }
 0x301   : > { %2772 = vmatprep.mubr.bf16.mxu0 %v2314_v10  ;;  %v3468_v10 = vsel %vm1720_vm8, %v7272_v2, %v3467_v22 }
 0x302   : > { %v3479_v22 = vrot.slane %v3477_v8, 1  ;;  %v1669_v14 = vld [vmem:[#allocation2 + $0x118] sm:$0x1] }
 0x303   : > { %v1670_v8 = vsel %vm6742_vm4, %v6812_v35, %v1669_v14 }
 0x304   : > { %v3480_v11 = vsel %vm1720_vm8, %v7288_v6, %v3479_v22  ;;  %v3489_v6 = vshll.u32 %v7390_v48, 16  ;;  %1671 = vst [vmem:[#allocation2 + $0x118] sm:$0x1] %v1670_v8 }
 0x305   : > { %3167 = vmatmul.mubr.bf16.gmra.mrb[76].mxu1 %v7315_v7 }
 0x306   : > { %3174 = vmatprep.mubr.bf16.mxu1 %v1816_v0  ;;  %v1827_v0 = vrot.slane %v1825_v46, 1  ;;  %v1666_v46 = vld [vmem:[#allocation2 + $0x110] sm:$0xff]  ;;  %v3491_v22 = vrot.slane %v3489_v6, 1 }
 0x307   : > { %v7402_v50 = vsel %vm6815_vm6, %v6812_v35, %v1666_v46  ;;  %v7417_v35 = vld [vmem:[#allocation2 + $0x58] sm:$0x1] }
 0x308   : > { %2773 = vmatmul.mubr.bf16.gmra.mrb[112].mxu0 %v7219_v18  ;;  %v1832_v18 = vshll.u32 %v7371_v17, 16  ;;  %v1828_v2 = vsel %vm1720_vm8, %v7381_v21, %v1827_v0  ;;  %1668 = vst [vmem:[#allocation2 + $0x110] sm:$0xff] %v7402_v50  ;;  %v3501_v14 = vshll.u32 %v7417_v35, 16 }
 0x309   : > { %3986 = vmatprep.mubr.bf16.mxu0 %v3468_v10  ;;  %v1837_v10 = vshll.u32 %v7385_v62, 16 }
 0x30a   : > { %v1834_v4 = vrot.slane %v1832_v18, 1  ;;  %v1844_v18 = vshll.u32 %v7392_v13, 16 }
 0x30b   : > { %v1839_v0 = vrot.slane %v1837_v10, 1 }
 0x30c   : > { %v1846_v16 = vrot.slane %v1844_v18, 1  ;;  %v7430_v18 = vld [vmem:[#allocation2 + $0xb8] sm:$0x1] }
 0x30d   : > { %3175 = vmatmul.mubr.bf16.gmra.mrb[80].mxu1 %v7335_v58 }
 0x30e   : > { %3182 = vmatprep.mubr.bf16.mxu1 %v1828_v2  ;;  %v7412_v2 = vld [vmem:[#allocation2 + $0xa8] sm:$0x1] }
 0x30f   : > { %v1849_v10 = vshll.u32 %v7412_v2, 16 }
 0x310   : > { %3987 = vmatmul.mubr.bf16.vlgmr.msra.gmra.mrb[116].mxu0 %v7254_v54  ;;  %v7407_v54 = vor.u32 %v1834_v4, %v1830_v49  ;;  %v7419_v4 = vld [vmem:[#allocation2 + $0xb0] sm:$0xff]  ;;  %v1842_v49 = vshrl.u32 %v7392_v13, 16 }
 0x311   : > { %3994 = vmatprep.mubr.bf16.mxu0 %v3480_v11  ;;  %v3492_v11 = vsel %vm1720_vm8, %v7305_v24, %v3491_v22  ;;  %v1856_v8 = vshll.u32 %v7419_v4, 16  ;;  %v1851_v6 = vrot.slane %v1849_v10, 1  ;;  %v3503_v24 = vrot.slane %v3501_v14, 1  ;;  %v7437_v22 = vld [vmem:[#allocation2 + $0xc0] sm:$0xff] }
 0x312   : > { %v1840_v5 = vsel %vm1720_vm8, %v7407_v54, %v1839_v0  ;;  %v7426_v46 = vor.u32 %v1846_v16, %v1842_v49  ;;  %v1861_v49 = vshll.u32 %v7430_v18, 16 }
 0x313   : > { %v1858_v0 = vrot.slane %v1856_v8, 1  ;;  %v3504_v16 = vsel %vm1720_vm8, %v7324_v55, %v3503_v24  ;;  %v1868_v8 = vshll.u32 %v7437_v22, 16 }
 0x315   : > { %3183 = vmatmul.mubr.bf16.gmra.mrb[84].mxu1 %v7353_v1  ;;  %v1870_v24 = vrot.slane %v1868_v8, 1 }
 0x316   : > { %3190 = vmatprep.mubr.bf16.mxu1 %v1840_v5  ;;  %v7435_v5 = vld [vmem:[#allocation2 + $0x68] sm:$0x1] }
 0x317   : > { %v3513_v14 = vshll.u32 %v7435_v5, 16 }
 0x318   : > { %3995 = vmatmul.mubr.bf16.gmra.mrb[120].mxu0 %v7265_v61  ;;  %v1852_v61 = vsel %vm1720_vm8, %v7426_v46, %v1851_v6  ;;  %v1863_v6 = vrot.slane %v1861_v49, 1 }
 0x319   : > { %4002 = vmatprep.mubr.bf16.mxu0 %v3492_v11  ;;  %v1854_v11 = vshrl.u32 %v7419_v4, 16  ;;  %v3515_v55 = vrot.slane %v3513_v14, 1  ;;  %v3525_v14 = vshll.u32 %v7453_v43, 16 }
 0x31b   : > { %v7444_v10 = vor.u32 %v1858_v0, %v1854_v11  ;;  %v3516_v0 = vsel %vm1720_vm8, %v7342_v63, %v3515_v55  ;;  %v1866_v11 = vshrl.u32 %v7437_v22, 16  ;;  %v3527_v63 = vrot.slane %v3525_v14, 1 }
 0x31c   : > { %v3537_v14 = vshll.u32 %v7471_v45, 16 }
 0x31d   : > { %3191 = vmatmul.mubr.bf16.gmra.mrb[88].mxu1 %v7371_v17  ;;  %v7462_v32 = vor.u32 %v1870_v24, %v1866_v11  ;;  %v3528_v24 = vsel %vm1720_vm8, %v7359_v19, %v3527_v63 }
 0x31e   : > { %3198 = vmatprep.mubr.bf16.mxu1 %v1852_v61  ;;  %v7448_v61 = vld [vmem:[#allocation2 + $0xc8] sm:$0x1]  ;;  %v3539_v19 = vrot.slane %v3537_v14, 1  ;;  %v3549_v14 = vshll.u32 %v7489_v9, 16 }
 0x31f   : > { %v1873_v49 = vshll.u32 %v7448_v61, 16 }
 0x320   : > { %4003 = vmatmul.mubr.bf16.gmra.mrb[124].mxu0 %v7281_v37  ;;  %v1864_v37 = vsel %vm1720_vm8, %v7444_v10, %v1863_v6 }
 0x321   : > { %4010 = vmatprep.mubr.bf16.mxu0 %v3504_v16  ;;  %v7455_v16 = vld [vmem:[#allocation2 + $0xd0] sm:$0xff]  ;;  %v1875_v6 = vrot.slane %v1873_v49, 1 }
 0x322   : > { %v1880_v8 = vshll.u32 %v7455_v16, 16  ;;  %v1878_v11 = vshrl.u32 %v7455_v16, 16 }
 0x324   : > { %v1882_v55 = vrot.slane %v1880_v8, 1 }
 0x325   : > { %3199 = vmatmul.mubr.bf16.gmra.mrb[92].mxu1 %v7392_v13 }
 0x326   : > { %3206 = vmatprep.mubr.bf16.mxu1 %v1864_v37  ;;  %v7466_v37 = vld [vmem:[#allocation2 + $0xd8] sm:$0x1]  ;;  %v7480_v53 = vor.u32 %v1882_v55, %v1878_v11  ;;  %v3540_v55 = vsel %vm1720_vm8, %v7381_v21, %v3539_v19  ;;  %v3551_v21 = vrot.slane %v3549_v14, 1  ;;  %v1704_v14 = vld [vmem:[#allocation2] sm:$0xfe] }
 0x327   : > { %v1885_v49 = vshll.u32 %v7466_v37, 16 }
 0x328   : > { %4011 = vmatmul.mubr.bf16.gmra.mrb[128].mxu0 %v7298_v51  ;;  %v1876_v51 = vsel %vm1720_vm8, %v7462_v32, %v1875_v6 }
 0x329   : > { %4018 = vmatprep.mubr.bf16.mxu0 %v3516_v0  ;;  %v7473_v0 = vld [vmem:[#allocation2 + $0xe0] sm:$0xff]  ;;  %v1887_v6 = vrot.slane %v1885_v49, 1 }
 0x32a   : > { %v1892_v8 = vshll.u32 %v7473_v0, 16  ;;  %v1890_v11 = vshrl.u32 %v7473_v0, 16 }
 0x32c   : > { %v1894_v63 = vrot.slane %v1892_v8, 1 }
 0x32d   : > { %3207 = vmatmul.mubr.bf16.gmra.mrb[96].mxu1 %v7419_v4 }
 0x32e   : > { %3214 = vmatprep.mubr.bf16.mxu1 %v1876_v51  ;;  %v7484_v51 = vld [vmem:[#allocation2 + $0xe8] sm:$0x1]  ;;  %v7498_v31 = vor.u32 %v1894_v63, %v1890_v11  ;;  %v3552_v63 = vsel %vm1720_vm8, %v7407_v54, %v3551_v21  ;;  %v1962_v21 = vrot.slane %v1704_v14, 1 }
 0x32f   : > { %v1897_v49 = vshll.u32 %v7484_v51, 16 }
 0x330   : > { %4019 = vmatmul.mubr.bf16.gmra.mrb[132].mxu0 %v7315_v7  ;;  %v1888_v7 = vsel %vm1720_vm8, %v7480_v53, %v1887_v6 }
 0x331   : > { %4026 = vmatprep.mubr.bf16.mxu0 %v3528_v24  ;;  %v7491_v24 = vld [vmem:[#allocation2 + $0xf0] sm:$0xff]  ;;  %v1899_v6 = vrot.slane %v1897_v49, 1 }
 0x332   : > { %v1904_v8 = vshll.u32 %v7491_v24, 16 }
 0x334   : > { %v1906_v19 = vrot.slane %v1904_v8, 1 }
 0x335   : > { %3215 = vmatmul.mubr.bf16.gmra.mrb[100].mxu1 %v7437_v22 }
 0x336   : > { %3222 = vmatprep.mubr.bf16.mxu1 %v1888_v7  ;;  %v7502_v7 = vld [vmem:[#allocation2 + $0xf8] sm:$0x1] }
 0x337   : > { %v1909_v11 = vshll.u32 %v7502_v7, 16 }
 0x338   : > { %4027 = vmatmul.mubr.bf16.gmra.mrb[136].mxu0 %v7335_v58  ;;  %v1900_v58 = vsel %vm1720_vm8, %v7498_v31, %v1899_v6 }
 0x339   : > { %4034 = vmatprep.mubr.bf16.mxu0 %v3540_v55  ;;  %v1902_v55 = vshrl.u32 %v7491_v24, 16  ;;  %v1911_v6 = vrot.slane %v1909_v11, 1 }
 0x33b   : > { %v7514_v49 = vor.u32 %v1906_v19, %v1902_v55  ;;  %v1963_v19 = vrot.slane %v7232_v28, 1 }
 0x33d   : > { %3223 = vmatmul.mubr.bf16.gmra.mrb[104].mxu1 %v7455_v16  ;;  %v1912_v8 = vsel %vm1720_vm8, %v7514_v49, %v1911_v6  ;;  %v1964_v55 = vsel %vm1961_vm7, %v1962_v21, %v1963_v19  ;;  %v1706_v6 = vld [vmem:[#allocation2 + $0x20] sm:$0xfe]  ;;  %v6075_v21 = vld [vmem:[#allocation9 + $0x208] sm:$0xff]  }
 0x33e   : > { %3230 = vmatprep.mubr.bf16.mxu1 %v1900_v58  ;;  %v7520_v58 = vld [vmem:[#allocation2 + $0xb8] sm:$0x1] }
 0x340   : > { %4035 = vmatmul.mubr.bf16.gmra.mrb[140].mxu0 %v7353_v1  ;;  %v3563_v1 = vrot.slane %v3561_v30, 1  ;;  %v1705_v30 = vld [vmem:[#allocation2 + $0x10] sm:$0xfe] }
 0x341   : > { %4042 = vmatprep.mubr.bf16.mxu0 %v3552_v63  ;;  %v3573_v63 = vshll.u32 %v7520_v58, 16  ;;  %v1965_v28 = vrot.slane %v1705_v30, 1 }
 0x342   : > { %v3564_v54 = vsel %vm1720_vm8, %v7426_v46, %v3563_v1  ;;  %v1968_v46 = vrot.slane %v1706_v6, 1  ;;  %v1966_v1 = vrot.slane %v7249_v3, 1 }
 0x343   : > { %v3575_v11 = vrot.slane %v3573_v63, 1 }
 0x344   : > { %v1967_v19 = vsel %vm1961_vm7, %v1965_v28, %v1966_v1  ;;  %v1972_v28 = vrot.slane %v7276_v27, 1  ;;  %v6077_v1 = vld [vmem:[#allocation9 + $0x218] sm:$0xff]   ;;  %v1710_v27 = vld [vmem:[#allocation2 + $0x60] sm:$0xfe] }
 0x345   : > { %3231 = vmatmul.mubr.bf16.gmra.mrb[108].mxu1 %v7473_v0 }
 0x346   : > { %3238 = vmatprep.mubr.bf16.mxu1 %v1912_v8  ;;  %v7529_v8 = vld [vmem:[#allocation2 + $0xc8] sm:$0x1] }
 0x347   : > { %v3585_v14 = vshll.u32 %v7529_v8, 16 }
 0x348   : > { %4043 = vmatmul.mubr.bf16.gmra.mrb[144].mxu0 %v7371_v17  ;;  %v3576_v17 = vsel %vm1720_vm8, %v7444_v10, %v3575_v11  ;;  %v1708_v10 = vld [vmem:[#allocation2 + $0x40] sm:$0xfe]  ;;  %v7540_v11 = vld [vmem:[#allocation2 + $0xd8] sm:$0x1] }
 0x349   : > { %4050 = vmatprep.mubr.bf16.mxu0 %v3564_v54  ;;  %v1969_v54 = vrot.slane %v7260_v34, 1  ;;  %v6076_v34 = vld [vmem:[#allocation9 + $0x210] sm:$0xff]   ;;  %v1974_v6 = vrot.slane %v1708_v10, 1 }
 0x34b   : > { %v1970_v63 = vsel %vm1961_vm7, %v1968_v46, %v1969_v54  ;;  %v1975_v46 = vrot.slane %v7292_v25, 1  ;;  %v7554_v25 = vld [vmem:[#allocation2 + $0xe8] sm:$0x1] }
 0x34d   : > { %3239 = vmatmul.mubr.bf16.gmra.mrb[112].mxu1 %v7491_v24 }
 0x34e   : > { %5619 = vmatprep.mubr.bf16.mxu1 %v1964_v55  ;;  %v3587_v55 = vrot.slane %v3585_v14, 1 }
 0x350   : > { %4051 = vmatmul.mubr.bf16.gmra.mrb[148].mxu0 %v7392_v13  ;;  %v1707_v13 = vld [vmem:[#allocation2 + $0x30] sm:$0xfe]  ;;  %v3588_v3 = vsel %vm1720_vm8, %v7462_v32, %v3587_v55 }
 0x351   : > { %4058 = vmatprep.mubr.bf16.mxu0 %v3576_v17  ;;  %v1971_v30 = vrot.slane %v1707_v13, 1  ;;  %v3597_v17 = vshll.u32 %v7540_v11, 16  ;;  %v1709_v55 = vld [vmem:[#allocation2 + $0x50] sm:$0xfe] }
 0x355   : > { %5620 = vmatmul.mubr.bf16.vlgmr.msra.gmra.mrb[20].mxu1 %v1967_v19  ;;  %v1976_v19 = vsel %vm1961_vm7, %v1974_v6, %v1975_v46  ;;  %v1980_v6 = vrot.slane %v1710_v27, 1  ;;  %v1984_v27 = vrot.slane %v7346_v39, 1 }
 0x356   : > { %5652 = vmatpush3.bf16.msra.mxu1 %v7322_v29  ;;  %5623 = vmatprep.mubr.bf16.mxu1 %v1970_v63  ;;  %v3599_v63 = vrot.slane %v3597_v17, 1  ;;  %v3609_v17 = vshll.u32 %v7554_v25, 16 }
 0x357   : > { %5653 = vmatprep.subr.bf16.mxu1 %v6075_v21 }
 0x358   : > { %4059 = vmatmul.mubr.bf16.gmra.mrb[152].mxu0 %v7419_v4  ;;  %v1973_v4 = vsel %vm1961_vm7, %v1971_v30, %v1972_v28  ;;  %v3600_v10 = vsel %vm1720_vm8, %v7480_v53, %v3599_v63  ;;  %v1977_v30 = vrot.slane %v1709_v55, 1  ;;  %v1978_v28 = vrot.slane %v7309_v40, 1 }
 0x359   : > { %4066 = vmatprep.mubr.bf16.mxu0 %v3588_v3  ;;  %v6078_v3 = vld [vmem:[#allocation9 + $0x220] sm:$0xff]   ;;  %v3611_v53 = vrot.slane %v3609_v17, 1 }
 0x35a   : > { %5654 = vmatpush3.bf16.msra.mxu1 %v6075_v21  ;;  %v1979_v46 = vsel %vm1961_vm7, %v1977_v30, %v1978_v28 }
 0x35b   : > { %5655 = vmatprep.subr.bf16.mxu1 %v6076_v34  ;;  %v3612_v40 = vsel %vm1720_vm8, %v7498_v31, %v3611_v53  ;;  %v7581_v53 = vld [vmem:[#allocation2 + $0x108] sm:$0x1] }
 0x35c   : > { %v5059_v29 = vpop.f32.mrb[52].mxu0 }
 0x35d   : > { %v5060_v14 = vpop.f32.mrb[53].mxu0  ;;  %5624 = vmatmul.mubr.bf16.gmra.mrb[24].mxu1 %v1973_v4  ;;  %v1712_v4 = vld [vmem:[#allocation2 + $0x80] sm:$0xfe] }
 0x35e   : > { %v7549_v54 = vadd.f32 %v5060_v14, %v5059_v29  ;;  %v5062_v32 = vpop.f32.mrb[54].mxu0  ;;  %5627 = vmatprep.mubr.bf16.mxu1 %v1976_v19  ;;  %5656 = vmatpush3.bf16.msra.mxu1 %v6076_v34  ;;  %v1981_v34 = vrot.slane %v7329_v23, 1  ;;  %v6079_v29 = vld [vmem:[#allocation9 + $0x228] sm:$0xff]   ;;  %v1711_v14 = vld [vmem:[#allocation2 + $0x70] sm:$0xfe]  ;;  %v7569_v19 = vld [vmem:[#allocation2 + $0x100] sm:$0xff] }
 0x35f   : > { %v5063_v13 = vpop.f32.mrb[55].mxu0  ;;  %5657 = vmatprep.subr.bf16.mxu1 %v6077_v1  ;;  %v6080_v23 = vld [vmem:[#allocation9 + $0x230] sm:$0xff]   ;;  %v1986_v55 = vrot.slane %v1712_v4, 1  ;;  %v3628_v31 = vshll.u32 %v7569_v19, 16 }
 0x360   : > { %v7552_v21 = vadd.f32 %v5063_v13, %v5062_v32  ;;  %4067 = vmatmul.mubr.bf16.gmra.mrb[156].mxu0 %v7437_v22  ;;  %v1982_v22 = vsel %vm1961_vm7, %v1980_v6, %v1981_v34  ;;  %v7564_v32 = vld [vmem:[#allocation2 + $0xf8] sm:$0x1]  ;;  %v1713_v34 = vld [vmem:[#allocation2 + $0x90] sm:$0xfe] }
 0x361   : > { %4074 = vmatprep.mubr.bf16.mxu0 %v3600_v10  ;;  %v3621_v13 = vshll.u32 %v7564_v32, 16  ;;  %v6081_v6 = vld [vmem:[#allocation9 + $0x238] sm:$0xff]   ;;  %v1989_v4 = vrot.slane %v1713_v34, 1 }
 0x362   : > { %5658 = vmatpush3.bf16.msra.mxu1 %v6077_v1  ;;  %v1983_v1 = vrot.slane %v1711_v14, 1  ;;  %v3630_v14 = vrot.slane %v3628_v31, 1 }
 0x363   : > { %5659 = vmatprep.subr.bf16.mxu1 %v6078_v3  ;;  %v3623_v39 = vrot.slane %v3621_v13, 1  ;;  %v3640_v13 = vshll.u32 %v7402_v50, 16 }
 0x364   : > { %v1985_v17 = vsel %vm1961_vm7, %v1983_v1, %v1984_v27  ;;  %v3633_v1 = vshll.u32 %v7581_v53, 16  ;;  %v1990_v27 = vrot.slane %v7385_v62, 1  ;;  %v1715_v62 = vld [vmem:[#allocation2 + $0xb0] sm:$0xfe] }
 0x365   : > { %5628 = vmatmul.mubr.bf16.gmra.mrb[28].mxu1 %v1979_v46 }
 0x366   : > { %5631 = vmatprep.mubr.bf16.mxu1 %v1982_v22  ;;  %5660 = vmatpush3.bf16.msra.mxu1 %v6078_v3  ;;  %v1991_v31 = vsel %vm1961_vm7, %v1989_v4, %v1990_v27  ;;  %v3635_v34 = vrot.slane %v3633_v1, 1 }
 0x367   : > { %5661 = vmatprep.subr.bf16.mxu1 %v6079_v29 }
 0x368   : > { %4075 = vmatmul.mubr.bf16.gmra.mrb[160].mxu0 %v7455_v16  ;;  %v1987_v16 = vrot.slane %v7363_v38, 1  ;;  %v3624_v38 = vsel %vm1720_vm8, %v7514_v49, %v3623_v39  ;;  %v3638_v39 = vshrl.u32 %v7402_v50, 16 }
 0x369   : > { %4082 = vmatprep.mubr.bf16.mxu0 %v3612_v40 }
 0x36a   : > { %5662 = vmatpush3.bf16.msra.mxu1 %v6079_v29  ;;  %v1988_v46 = vsel %vm1961_vm7, %v1986_v55, %v1987_v16  ;;  %v1714_v29 = vld [vmem:[#allocation2 + $0xa0] sm:$0xfe]  ;;  %v3626_v55 = vshrl.u32 %v7569_v19, 16 }
 0x36b   : > { %v5065_v63 = vpop.f32.mrb[56].mxu0  ;;  %5663 = vmatprep.subr.bf16.mxu1 %v6080_v23  ;;  %v1992_v40 = vrot.slane %v1714_v29, 1 }
 0x36c   : > { %v5066_v10 = vpop.f32.mrb[57].mxu0 }
 0x36d   : > { %v7573_v3 = vadd.f32 %v5066_v10, %v5065_v63  ;;  %v5068_v30 = vpop.f32.mrb[58].mxu0  ;;  %5632 = vmatmul.mubr.bf16.gmra.mrb[32].mxu1 %v1985_v17  ;;  %v7591_v10 = vld [vmem:[#allocation2 + $0x118] sm:$0x1] }
 0x36e   : > { %v5069_v28 = vpop.f32.mrb[59].mxu0  ;;  %5635 = vmatprep.mubr.bf16.mxu1 %v1988_v46  ;;  %5664 = vmatpush3.bf16.msra.mxu1 %v6080_v23  ;;  %v3645_v29 = vshll.u32 %v7591_v10, 16 }
 0x36f   : > { %v7579_v22 = vadd.f32 %v5069_v28, %v5068_v30  ;;  %5665 = vmatprep.subr.bf16.mxu1 %v6081_v6  ;;  %v3631_v30 = vor.u32 %v3630_v14, %v3626_v55  ;;  %v1995_v14 = vrot.slane %v1715_v62, 1  ;;  %v1996_v55 = vrot.slane %v7430_v18, 1 }
 0x370   : > { %4083 = vmatmul.mubr.bf16.gmra.mrb[164].mxu0 %v7473_v0  ;;  %v1993_v0 = vrot.slane %v7412_v2, 1  ;;  %v3642_v2 = vrot.slane %v3640_v13, 1  ;;  %v1999_v13 = vrot.slane %v7448_v61, 1 }
 0x371   : > { %4090 = vmatprep.mubr.bf16.mxu0 %v3624_v38  ;;  %v3636_v38 = vsel %vm1720_vm8, %v3631_v30, %v3635_v34  ;;  %v1718_v34 = vld [vmem:[#allocation2 + $0xe0] sm:$0xfe] }
 0x372   : > { %5666 = vmatpush3.bf16.msra.mxu1 %v6081_v6  ;;  %v1994_v17 = vsel %vm1961_vm7, %v1992_v40, %v1993_v0  ;;  %v1716_v6 = vld [vmem:[#allocation2 + $0xc0] sm:$0xfe]  ;;  %v3643_v1 = vor.u32 %v3642_v2, %v3638_v39  ;;  %v2004_v61 = vrot.slane %v1718_v34, 1  ;;  %v2002_v39 = vrot.slane %v7466_v37, 1 }
 0x373   : > { %v5071_v63 = vpop.f32.mrb[60].mxu0  ;;  %v1998_v40 = vrot.slane %v1716_v6, 1  ;;  %v2005_v6 = vrot.slane %v7484_v51, 1 }
 0x374   : > { %v5072_v23 = vpop.f32.mrb[61].mxu0 }
 0x375   : > { %v7593_v49 = vadd.f32 %v5072_v23, %v5071_v63  ;;  %v5074_v16 = vpop.f32.mrb[62].mxu0  ;;  %5636 = vmatmul.mubr.bf16.gmra.mrb[36].mxu1 %v1991_v31  ;;  %v3647_v63 = vrot.slane %v3645_v29, 1 }
 0x376   : > { %v5075_v28 = vpop.f32.mrb[63].mxu0  ;;  %5639 = vmatprep.mubr.bf16.mxu1 %v1994_v17  ;;  %v1717_v17 = vld [vmem:[#allocation2 + $0xd0] sm:$0xfe] }
 0x377   : > { %v7597_v46 = vadd.f32 %v5075_v28, %v5074_v16  ;;  %v1997_v16 = vsel %vm1961_vm7, %v1995_v14, %v1996_v55  ;;  %v3648_v28 = vsel %vm1720_vm8, %v3643_v1, %v3647_v63  ;;  %v2001_v18 = vrot.slane %v1717_v17, 1  ;;  %v3441_v63 = vld [vmem:[#allocation2 + $0x20] sm:$0xfe] }
 0x378   : > { %4091 = vmatmul.mubr.bf16.gmra.mrb[168].mxu0 %v7491_v24  ;;  %v2000_v24 = vsel %vm1961_vm7, %v1998_v40, %v1999_v13  ;;  %v2006_v40 = vsel %vm1961_vm7, %v2004_v61, %v2005_v6  ;;  %v2008_v13 = vrot.slane %v7502_v7, 1 }
 0x379   : > { %4098 = vmatprep.mubr.bf16.mxu0 %v3636_v38  ;;  %v2003_v14 = vsel %vm1961_vm7, %v2001_v18, %v2002_v39  ;;  %v3443_v18 = vld [vmem:[#allocation2 + $0x40] sm:$0xfe]  ;;  %v3701_v39 = vrot.slane %v7368_v26, 1 }
 0x37a   : > { %v3703_v7 = vrot.slane %v3443_v18, 1  ;;  %v3446_v18 = vld [vmem:[#allocation2 + $0x70] sm:$0xfe] }
 0x37b   : > { %v5077_v4 = vpop.f32.mrb[64].mxu0 }
 0x37c   : > { %v5078_v27 = vpop.f32.mrb[65].mxu0 }
 0x37d   : > { %v7604_v23 = vadd.f32 %v5078_v27, %v5077_v4  ;;  %v5080_v0 = vpop.f32.mrb[66].mxu0  ;;  %5640 = vmatmul.mubr.bf16.gmra.mrb[40].mxu1 %v1997_v16  ;;  %v3697_v27 = vrot.slane %v3441_v63, 1  ;;  %v3698_v16 = vrot.slane %v7351_v41, 1  ;;  %v3704_v41 = vrot.slane %v7390_v48, 1  ;;  %v3444_v63 = vld [vmem:[#allocation2 + $0x50] sm:$0xfe] }
 0x37e   : > { %v5081_v31 = vpop.f32.mrb[67].mxu0  ;;  %5643 = vmatprep.mubr.bf16.mxu1 %v2000_v24  ;;  %v3710_v48 = vrot.slane %v7435_v5, 1  ;;  %v3716_v5 = vrot.slane %v7471_v45, 1  ;;  %v3719_v45 = vrot.slane %v7489_v9, 1 }
 0x37f   : > { %v7609_v30 = vadd.f32 %v5081_v31, %v5080_v0 }
 0x380   : > { %4099 = vmatmul.mubr.bf16.gmra.mrb[172].mxu0 %v7569_v19  ;;  %v1719_v19 = vld [vmem:[#allocation2 + $0xf0] sm:$0xfe] }
 0x381   : > { %4106 = vmatprep.mubr.bf16.mxu0 %v3648_v28  ;;  %v2007_v37 = vrot.slane %v1719_v19, 1  ;;  %v3699_v28 = vsel %vm1961_vm7, %v3697_v27, %v3698_v16 }
 0x383   : > { %v5083_v62 = vpop.f32.mrb[68].mxu0  ;;  %v2009_v24 = vsel %vm1961_vm7, %v2007_v37, %v2008_v13  ;;  %v3445_v37 = vld [vmem:[#allocation2 + $0x60] sm:$0xfe]  ;;  %v3707_v13 = vrot.slane %v7417_v35, 1 }
 0x384   : > { %v5084_v2 = vpop.f32.mrb[69].mxu0  ;;  %v3709_v26 = vrot.slane %v3445_v37, 1  ;;  %v3448_v37 = vld [vmem:[#allocation2 + $0x90] sm:$0xfe] }
 0x385   : > { %v7614_v29 = vadd.f32 %v5084_v2, %v5083_v62  ;;  %v5086_v38 = vpop.f32.mrb[70].mxu0  ;;  %5644 = vmatmul.mubr.bf16.gmra.mrb[44].mxu1 %v2003_v14 }
 0x386   : > { %v5087_v4 = vpop.f32.mrb[71].mxu0  ;;  %5647 = vmatprep.mubr.bf16.mxu1 %v2006_v40  ;;  %v3705_v40 = vsel %vm1961_vm7, %v3703_v7, %v3704_v41 }
 0x387   : > { %v7619_v1 = vadd.f32 %v5087_v4, %v5086_v38 }
 0x388   : > { %4107 = vmatmul.mubr.bf16.gmra.mrb[176].mxu0 %v7402_v50  ;;  %v3442_v50 = vld [vmem:[#allocation2 + $0x30] sm:$0xfe] }
 0x389   : > { %v3700_v62 = vrot.slane %v3442_v50, 1 }
 0x38b   : > { %v5089_v55 = vpop.f32.mrb[72].mxu0  ;;  %v3702_v14 = vsel %vm1961_vm7, %v3700_v62, %v3701_v39  ;;  %v3447_v62 = vld [vmem:[#allocation2 + $0x80] sm:$0xfe]  ;;  %v3713_v39 = vrot.slane %v7453_v43, 1 }
 0x38c   : > { %v5090_v51 = vpop.f32.mrb[73].mxu0  ;;  %v3715_v35 = vrot.slane %v3447_v62, 1 }
 0x38d   : > { %v7623_v0 = vadd.f32 %v5090_v51, %v5089_v55  ;;  %v5092_v31 = vpop.f32.mrb[74].mxu0  ;;  %5648 = vmatmul.mubr.bf16.gmra.mrb[48].mxu1 %v2009_v24  ;;  %v3706_v55 = vrot.slane %v3444_v63, 1 }
 0x38e   : > { %v5093_v17 = vpop.f32.mrb[75].mxu0  ;;  %5667 = vmatprep.mubr.bf16.mxu1 %v3699_v28  ;;  %v3711_v28 = vsel %vm1961_vm7, %v3709_v26, %v3710_v48  ;;  %v3718_v26 = vrot.slane %v3448_v37, 1 }
 0x38f   : > { %v7628_v34 = vadd.f32 %v5093_v17, %v5092_v31  ;;  %v3708_v24 = vsel %vm1961_vm7, %v3706_v55, %v3707_v13  ;;  %v3449_v55 = vld [vmem:[#allocation2 + $0xa0] sm:$0xfe] }
 0x390   : > { %v3721_v13 = vrot.slane %v3449_v55, 1 }
 0x393   : > { %v5095_v61 = vpop.f32.mrb[76].mxu0 }
 0x394   : > { %v5096_v2 = vpop.f32.mrb[77].mxu0 }
 0x395   : > { %v7631_v6 = vadd.f32 %v5096_v2, %v5095_v61  ;;  %v5098_v38 = vpop.f32.mrb[78].mxu0  ;;  %5668 = vmatmul.mubr.bf16.vlgmr.msra.gmra.mrb[20].mxu1 %v3702_v14  ;;  %v3712_v61 = vrot.slane %v3446_v18, 1 }
 0x396   : > { %v5099_v4 = vpop.f32.mrb[79].mxu0  ;;  %5671 = vmatprep.mubr.bf16.mxu1 %v3705_v40  ;;  %v3717_v40 = vsel %vm1961_vm7, %v3715_v35, %v3716_v5  ;;  %v3450_v5 = vld [vmem:[#allocation2 + $0xb0] sm:$0xfe] }
 0x397   : > { %v7636_v19 = vadd.f32 %v5099_v4, %v5098_v38  ;;  %v3714_v14 = vsel %vm1961_vm7, %v3712_v61, %v3713_v39  ;;  %v3720_v61 = vsel %vm1961_vm7, %v3718_v26, %v3719_v45  ;;  %v3725_v26 = vrot.slane %v7520_v58, 1 }
 0x39b   : > { %v5101_v27 = vpop.f32.mrb[80].mxu0 }
 0x39c   : > { %v5102_v51 = vpop.f32.mrb[81].mxu0 }
 0x39d   : > { %v7639_v16 = vadd.f32 %v5102_v51, %v5101_v27  ;;  %v5104_v31 = vpop.f32.mrb[82].mxu0  ;;  %5672 = vmatmul.mubr.bf16.gmra.mrb[24].mxu1 %v3708_v24 }
 0x39e   : > { %v5105_v17 = vpop.f32.mrb[83].mxu0  ;;  %5675 = vmatprep.mubr.bf16.mxu1 %v3711_v28  ;;  %v3722_v28 = vrot.slane %v7507_v57, 1  ;;  %v3451_v57 = vld [vmem:[#allocation2 + $0xc0] sm:$0xfe] }
 0x39f   : > { %v7644_v50 = vadd.f32 %v5105_v17, %v5104_v31 }
 0x3a0   : > { %v3723_v39 = vsel %vm1961_vm7, %v3721_v13, %v3722_v28 }
 0x3a3   : > { %v5107_v7 = vpop.f32.mrb[84].mxu0 }
 0x3a4   : > { %v5108_v2 = vpop.f32.mrb[85].mxu0 }
 0x3a5   : > { %v7647_v41 = vadd.f32 %v5108_v2, %v5107_v7  ;;  %v5110_v38 = vpop.f32.mrb[86].mxu0  ;;  %5676 = vmatmul.mubr.bf16.gmra.mrb[28].mxu1 %v3714_v14  ;;  %v3724_v14 = vrot.slane %v3450_v5, 1 }
 0x3a6   : > { %v5111_v4 = vpop.f32.mrb[87].mxu0  ;;  %5679 = vmatprep.mubr.bf16.mxu1 %v3717_v40  ;;  %v3727_v40 = vrot.slane %v3451_v57, 1 }
 0x3a7   : > { %v7652_v63 = vadd.f32 %v5111_v4, %v5110_v38 }
 0x3a8   : > { %v5195_v27 = vpop.f32.mrb[52].mxu1 }
 0x3a9   : > { %v5196_v43 = vpop.f32.mrb[53].mxu1 }
 0x3aa   : > { %v5197_v51 = vadd.f32 %v5196_v43, %v5195_v27  ;;  %v5198_v48 = vpop.f32.mrb[54].mxu1 }
 0x3ab   : > { %v5113_v31 = vpop.f32.mrb[88].mxu0  ;;  %v5199_v24 = vpop.f32.mrb[55].mxu1 }
 0x3ac   : > { %v5114_v17 = vpop.f32.mrb[89].mxu0  ;;  %v7657_v18 = vadd.f32 %v5197_v51, %v7549_v54  ;;  %v5200_v62 = vadd.f32 %v5199_v24, %v5198_v48  ;;  %v3728_v51 = vrot.slane %v7529_v8, 1  ;;  %v3453_v8 = vld [vmem:[#allocation2 + $0xe0] sm:$0xfe] }
 0x3ad   : > { %v7660_v7 = vadd.f32 %v5114_v17, %v5113_v31  ;;  %v5116_v35 = vpop.f32.mrb[90].mxu0  ;;  %5680 = vmatmul.mubr.bf16.gmra.mrb[32].mxu1 %v3720_v61  ;;  %v3726_v31 = vsel %vm1961_vm7, %v3724_v14, %v3725_v26  ;;  %v3731_v14 = vrot.slane %v7540_v11, 1 }
 0x3ae   : > { %v5117_v2 = vpop.f32.mrb[91].mxu0  ;;  %v7664_v9 = vadd.f32 %v5200_v62, %v7552_v21  ;;  %5683 = vmatprep.mubr.bf16.mxu1 %v3723_v39  ;;  %v3729_v17 = vsel %vm1961_vm7, %v3727_v40, %v3728_v51  ;;  %v3452_v62 = vld [vmem:[#allocation2 + $0xd0] sm:$0xfe] }
 0x3af   : > { %v7666_v38 = vadd.f32 %v5117_v2, %v5116_v35  ;;  %v3730_v35 = vrot.slane %v3452_v62, 1  ;;  %v3733_v2 = vrot.slane %v3453_v8, 1 }
 0x3b0   : > { %v5201_v54 = vpop.f32.mrb[56].mxu1 }
 0x3b1   : > { %v5202_v4 = vpop.f32.mrb[57].mxu1 }
 0x3b2   : > { %v5203_v37 = vadd.f32 %v5202_v4, %v5201_v54  ;;  %v5204_v55 = vpop.f32.mrb[58].mxu1 }
 0x3b3   : > { %v5119_v27 = vpop.f32.mrb[92].mxu0  ;;  %v5205_v43 = vpop.f32.mrb[59].mxu1 }
 0x3b4   : > { %v5120_v13 = vpop.f32.mrb[93].mxu0  ;;  %v7671_v21 = vadd.f32 %v5203_v37, %v7573_v3  ;;  %v5206_v48 = vadd.f32 %v5205_v43, %v5204_v55  ;;  %v3734_v37 = vrot.slane %v7554_v25, 1  ;;  %v3455_v25 = vld [vmem:[#allocation2 + $0x100] sm:$0xfe] }
 0x3b5   : > { %v7674_v45 = vadd.f32 %v5120_v13, %v5119_v27  ;;  %v5122_v24 = vpop.f32.mrb[94].mxu0  ;;  %5684 = vmatmul.mubr.bf16.gmra.mrb[36].mxu1 %v3726_v31  ;;  %v3732_v27 = vsel %vm1961_vm7, %v3730_v35, %v3731_v14  ;;  %v3737_v35 = vrot.slane %v7564_v32, 1 }
 0x3b6   : > { %v5123_v28 = vpop.f32.mrb[95].mxu0  ;;  %v7678_v58 = vadd.f32 %v5206_v48, %v7579_v22  ;;  %5687 = vmatprep.mubr.bf16.mxu1 %v3729_v17  ;;  %v3735_v13 = vsel %vm1961_vm7, %v3733_v2, %v3734_v37  ;;  %v3454_v48 = vld [vmem:[#allocation2 + $0xf0] sm:$0xfe] }
 0x3b7   : > { %v7680_v61 = vadd.f32 %v5123_v28, %v5122_v24  ;;  %v3736_v24 = vrot.slane %v3454_v48, 1  ;;  %v3739_v28 = vrot.slane %v3455_v25, 1 }
 0x3b8   : > { %v5207_v3 = vpop.f32.mrb[60].mxu1 }
 0x3b9   : > { %v5208_v39 = vpop.f32.mrb[61].mxu1  ;;  %v3738_v14 = vsel %vm1961_vm7, %v3736_v24, %v3737_v35 }
 0x3ba   : > { %v5209_v5 = vadd.f32 %v5208_v39, %v5207_v3  ;;  %v5210_v57 = vpop.f32.mrb[62].mxu1 }
 0x3bb   : > { %v5125_v54 = vpop.f32.mrb[96].mxu0  ;;  %v5211_v4 = vpop.f32.mrb[63].mxu1 }
 0x3bc   : > { %v5126_v40 = vpop.f32.mrb[97].mxu0  ;;  %v7685_v22 = vadd.f32 %v5209_v5, %v7593_v49  ;;  %v5212_v55 = vadd.f32 %v5211_v4, %v5210_v57  ;;  %v3740_v5 = vrot.slane %v7581_v53, 1  ;;  %v3456_v57 = vld [vmem:[#allocation2 + $0x110] sm:$0xfe] }
 0x3bd   : > { %v7688_v26 = vadd.f32 %v5126_v40, %v5125_v54  ;;  %v5128_v43 = vpop.f32.mrb[98].mxu0  ;;  %5688 = vmatmul.mubr.bf16.gmra.mrb[40].mxu1 %v3732_v27  ;;  %v3742_v53 = vrot.slane %v3456_v57, 1 }
 0x3be   : > { %v5129_v51 = vpop.f32.mrb[99].mxu0  ;;  %v7692_v11 = vadd.f32 %v5212_v55, %v7597_v46  ;;  %5691 = vmatprep.mubr.bf16.mxu1 %v3735_v13  ;;  %v3741_v37 = vsel %vm1961_vm7, %v3739_v28, %v3740_v5 }
 0x3bf   : > { %v7694_v31 = vadd.f32 %v5129_v51, %v5128_v43 }
 0x3c0   : > { %v5213_v49 = vpop.f32.mrb[64].mxu1 }
 0x3c1   : > { %v5214_v17 = vpop.f32.mrb[65].mxu1 }
 0x3c2   : > { %v5215_v62 = vadd.f32 %v5214_v17, %v5213_v49  ;;  %v5216_v8 = vpop.f32.mrb[66].mxu1 }
 0x3c3   : > { %v5131_v3 = vpop.f32.mrb[100].mxu0  ;;  %v5217_v39 = vpop.f32.mrb[67].mxu1 }
 0x3c4   : > { %v5132_v2 = vpop.f32.mrb[101].mxu0  ;;  %v7699_v46 = vadd.f32 %v5215_v62, %v7604_v23  ;;  %v5218_v54 = vadd.f32 %v5217_v39, %v5216_v8  ;;  %v3743_v23 = vrot.slane %v7591_v10, 1 }
 0x3c5   : > { %v7702_v4 = vadd.f32 %v5132_v2, %v5131_v3  ;;  %v5134_v40 = vpop.f32.mrb[102].mxu0  ;;  %5692 = vmatmul.mubr.bf16.gmra.mrb[44].mxu1 %v3738_v14 }
 0x3c6   : > { %v5135_v55 = vpop.f32.mrb[103].mxu0  ;;  %v7706_v32 = vadd.f32 %v5218_v54, %v7609_v30  ;;  %5695 = vmatprep.mubr.bf16.mxu1 %v3741_v37  ;;  %v3744_v49 = vsel %vm1961_vm7, %v3742_v53, %v3743_v23 }
 0x3c7   : > { %v7708_v27 = vadd.f32 %v5135_v55, %v5134_v40 }
 0x3c8   : > { %v5219_v43 = vpop.f32.mrb[68].mxu1 }
 0x3c9   : > { %v5220_v13 = vpop.f32.mrb[69].mxu1 }
 0x3ca   : > { %v5221_v51 = vadd.f32 %v5220_v13, %v5219_v43  ;;  %v5222_v48 = vpop.f32.mrb[70].mxu1 }
 0x3cb   : > { %v5137_v25 = vpop.f32.mrb[104].mxu0  ;;  %v5223_v24 = vpop.f32.mrb[71].mxu1 }
 0x3cc   : > { %v5138_v17 = vpop.f32.mrb[105].mxu0  ;;  %v7713_v28 = vadd.f32 %v5221_v51, %v7614_v29  ;;  %v5224_v30 = vadd.f32 %v5223_v24, %v5222_v48 }
 0x3cd   : > { %v7715_v62 = vadd.f32 %v5138_v17, %v5137_v25  ;;  %v5140_v8 = vpop.f32.mrb[106].mxu0  ;;  %5696 = vmatmul.mubr.bf16.gmra.mrb[48].mxu1 %v3744_v49 }
 0x3ce   : > { %v5141_v3 = vpop.f32.mrb[107].mxu0  ;;  %v7718_v10 = vadd.f32 %v5224_v30, %v7619_v1 }
 0x3cf   : > { %v7720_v35 = vadd.f32 %v5141_v3, %v5140_v8 }
 0x3d0   : > { %v5225_v39 = vpop.f32.mrb[72].mxu1 }
 0x3d1   : > { %v5226_v2 = vpop.f32.mrb[73].mxu1 }
 0x3d2   : > { %v5227_v5 = vadd.f32 %v5226_v2, %v5225_v39  ;;  %v5228_v57 = vpop.f32.mrb[74].mxu1 }
 0x3d3   : > { %v5143_v54 = vpop.f32.mrb[108].mxu0  ;;  %v5229_v14 = vpop.f32.mrb[75].mxu1 }
 0x3d4   : > { %v5144_v40 = vpop.f32.mrb[109].mxu0  ;;  %v7723_v29 = vadd.f32 %v5227_v5, %v7623_v0  ;;  %v5230_v37 = vadd.f32 %v5229_v14, %v5228_v57 }
 0x3d5   : > { %v7725_v55 = vadd.f32 %v5144_v40, %v5143_v54  ;;  %v5146_v53 = vpop.f32.mrb[110].mxu0 }
 0x3d6   : > { %v5147_v23 = vpop.f32.mrb[111].mxu0  ;;  %v7728_v1 = vadd.f32 %v5230_v37, %v7628_v34 }
 0x3d7   : > { %v7730_v43 = vadd.f32 %v5147_v23, %v5146_v53 }
 0x3d8   : > { %v5231_v13 = vpop.f32.mrb[76].mxu1 }
 0x3d9   : > { %v5232_v51 = vpop.f32.mrb[77].mxu1 }
 0x3da   : > { %v5233_v48 = vadd.f32 %v5232_v51, %v5231_v13  ;;  %v5234_v25 = vpop.f32.mrb[78].mxu1 }
 0x3db   : > { %v5149_v49 = vpop.f32.mrb[112].mxu0  ;;  %v5235_v24 = vpop.f32.mrb[79].mxu1 }
 0x3dc   : > { %v5150_v17 = vpop.f32.mrb[113].mxu0  ;;  %v7733_v0 = vadd.f32 %v5233_v48, %v7631_v6  ;;  %v5236_v30 = vadd.f32 %v5235_v24, %v5234_v25 }
 0x3dd   : > { %v7735_v8 = vadd.f32 %v5150_v17, %v5149_v49  ;;  %v5152_v3 = vpop.f32.mrb[114].mxu0 }
 0x3de   : > { %v5153_v39 = vpop.f32.mrb[115].mxu0  ;;  %v7738_v34 = vadd.f32 %v5236_v30, %v7636_v19 }
 0x3df   : > { %v7740_v2 = vadd.f32 %v5153_v39, %v5152_v3 }
 0x3e0   : > { %v5237_v5 = vpop.f32.mrb[80].mxu1 }
 0x3e1   : > { %v5238_v57 = vpop.f32.mrb[81].mxu1 }
 0x3e2   : > { %v5239_v54 = vadd.f32 %v5238_v57, %v5237_v5  ;;  %v5240_v14 = vpop.f32.mrb[82].mxu1 }
 0x3e3   : > { %v5331_v40 = vpop.f32.mrb[116].mxu0  ;;  %v5241_v37 = vpop.f32.mrb[83].mxu1 }
 0x3e4   : > { %v5332_v53 = vpop.f32.mrb[117].mxu0  ;;  %v7743_v6 = vadd.f32 %v5239_v54, %v7639_v16  ;;  %v5242_v23 = vadd.f32 %v5241_v37, %v5240_v14 }
 0x3e5   : > { %v5333_v13 = vadd.f32 %v5332_v53, %v5331_v40  ;;  %v5334_v51 = vpop.f32.mrb[118].mxu0 }
 0x3e6   : > { %v5335_v48 = vpop.f32.mrb[119].mxu0  ;;  %v7746_v25 = vadd.f32 %v5242_v23, %v7644_v50 }
 0x3e7   : > { %v5336_v19 = vadd.f32 %v5335_v48, %v5334_v51  ;;  %v7749_v49 = vadd.f32 %v7657_v18, %v5333_v13 }
 0x3e8   : > { %v5243_v24 = vpop.f32.mrb[84].mxu1 }
 0x3e9   : > { %v7752_v17 = vadd.f32 %v7664_v9, %v5336_v19  ;;  %v5244_v30 = vpop.f32.mrb[85].mxu1 }
 0x3ea   : > { %v5245_v3 = vadd.f32 %v5244_v30, %v5243_v24  ;;  %v5246_v39 = vpop.f32.mrb[86].mxu1 }
 0x3eb   : > { %v5337_v16 = vpop.f32.mrb[120].mxu0  ;;  %v5247_v5 = vpop.f32.mrb[87].mxu1 }
 0x3ec   : > { %v5338_v57 = vpop.f32.mrb[121].mxu0  ;;  %v7755_v54 = vadd.f32 %v5245_v3, %v7647_v41  ;;  %v5248_v14 = vadd.f32 %v5247_v5, %v5246_v39 }
 0x3ed   : > { %v5339_v50 = vadd.f32 %v5338_v57, %v5337_v16  ;;  %v5340_v40 = vpop.f32.mrb[122].mxu0 }
 0x3ee   : > { %v5341_v37 = vpop.f32.mrb[123].mxu0  ;;  %v7758_v18 = vadd.f32 %v5248_v14, %v7652_v63 }
 0x3ef   : > { %v5342_v53 = vadd.f32 %v5341_v37, %v5340_v40  ;;  %v7761_v9 = vadd.f32 %v7671_v21, %v5339_v50 }
 0x3f0   : > { %v5249_v23 = vpop.f32.mrb[88].mxu1 }
 0x3f1   : > { %v7764_v13 = vadd.f32 %v7678_v58, %v5342_v53  ;;  %v5250_v51 = vpop.f32.mrb[89].mxu1 }
 0x3f2   : > { %v5251_v48 = vadd.f32 %v5250_v51, %v5249_v23  ;;  %v5252_v19 = vpop.f32.mrb[90].mxu1 }
 0x3f3   : > { %v5343_v41 = vpop.f32.mrb[124].mxu0  ;;  %v5253_v24 = vpop.f32.mrb[91].mxu1 }
 0x3f4   : > { %v5344_v30 = vpop.f32.mrb[125].mxu0  ;;  %v7767_v3 = vadd.f32 %v5251_v48, %v7660_v7  ;;  %v5254_v39 = vadd.f32 %v5253_v24, %v5252_v19 }
 0x3f5   : > { %v5345_v63 = vadd.f32 %v5344_v30, %v5343_v41  ;;  %v5346_v16 = vpop.f32.mrb[126].mxu0 }
 0x3f6   : > { %v5347_v5 = vpop.f32.mrb[127].mxu0  ;;  %v7770_v21 = vadd.f32 %v5254_v39, %v7666_v38 }
 0x3f7   : > { %v5348_v57 = vadd.f32 %v5347_v5, %v5346_v16  ;;  %v7773_v58 = vadd.f32 %v7685_v22, %v5345_v63 }
 0x3f8   : > { %v5255_v14 = vpop.f32.mrb[92].mxu1 }
 0x3f9   : > { %v7776_v50 = vadd.f32 %v7692_v11, %v5348_v57  ;;  %v5256_v40 = vpop.f32.mrb[93].mxu1 }
 0x3fa   : > { %v5257_v37 = vadd.f32 %v5256_v40, %v5255_v14  ;;  %v5258_v53 = vpop.f32.mrb[94].mxu1 }
 0x3fb   : > { %v5349_v7 = vpop.f32.mrb[128].mxu0  ;;  %v5259_v23 = vpop.f32.mrb[95].mxu1 }
 0x3fc   : > { %v5350_v51 = vpop.f32.mrb[129].mxu0  ;;  %v7779_v48 = vadd.f32 %v5257_v37, %v7674_v45  ;;  %v5260_v19 = vadd.f32 %v5259_v23, %v5258_v53 }
 0x3fd   : > { %v5351_v38 = vadd.f32 %v5350_v51, %v5349_v7  ;;  %v5352_v41 = vpop.f32.mrb[130].mxu0 }
 0x3fe   : > { %v5353_v24 = vpop.f32.mrb[131].mxu0  ;;  %v7782_v22 = vadd.f32 %v5260_v19, %v7680_v61 }
 0x3ff   : > { %v5354_v30 = vadd.f32 %v5353_v24, %v5352_v41  ;;  %v7785_v11 = vadd.f32 %v7699_v46, %v5351_v38 }
 0x400   : > { %v5261_v39 = vpop.f32.mrb[96].mxu1 }
 0x401   : > { %v7788_v63 = vadd.f32 %v7706_v32, %v5354_v30  ;;  %v5262_v16 = vpop.f32.mrb[97].mxu1 }
 0x402   : > { %v5263_v5 = vadd.f32 %v5262_v16, %v5261_v39  ;;  %v5264_v57 = vpop.f32.mrb[98].mxu1 }
 0x403   : > { %v5355_v45 = vpop.f32.mrb[132].mxu0  ;;  %v5265_v14 = vpop.f32.mrb[99].mxu1 }
 0x404   : > { %v5356_v40 = vpop.f32.mrb[133].mxu0  ;;  %v7791_v37 = vadd.f32 %v5263_v5, %v7688_v26  ;;  %v5266_v53 = vadd.f32 %v5265_v14, %v5264_v57 }
 0x405   : > { %v5357_v61 = vadd.f32 %v5356_v40, %v5355_v45  ;;  %v5358_v7 = vpop.f32.mrb[134].mxu0 }
 0x406   : > { %v5359_v23 = vpop.f32.mrb[135].mxu0  ;;  %v7794_v46 = vadd.f32 %v5266_v53, %v7694_v31 }
 0x407   : > { %v5360_v51 = vadd.f32 %v5359_v23, %v5358_v7  ;;  %v7797_v32 = vadd.f32 %v7713_v28, %v5357_v61 }
 0x408   : > { %v5267_v19 = vpop.f32.mrb[100].mxu1 }
 0x409   : > { %v7800_v38 = vadd.f32 %v7718_v10, %v5360_v51  ;;  %v5268_v41 = vpop.f32.mrb[101].mxu1 }
 0x40a   : > { %v5269_v24 = vadd.f32 %v5268_v41, %v5267_v19  ;;  %v5270_v30 = vpop.f32.mrb[102].mxu1 }
 0x40b   : > { %v5361_v26 = vpop.f32.mrb[136].mxu0  ;;  %v5271_v39 = vpop.f32.mrb[103].mxu1 }
 0x40c   : > { %v5362_v16 = vpop.f32.mrb[137].mxu0  ;;  %v7803_v5 = vadd.f32 %v5269_v24, %v7702_v4  ;;  %v5272_v57 = vadd.f32 %v5271_v39, %v5270_v30 }
 0x40d   : > { %v5363_v31 = vadd.f32 %v5362_v16, %v5361_v26  ;;  %v5364_v45 = vpop.f32.mrb[138].mxu0 }
 0x40e   : > { %v5365_v14 = vpop.f32.mrb[139].mxu0  ;;  %v7806_v28 = vadd.f32 %v5272_v57, %v7708_v27 }
 0x40f   : > { %v5366_v40 = vadd.f32 %v5365_v14, %v5364_v45  ;;  %v7809_v10 = vadd.f32 %v7723_v29, %v5363_v31 }
 0x410   : > { %v5273_v53 = vpop.f32.mrb[104].mxu1 }
 0x411   : > { %v7812_v61 = vadd.f32 %v7728_v1, %v5366_v40  ;;  %v5274_v7 = vpop.f32.mrb[105].mxu1 }
 0x412   : > { %v5275_v23 = vadd.f32 %v5274_v7, %v5273_v53  ;;  %v5276_v51 = vpop.f32.mrb[106].mxu1 }
 0x413   : > { %v5367_v4 = vpop.f32.mrb[140].mxu0  ;;  %v5277_v19 = vpop.f32.mrb[107].mxu1 }
 0x414   : > { %v5368_v41 = vpop.f32.mrb[141].mxu0  ;;  %v7815_v24 = vadd.f32 %v5275_v23, %v7715_v62  ;;  %v5278_v30 = vadd.f32 %v5277_v19, %v5276_v51 }
 0x415   : > { %v5369_v27 = vadd.f32 %v5368_v41, %v5367_v4  ;;  %v5370_v26 = vpop.f32.mrb[142].mxu0 }
 0x416   : > { %v5371_v39 = vpop.f32.mrb[143].mxu0  ;;  %v7818_v29 = vadd.f32 %v5278_v30, %v7720_v35 }
 0x417   : > { %v5372_v16 = vadd.f32 %v5371_v39, %v5370_v26  ;;  %v7821_v1 = vadd.f32 %v7733_v0, %v5369_v27 }
 0x418   : > { %v5279_v57 = vpop.f32.mrb[108].mxu1 }
 0x419   : > { %v7824_v31 = vadd.f32 %v7738_v34, %v5372_v16  ;;  %v5280_v45 = vpop.f32.mrb[109].mxu1 }
 0x41a   : > { %v5281_v14 = vadd.f32 %v5280_v45, %v5279_v57  ;;  %v5282_v40 = vpop.f32.mrb[110].mxu1 }
 0x41b   : > { %v5373_v62 = vpop.f32.mrb[144].mxu0  ;;  %v5283_v53 = vpop.f32.mrb[111].mxu1 }
 0x41c   : > { %v5374_v7 = vpop.f32.mrb[145].mxu0  ;;  %v7827_v23 = vadd.f32 %v5281_v14, %v7725_v55  ;;  %v5284_v51 = vadd.f32 %v5283_v53, %v5282_v40 }
 0x41d   : > { %v5375_v35 = vadd.f32 %v5374_v7, %v5373_v62  ;;  %v5376_v4 = vpop.f32.mrb[146].mxu0 }
 0x41e   : > { %v5377_v19 = vpop.f32.mrb[147].mxu0  ;;  %v7830_v0 = vadd.f32 %v5284_v51, %v7730_v43 }
 0x41f   : > { %v5378_v41 = vadd.f32 %v5377_v19, %v5376_v4  ;;  %v7833_v34 = vadd.f32 %v7743_v6, %v5375_v35 }
 0x420   : > { %v5285_v30 = vpop.f32.mrb[112].mxu1 }
 0x421   : > { %v7836_v27 = vadd.f32 %v7746_v25, %v5378_v41  ;;  %v5286_v26 = vpop.f32.mrb[113].mxu1 }
 0x422   : > { %v5287_v39 = vadd.f32 %v5286_v26, %v5285_v30  ;;  %v5288_v16 = vpop.f32.mrb[114].mxu1 }
 0x423   : > { %v5379_v55 = vpop.f32.mrb[148].mxu0  ;;  %v5289_v57 = vpop.f32.mrb[115].mxu1 }
 0x424   : > { %v5380_v45 = vpop.f32.mrb[149].mxu0  ;;  %v7839_v14 = vadd.f32 %v5287_v39, %v7735_v8  ;;  %v5290_v40 = vadd.f32 %v5289_v57, %v5288_v16 }
 0x425   : > { %v5381_v43 = vadd.f32 %v5380_v45, %v5379_v55  ;;  %v5382_v62 = vpop.f32.mrb[150].mxu0 }
 0x426   : > { %v5383_v53 = vpop.f32.mrb[151].mxu0  ;;  %v5805_v6 = vadd.f32 %v5290_v40, %v7740_v2 }
 0x427   : > { %v5384_v7 = vadd.f32 %v5383_v53, %v5382_v62  ;;  %v7843_v51 = vadd.f32 %v7755_v54, %v5381_v43 }
 0x429   : > { %v7846_v25 = vadd.f32 %v7758_v18, %v5384_v7 }
 0x42b   : > { %v5385_v35 = vpop.f32.mrb[152].mxu0 }
 0x42c   : > { %v5386_v4 = vpop.f32.mrb[153].mxu0 }
 0x42d   : > { %v5387_v19 = vadd.f32 %v5386_v4, %v5385_v35  ;;  %v5388_v41 = vpop.f32.mrb[154].mxu0 }
 0x42e   : > { %v5389_v30 = vpop.f32.mrb[155].mxu0 }
 0x42f   : > { %v5390_v8 = vadd.f32 %v5389_v30, %v5388_v41  ;;  %v7849_v26 = vadd.f32 %v7767_v3, %v5387_v19 }
 0x431   : > { %v7852_v39 = vadd.f32 %v7770_v21, %v5390_v8 }
 0x433   : > { %v5391_v2 = vpop.f32.mrb[156].mxu0 }
 0x434   : > { %v5392_v16 = vpop.f32.mrb[157].mxu0 }
 0x435   : > { %v5393_v55 = vadd.f32 %v5392_v16, %v5391_v2  ;;  %v5394_v54 = vpop.f32.mrb[158].mxu0 }
 0x436   : > { %v5395_v57 = vpop.f32.mrb[159].mxu0 }
 0x437   : > { %v5396_v45 = vadd.f32 %v5395_v57, %v5394_v54  ;;  %v7855_v18 = vadd.f32 %v7779_v48, %v5393_v55 }
 0x439   : > { %v7858_v40 = vadd.f32 %v7782_v22, %v5396_v45 }
 0x43b   : > { %v5397_v43 = vpop.f32.mrb[160].mxu0 }
 0x43c   : > { %v5398_v62 = vpop.f32.mrb[161].mxu0 }
 0x43d   : > { %v5399_v53 = vadd.f32 %v5398_v62, %v5397_v43  ;;  %v5400_v3 = vpop.f32.mrb[162].mxu0 }
 0x43e   : > { %v5401_v7 = vpop.f32.mrb[163].mxu0 }
 0x43f   : > { %v5402_v35 = vadd.f32 %v5401_v7, %v5400_v3  ;;  %v7861_v21 = vadd.f32 %v7791_v37, %v5399_v53 }
 0x441   : > { %v7864_v4 = vadd.f32 %v7794_v46, %v5402_v35 }
 0x443   : > { %v5403_v19 = vpop.f32.mrb[164].mxu0 }
 0x444   : > { %v5404_v41 = vpop.f32.mrb[165].mxu0 }
 0x445   : > { %v5405_v30 = vadd.f32 %v5404_v41, %v5403_v19  ;;  %v5406_v48 = vpop.f32.mrb[166].mxu0 }
 0x446   : > { %v5407_v8 = vpop.f32.mrb[167].mxu0 }
 0x447   : > { %v5408_v2 = vadd.f32 %v5407_v8, %v5406_v48  ;;  %v7867_v22 = vadd.f32 %v7803_v5, %v5405_v30 }
 0x449   : > { %v7870_v16 = vadd.f32 %v7806_v28, %v5408_v2 }
 0x44b   : > { %v5409_v55 = vpop.f32.mrb[168].mxu0 }
 0x44c   : > { %v5410_v54 = vpop.f32.mrb[169].mxu0 }
 0x44d   : > { %v5411_v57 = vadd.f32 %v5410_v54, %v5409_v55  ;;  %v5412_v37 = vpop.f32.mrb[170].mxu0 }
 0x44e   : > { %v5413_v45 = vpop.f32.mrb[171].mxu0 }
 0x44f   : > { %v5414_v43 = vadd.f32 %v5413_v45, %v5412_v37  ;;  %v7873_v46 = vadd.f32 %v7815_v24, %v5411_v57 }
 0x451   : > { %v7876_v62 = vadd.f32 %v7818_v29, %v5414_v43 }
 0x453   : > { %v5415_v53 = vpop.f32.mrb[172].mxu0 }
 0x454   : > { %v5416_v3 = vpop.f32.mrb[173].mxu0 }
 0x455   : > { %v5417_v7 = vadd.f32 %v5416_v3, %v5415_v53  ;;  %v5418_v5 = vpop.f32.mrb[174].mxu0 }
 0x456   : > { %v5419_v35 = vpop.f32.mrb[175].mxu0 }
 0x457   : > { %v5420_v19 = vadd.f32 %v5419_v35, %v5418_v5  ;;  %v7879_v28 = vadd.f32 %v7827_v23, %v5417_v7  ;;  %v7892_v23 = vld [vmem:[%s8103_s6] ss:$0 sm:$0xff]  ;;  %v1129_v5 = vadd.f32 %v6853_v33, %v6618_v59 }
 0x459   : > { %v7882_v41 = vadd.f32 %v7830_v0, %v5420_v19  ;;  %v1127_v19 = vadd.f32 %v6833_v42, %v6608_v47 }
 0x45b   : > { %v5421_v30 = vpop.f32.mrb[176].mxu0 }
 0x45c   : > { %v5422_v48 = vpop.f32.mrb[177].mxu0 }
 0x45d   : > { %v5423_v8 = vadd.f32 %v5422_v48, %v5421_v30  ;;  %v5424_v24 = vpop.f32.mrb[178].mxu0 }
 0x45e   : > { %v5425_v2 = vpop.f32.mrb[179].mxu0 }
 0x45f   : > { %v5426_v55 = vadd.f32 %v5425_v2, %v5424_v24  ;;  %v7885_v29 = vadd.f32 %v7839_v14, %v5423_v8 }
 0x461   : > { %v7887_v54 = vadd.f32 %v5805_v6, %v5426_v55 }
 0x468   : > { %v5669_v57 = vpop.f32.mrb[20].mxu1 }
 0x469   : > { %v5717_v0 = vadd.f32 %v7761_v9, %v5669_v57  ;;  %v4149_v37 = vpop.f32.mrb[21].mxu1 }
 0x46a   : > { %v5720_v45 = vadd.f32 %v7749_v49, %v4149_v37  ;;  %v5670_v43 = vpop.f32.mrb[22].mxu1 }
 0x46b   : > { %v4317_v53 = vadd.f32 %v5717_v0, %v7892_v23  ;;  %v5723_v14 = vadd.f32 %v7764_v13, %v5670_v43  ;;  %v4152_v3 = vpop.f32.mrb[23].mxu1  ;;  %v1130_v13 = vadd.f32 %v6856_v36, %v6620_v60 }
 0x46c   : > { %v4315_v6 = vadd.f32 %v5720_v45, %v7892_v23  ;;  %v5726_v7 = vadd.f32 %v7752_v17, %v4152_v3  ;;  %v8241_v17 = vld [vmem:[#allocation45_spill] sm:$0xff]  ;;  %v8242_v3 = vld [vmem:[#allocation22_spill] sm:$0xff] }
 0x46d   : > { %v4349_v35 = vmax.f32 %v4317_v53, 0.0  ;;  %v4318_v9 = vadd.f32 %v5723_v14, %v7892_v23  ;;  %v1128_v24 = vadd.f32 %v8241_v17, %v6606_v44  ;;  %v8249_v17 = vld [vmem:[#allocation47_spill] sm:$0xff] }
 0x46e   : > { %v4347_v49 = vmax.f32 %v4315_v6, 0.0  ;;  %v4316_v30 = vadd.f32 %v5726_v7, %v7892_v23  ;;  %v8243_v6 = vld [vmem:[#allocation50_spill] sm:$0xff] }
 0x46f   : > { %v4381_v48 = vadd.f32 %v4349_v35, %v1129_v5  ;;  %v4350_v8 = vmax.f32 %v4318_v9, 0.0  ;;  %v1133_v7 = vadd.f32 %v8243_v6, %v8242_v3  ;;  %v8244_v5 = vld [vmem:[#allocation20_spill] sm:$0xff]  ;;  %v8245_v35 = vld [vmem:[#allocation46_spill] sm:$0xff] }
 0x470   : > { %v4379_v2 = vadd.f32 %v4347_v49, %v1127_v19  ;;  %v4348_v59 = vmax.f32 %v4316_v30, 0.0  ;;  %v5673_v33 = vpop.f32.mrb[24].mxu1  ;;  %v8246_v49 = vld [vmem:[#allocation23_spill] sm:$0xff]  ;;  %v8250_v3 = vld [vmem:[#allocation26_spill] sm:$0xff] }
 0x471   : > { %v4382_v55 = vadd.f32 %v4350_v8, %v1130_v13  ;;  %v5729_v57 = vadd.f32 %v7785_v11, %v5673_v33  ;;  %v4165_v0 = vpop.f32.mrb[25].mxu1  ;;  %v8248_v8 = vld [vmem:[#allocation19_spill] sm:$0xff]  ;;  %v8251_v6 = vld [vmem:[#allocation54_spill] sm:$0xff] }
 0x472   : > { %v4380_v47 = vadd.f32 %v4348_v59, %v1128_v24  ;;  %v5732_v42 = vadd.f32 %v7773_v58, %v4165_v0  ;;  %v5674_v37 = vpop.f32.mrb[26].mxu1  ;;  %v1132_v24 = vadd.f32 %v8249_v17, %v8248_v8 }
 0x473   : > { %v4904_v45 = vpack.c.bf16 %v4382_v55, %v4381_v48  ;;  %v4321_v60 = vadd.f32 %v5729_v57, %v7892_v23  ;;  %v5735_v36 = vadd.f32 %v7788_v63, %v5674_v37  ;;  %v4168_v43 = vpop.f32.mrb[27].mxu1  ;;  %v1131_v63 = vadd.f32 %v8245_v35, %v8244_v5 }
 0x474   : > { %v4899_v53 = vpack.c.bf16 %v4380_v47, %v4379_v2  ;;  %v4319_v44 = vadd.f32 %v5732_v42, %v7892_v23  ;;  %v5738_v14 = vadd.f32 %v7776_v50, %v4168_v43  ;;  %v8247_v50 = vld [vmem:[#allocation51_spill] sm:$0xff] }
 0x475   : > { %4976 = vst [vmem:[%s7919_s7 + $0x8] sm:$0xff] %v4904_v45   ;;  %v4353_v58 = vmax.f32 %v4321_v60, 0.0  ;;  %v4322_v11 = vadd.f32 %v5735_v36, %v7892_v23  ;;  %v1134_v30 = vadd.f32 %v8247_v50, %v8246_v49 }
 0x476   : > { %4900 = vst [vmem:[%s7919_s7] sm:$0xff] %v4899_v53   ;;  %v4351_v9 = vmax.f32 %v4319_v44, 0.0  ;;  %v4320_v19 = vadd.f32 %v5738_v14, %v7892_v23 }
 0x477   : > { %v4385_v13 = vadd.f32 %v4353_v58, %v1133_v7  ;;  %v4354_v48 = vmax.f32 %v4322_v11, 0.0  ;;  %v8253_v11 = vld [vmem:[#allocation48_spill] sm:$0xff] }
 0x478   : > { %v4383_v2 = vadd.f32 %v4351_v9, %v1131_v63  ;;  %v4352_v59 = vmax.f32 %v4320_v19, 0.0  ;;  %v5677_v33 = vpop.f32.mrb[28].mxu1  ;;  %v8254_v63 = vld [vmem:[#allocation27_spill] sm:$0xff] }
 0x479   : > { %v4386_v55 = vadd.f32 %v4354_v48, %v1134_v30  ;;  %v5741_v57 = vadd.f32 %v7809_v10, %v5677_v33  ;;  %v4181_v0 = vpop.f32.mrb[29].mxu1  ;;  %v1137_v10 = vadd.f32 %v8251_v6, %v8250_v3  ;;  %v8255_v9 = vld [vmem:[#allocation55_spill] sm:$0xff]  ;;  %v8257_v30 = vld [vmem:[#allocation49_spill] sm:$0xff]  ;;  %v8261_v3 = vld [vmem:[#allocation52_spill] sm:$0xff] }
 0x47a   : > { %v4384_v47 = vadd.f32 %v4352_v59, %v1132_v24  ;;  %v5744_v42 = vadd.f32 %v7797_v32, %v4181_v0  ;;  %v5678_v37 = vpop.f32.mrb[30].mxu1  ;;  %v8252_v32 = vld [vmem:[#allocation24_spill] sm:$0xff]  ;;  %v1138_v19 = vadd.f32 %v8255_v9, %v8254_v63 }
 0x47b   : > { %v4914_v45 = vpack.c.bf16 %v4386_v55, %v4385_v13  ;;  %v4325_v60 = vadd.f32 %v5741_v57, %v7892_v23  ;;  %v5747_v36 = vadd.f32 %v7812_v61, %v5678_v37  ;;  %v4184_v43 = vpop.f32.mrb[31].mxu1  ;;  %v1135_v5 = vadd.f32 %v8253_v11, %v8252_v32 }
 0x47c   : > { %v4909_v53 = vpack.c.bf16 %v4384_v47, %v4383_v2  ;;  %v4323_v44 = vadd.f32 %v5744_v42, %v7892_v23  ;;  %v5750_v14 = vadd.f32 %v7800_v38, %v4184_v43  ;;  %v8256_v38 = vld [vmem:[#allocation21_spill] sm:$0xff]  ;;  %v8258_v43 = vld [vmem:[#allocation30_spill] sm:$0xff] }
 0x47d   : > { %4978 = vst [vmem:[%s7919_s7 + $0x18] sm:$0xff] %v4914_v45   ;;  %v4357_v7 = vmax.f32 %v4325_v60, 0.0  ;;  %v4326_v58 = vadd.f32 %v5747_v36, %v7892_v23  ;;  %v1136_v13 = vadd.f32 %v8257_v30, %v8256_v38 }
 0x47e   : > { %4977 = vst [vmem:[%s7919_s7 + $0x10] sm:$0xff] %v4909_v53   ;;  %v4355_v35 = vmax.f32 %v4323_v44, 0.0  ;;  %v4324_v61 = vadd.f32 %v5750_v14, %v7892_v23  ;;  %v8259_v53 = vld [vmem:[#allocation58_spill] sm:$0xff] }
 0x47f   : > { %v4389_v49 = vadd.f32 %v4357_v7, %v1137_v10  ;;  %v4358_v50 = vmax.f32 %v4326_v58, 0.0  ;;  %v8262_v7 = vld [vmem:[#allocation31_spill] sm:$0xff] }
 0x480   : > { %v4387_v48 = vadd.f32 %v4355_v35, %v1135_v5  ;;  %v4356_v8 = vmax.f32 %v4324_v61, 0.0  ;;  %v5681_v17 = vpop.f32.mrb[32].mxu1  ;;  %v8263_v58 = vld [vmem:[#allocation59_spill] sm:$0xff]  ;;  %v8265_v35 = vld [vmem:[#allocation53_spill] sm:$0xff] }
 0x481   : > { %v4390_v24 = vadd.f32 %v4358_v50, %v1138_v19  ;;  %v5753_v2 = vadd.f32 %v7833_v34, %v5681_v17  ;;  %v4197_v59 = vpop.f32.mrb[33].mxu1  ;;  %v1141_v34 = vadd.f32 %v8259_v53, %v8258_v43  ;;  %v1142_v32 = vadd.f32 %v8263_v58, %v8262_v7  ;;  %v8270_v53 = vld [vmem:[#allocation57_spill] sm:$0xff] }
 0x482   : > { %v4388_v33 = vadd.f32 %v4356_v8, %v1136_v13  ;;  %v5756_v55 = vadd.f32 %v7821_v1, %v4197_v59  ;;  %v5682_v57 = vpop.f32.mrb[34].mxu1  ;;  %v8260_v1 = vld [vmem:[#allocation28_spill] sm:$0xff] }
 0x483   : > { %v4924_v0 = vpack.c.bf16 %v4390_v24, %v4389_v49  ;;  %v4329_v47 = vadd.f32 %v5753_v2, %v7892_v23  ;;  %v5759_v42 = vadd.f32 %v7836_v27, %v5682_v57  ;;  %v4200_v37 = vpop.f32.mrb[35].mxu1  ;;  %v1139_v6 = vadd.f32 %v8261_v3, %v8260_v1  ;;  %v8266_v57 = vld [vmem:[#allocation34_spill] sm:$0xff] }
 0x484   : > { %v4919_v45 = vpack.c.bf16 %v4388_v33, %v4387_v48  ;;  %v4327_v60 = vadd.f32 %v5756_v55, %v7892_v23  ;;  %v5762_v36 = vadd.f32 %v7824_v31, %v4200_v37  ;;  %v8264_v31 = vld [vmem:[#allocation25_spill] sm:$0xff] }
 0x485   : > { %4980 = vst [vmem:[%s7919_s7 + $0x28] sm:$0xff] %v4924_v0   ;;  %v4361_v44 = vmax.f32 %v4329_v47, 0.0  ;;  %v4330_v14 = vadd.f32 %v5759_v42, %v7892_v23  ;;  %v1140_v61 = vadd.f32 %v8265_v35, %v8264_v31  ;;  %v8268_v42 = vld [vmem:[#allocation56_spill] sm:$0xff] }
 0x486   : > { %4979 = vst [vmem:[%s7919_s7 + $0x20] sm:$0xff] %v4919_v45   ;;  %v4359_v10 = vmax.f32 %v4327_v60, 0.0  ;;  %v4328_v27 = vadd.f32 %v5762_v36, %v7892_v23  ;;  %v1146_v60 = vadd.f32 %v7037_v15, %v6685_v56 }
 0x487   : > { %v4393_v11 = vadd.f32 %v4361_v44, %v1141_v34  ;;  %v4362_v5 = vmax.f32 %v4330_v14, 0.0 }
 0x488   : > { %v4391_v63 = vadd.f32 %v4359_v10, %v1139_v6  ;;  %v4360_v9 = vmax.f32 %v4328_v27, 0.0  ;;  %v5685_v19 = vpop.f32.mrb[36].mxu1 }
 0x489   : > { %v4394_v49 = vadd.f32 %v4362_v5, %v1142_v32  ;;  %v5765_v50 = vadd.f32 %v7849_v26, %v5685_v19  ;;  %v4213_v38 = vpop.f32.mrb[37].mxu1  ;;  %v1145_v26 = vadd.f32 %v7002_v52, %v8266_v57 }
 0x48a   : > { %v4392_v30 = vadd.f32 %v4360_v9, %v1140_v61  ;;  %v5768_v13 = vadd.f32 %v7843_v51, %v4213_v38  ;;  %v5686_v48 = vpop.f32.mrb[38].mxu1  ;;  %v8267_v51 = vld [vmem:[#allocation32_spill] sm:$0xff] }
 0x48b   : > { %v4934_v8 = vpack.c.bf16 %v4394_v49, %v4393_v11  ;;  %v4333_v17 = vadd.f32 %v5765_v50, %v7892_v23  ;;  %v5771_v24 = vadd.f32 %v7852_v39, %v5686_v48  ;;  %v4216_v2 = vpop.f32.mrb[39].mxu1  ;;  %v1143_v37 = vadd.f32 %v8268_v42, %v8267_v51  ;;  %v8273_v49 = vld [vmem:[#allocation37_spill] sm:$0xff]  ;;  %v8274_v50 = vld [vmem:[#allocation64_spill] sm:$0xff] }
 0x48c   : > { %v4929_v59 = vpack.c.bf16 %v4392_v30, %v4391_v63  ;;  %v4331_v33 = vadd.f32 %v5768_v13, %v7892_v23  ;;  %v5774_v55 = vadd.f32 %v7846_v25, %v4216_v2  ;;  %v8269_v25 = vld [vmem:[#allocation29_spill] sm:$0xff]  ;;  %v8272_v63 = vld [vmem:[#allocation60_spill] sm:$0xff]  ;;  %v1150_v38 = vadd.f32 %v8274_v50, %v8273_v49 }
 0x48d   : > { %4982 = vst [vmem:[%s7919_s7 + $0x38] sm:$0xff] %v4934_v8   ;;  %v4365_v0 = vmax.f32 %v4333_v17, 0.0  ;;  %v4334_v47 = vadd.f32 %v5771_v24, %v7892_v23  ;;  %v1144_v34 = vadd.f32 %v8270_v53, %v8269_v25  ;;  %v8276_v48 = vld [vmem:[#allocation61_spill] sm:$0xff]  ;;  %v8280_v25 = vld [vmem:[#allocation62_spill] sm:$0xff] }
 0x48e   : > { %4981 = vst [vmem:[%s7919_s7 + $0x30] sm:$0xff] %v4929_v59   ;;  %v4363_v45 = vmax.f32 %v4331_v33, 0.0  ;;  %v4332_v39 = vadd.f32 %v5774_v55, %v7892_v23 }
 0x48f   : > { %v4397_v36 = vadd.f32 %v4365_v0, %v1145_v26  ;;  %v4366_v43 = vmax.f32 %v4334_v47, 0.0 }
 0x490   : > { %v4395_v52 = vadd.f32 %v4363_v45, %v1143_v37  ;;  %v4364_v44 = vmax.f32 %v4332_v39, 0.0  ;;  %v5689_v14 = vpop.f32.mrb[40].mxu1  ;;  %v8277_v39 = vld [vmem:[#allocation40_spill] sm:$0xff] }
 0x491   : > { %v4398_v1 = vadd.f32 %v4366_v43, %v1146_v60  ;;  %v5777_v3 = vadd.f32 %v7861_v21, %v5689_v14  ;;  %v4229_v6 = vpop.f32.mrb[41].mxu1  ;;  %v1149_v21 = vadd.f32 %v7073_v20, %v6699_v12  ;;  %v8278_v60 = vld [vmem:[#allocation66_spill] sm:$0xff] }
 0x492   : > { %v4396_v10 = vadd.f32 %v4364_v44, %v1144_v34  ;;  %v5780_v27 = vadd.f32 %v7855_v18, %v4229_v6  ;;  %v5690_v7 = vpop.f32.mrb[42].mxu1  ;;  %v8271_v18 = vld [vmem:[#allocation35_spill] sm:$0xff]  ;;  %v8282_v44 = vld [vmem:[#allocation68_spill] sm:$0xff] }
 0x493   : > { %v4944_v58 = vpack.c.bf16 %v4398_v1, %v4397_v36  ;;  %v4337_v56 = vadd.f32 %v5777_v3, %v7892_v23  ;;  %v5783_v15 = vadd.f32 %v7864_v4, %v5690_v7  ;;  %v4232_v32 = vpop.f32.mrb[43].mxu1  ;;  %v1147_v9 = vadd.f32 %v8272_v63, %v8271_v18  ;;  %v8284_v6 = vld [vmem:[#allocation63_spill] sm:$0xff] }
 0x494   : > { %v4939_v11 = vpack.c.bf16 %v4396_v10, %v4395_v52  ;;  %v4335_v5 = vadd.f32 %v5780_v27, %v7892_v23  ;;  %v5786_v31 = vadd.f32 %v7858_v40, %v4232_v32  ;;  %v8275_v40 = vld [vmem:[#allocation33_spill] sm:$0xff] }
 0x495   : > { %4984 = vst [vmem:[%s7919_s7 + $0x48] sm:$0xff] %v4944_v58   ;;  %v4369_v35 = vmax.f32 %v4337_v56, 0.0  ;;  %v4338_v61 = vadd.f32 %v5783_v15, %v7892_v23  ;;  %v1148_v8 = vadd.f32 %v8276_v48, %v8275_v40  ;;  %v8281_v52 = vld [vmem:[#allocation41_spill] sm:$0xff]  ;;  %v8290_v48 = vld [vmem:[#allocation44_spill] sm:$0xff] }
 0x496   : > { %4983 = vst [vmem:[%s7919_s7 + $0x40] sm:$0xff] %v4939_v11   ;;  %v4367_v19 = vmax.f32 %v4335_v5, 0.0  ;;  %v4336_v4 = vadd.f32 %v5786_v31, %v7892_v23  ;;  %v1154_v14 = vadd.f32 %v8282_v44, %v8281_v52 }
 0x497   : > { %v4401_v30 = vadd.f32 %v4369_v35, %v1149_v21  ;;  %v4370_v13 = vmax.f32 %v4338_v61, 0.0 }
 0x498   : > { %v4399_v12 = vadd.f32 %v4367_v19, %v1147_v9  ;;  %v4368_v20 = vmax.f32 %v4336_v4, 0.0  ;;  %v5693_v17 = vpop.f32.mrb[44].mxu1  ;;  %v8286_v4 = vld [vmem:[#allocation43_spill] sm:$0xff] }
 0x499   : > { %v4402_v24 = vadd.f32 %v4370_v13, %v1150_v38  ;;  %v5789_v2 = vadd.f32 %v7873_v46, %v5693_v17  ;;  %v4245_v59 = vpop.f32.mrb[45].mxu1  ;;  %v1153_v46 = vadd.f32 %v8278_v60, %v8277_v39  ;;  %v8288_v38 = vld [vmem:[#allocation42_spill] sm:$0xff]  ;;  %v8292_v17 = vld [vmem:[#allocation39_spill] sm:$0xff] }
 0x49a   : > { %v4400_v33 = vadd.f32 %v4368_v20, %v1148_v8  ;;  %v5792_v55 = vadd.f32 %v7867_v22, %v4245_v59  ;;  %v5694_v57 = vpop.f32.mrb[46].mxu1  ;;  %v8279_v22 = vld [vmem:[#allocation38_spill] sm:$0xff] }
 0x49b   : > { %v4954_v26 = vpack.c.bf16 %v4402_v24, %v4401_v30  ;;  %v4341_v0 = vadd.f32 %v5789_v2, %v7892_v23  ;;  %v5795_v47 = vadd.f32 %v7876_v62, %v5694_v57  ;;  %v4248_v51 = vpop.f32.mrb[47].mxu1  ;;  %v1151_v53 = vadd.f32 %v8280_v25, %v8279_v22  ;;  %v8289_v30 = vld [vmem:[#allocation65_spill] sm:$0xff]  ;;  %v8291_v8 = vld [vmem:[#allocation70_spill] sm:$0xff]  ;;  %v8293_v24 = vld [vmem:[#allocation67_spill] sm:$0xff] }
 0x49c   : > { %v4949_v42 = vpack.c.bf16 %v4400_v33, %v4399_v12  ;;  %v4339_v37 = vadd.f32 %v5792_v55, %v7892_v23  ;;  %v5798_v45 = vadd.f32 %v7870_v16, %v4248_v51  ;;  %v8283_v16 = vld [vmem:[#allocation36_spill] sm:$0xff]  ;;  %v1155_v13 = vadd.f32 %v8289_v30, %v8288_v38 }
 0x49d   : > { %4986 = vst [vmem:[%s7919_s7 + $0x58] sm:$0xff] %v4954_v26   ;;  %v4373_v36 = vmax.f32 %v4341_v0, 0.0  ;;  %v4342_v43 = vadd.f32 %v5795_v47, %v7892_v23  ;;  %v1152_v10 = vadd.f32 %v8284_v6, %v8283_v16  ;;  %v1156_v2 = vadd.f32 %v8293_v24, %v8292_v17 }
 0x49e   : > { %4985 = vst [vmem:[%s7919_s7 + $0x50] sm:$0xff] %v4949_v42   ;;  %v4371_v34 = vmax.f32 %v4339_v37, 0.0  ;;  %v4340_v62 = vadd.f32 %v5798_v45, %v7892_v23 }
 0x49f   : > { %v4405_v1 = vadd.f32 %v4373_v36, %v1153_v46  ;;  %v4374_v3 = vmax.f32 %v4342_v43, 0.0 }
 0x4a0   : > { %v4403_v27 = vadd.f32 %v4371_v34, %v1151_v53  ;;  %v4372_v7 = vmax.f32 %v4340_v62, 0.0  ;;  %v5697_v58 = vpop.f32.mrb[48].mxu1 }
 0x4a1   : > { %v4406_v56 = vadd.f32 %v4374_v3, %v1154_v14  ;;  %v5801_v15 = vadd.f32 %v7885_v29, %v5697_v58  ;;  %v4261_v32 = vpop.f32.mrb[49].mxu1  ;;  %v8287_v29 = vld [vmem:[#allocation69_spill] sm:$0xff] }
 0x4a2   : > { %v4404_v11 = vadd.f32 %v4372_v7, %v1152_v10  ;;  %v5804_v5 = vadd.f32 %v7879_v28, %v4261_v32  ;;  %v5698_v31 = vpop.f32.mrb[50].mxu1  ;;  %v1157_v49 = vadd.f32 %v8287_v29, %v8286_v4 }
 0x4a3   : > { %v4964_v21 = vpack.c.bf16 %v4406_v56, %v4405_v1  ;;  %v4345_v35 = vadd.f32 %v5801_v15, %v7892_v23  ;;  %v5807_v61 = vadd.f32 %v7887_v54, %v5698_v31  ;;  %v4264_v18 = vpop.f32.mrb[51].mxu1 }
 0x4a4   : > { %v4959_v63 = vpack.c.bf16 %v4404_v11, %v4403_v27  ;;  %v4343_v9 = vadd.f32 %v5804_v5, %v7892_v23  ;;  %v5810_v19 = vadd.f32 %v7882_v41, %v4264_v18  ;;  %v1158_v41 = vadd.f32 %v8291_v8, %v8290_v48 }
 0x4a5   : > { %4988 = vst [vmem:[%s7919_s7 + $0x68] sm:$0xff] %v4964_v21   ;;  %v4377_v50 = vmax.f32 %v4345_v35, 0.0  ;;  %v4346_v28 = vadd.f32 %v5807_v61, %v7892_v23 }
 0x4a6   : > { %4987 = vst [vmem:[%s7919_s7 + $0x60] sm:$0xff] %v4959_v63   ;;  %v4375_v54 = vmax.f32 %v4343_v9, 0.0  ;;  %v4344_v40 = vadd.f32 %v5810_v19, %v7892_v23 }
 0x4a7   : > { %v4409_v12 = vadd.f32 %v4377_v50, %v1157_v49  ;;  %v4378_v20 = vmax.f32 %v4346_v28, 0.0 }
 0x4a8   : > { %v4407_v59 = vadd.f32 %v4375_v54, %v1155_v13  ;;  %v4376_v33 = vmax.f32 %v4344_v40, 0.0 }
 0x4a9   : > { %v4410_v55 = vadd.f32 %v4378_v20, %v1158_v41 }
 0x4aa   : > { %v4408_v57 = vadd.f32 %v4376_v33, %v1156_v2 }
 0x4ab   : > { %v4974_v26 = vpack.c.bf16 %v4410_v55, %v4409_v12 }
 0x4ac   : > { %v4969_v23 = vpack.c.bf16 %v4408_v57, %v4407_v59 }
 0x4ad   : > { %4990 = vst [vmem:[%s7919_s7 + $0x78] sm:$0xff] %v4974_v26  }
 0x4ae   : > { %4989 = vst [vmem:[%s7919_s7 + $0x70] sm:$0xff] %v4969_v23  }
 0x4af   : > { %6210 = shalt.err (!%p6207_p0)
}
 0x4b0   : > { %s6211_s8 = scalar_lea.hbm %s8044_s17, 2048  ;;  %s6215_s7 = scalar_lea.hbm %s8294_s30, 4096 }
 0x4b1   : > { %p6212_p4 = scmp.ne.s32.totalorder %s8044_s17, %s6211_s8  ;;  %p6216_p12 = scmp.lt.u32.totalorder %s8044_s17, %s8294_s30 }
 0x4b2   : > { %p6217_p1 = scmp.lt.u32.totalorder %s6215_s7, %s6211_s8  ;;  %p6219_p13 = scmp.lt.u32.totalorder %s6211_s8, %s8044_s17 }
 0x4b3   : > { %p6213_p2 = pnand %p6212_p4, %p6499_p10 }
 0x4b4   : > { %p6218_p11 = por %p6217_p1, %p6216_p12 }
 0x4b5   : > { %p6214_p8 = pneg %p6213_p2 }
 0x4b6   : > { %p6220_p6 = por %p6219_p13, %p6218_p11 }
 0x4b8   : > { %p6221_p3 = pnand %p6220_p6, %p6214_p8 }
 0x4ba   : > { %6224 = shalt.err (!%p6221_p3)
}
 0x4bb   : > { %s6297_s22 = smov 64   ;;  %s6298_s12 = smov 4  }
 0x4bc   : > { %5892 = dma.vmem_to_hbm [thread:$0]  (%p6499_p10), %s8046_s15, 2048, %s8044_s17, %s4572_s19, %s6297_s22, %s6297_s22, %s6298_s12  }
 0x4bd PF: > { %s8295_s9 = sld [smem:[#allocation16_spill]]  ;;  %s8296_s11 = sld [smem:[#allocation18_spill]] }
 0x4be   : > { %p8298_p7 = scmp.ge.s32.totalorder %s6287_s29, 2 }
 0x4c3   : > { %s4603_s13 = sand.u32 1, %s8295_s9   ;;  %p8297_p5 = scmp.ne.s32.totalorder %s8296_s11, 0 }
 0x4c4   : > { %s4604_s23 = scalar_lea.sflag [#allocation5], %s4603_s13 }
 0x4c5   : > { %p5909_p9 = pnand %p8298_p7, %p8297_p5 }
 0x4c7   : > { %6262 = dma.done.wait (!%p5909_p9), %s4604_s23, 2048  }
 0x4c8   : > { %6264 = vsyncadd (!%p5909_p9), %s4604_s23, 4294965248  ;;  %s25_s29 = sadd.s32 1, %s6287_s29   ;;  %s8299_s24 = smov %s6271_s25 }
 0x4c9   : > { %p22_p0 = scmp.ge.s32.totalorder %s25_s29, 4   ;;  %s8300_s25 = smov %s6275_s26 }
 0x4ca   : > { %s8301_s26 = smov %s6515_s10  ;;  %s8302_s27 = smov %s6283_s28 }
 0x4cb   : > { %s8303_s28 = smov %s8305_s16  ;;  %24 = sbr.rel (!%p22_p0) target bundleno = 10 (0xa), region = 109 }
 0x4d2   :  { %4609 = vsyncpa [#allocation4], 1 }
 0x4d3   :  { %4611 = vsyncpa [#allocation4 + $0x1], 1 }
 0x4d4   :  { %4612 = vsyncpa [#allocation7], 1 }
 0x4d5   :  { %4613 = vsyncpa [#allocation10], 1 }
 0x4d6   :  { %4614 = vsyncpa [#allocation5], 1 }
 0x4d7   :  { %4616 = vsyncpa [#allocation5 + $0x1], 1 }

</bundles_post_ra>
